<compile_context>
chip_gen: v6e
topology: v6e:2x2x1
jax: 0.10.0
libtpu: 0.0.40
codegen_flags: <defaults>
</compile_context>

<pallas_src>
import functools

import jax
import jax.numpy as jnp
from jax.experimental import pallas as pl
from jax.experimental.pallas import tpu as pltpu

BN_EPS = 1e-5
LANE = 128
SUBLANE = 8


def _round_up(x, m):
    return (x + m - 1) // m * m


# ---------------------------------------------------------------------------
# Fused Pallas kernels: MXU matmul (bf16 in / f32 accumulate) + epilogue
# ---------------------------------------------------------------------------
def _matmul_bn_relu_kernel(a_ref, w_ref, g_ref, b_ref, o_ref, *, m_true):
    # Full conv output for this 128-channel block stays resident in VMEM.
    y = jnp.dot(a_ref[...], w_ref[...], preferred_element_type=jnp.float32)
    # Batch statistics over the true M rows.  Padded rows of A are all-zero
    # and there is no bias, so they contribute nothing to either sum.
    inv_m = jnp.float32(1.0 / m_true)
    mean = jnp.sum(y, axis=0, keepdims=True) * inv_m
    ex2 = jnp.sum(y * y, axis=0, keepdims=True) * inv_m
    var = jnp.maximum(ex2 - mean * mean, 0.0)        # biased var (train mode)
    scale = g_ref[...] * jax.lax.rsqrt(var + BN_EPS)
    shift = b_ref[...] - mean * scale
    o_ref[...] = jnp.maximum(y * scale + shift, 0.0)


def _matmul_bias_tanh_kernel(a_ref, w_ref, b_ref, o_ref):
    y = jnp.dot(a_ref[...], w_ref[...], preferred_element_type=jnp.float32)
    o_ref[...] = jnp.tanh(y + b_ref[...])


def _fused_matmul(patches, w_p, vec_args, kernel_fn):
    """patches: (M, K) f32.  w_p: (Kp, Np) bf16 pre-padded.  vec_args: (1, Np) f32."""
    M, K = patches.shape
    Kp, Np = w_p.shape
    Mp = _round_up(max(M, SUBLANE), SUBLANE)
    a_p = jnp.pad(patches.astype(jnp.bfloat16), ((0, Mp - M), (0, Kp - K)))

    n_blocks = Np // LANE
    out = pl.pallas_call(
        kernel_fn,
        out_shape=jax.ShapeDtypeStruct((Mp, Np), jnp.float32),
        grid=(n_blocks,),
        in_specs=[
            pl.BlockSpec((Mp, Kp), lambda j: (0, 0)),
            pl.BlockSpec((Kp, LANE), lambda j: (0, j)),
        ] + [pl.BlockSpec((1, LANE), lambda j: (0, j)) for _ in vec_args],
        out_specs=pl.BlockSpec((Mp, LANE), lambda j: (0, j)),
        compiler_params=pltpu.CompilerParams(
            dimension_semantics=("parallel",),
            vmem_limit_bytes=32 * 1024 * 1024),
    )(a_p, w_p, *vec_args)
    return out[:M]


# ---------------------------------------------------------------------------
# Conv / deconv layers built on the fused kernels (im2col glue stays in XLA)
# ---------------------------------------------------------------------------
def _im2col(x, kh, kw, stride, padding):
    B, H, W, C = x.shape
    xp = jnp.pad(x, ((0, 0), (padding, padding), (padding, padding), (0, 0)))
    OH = (H + 2 * padding - kh) // stride + 1
    OW = (W + 2 * padding - kw) // stride + 1
    cols = []
    for i in range(kh):
        for j in range(kw):
            cols.append(
                xp[:, i:i + stride * OH:stride, j:j + stride * OW:stride, :])
    patches = jnp.concatenate(cols, axis=-1).reshape(B * OH * OW, kh * kw * C)
    return patches, OH, OW


def conv_bn_relu(x, p, kh, kw, cout, stride, padding):
    patches, OH, OW = _im2col(x, kh, kw, stride, padding)
    M = patches.shape[0]
    kern = functools.partial(_matmul_bn_relu_kernel, m_true=M)
    y = _fused_matmul(patches, p["w"], (p["gamma"], p["beta"]), kern)
    return y[:, :cout].reshape(x.shape[0], OH, OW, cout)


def _dilate_for_transpose(x, stride, k, padding):
    # ConvTranspose2d(k, stride, padding) == stride-1 conv over the
    # zero-dilated input, re-padded with k - 1 - padding.
    B, H, W, C = x.shape
    Hd = (H - 1) * stride + 1
    Wd = (W - 1) * stride + 1
    xd = jnp.zeros((B, Hd, Wd, C), x.dtype).at[:, ::stride, ::stride, :].set(x)
    return xd, k - 1 - padding


def deconv_bn_relu(x, p, k, cout):
    xd, pad = _dilate_for_transpose(x, 2, k, 1)
    return conv_bn_relu(xd, p, k, k, cout, 1, pad)


def deconv_bias_tanh(x, p, k, cout):
    xd, pad = _dilate_for_transpose(x, 2, k, 1)
    patches, OH, OW = _im2col(xd, k, k, 1, pad)
    y = _fused_matmul(patches, p["w"], (p["bias"],), _matmul_bias_tanh_kernel)
    return y[:, :cout].reshape(x.shape[0], OH, OW, cout)


# ---------------------------------------------------------------------------
# Model forward (Generator_Residual)
# ---------------------------------------------------------------------------
def g_block(x, p, dim):
    x = conv_bn_relu(x, p["c1"], 4, 4, 2 * dim, 2, 1)   # k4 s2 p1
    x = conv_bn_relu(x, p["c2"], 3, 3, 4 * dim, 1, 1)   # k3 s1 p1
    x = conv_bn_relu(x, p["c3"], 3, 3, 4 * dim, 1, 1)   # k3 s1 p1
    x = deconv_bn_relu(x, p["d4"], 4, 2 * dim)          # k4 s2 p1 (transpose)
    return x


def generator_residual_forward(params, src_nchw, tgt_nchw, *, dim=32, out_ch=3):
    src = jnp.transpose(src_nchw, (0, 2, 3, 1)).astype(jnp.float32)
    tgt = jnp.transpose(tgt_nchw, (0, 2, 3, 1)).astype(jnp.float32)

    src_e = conv_bn_relu(src, params["src_encoder"], 4, 4, dim, 2, 1)
    tgt_e = conv_bn_relu(tgt, params["tgt_encoder"], 4, 4, dim, 2, 1)

    x = g_block(tgt_e, params["tgt_g"], dim)
    residual = g_block(jnp.concatenate([src_e, tgt_e], axis=-1),
                       params["residual_g"], dim)
    x = x + residual

    y = deconv_bias_tanh(x, params["out"], 4, out_ch)   # bias + tanh fused
    return jnp.transpose(y, (0, 3, 1, 2))               # back to NCHW


# ---------------------------------------------------------------------------
# Deterministic parameter init (shapes from Generator_Residual.__init__).
# Weights pre-reshaped to (kh*kw*cin, cout), padded to (Kp, Np), cast to bf16.
# ---------------------------------------------------------------------------
def init_params(key, tgt_ch=3, src_ch=1, out_ch=3, dim=32):
    keys = iter(jax.random.split(key, 64))

    def conv_p(kh, kw, cin, cout, *, bn=True, scale=0.05):
        K = kh * kw * cin
        Kp = _round_up(K, LANE)
        Np = _round_up(cout, LANE)
        w = scale * jax.random.normal(next(keys), (K, cout), jnp.float32)
        p = {"w": jnp.pad(w, ((0, Kp - K), (0, Np - cout))).astype(jnp.bfloat16)}
        if bn:
            p["gamma"] = jnp.pad(jnp.ones((cout,), jnp.float32),
                                 (0, Np - cout)).reshape(1, Np)
            p["beta"] = jnp.zeros((1, Np), jnp.float32)
        else:
            b = scale * jax.random.normal(next(keys), (cout,), jnp.float32)
            p["bias"] = jnp.pad(b, (0, Np - cout)).reshape(1, Np)
        return p

    def g_params(cin):
        return {
            "c1": conv_p(4, 4, cin, 2 * dim),
            "c2": conv_p(3, 3, 2 * dim, 4 * dim),
            "c3": conv_p(3, 3, 4 * dim, 4 * dim),
            "d4": conv_p(4, 4, 4 * dim, 2 * dim),
        }

    return {
        "src_encoder": conv_p(4, 4, src_ch, dim),
        "tgt_encoder": conv_p(4, 4, tgt_ch, dim),
        "tgt_g": g_params(dim),
        "residual_g": g_params(2 * dim),
        "out": conv_p(4, 4, 2 * dim, out_ch, bn=False),
    }


if __name__ == "__main__":
    key = jax.random.PRNGKey(0)
    kp, ks, kt = jax.random.split(key, 3)
    params = init_params(kp)

    B, H, W = 2, 16, 16
    src = jax.random.normal(ks, (B, 1, H, W), jnp.float32)   # NCHW like PyTorch
    tgt = jax.random.normal(kt, (B, 3, H, W), jnp.float32)

    fwd = jax.jit(generator_residual_forward)
    out = jax.block_until_ready(fwd(params, src, tgt))
    assert out.shape == (B, 3, H, W), out.shape
    assert bool(jnp.all(jnp.isfinite(out)))
    print("KERNEL_OK")
</pallas_src>

<mosaic_0001>
module attributes {stable_mosaic.version = 11 : i64} {
  func.func @_matmul_bn_relu_kernel(%arg0: i32, %arg1: memref<128x128xbf16, #tpu.memory_space<vmem>>, %arg2: memref<128x128xbf16, #tpu.memory_space<vmem>>, %arg3: memref<1x128xf32, #tpu.memory_space<vmem>>, %arg4: memref<1x128xf32, #tpu.memory_space<vmem>>, %arg5: memref<128x128xf32, #tpu.memory_space<vmem>>) attributes {dimension_semantics = [#tpu.dimension_semantics<parallel>], iteration_bounds = array<i64: 1>, scalar_prefetch = 0 : i64, scratch_operands = 0 : i64, tpu.core_type = #tpu.core_type<tc>, window_params = [{pipeline_mode = #tpu.pipeline_mode<synchronous>, transform_indices = @transform_0, window_bounds = array<i64: 128, 128>}, {transform_indices = @transform_1, window_bounds = array<i64: 128, 128>}, {transform_indices = @transform_2, window_bounds = array<i64: 1, 128>}, {transform_indices = @transform_3, window_bounds = array<i64: 1, 128>}, {transform_indices = @transform_4, window_bounds = array<i64: 128, 128>}]} {
    %c0 = arith.constant 0 : index
    %c0_0 = arith.constant 0 : index
    %0 = vector.load %arg1[%c0, %c0_0] : memref<128x128xbf16, #tpu.memory_space<vmem>>, vector<128x128xbf16>
    %c0_1 = arith.constant 0 : index
    %c0_2 = arith.constant 0 : index
    %1 = vector.load %arg2[%c0_1, %c0_2] : memref<128x128xbf16, #tpu.memory_space<vmem>>, vector<128x128xbf16>
    %cst = arith.constant dense<0.000000e+00> : vector<128x128xf32>
    %2 = tpu.matmul %0, %1, %cst {dimension_numbers = #tpu.dot_dimension_numbers<[1], [0], [0], [1], [0, 0, 1, 1], [], []>} : vector<128x128xbf16>, vector<128x128xbf16>, vector<128x128xf32> -> vector<128x128xf32>
    %cst_3 = arith.constant dense<0.000000e+00> : vector<128xf32>
    %3 = vector.multi_reduction <add>, %2, %cst_3 [0] : vector<128x128xf32> to vector<128xf32>
    %4 = vector.shape_cast %3 : vector<128xf32> to vector<1x128xf32>
    %cst_4 = arith.constant 7.812500e-03 : f32
    %5 = vector.broadcast %cst_4 : f32 to vector<1x128xf32>
    %6 = arith.mulf %4, %5 : vector<1x128xf32>
    %7 = arith.mulf %2, %2 : vector<128x128xf32>
    %cst_5 = arith.constant dense<0.000000e+00> : vector<128xf32>
    %8 = vector.multi_reduction <add>, %7, %cst_5 [0] : vector<128x128xf32> to vector<128xf32>
    %9 = vector.shape_cast %8 : vector<128xf32> to vector<1x128xf32>
    %cst_6 = arith.constant 7.812500e-03 : f32
    %10 = vector.broadcast %cst_6 : f32 to vector<1x128xf32>
    %11 = arith.mulf %9, %10 : vector<1x128xf32>
    %12 = arith.mulf %6, %6 : vector<1x128xf32>
    %13 = arith.subf %11, %12 : vector<1x128xf32>
    %cst_7 = arith.constant 0.000000e+00 : f32
    %14 = vector.broadcast %cst_7 : f32 to vector<1x128xf32>
    %15 = arith.maximumf %13, %14 : vector<1x128xf32>
    %c0_8 = arith.constant 0 : index
    %c0_9 = arith.constant 0 : index
    %16 = vector.load %arg3[%c0_8, %c0_9] : memref<1x128xf32, #tpu.memory_space<vmem>>, vector<1x128xf32>
    %cst_10 = arith.constant 9.99999974E-6 : f32
    %17 = vector.broadcast %cst_10 : f32 to vector<1x128xf32>
    %18 = arith.addf %15, %17 : vector<1x128xf32>
    %19 = math.rsqrt %18 : vector<1x128xf32>
    %20 = arith.mulf %16, %19 : vector<1x128xf32>
    %c0_11 = arith.constant 0 : index
    %c0_12 = arith.constant 0 : index
    %21 = vector.load %arg4[%c0_11, %c0_12] : memref<1x128xf32, #tpu.memory_space<vmem>>, vector<1x128xf32>
    %22 = arith.mulf %6, %20 : vector<1x128xf32>
    %23 = arith.subf %21, %22 : vector<1x128xf32>
    %24 = vector.broadcast %20 : vector<1x128xf32> to vector<128x128xf32>
    %25 = arith.mulf %2, %24 : vector<128x128xf32>
    %26 = vector.broadcast %23 : vector<1x128xf32> to vector<128x128xf32>
    %27 = arith.addf %25, %26 : vector<128x128xf32>
    %cst_13 = arith.constant 0.000000e+00 : f32
    %28 = vector.broadcast %cst_13 : f32 to vector<128x128xf32>
    %29 = arith.maximumf %27, %28 : vector<128x128xf32>
    %c0_14 = arith.constant 0 : index
    %c0_15 = arith.constant 0 : index
    %30 = vector.load %arg5[%c0_14, %c0_15] : memref<128x128xf32, #tpu.memory_space<vmem>>, vector<128x128xf32>
    tpu.vector_store %arg5[%c0_14, %c0_15], %29 {strides = array<i32>} : memref<128x128xf32, #tpu.memory_space<vmem>>, vector<128x128xf32>,
    return
  }
  func.func @transform_0(%arg0: i32) -> (i32, i32) {
    %c0_i32 = arith.constant 0 : i32
    %c0_i32_0 = arith.constant 0 : i32
    %c0_i32_1 = arith.constant 0 : i32
    return %c0_i32, %c0_i32_0 : i32, i32
  }
  func.func @transform_1(%arg0: i32) -> (i32, i32) {
    %c0_i32 = arith.constant 0 : i32
    %c0_i32_0 = arith.constant 0 : i32
    return %c0_i32, %arg0 : i32, i32
  }
  func.func @transform_2(%arg0: i32) -> (i32, i32) {
    %c0_i32 = arith.constant 0 : i32
    %c0_i32_0 = arith.constant 0 : i32
    return %c0_i32, %arg0 : i32, i32
  }
  func.func @transform_3(%arg0: i32) -> (i32, i32) {
    %c0_i32 = arith.constant 0 : i32
    %c0_i32_0 = arith.constant 0 : i32
    return %c0_i32, %arg0 : i32, i32
  }
  func.func @transform_4(%arg0: i32) -> (i32, i32) {
    %c0_i32 = arith.constant 0 : i32
    %c0_i32_0 = arith.constant 0 : i32
    return %c0_i32, %arg0 : i32, i32
  }
}

module attributes {stable_mosaic.version = 11 : i64} {
  func.func @_matmul_bn_relu_kernel(%arg0: i32, %arg1: memref<32x1024xbf16, #tpu.memory_space<vmem>>, %arg2: memref<1024x128xbf16, #tpu.memory_space<vmem>>, %arg3: memref<1x128xf32, #tpu.memory_space<vmem>>, %arg4: memref<1x128xf32, #tpu.memory_space<vmem>>, %arg5: memref<32x128xf32, #tpu.memory_space<vmem>>) attributes {dimension_semantics = [#tpu.dimension_semantics<parallel>], iteration_bounds = array<i64: 1>, scalar_prefetch = 0 : i64, scratch_operands = 0 : i64, tpu.core_type = #tpu.core_type<tc>, window_params = [{pipeline_mode = #tpu.pipeline_mode<synchronous>, transform_indices = @transform_0, window_bounds = array<i64: 32, 1024>}, {transform_indices = @transform_1, window_bounds = array<i64: 1024, 128>}, {transform_indices = @transform_2, window_bounds = array<i64: 1, 128>}, {transform_indices = @transform_3, window_bounds = array<i64: 1, 128>}, {transform_indices = @transform_4, window_bounds = array<i64: 32, 128>}]} {
    %c0 = arith.constant 0 : index
    %c0_0 = arith.constant 0 : index
    %0 = vector.load %arg1[%c0, %c0_0] : memref<32x1024xbf16, #tpu.memory_space<vmem>>, vector<32x1024xbf16>
    %c0_1 = arith.constant 0 : index
    %c0_2 = arith.constant 0 : index
    %1 = vector.load %arg2[%c0_1, %c0_2] : memref<1024x128xbf16, #tpu.memory_space<vmem>>, vector<1024x128xbf16>
    %cst = arith.constant dense<0.000000e+00> : vector<32x128xf32>
    %2 = tpu.matmul %0, %1, %cst {dimension_numbers = #tpu.dot_dimension_numbers<[1], [0], [0], [1], [0, 0, 1, 1], [], []>} : vector<32x1024xbf16>, vector<1024x128xbf16>, vector<32x128xf32> -> vector<32x128xf32>
    %cst_3 = arith.constant dense<0.000000e+00> : vector<128xf32>
    %3 = vector.multi_reduction <add>, %2, %cst_3 [0] : vector<32x128xf32> to vector<128xf32>
    %4 = vector.shape_cast %3 : vector<128xf32> to vector<1x128xf32>
    %cst_4 = arith.constant 3.125000e-02 : f32
    %5 = vector.broadcast %cst_4 : f32 to vector<1x128xf32>
    %6 = arith.mulf %4, %5 : vector<1x128xf32>
    %7 = arith.mulf %2, %2 : vector<32x128xf32>
    %cst_5 = arith.constant dense<0.000000e+00> : vector<128xf32>
    %8 = vector.multi_reduction <add>, %7, %cst_5 [0] : vector<32x128xf32> to vector<128xf32>
    %9 = vector.shape_cast %8 : vector<128xf32> to vector<1x128xf32>
    %cst_6 = arith.constant 3.125000e-02 : f32
    %10 = vector.broadcast %cst_6 : f32 to vector<1x128xf32>
    %11 = arith.mulf %9, %10 : vector<1x128xf32>
    %12 = arith.mulf %6, %6 : vector<1x128xf32>
    %13 = arith.subf %11, %12 : vector<1x128xf32>
    %cst_7 = arith.constant 0.000000e+00 : f32
    %14 = vector.broadcast %cst_7 : f32 to vector<1x128xf32>
    %15 = arith.maximumf %13, %14 : vector<1x128xf32>
    %c0_8 = arith.constant 0 : index
    %c0_9 = arith.constant 0 : index
    %16 = vector.load %arg3[%c0_8, %c0_9] : memref<1x128xf32, #tpu.memory_space<vmem>>, vector<1x128xf32>
    %cst_10 = arith.constant 9.99999974E-6 : f32
    %17 = vector.broadcast %cst_10 : f32 to vector<1x128xf32>
    %18 = arith.addf %15, %17 : vector<1x128xf32>
    %19 = math.rsqrt %18 : vector<1x128xf32>
    %20 = arith.mulf %16, %19 : vector<1x128xf32>
    %c0_11 = arith.constant 0 : index
    %c0_12 = arith.constant 0 : index
    %21 = vector.load %arg4[%c0_11, %c0_12] : memref<1x128xf32, #tpu.memory_space<vmem>>, vector<1x128xf32>
    %22 = arith.mulf %6, %20 : vector<1x128xf32>
    %23 = arith.subf %21, %22 : vector<1x128xf32>
    %24 = vector.broadcast %20 : vector<1x128xf32> to vector<32x128xf32>
    %25 = arith.mulf %2, %24 : vector<32x128xf32>
    %26 = vector.broadcast %23 : vector<1x128xf32> to vector<32x128xf32>
    %27 = arith.addf %25, %26 : vector<32x128xf32>
    %cst_13 = arith.constant 0.000000e+00 : f32
    %28 = vector.broadcast %cst_13 : f32 to vector<32x128xf32>
    %29 = arith.maximumf %27, %28 : vector<32x128xf32>
    %c0_14 = arith.constant 0 : index
    %c0_15 = arith.constant 0 : index
    %30 = vector.load %arg5[%c0_14, %c0_15] : memref<32x128xf32, #tpu.memory_space<vmem>>, vector<32x128xf32>
    tpu.vector_store %arg5[%c0_14, %c0_15], %29 {strides = array<i32>} : memref<32x128xf32, #tpu.memory_space<vmem>>, vector<32x128xf32>,
    return
  }
  func.func @transform_0(%arg0: i32) -> (i32, i32) {
    %c0_i32 = arith.constant 0 : i32
    %c0_i32_0 = arith.constant 0 : i32
    %c0_i32_1 = arith.constant 0 : i32
    return %c0_i32, %c0_i32_0 : i32, i32
  }
  func.func @transform_1(%arg0: i32) -> (i32, i32) {
    %c0_i32 = arith.constant 0 : i32
    %c0_i32_0 = arith.constant 0 : i32
    return %c0_i32, %arg0 : i32, i32
  }
  func.func @transform_2(%arg0: i32) -> (i32, i32) {
    %c0_i32 = arith.constant 0 : i32
    %c0_i32_0 = arith.constant 0 : i32
    return %c0_i32, %arg0 : i32, i32
  }
  func.func @transform_3(%arg0: i32) -> (i32, i32) {
    %c0_i32 = arith.constant 0 : i32
    %c0_i32_0 = arith.constant 0 : i32
    return %c0_i32, %arg0 : i32, i32
  }
  func.func @transform_4(%arg0: i32) -> (i32, i32) {
    %c0_i32 = arith.constant 0 : i32
    %c0_i32_0 = arith.constant 0 : i32
    return %c0_i32, %arg0 : i32, i32
  }
}

module attributes {stable_mosaic.version = 11 : i64} {
  func.func @_matmul_bn_relu_kernel(%arg0: i32, %arg1: memref<32x640xbf16, #tpu.memory_space<vmem>>, %arg2: memref<640x128xbf16, #tpu.memory_space<vmem>>, %arg3: memref<1x128xf32, #tpu.memory_space<vmem>>, %arg4: memref<1x128xf32, #tpu.memory_space<vmem>>, %arg5: memref<32x128xf32, #tpu.memory_space<vmem>>) attributes {dimension_semantics = [#tpu.dimension_semantics<parallel>], iteration_bounds = array<i64: 1>, scalar_prefetch = 0 : i64, scratch_operands = 0 : i64, tpu.core_type = #tpu.core_type<tc>, window_params = [{pipeline_mode = #tpu.pipeline_mode<synchronous>, transform_indices = @transform_0, window_bounds = array<i64: 32, 640>}, {transform_indices = @transform_1, window_bounds = array<i64: 640, 128>}, {transform_indices = @transform_2, window_bounds = array<i64: 1, 128>}, {transform_indices = @transform_3, window_bounds = array<i64: 1, 128>}, {transform_indices = @transform_4, window_bounds = array<i64: 32, 128>}]} {
    %c0 = arith.constant 0 : index
    %c0_0 = arith.constant 0 : index
    %0 = vector.load %arg1[%c0, %c0_0] : memref<32x640xbf16, #tpu.memory_space<vmem>>, vector<32x640xbf16>
    %c0_1 = arith.constant 0 : index
    %c0_2 = arith.constant 0 : index
    %1 = vector.load %arg2[%c0_1, %c0_2] : memref<640x128xbf16, #tpu.memory_space<vmem>>, vector<640x128xbf16>
    %cst = arith.constant dense<0.000000e+00> : vector<32x128xf32>
    %2 = tpu.matmul %0, %1, %cst {dimension_numbers = #tpu.dot_dimension_numbers<[1], [0], [0], [1], [0, 0, 1, 1], [], []>} : vector<32x640xbf16>, vector<640x128xbf16>, vector<32x128xf32> -> vector<32x128xf32>
    %cst_3 = arith.constant dense<0.000000e+00> : vector<128xf32>
    %3 = vector.multi_reduction <add>, %2, %cst_3 [0] : vector<32x128xf32> to vector<128xf32>
    %4 = vector.shape_cast %3 : vector<128xf32> to vector<1x128xf32>
    %cst_4 = arith.constant 3.125000e-02 : f32
    %5 = vector.broadcast %cst_4 : f32 to vector<1x128xf32>
    %6 = arith.mulf %4, %5 : vector<1x128xf32>
    %7 = arith.mulf %2, %2 : vector<32x128xf32>
    %cst_5 = arith.constant dense<0.000000e+00> : vector<128xf32>
    %8 = vector.multi_reduction <add>, %7, %cst_5 [0] : vector<32x128xf32> to vector<128xf32>
    %9 = vector.shape_cast %8 : vector<128xf32> to vector<1x128xf32>
    %cst_6 = arith.constant 3.125000e-02 : f32
    %10 = vector.broadcast %cst_6 : f32 to vector<1x128xf32>
    %11 = arith.mulf %9, %10 : vector<1x128xf32>
    %12 = arith.mulf %6, %6 : vector<1x128xf32>
    %13 = arith.subf %11, %12 : vector<1x128xf32>
    %cst_7 = arith.constant 0.000000e+00 : f32
    %14 = vector.broadcast %cst_7 : f32 to vector<1x128xf32>
    %15 = arith.maximumf %13, %14 : vector<1x128xf32>
    %c0_8 = arith.constant 0 : index
    %c0_9 = arith.constant 0 : index
    %16 = vector.load %arg3[%c0_8, %c0_9] : memref<1x128xf32, #tpu.memory_space<vmem>>, vector<1x128xf32>
    %cst_10 = arith.constant 9.99999974E-6 : f32
    %17 = vector.broadcast %cst_10 : f32 to vector<1x128xf32>
    %18 = arith.addf %15, %17 : vector<1x128xf32>
    %19 = math.rsqrt %18 : vector<1x128xf32>
    %20 = arith.mulf %16, %19 : vector<1x128xf32>
    %c0_11 = arith.constant 0 : index
    %c0_12 = arith.constant 0 : index
    %21 = vector.load %arg4[%c0_11, %c0_12] : memref<1x128xf32, #tpu.memory_space<vmem>>, vector<1x128xf32>
    %22 = arith.mulf %6, %20 : vector<1x128xf32>
    %23 = arith.subf %21, %22 : vector<1x128xf32>
    %24 = vector.broadcast %20 : vector<1x128xf32> to vector<32x128xf32>
    %25 = arith.mulf %2, %24 : vector<32x128xf32>
    %26 = vector.broadcast %23 : vector<1x128xf32> to vector<32x128xf32>
    %27 = arith.addf %25, %26 : vector<32x128xf32>
    %cst_13 = arith.constant 0.000000e+00 : f32
    %28 = vector.broadcast %cst_13 : f32 to vector<32x128xf32>
    %29 = arith.maximumf %27, %28 : vector<32x128xf32>
    %c0_14 = arith.constant 0 : index
    %c0_15 = arith.constant 0 : index
    %30 = vector.load %arg5[%c0_14, %c0_15] : memref<32x128xf32, #tpu.memory_space<vmem>>, vector<32x128xf32>
    tpu.vector_store %arg5[%c0_14, %c0_15], %29 {strides = array<i32>} : memref<32x128xf32, #tpu.memory_space<vmem>>, vector<32x128xf32>,
    return
  }
  func.func @transform_0(%arg0: i32) -> (i32, i32) {
    %c0_i32 = arith.constant 0 : i32
    %c0_i32_0 = arith.constant 0 : i32
    %c0_i32_1 = arith.constant 0 : i32
    return %c0_i32, %c0_i32_0 : i32, i32
  }
  func.func @transform_1(%arg0: i32) -> (i32, i32) {
    %c0_i32 = arith.constant 0 : i32
    %c0_i32_0 = arith.constant 0 : i32
    return %c0_i32, %arg0 : i32, i32
  }
  func.func @transform_2(%arg0: i32) -> (i32, i32) {
    %c0_i32 = arith.constant 0 : i32
    %c0_i32_0 = arith.constant 0 : i32
    return %c0_i32, %arg0 : i32, i32
  }
  func.func @transform_3(%arg0: i32) -> (i32, i32) {
    %c0_i32 = arith.constant 0 : i32
    %c0_i32_0 = arith.constant 0 : i32
    return %c0_i32, %arg0 : i32, i32
  }
  func.func @transform_4(%arg0: i32) -> (i32, i32) {
    %c0_i32 = arith.constant 0 : i32
    %c0_i32_0 = arith.constant 0 : i32
    return %c0_i32, %arg0 : i32, i32
  }
}

module attributes {stable_mosaic.version = 11 : i64} {
  func.func @_matmul_bn_relu_kernel(%arg0: i32, %arg1: memref<32x512xbf16, #tpu.memory_space<vmem>>, %arg2: memref<512x128xbf16, #tpu.memory_space<vmem>>, %arg3: memref<1x128xf32, #tpu.memory_space<vmem>>, %arg4: memref<1x128xf32, #tpu.memory_space<vmem>>, %arg5: memref<32x128xf32, #tpu.memory_space<vmem>>) attributes {dimension_semantics = [#tpu.dimension_semantics<parallel>], iteration_bounds = array<i64: 1>, scalar_prefetch = 0 : i64, scratch_operands = 0 : i64, tpu.core_type = #tpu.core_type<tc>, window_params = [{pipeline_mode = #tpu.pipeline_mode<synchronous>, transform_indices = @transform_0, window_bounds = array<i64: 32, 512>}, {transform_indices = @transform_1, window_bounds = array<i64: 512, 128>}, {transform_indices = @transform_2, window_bounds = array<i64: 1, 128>}, {transform_indices = @transform_3, window_bounds = array<i64: 1, 128>}, {transform_indices = @transform_4, window_bounds = array<i64: 32, 128>}]} {
    %c0 = arith.constant 0 : index
    %c0_0 = arith.constant 0 : index
    %0 = vector.load %arg1[%c0, %c0_0] : memref<32x512xbf16, #tpu.memory_space<vmem>>, vector<32x512xbf16>
    %c0_1 = arith.constant 0 : index
    %c0_2 = arith.constant 0 : index
    %1 = vector.load %arg2[%c0_1, %c0_2] : memref<512x128xbf16, #tpu.memory_space<vmem>>, vector<512x128xbf16>
    %cst = arith.constant dense<0.000000e+00> : vector<32x128xf32>
    %2 = tpu.matmul %0, %1, %cst {dimension_numbers = #tpu.dot_dimension_numbers<[1], [0], [0], [1], [0, 0, 1, 1], [], []>} : vector<32x512xbf16>, vector<512x128xbf16>, vector<32x128xf32> -> vector<32x128xf32>
    %cst_3 = arith.constant dense<0.000000e+00> : vector<128xf32>
    %3 = vector.multi_reduction <add>, %2, %cst_3 [0] : vector<32x128xf32> to vector<128xf32>
    %4 = vector.shape_cast %3 : vector<128xf32> to vector<1x128xf32>
    %cst_4 = arith.constant 3.125000e-02 : f32
    %5 = vector.broadcast %cst_4 : f32 to vector<1x128xf32>
    %6 = arith.mulf %4, %5 : vector<1x128xf32>
    %7 = arith.mulf %2, %2 : vector<32x128xf32>
    %cst_5 = arith.constant dense<0.000000e+00> : vector<128xf32>
    %8 = vector.multi_reduction <add>, %7, %cst_5 [0] : vector<32x128xf32> to vector<128xf32>
    %9 = vector.shape_cast %8 : vector<128xf32> to vector<1x128xf32>
    %cst_6 = arith.constant 3.125000e-02 : f32
    %10 = vector.broadcast %cst_6 : f32 to vector<1x128xf32>
    %11 = arith.mulf %9, %10 : vector<1x128xf32>
    %12 = arith.mulf %6, %6 : vector<1x128xf32>
    %13 = arith.subf %11, %12 : vector<1x128xf32>
    %cst_7 = arith.constant 0.000000e+00 : f32
    %14 = vector.broadcast %cst_7 : f32 to vector<1x128xf32>
    %15 = arith.maximumf %13, %14 : vector<1x128xf32>
    %c0_8 = arith.constant 0 : index
    %c0_9 = arith.constant 0 : index
    %16 = vector.load %arg3[%c0_8, %c0_9] : memref<1x128xf32, #tpu.memory_space<vmem>>, vector<1x128xf32>
    %cst_10 = arith.constant 9.99999974E-6 : f32
    %17 = vector.broadcast %cst_10 : f32 to vector<1x128xf32>
    %18 = arith.addf %15, %17 : vector<1x128xf32>
    %19 = math.rsqrt %18 : vector<1x128xf32>
    %20 = arith.mulf %16, %19 : vector<1x128xf32>
    %c0_11 = arith.constant 0 : index
    %c0_12 = arith.constant 0 : index
    %21 = vector.load %arg4[%c0_11, %c0_12] : memref<1x128xf32, #tpu.memory_space<vmem>>, vector<1x128xf32>
    %22 = arith.mulf %6, %20 : vector<1x128xf32>
    %23 = arith.subf %21, %22 : vector<1x128xf32>
    %24 = vector.broadcast %20 : vector<1x128xf32> to vector<32x128xf32>
    %25 = arith.mulf %2, %24 : vector<32x128xf32>
    %26 = vector.broadcast %23 : vector<1x128xf32> to vector<32x128xf32>
    %27 = arith.addf %25, %26 : vector<32x128xf32>
    %cst_13 = arith.constant 0.000000e+00 : f32
    %28 = vector.broadcast %cst_13 : f32 to vector<32x128xf32>
    %29 = arith.maximumf %27, %28 : vector<32x128xf32>
    %c0_14 = arith.constant 0 : index
    %c0_15 = arith.constant 0 : index
    %30 = vector.load %arg5[%c0_14, %c0_15] : memref<32x128xf32, #tpu.memory_space<vmem>>, vector<32x128xf32>
    tpu.vector_store %arg5[%c0_14, %c0_15], %29 {strides = array<i32>} : memref<32x128xf32, #tpu.memory_space<vmem>>, vector<32x128xf32>,
    return
  }
  func.func @transform_0(%arg0: i32) -> (i32, i32) {
    %c0_i32 = arith.constant 0 : i32
    %c0_i32_0 = arith.constant 0 : i32
    %c0_i32_1 = arith.constant 0 : i32
    return %c0_i32, %c0_i32_0 : i32, i32
  }
  func.func @transform_1(%arg0: i32) -> (i32, i32) {
    %c0_i32 = arith.constant 0 : i32
    %c0_i32_0 = arith.constant 0 : i32
    return %c0_i32, %arg0 : i32, i32
  }
  func.func @transform_2(%arg0: i32) -> (i32, i32) {
    %c0_i32 = arith.constant 0 : i32
    %c0_i32_0 = arith.constant 0 : i32
    return %c0_i32, %arg0 : i32, i32
  }
  func.func @transform_3(%arg0: i32) -> (i32, i32) {
    %c0_i32 = arith.constant 0 : i32
    %c0_i32_0 = arith.constant 0 : i32
    return %c0_i32, %arg0 : i32, i32
  }
  func.func @transform_4(%arg0: i32) -> (i32, i32) {
    %c0_i32 = arith.constant 0 : i32
    %c0_i32_0 = arith.constant 0 : i32
    return %c0_i32, %arg0 : i32, i32
  }
}

module attributes {stable_mosaic.version = 11 : i64} {
  func.func @_matmul_bn_relu_kernel(%arg0: i32, %arg1: memref<32x1152xbf16, #tpu.memory_space<vmem>>, %arg2: memref<1152x128xbf16, #tpu.memory_space<vmem>>, %arg3: memref<1x128xf32, #tpu.memory_space<vmem>>, %arg4: memref<1x128xf32, #tpu.memory_space<vmem>>, %arg5: memref<32x128xf32, #tpu.memory_space<vmem>>) attributes {dimension_semantics = [#tpu.dimension_semantics<parallel>], iteration_bounds = array<i64: 1>, scalar_prefetch = 0 : i64, scratch_operands = 0 : i64, tpu.core_type = #tpu.core_type<tc>, window_params = [{pipeline_mode = #tpu.pipeline_mode<synchronous>, transform_indices = @transform_0, window_bounds = array<i64: 32, 1152>}, {transform_indices = @transform_1, window_bounds = array<i64: 1152, 128>}, {transform_indices = @transform_2, window_bounds = array<i64: 1, 128>}, {transform_indices = @transform_3, window_bounds = array<i64: 1, 128>}, {transform_indices = @transform_4, window_bounds = array<i64: 32, 128>}]} {
    %c0 = arith.constant 0 : index
    %c0_0 = arith.constant 0 : index
    %0 = vector.load %arg1[%c0, %c0_0] : memref<32x1152xbf16, #tpu.memory_space<vmem>>, vector<32x1152xbf16>
    %c0_1 = arith.constant 0 : index
    %c0_2 = arith.constant 0 : index
    %1 = vector.load %arg2[%c0_1, %c0_2] : memref<1152x128xbf16, #tpu.memory_space<vmem>>, vector<1152x128xbf16>
    %cst = arith.constant dense<0.000000e+00> : vector<32x128xf32>
    %2 = tpu.matmul %0, %1, %cst {dimension_numbers = #tpu.dot_dimension_numbers<[1], [0], [0], [1], [0, 0, 1, 1], [], []>} : vector<32x1152xbf16>, vector<1152x128xbf16>, vector<32x128xf32> -> vector<32x128xf32>
    %cst_3 = arith.constant dense<0.000000e+00> : vector<128xf32>
    %3 = vector.multi_reduction <add>, %2, %cst_3 [0] : vector<32x128xf32> to vector<128xf32>
    %4 = vector.shape_cast %3 : vector<128xf32> to vector<1x128xf32>
    %cst_4 = arith.constant 3.125000e-02 : f32
    %5 = vector.broadcast %cst_4 : f32 to vector<1x128xf32>
    %6 = arith.mulf %4, %5 : vector<1x128xf32>
    %7 = arith.mulf %2, %2 : vector<32x128xf32>
    %cst_5 = arith.constant dense<0.000000e+00> : vector<128xf32>
    %8 = vector.multi_reduction <add>, %7, %cst_5 [0] : vector<32x128xf32> to vector<128xf32>
    %9 = vector.shape_cast %8 : vector<128xf32> to vector<1x128xf32>
    %cst_6 = arith.constant 3.125000e-02 : f32
    %10 = vector.broadcast %cst_6 : f32 to vector<1x128xf32>
    %11 = arith.mulf %9, %10 : vector<1x128xf32>
    %12 = arith.mulf %6, %6 : vector<1x128xf32>
    %13 = arith.subf %11, %12 : vector<1x128xf32>
    %cst_7 = arith.constant 0.000000e+00 : f32
    %14 = vector.broadcast %cst_7 : f32 to vector<1x128xf32>
    %15 = arith.maximumf %13, %14 : vector<1x128xf32>
    %c0_8 = arith.constant 0 : index
    %c0_9 = arith.constant 0 : index
    %16 = vector.load %arg3[%c0_8, %c0_9] : memref<1x128xf32, #tpu.memory_space<vmem>>, vector<1x128xf32>
    %cst_10 = arith.constant 9.99999974E-6 : f32
    %17 = vector.broadcast %cst_10 : f32 to vector<1x128xf32>
    %18 = arith.addf %15, %17 : vector<1x128xf32>
    %19 = math.rsqrt %18 : vector<1x128xf32>
    %20 = arith.mulf %16, %19 : vector<1x128xf32>
    %c0_11 = arith.constant 0 : index
    %c0_12 = arith.constant 0 : index
    %21 = vector.load %arg4[%c0_11, %c0_12] : memref<1x128xf32, #tpu.memory_space<vmem>>, vector<1x128xf32>
    %22 = arith.mulf %6, %20 : vector<1x128xf32>
    %23 = arith.subf %21, %22 : vector<1x128xf32>
    %24 = vector.broadcast %20 : vector<1x128xf32> to vector<32x128xf32>
    %25 = arith.mulf %2, %24 : vector<32x128xf32>
    %26 = vector.broadcast %23 : vector<1x128xf32> to vector<32x128xf32>
    %27 = arith.addf %25, %26 : vector<32x128xf32>
    %cst_13 = arith.constant 0.000000e+00 : f32
    %28 = vector.broadcast %cst_13 : f32 to vector<32x128xf32>
    %29 = arith.maximumf %27, %28 : vector<32x128xf32>
    %c0_14 = arith.constant 0 : index
    %c0_15 = arith.constant 0 : index
    %30 = vector.load %arg5[%c0_14, %c0_15] : memref<32x128xf32, #tpu.memory_space<vmem>>, vector<32x128xf32>
    tpu.vector_store %arg5[%c0_14, %c0_15], %29 {strides = array<i32>} : memref<32x128xf32, #tpu.memory_space<vmem>>, vector<32x128xf32>,
    return
  }
  func.func @transform_0(%arg0: i32) -> (i32, i32) {
    %c0_i32 = arith.constant 0 : i32
    %c0_i32_0 = arith.constant 0 : i32
    %c0_i32_1 = arith.constant 0 : i32
    return %c0_i32, %c0_i32_0 : i32, i32
  }
  func.func @transform_1(%arg0: i32) -> (i32, i32) {
    %c0_i32 = arith.constant 0 : i32
    %c0_i32_0 = arith.constant 0 : i32
    return %c0_i32, %arg0 : i32, i32
  }
  func.func @transform_2(%arg0: i32) -> (i32, i32) {
    %c0_i32 = arith.constant 0 : i32
    %c0_i32_0 = arith.constant 0 : i32
    return %c0_i32, %arg0 : i32, i32
  }
  func.func @transform_3(%arg0: i32) -> (i32, i32) {
    %c0_i32 = arith.constant 0 : i32
    %c0_i32_0 = arith.constant 0 : i32
    return %c0_i32, %arg0 : i32, i32
  }
  func.func @transform_4(%arg0: i32) -> (i32, i32) {
    %c0_i32 = arith.constant 0 : i32
    %c0_i32_0 = arith.constant 0 : i32
    return %c0_i32, %arg0 : i32, i32
  }
}

module attributes {stable_mosaic.version = 11 : i64} {
  func.func @_matmul_bn_relu_kernel(%arg0: i32, %arg1: memref<128x2048xbf16, #tpu.memory_space<vmem>>, %arg2: memref<2048x128xbf16, #tpu.memory_space<vmem>>, %arg3: memref<1x128xf32, #tpu.memory_space<vmem>>, %arg4: memref<1x128xf32, #tpu.memory_space<vmem>>, %arg5: memref<128x128xf32, #tpu.memory_space<vmem>>) attributes {dimension_semantics = [#tpu.dimension_semantics<parallel>], iteration_bounds = array<i64: 1>, scalar_prefetch = 0 : i64, scratch_operands = 0 : i64, tpu.core_type = #tpu.core_type<tc>, window_params = [{pipeline_mode = #tpu.pipeline_mode<synchronous>, transform_indices = @transform_0, window_bounds = array<i64: 128, 2048>}, {transform_indices = @transform_1, window_bounds = array<i64: 2048, 128>}, {transform_indices = @transform_2, window_bounds = array<i64: 1, 128>}, {transform_indices = @transform_3, window_bounds = array<i64: 1, 128>}, {transform_indices = @transform_4, window_bounds = array<i64: 128, 128>}]} {
    %c0 = arith.constant 0 : index
    %c0_0 = arith.constant 0 : index
    %0 = vector.load %arg1[%c0, %c0_0] : memref<128x2048xbf16, #tpu.memory_space<vmem>>, vector<128x2048xbf16>
    %c0_1 = arith.constant 0 : index
    %c0_2 = arith.constant 0 : index
    %1 = vector.load %arg2[%c0_1, %c0_2] : memref<2048x128xbf16, #tpu.memory_space<vmem>>, vector<2048x128xbf16>
    %cst = arith.constant dense<0.000000e+00> : vector<128x128xf32>
    %2 = tpu.matmul %0, %1, %cst {dimension_numbers = #tpu.dot_dimension_numbers<[1], [0], [0], [1], [0, 0, 1, 1], [], []>} : vector<128x2048xbf16>, vector<2048x128xbf16>, vector<128x128xf32> -> vector<128x128xf32>
    %cst_3 = arith.constant dense<0.000000e+00> : vector<128xf32>
    %3 = vector.multi_reduction <add>, %2, %cst_3 [0] : vector<128x128xf32> to vector<128xf32>
    %4 = vector.shape_cast %3 : vector<128xf32> to vector<1x128xf32>
    %cst_4 = arith.constant 7.812500e-03 : f32
    %5 = vector.broadcast %cst_4 : f32 to vector<1x128xf32>
    %6 = arith.mulf %4, %5 : vector<1x128xf32>
    %7 = arith.mulf %2, %2 : vector<128x128xf32>
    %cst_5 = arith.constant dense<0.000000e+00> : vector<128xf32>
    %8 = vector.multi_reduction <add>, %7, %cst_5 [0] : vector<128x128xf32> to vector<128xf32>
    %9 = vector.shape_cast %8 : vector<128xf32> to vector<1x128xf32>
    %cst_6 = arith.constant 7.812500e-03 : f32
    %10 = vector.broadcast %cst_6 : f32 to vector<1x128xf32>
    %11 = arith.mulf %9, %10 : vector<1x128xf32>
    %12 = arith.mulf %6, %6 : vector<1x128xf32>
    %13 = arith.subf %11, %12 : vector<1x128xf32>
    %cst_7 = arith.constant 0.000000e+00 : f32
    %14 = vector.broadcast %cst_7 : f32 to vector<1x128xf32>
    %15 = arith.maximumf %13, %14 : vector<1x128xf32>
    %c0_8 = arith.constant 0 : index
    %c0_9 = arith.constant 0 : index
    %16 = vector.load %arg3[%c0_8, %c0_9] : memref<1x128xf32, #tpu.memory_space<vmem>>, vector<1x128xf32>
    %cst_10 = arith.constant 9.99999974E-6 : f32
    %17 = vector.broadcast %cst_10 : f32 to vector<1x128xf32>
    %18 = arith.addf %15, %17 : vector<1x128xf32>
    %19 = math.rsqrt %18 : vector<1x128xf32>
    %20 = arith.mulf %16, %19 : vector<1x128xf32>
    %c0_11 = arith.constant 0 : index
    %c0_12 = arith.constant 0 : index
    %21 = vector.load %arg4[%c0_11, %c0_12] : memref<1x128xf32, #tpu.memory_space<vmem>>, vector<1x128xf32>
    %22 = arith.mulf %6, %20 : vector<1x128xf32>
    %23 = arith.subf %21, %22 : vector<1x128xf32>
    %24 = vector.broadcast %20 : vector<1x128xf32> to vector<128x128xf32>
    %25 = arith.mulf %2, %24 : vector<128x128xf32>
    %26 = vector.broadcast %23 : vector<1x128xf32> to vector<128x128xf32>
    %27 = arith.addf %25, %26 : vector<128x128xf32>
    %cst_13 = arith.constant 0.000000e+00 : f32
    %28 = vector.broadcast %cst_13 : f32 to vector<128x128xf32>
    %29 = arith.maximumf %27, %28 : vector<128x128xf32>
    %c0_14 = arith.constant 0 : index
    %c0_15 = arith.constant 0 : index
    %30 = vector.load %arg5[%c0_14, %c0_15] : memref<128x128xf32, #tpu.memory_space<vmem>>, vector<128x128xf32>
    tpu.vector_store %arg5[%c0_14, %c0_15], %29 {strides = array<i32>} : memref<128x128xf32, #tpu.memory_space<vmem>>, vector<128x128xf32>,
    return
  }
  func.func @transform_0(%arg0: i32) -> (i32, i32) {
    %c0_i32 = arith.constant 0 : i32
    %c0_i32_0 = arith.constant 0 : i32
    %c0_i32_1 = arith.constant 0 : i32
    return %c0_i32, %c0_i32_0 : i32, i32
  }
  func.func @transform_1(%arg0: i32) -> (i32, i32) {
    %c0_i32 = arith.constant 0 : i32
    %c0_i32_0 = arith.constant 0 : i32
    return %c0_i32, %arg0 : i32, i32
  }
  func.func @transform_2(%arg0: i32) -> (i32, i32) {
    %c0_i32 = arith.constant 0 : i32
    %c0_i32_0 = arith.constant 0 : i32
    return %c0_i32, %arg0 : i32, i32
  }
  func.func @transform_3(%arg0: i32) -> (i32, i32) {
    %c0_i32 = arith.constant 0 : i32
    %c0_i32_0 = arith.constant 0 : i32
    return %c0_i32, %arg0 : i32, i32
  }
  func.func @transform_4(%arg0: i32) -> (i32, i32) {
    %c0_i32 = arith.constant 0 : i32
    %c0_i32_0 = arith.constant 0 : i32
    return %c0_i32, %arg0 : i32, i32
  }
}

module attributes {stable_mosaic.version = 11 : i64} {
  func.func @_matmul_bias_tanh_kernel(%arg0: i32, %arg1: memref<512x1024xbf16, #tpu.memory_space<vmem>>, %arg2: memref<1024x128xbf16, #tpu.memory_space<vmem>>, %arg3: memref<1x128xf32, #tpu.memory_space<vmem>>, %arg4: memref<512x128xf32, #tpu.memory_space<vmem>>) attributes {dimension_semantics = [#tpu.dimension_semantics<parallel>], iteration_bounds = array<i64: 1>, scalar_prefetch = 0 : i64, scratch_operands = 0 : i64, tpu.core_type = #tpu.core_type<tc>, window_params = [{pipeline_mode = #tpu.pipeline_mode<synchronous>, transform_indices = @transform_0, window_bounds = array<i64: 512, 1024>}, {transform_indices = @transform_1, window_bounds = array<i64: 1024, 128>}, {transform_indices = @transform_2, window_bounds = array<i64: 1, 128>}, {transform_indices = @transform_3, window_bounds = array<i64: 512, 128>}]} {
    %c0 = arith.constant 0 : index
    %c0_0 = arith.constant 0 : index
    %0 = vector.load %arg1[%c0, %c0_0] : memref<512x1024xbf16, #tpu.memory_space<vmem>>, vector<512x1024xbf16>
    %c0_1 = arith.constant 0 : index
    %c0_2 = arith.constant 0 : index
    %1 = vector.load %arg2[%c0_1, %c0_2] : memref<1024x128xbf16, #tpu.memory_space<vmem>>, vector<1024x128xbf16>
    %cst = arith.constant dense<0.000000e+00> : vector<512x128xf32>
    %2 = tpu.matmul %0, %1, %cst {dimension_numbers = #tpu.dot_dimension_numbers<[1], [0], [0], [1], [0, 0, 1, 1], [], []>} : vector<512x1024xbf16>, vector<1024x128xbf16>, vector<512x128xf32> -> vector<512x128xf32>
    %c0_3 = arith.constant 0 : index
    %c0_4 = arith.constant 0 : index
    %3 = vector.load %arg3[%c0_3, %c0_4] : memref<1x128xf32, #tpu.memory_space<vmem>>, vector<1x128xf32>
    %4 = vector.broadcast %3 : vector<1x128xf32> to vector<512x128xf32>
    %5 = arith.addf %2, %4 : vector<512x128xf32>
    %6 = math.tanh %5 : vector<512x128xf32>
    %c0_5 = arith.constant 0 : index
    %c0_6 = arith.constant 0 : index
    %7 = vector.load %arg4[%c0_5, %c0_6] : memref<512x128xf32, #tpu.memory_space<vmem>>, vector<512x128xf32>
    tpu.vector_store %arg4[%c0_5, %c0_6], %6 {strides = array<i32>} : memref<512x128xf32, #tpu.memory_space<vmem>>, vector<512x128xf32>,
    return
  }
  func.func @transform_0(%arg0: i32) -> (i32, i32) {
    %c0_i32 = arith.constant 0 : i32
    %c0_i32_0 = arith.constant 0 : i32
    %c0_i32_1 = arith.constant 0 : i32
    return %c0_i32, %c0_i32_0 : i32, i32
  }
  func.func @transform_1(%arg0: i32) -> (i32, i32) {
    %c0_i32 = arith.constant 0 : i32
    %c0_i32_0 = arith.constant 0 : i32
    return %c0_i32, %arg0 : i32, i32
  }
  func.func @transform_2(%arg0: i32) -> (i32, i32) {
    %c0_i32 = arith.constant 0 : i32
    %c0_i32_0 = arith.constant 0 : i32
    return %c0_i32, %arg0 : i32, i32
  }
  func.func @transform_3(%arg0: i32) -> (i32, i32) {
    %c0_i32 = arith.constant 0 : i32
    %c0_i32_0 = arith.constant 0 : i32
    return %c0_i32, %arg0 : i32, i32
  }
}

</mosaic_0001>

<bundles_post_ra>
// kernel: generator_residual_forward.11
= control target key start
LH: loop header
LB: loop body
LE: loop exit
PB: predicated region body
PF: predicated region fallthrough
CT: control target
= control target key end

     0   :  { %s708_s1 = inlined_call_operand.vmem [shape: bf16[128,128], index: 1, kind: input, shape index: {}]   ;;  %s709_s0 = inlined_call_operand.vmem [shape: bf16[128,128], index: 0, kind: input, shape index: {}]   ;;  %s710_s2 = inlined_call_operand.vmem [shape: f32[1,128], index: 2, kind: input, shape index: {}]   ;;  %s711_s3 = inlined_call_operand.vmem [shape: f32[1,128], index: 3, kind: input, shape index: {}]   ;;  %s712_s4 = inlined_call_operand.vmem [shape: f32[128,128], index: 4, kind: output, shape index: {}]  }
   0x1   :  { %v473_v0 = vld [vmem:[%s708_s1 + $0x38] sm:$0xff]   ;;  %v474_v1 = vld [vmem:[%s708_s1 + $0x30] sm:$0xff]   ;;  %v475_v2 = vld [vmem:[%s708_s1 + $0x28] sm:$0xff]  }
   0x2   :  { %425 = vmatprep.subr.bf16.mxu0 %v473_v0  ;;  %457 = vmatprep.subr.bf16.mxu1 %v473_v0  ;;  %v476_v3 = vld [vmem:[%s708_s1 + $0x20] sm:$0xff]   ;;  %v477_v5 = vld [vmem:[%s708_s1 + $0x18] sm:$0xff]   ;;  %v478_v7 = vld [vmem:[%s708_s1 + $0x10] sm:$0xff]  }
   0x3   :  { %426 = vmatpush3.bf16.msra.mxu0 %v473_v0  ;;  %465 = vmatpush3.bf16.msra.mxu1 %v473_v0  ;;  %v481_v4 = vld [vmem:[%s709_s0] sm:$0xff]   ;;  %v479_v8 = vld [vmem:[%s708_s1 + $0x8] sm:$0xff]   ;;  %v483_v12 = vld [vmem:[%s709_s0 + $0x10] sm:$0xff]  }
   0x4   :  { %427 = vmatprep.subr.bf16.mxu0 %v474_v1  ;;  %458 = vmatprep.subr.bf16.mxu1 %v474_v1  ;;  %v485_v6 = vld [vmem:[%s709_s0 + $0x20] sm:$0xff]   ;;  %v482_v10 = vld [vmem:[%s709_s0 + $0x8] sm:$0xff]   ;;  %v487_v13 = vld [vmem:[%s709_s0 + $0x30] sm:$0xff]  }
   0x5   :  { %441 = vmatprep.mubr.bf16.mxu0 %v481_v4  ;;  %449 = vmatprep.mubr.bf16.mxu1 %v485_v6  ;;  %v480_v9 = vld [vmem:[%s708_s1] sm:$0xff]   ;;  %v486_v11 = vld [vmem:[%s709_s0 + $0x28] sm:$0xff]   ;;  %v484_v14 = vld [vmem:[%s709_s0 + $0x18] sm:$0xff]  }
   0x6   :  { %v488_v15 = vld [vmem:[%s709_s0 + $0x38] sm:$0xff]  }
   0x7   :  { %428 = vmatpush3.bf16.msra.mxu0 %v474_v1  ;;  %466 = vmatpush3.bf16.msra.mxu1 %v474_v1 }
   0x8   :  { %429 = vmatprep.subr.bf16.mxu0 %v475_v2  ;;  %459 = vmatprep.subr.bf16.mxu1 %v475_v2 }
   0xb   :  { %430 = vmatpush3.bf16.msra.mxu0 %v475_v2  ;;  %467 = vmatpush3.bf16.msra.mxu1 %v475_v2 }
   0xc   :  { %431 = vmatprep.subr.bf16.mxu0 %v476_v3  ;;  %460 = vmatprep.subr.bf16.mxu1 %v476_v3 }
   0xf   :  { %432 = vmatpush3.bf16.msra.mxu0 %v476_v3  ;;  %468 = vmatpush3.bf16.msra.mxu1 %v476_v3 }
  0x10   :  { %433 = vmatprep.subr.bf16.mxu0 %v477_v5  ;;  %461 = vmatprep.subr.bf16.mxu1 %v477_v5 }
  0x13   :  { %434 = vmatpush3.bf16.msra.mxu0 %v477_v5  ;;  %469 = vmatpush3.bf16.msra.mxu1 %v477_v5 }
  0x14   :  { %435 = vmatprep.subr.bf16.mxu0 %v478_v7  ;;  %462 = vmatprep.subr.bf16.mxu1 %v478_v7 }
  0x17   :  { %436 = vmatpush3.bf16.msra.mxu0 %v478_v7  ;;  %470 = vmatpush3.bf16.msra.mxu1 %v478_v7 }
  0x18   :  { %437 = vmatprep.subr.bf16.mxu0 %v479_v8  ;;  %463 = vmatprep.subr.bf16.mxu1 %v479_v8 }
  0x1b   :  { %438 = vmatpush3.bf16.msra.mxu0 %v479_v8  ;;  %471 = vmatpush3.bf16.msra.mxu1 %v479_v8 }
  0x1c   :  { %439 = vmatprep.subr.bf16.mxu0 %v480_v9  ;;  %464 = vmatprep.subr.bf16.mxu1 %v480_v9 }
  0x1f   :  { %440 = vmatpush3.bf16.msra.mxu0 %v480_v9  ;;  %472 = vmatpush3.bf16.msra.mxu1 %v480_v9 }
  0x22   :  { %442 = vmatmul.mubr.bf16.vlgmr.msra.gmra.mxu0 %v482_v10  ;;  %450 = vmatmul.mubr.bf16.vlgmr.msra.gmra.mxu1 %v486_v11 }
  0x23   :  { %445 = vmatprep.mubr.bf16.mxu0 %v483_v12  ;;  %453 = vmatprep.mubr.bf16.mxu1 %v487_v13 }
  0x2a   :  { %446 = vmatmul.mubr.bf16.gmra.mxu0 %v484_v14  ;;  %454 = vmatmul.mubr.bf16.gmra.mxu1 %v488_v15 }
  0xe2   :  { %v564_v16 = vpop.f32.mrf.mxu0  ;;  %v566_v17 = vpop.f32.mrf.mxu1 }
  0xe3   :  { %v267_v27 = vmul.f32 %v564_v16, %v564_v16  ;;  %v275_v58 = vmul.f32 %v566_v17, %v566_v17 }
  0xe4   :  { %v568_v18 = vpop.f32.mrf.mxu0  ;;  %v572_v20 = vpop.f32.mrf.mxu1 }
  0xe5   :  { %v265_v22 = vmul.f32 %v568_v18, %v568_v18  ;;  %v273_v51 = vmul.f32 %v572_v20, %v572_v20 }
  0xe6   :  { %v570_v19 = vpop.f32.mrf.mxu0  ;;  %v584_v26 = vpop.f32.mrf.mxu1 }
  0xe7   :  { %v268_v31 = vmul.f32 %v570_v19, %v570_v19  ;;  %v276_v61 = vmul.f32 %v584_v26, %v584_v26 }
  0xe8   :  { %v574_v21 = vpop.f32.mrf.mxu0  ;;  %v596_v35 = vpop.f32.mrf.mxu1 }
  0xe9   :  { %v243_v23 = vadd.f32 %v574_v21, %v568_v18  ;;  %v266_v24 = vmul.f32 %v574_v21, %v574_v21  ;;  %v274_v55 = vmul.f32 %v596_v35, %v596_v35 }
  0xea   :  { %v582_v25 = vpop.f32.mrf.mxu0  ;;  %v606_v43 = vpop.f32.mrf.mxu1 }
  0xeb   :  { %v244_v28 = vadd.f32 %v564_v16, %v243_v23  ;;  %v281_v29 = vadd.f32 %v266_v24, %v265_v22  ;;  %v271_v44 = vmul.f32 %v582_v25, %v582_v25  ;;  %v279_v7 = vmul.f32 %v606_v43, %v606_v43 }
  0xec   :  { %v589_v30 = vpop.f32.mrf.mxu0  ;;  %v614_v50 = vpop.f32.mrf.mxu1 }
  0xed   :  { %v282_v32 = vadd.f32 %v281_v29, %v267_v27  ;;  %v245_v33 = vadd.f32 %v570_v19, %v244_v28  ;;  %v269_v37 = vmul.f32 %v589_v30, %v589_v30  ;;  %v277_v2 = vmul.f32 %v614_v50, %v614_v50 }
  0xee   :  { %v594_v34 = vpop.f32.mrf.mxu0  ;;  %v622_v57 = vpop.f32.mrf.mxu1 }
  0xef   :  { %v246_v36 = vadd.f32 %v245_v33, %v589_v30  ;;  %v283_v38 = vadd.f32 %v282_v32, %v268_v31  ;;  %v272_v47 = vmul.f32 %v594_v34, %v594_v34  ;;  %v280_v10 = vmul.f32 %v622_v57, %v622_v57 }
  0xf0   :  { %v601_v39 = vpop.f32.mrf.mxu0  ;;  %v231_v0 = vpop.f32.mrf.mxu1 }
  0xf1   :  { %v284_v40 = vadd.f32 %v283_v38, %v269_v37  ;;  %v247_v41 = vadd.f32 %v246_v36, %v601_v39  ;;  %v270_v42 = vmul.f32 %v601_v39, %v601_v39  ;;  %v278_v6 = vmul.f32 %v231_v0, %v231_v0 }
  0xf3   :  { %v248_v45 = vadd.f32 %v582_v25, %v247_v41  ;;  %v285_v46 = vadd.f32 %v284_v40, %v270_v42 }
  0xf5   :  { %v249_v48 = vadd.f32 %v594_v34, %v248_v45  ;;  %v286_v49 = vadd.f32 %v285_v46, %v271_v44  ;;  %v314_v45 = vlaneseq }
  0xf7   :  { %v287_v52 = vadd.f32 %v286_v49, %v272_v47  ;;  %v250_v53 = vadd.f32 %v249_v48, %v572_v20  ;;  %v315_v46 = vshrl.u32 %v314_v45, 7  ;;  %v306_v47 = vld [vmem:[%s710_s2] sm:$0x1] }
  0xf9   :  { %v251_v54 = vadd.f32 %v250_v53, %v596_v35  ;;  %v288_v56 = vadd.f32 %v287_v52, %v273_v51  ;;  %v316_v48 = vsub.s32 0, %v315_v46  ;;  %v310_v52 = vld [vmem:[%s711_s3] sm:$0x1] }
  0xfb   :  { %v252_v59 = vadd.f32 %v566_v17, %v251_v54  ;;  %v289_v60 = vadd.f32 %v288_v56, %v274_v55 }
  0xfd   :  { %v290_v62 = vadd.f32 %v289_v60, %v275_v58  ;;  %v253_v63 = vadd.f32 %v584_v26, %v252_v59 }
  0xff   :  { %v254_v1 = vadd.f32 %v253_v63, %v614_v50  ;;  %v291_v3 = vadd.f32 %v290_v62, %v276_v61 }
 0x101   :  { %v292_v4 = vadd.f32 %v291_v3, %v277_v2  ;;  %v255_v5 = vadd.f32 %v254_v1, %v231_v0 }
 0x103   :  { %v256_v8 = vadd.f32 %v606_v43, %v255_v5  ;;  %v293_v9 = vadd.f32 %v292_v4, %v278_v6 }
 0x105   :  { %v257_v11 = vadd.f32 %v622_v57, %v256_v8  ;;  %v294_v12 = vadd.f32 %v293_v9, %v279_v7 }
 0x107   :  { %v258_v13 = vrot.slane %v257_v11, 4  ;;  %v295_v14 = vadd.f32 %v294_v12, %v280_v10 }
 0x109   :  { %v259_v15 = vadd.f32 %v258_v13, %v257_v11  ;;  %v296_v22 = vrot.slane %v295_v14, 4 }
 0x10b   :  { %v260_v23 = vrot.slane %v259_v15, 2  ;;  %v297_v24 = vadd.f32 %v296_v22, %v295_v14 }
 0x10d   :  { %v261_v27 = vadd.f32 %v260_v23, %v259_v15  ;;  %v298_v28 = vrot.slane %v297_v24, 2 }
 0x10f   :  { %v262_v29 = vrot.slane %v261_v27, 1  ;;  %v299_v31 = vadd.f32 %v298_v28, %v297_v24 }
 0x111   :  { %v263_v32 = vadd.f32 %v262_v29, %v261_v27  ;;  %v300_v33 = vrot.slane %v299_v31, 1 }
 0x113   :  { %v264_v36 = vmul.f32 0.0078125, %v263_v32  ;;  %v301_v37 = vadd.f32 %v300_v33, %v299_v31 }
 0x115   :  { %v302_v38 = vmul.f32 0.0078125, %v301_v37  ;;  %v303_v40 = vmul.f32 %v264_v36, %v264_v36 }
 0x117   :  { %v304_v41 = vsub.f32 %v302_v38, %v303_v40 }
 0x119   :  { %v305_v42 = vmax.f32 %v304_v41, 0.0 }
 0x11b   :  { %v307_v44 = vadd.f32 1e-05, %v305_v42 }
 0x11d   :  { %489 = vrsqrt.f32 %v307_v44 }
 0x12a   :  { %v490_v49 = vpop.eup %489 }
 0x12b   :  { %v309_v51 = vmul.f32 %v490_v49, %v306_v47 }
 0x12d   :  { %v311_v53 = vmul.f32 %v309_v51, %v264_v36  ;;  %v317_v54 = vrot.slane %v309_v51, %v316_v48 }
 0x12f   :  { %v312_v55 = vsub.f32 %v310_v52, %v311_v53  ;;  %v319_v56 = vmul.f32 %v317_v54, %v568_v18  ;;  %v320_v58 = vmul.f32 %v317_v54, %v574_v21  ;;  %v321_v59 = vmul.f32 %v564_v16, %v317_v54 }
 0x130   :  { %v322_v60 = vmul.f32 %v570_v19, %v317_v54  ;;  %v323_v61 = vmul.f32 %v317_v54, %v589_v30  ;;  %v324_v62 = vmul.f32 %v317_v54, %v601_v39  ;;  %v325_v63 = vmul.f32 %v582_v25, %v317_v54 }
 0x131   :  { %v326_v1 = vmul.f32 %v594_v34, %v317_v54  ;;  %v327_v2 = vmul.f32 %v317_v54, %v572_v20  ;;  %v328_v3 = vmul.f32 %v317_v54, %v596_v35  ;;  %v329_v18 = vmul.f32 %v566_v17, %v317_v54 }
 0x132   :  { %v330_v21 = vmul.f32 %v584_v26, %v317_v54  ;;  %v339_v4 = vrot.slane %v312_v55, %v316_v48  ;;  %v331_v16 = vmul.f32 %v317_v54, %v614_v50  ;;  %v332_v19 = vmul.f32 %v317_v54, %v231_v0 }
 0x133   :  { %v333_v30 = vmul.f32 %v606_v43, %v317_v54  ;;  %v334_v39 = vmul.f32 %v622_v57, %v317_v54 }
 0x134   :  { %v341_v5 = vadd.f32 %v339_v4, %v319_v56  ;;  %v342_v25 = vadd.f32 %v339_v4, %v320_v58  ;;  %v343_v6 = vadd.f32 %v339_v4, %v321_v59  ;;  %v344_v34 = vadd.f32 %v339_v4, %v322_v60 }
 0x135   :  { %v345_v7 = vadd.f32 %v339_v4, %v323_v61  ;;  %v346_v20 = vadd.f32 %v339_v4, %v324_v62  ;;  %v347_v8 = vadd.f32 %v339_v4, %v325_v63  ;;  %v348_v35 = vadd.f32 %v339_v4, %v326_v1 }
 0x136   :  { %v349_v9 = vadd.f32 %v339_v4, %v327_v2  ;;  %v350_v17 = vadd.f32 %v339_v4, %v328_v3  ;;  %v351_v10 = vadd.f32 %v339_v4, %v329_v18  ;;  %v352_v26 = vadd.f32 %v339_v4, %v330_v21 }
 0x137   :  { %v353_v11 = vadd.f32 %v339_v4, %v331_v16  ;;  %v354_v12 = vadd.f32 %v339_v4, %v332_v19  ;;  %v355_v50 = vadd.f32 %v339_v4, %v333_v30  ;;  %v356_v0 = vadd.f32 %v339_v4, %v334_v39 }
 0x138   :  { %v357_v13 = vmax.f32 %v341_v5, 0.0  ;;  %v358_v43 = vmax.f32 %v342_v25, 0.0  ;;  %v359_v14 = vmax.f32 %v343_v6, 0.0  ;;  %v360_v57 = vmax.f32 %v344_v34, 0.0 }
 0x139   :  { %v361_v15 = vmax.f32 %v345_v7, 0.0  ;;  %v362_v22 = vmax.f32 %v346_v20, 0.0  ;;  %v363_v23 = vmax.f32 %v347_v8, 0.0  ;;  %v364_v24 = vmax.f32 %v348_v35, 0.0 }
 0x13a   :  { %v365_v27 = vmax.f32 %v349_v9, 0.0  ;;  %v366_v28 = vmax.f32 %v350_v17, 0.0  ;;  %v367_v29 = vmax.f32 %v351_v10, 0.0  ;;  %v368_v31 = vmax.f32 %v352_v26, 0.0  ;;  %373 = vst [vmem:[%s712_s4] sm:$0xff] %v357_v13  ;;  %374 = vst [vmem:[%s712_s4 + $0x8] sm:$0xff] %v358_v43 }
 0x13b   :  { %375 = vst [vmem:[%s712_s4 + $0x10] sm:$0xff] %v359_v14  ;;  %376 = vst [vmem:[%s712_s4 + $0x18] sm:$0xff] %v360_v57  ;;  %v369_v32 = vmax.f32 %v353_v11, 0.0  ;;  %v370_v33 = vmax.f32 %v354_v12, 0.0  ;;  %v371_v36 = vmax.f32 %v355_v50, 0.0  ;;  %v372_v37 = vmax.f32 %v356_v0, 0.0 }
 0x13c   :  { %377 = vst [vmem:[%s712_s4 + $0x20] sm:$0xff] %v361_v15  ;;  %378 = vst [vmem:[%s712_s4 + $0x28] sm:$0xff] %v362_v22 }
 0x13d   :  { %379 = vst [vmem:[%s712_s4 + $0x30] sm:$0xff] %v363_v23  ;;  %380 = vst [vmem:[%s712_s4 + $0x38] sm:$0xff] %v364_v24 }
 0x13e   :  { %381 = vst [vmem:[%s712_s4 + $0x40] sm:$0xff] %v365_v27  ;;  %382 = vst [vmem:[%s712_s4 + $0x48] sm:$0xff] %v366_v28 }
 0x13f   :  { %383 = vst [vmem:[%s712_s4 + $0x50] sm:$0xff] %v367_v29  ;;  %384 = vst [vmem:[%s712_s4 + $0x58] sm:$0xff] %v368_v31 }
 0x140   :  { %385 = vst [vmem:[%s712_s4 + $0x60] sm:$0xff] %v369_v32  ;;  %386 = vst [vmem:[%s712_s4 + $0x68] sm:$0xff] %v370_v33 }
 0x141   :  { %387 = vst [vmem:[%s712_s4 + $0x70] sm:$0xff] %v371_v36  ;;  %388 = vst [vmem:[%s712_s4 + $0x78] sm:$0xff] %v372_v37 }

// kernel: generator_residual_forward.17
= control target key start
LH: loop header
LB: loop body
LE: loop exit
PB: predicated region body
PF: predicated region fallthrough
CT: control target
= control target key end

     0   :  { %s1429_s1 = inlined_call_operand.vmem [shape: bf16[1024,128], index: 1, kind: input, shape index: {}]   ;;  %s1430_s0 = inlined_call_operand.vmem [shape: bf16[32,1024], index: 0, kind: input, shape index: {}]   ;;  %s1431_s2 = inlined_call_operand.vmem [shape: f32[1,128], index: 2, kind: input, shape index: {}]   ;;  %s1432_s3 = inlined_call_operand.vmem [shape: f32[1,128], index: 3, kind: input, shape index: {}]   ;;  %s1433_s4 = inlined_call_operand.vmem [shape: f32[32,128], index: 4, kind: output, shape index: {}]  }
   0x1   :  { %v1080_v0 = vld [vmem:[%s1429_s1 + $0x78] sm:$0xff]   ;;  %v1084_v4 = vld [vmem:[%s1429_s1 + $0x70] sm:$0xff]   ;;  %v1088_v8 = vld [vmem:[%s1429_s1 + $0x68] sm:$0xff]  }
   0x2   :  { %v1081_v1 = vld [vmem:[%s1429_s1 + $0xf8] sm:$0xff]   ;;  %968 = vmatprep.subr.bf16.mxu0 %v1080_v0  ;;  %v1085_v5 = vld [vmem:[%s1429_s1 + $0xf0] sm:$0xff]   ;;  %v1089_v9 = vld [vmem:[%s1429_s1 + $0xe8] sm:$0xff]  }
   0x3   :  { %v1082_v2 = vld [vmem:[%s1429_s1 + $0x38] sm:$0xff]   ;;  %996 = vmatprep.subr.bf16.mxu1 %v1081_v1  ;;  %v1086_v6 = vld [vmem:[%s1429_s1 + $0x30] sm:$0xff]   ;;  %v1090_v10 = vld [vmem:[%s1429_s1 + $0x28] sm:$0xff]  }
   0x4   :  { %v1083_v3 = vld [vmem:[%s1429_s1 + $0xb8] sm:$0xff]   ;;  %969 = vmatpush3.bf16.msra.mxu0 %v1082_v2  ;;  %v1087_v7 = vld [vmem:[%s1429_s1 + $0xb0] sm:$0xff]   ;;  %v1091_v11 = vld [vmem:[%s1429_s1 + $0xa8] sm:$0xff]  }
   0x5   :  { %997 = vmatpush3.bf16.msra.mxu1 %v1083_v3  ;;  %970 = vmatprep.subr.bf16.mxu0 %v1084_v4  ;;  %v1092_v12 = vld [vmem:[%s1429_s1 + $0x60] sm:$0xff]   ;;  %v1096_v16 = vld [vmem:[%s1429_s1 + $0x58] sm:$0xff]   ;;  %v1100_v20 = vld [vmem:[%s1429_s1 + $0x50] sm:$0xff]  }
   0x6   :  { %998 = vmatprep.subr.bf16.mxu1 %v1085_v5  ;;  %v1093_v13 = vld [vmem:[%s1429_s1 + $0xe0] sm:$0xff]   ;;  %v1097_v17 = vld [vmem:[%s1429_s1 + $0xd8] sm:$0xff]   ;;  %v1101_v21 = vld [vmem:[%s1429_s1 + $0xd0] sm:$0xff]  }
   0x7   :  { %v1094_v14 = vld [vmem:[%s1429_s1 + $0x20] sm:$0xff]   ;;  %v1098_v18 = vld [vmem:[%s1429_s1 + $0x18] sm:$0xff]   ;;  %v1102_v22 = vld [vmem:[%s1429_s1 + $0x10] sm:$0xff]  }
   0x8   :  { %971 = vmatpush3.bf16.msra.mxu0 %v1086_v6  ;;  %v1095_v15 = vld [vmem:[%s1429_s1 + $0xa0] sm:$0xff]   ;;  %v1099_v19 = vld [vmem:[%s1429_s1 + $0x98] sm:$0xff]   ;;  %v1103_v23 = vld [vmem:[%s1429_s1 + $0x90] sm:$0xff]  }
   0x9   :  { %999 = vmatpush3.bf16.msra.mxu1 %v1087_v7  ;;  %972 = vmatprep.subr.bf16.mxu0 %v1088_v8  ;;  %v1104_v24 = vld [vmem:[%s1429_s1 + $0x48] sm:$0xff]   ;;  %v1108_v28 = vld [vmem:[%s1429_s1 + $0x40] sm:$0xff]   ;;  %v1112_v40 = vld [vmem:[%s1429_s1 + $0x178] sm:$0xff]  }
   0xa   :  { %1000 = vmatprep.subr.bf16.mxu1 %v1089_v9  ;;  %v1105_v25 = vld [vmem:[%s1429_s1 + $0xc8] sm:$0xff]   ;;  %v1109_v29 = vld [vmem:[%s1429_s1 + $0xc0] sm:$0xff]   ;;  %v1113_v41 = vld [vmem:[%s1429_s1 + $0x1f8] sm:$0xff]  }
   0xb   :  { %v1106_v26 = vld [vmem:[%s1429_s1 + $0x8] sm:$0xff]   ;;  %v1110_v30 = vld [vmem:[%s1429_s1] sm:$0xff]   ;;  %v1114_v42 = vld [vmem:[%s1429_s1 + $0x138] sm:$0xff]  }
   0xc   :  { %973 = vmatpush3.bf16.msra.mxu0 %v1090_v10  ;;  %v1107_v27 = vld [vmem:[%s1429_s1 + $0x88] sm:$0xff]   ;;  %v1111_v31 = vld [vmem:[%s1429_s1 + $0x80] sm:$0xff]   ;;  %v1115_v43 = vld [vmem:[%s1429_s1 + $0x1b8] sm:$0xff]  }
   0xd   :  { %1001 = vmatpush3.bf16.msra.mxu1 %v1091_v11  ;;  %974 = vmatprep.subr.bf16.mxu0 %v1092_v12  ;;  %v18_v32 = vld [vmem:[%s1430_s0] sm:$0xff]  ;;  %v19_v34 = vld [vmem:[%s1430_s0 + $0x8] sm:$0xff]  ;;  %v1116_v44 = vld [vmem:[%s1429_s1 + $0x170] sm:$0xff]  }
   0xe   :  { %1002 = vmatprep.subr.bf16.mxu1 %v1093_v13  ;;  %v22_v33 = vld [vmem:[%s1430_s0 + $0x20] sm:$0xff]  ;;  %v23_v37 = vld [vmem:[%s1430_s0 + $0x28] sm:$0xff]  ;;  %v1117_v45 = vld [vmem:[%s1429_s1 + $0x1f0] sm:$0xff]  }
   0xf   :  { %v888_v35 = vcombine.low %v18_v32, %v22_v33  ;;  %v889_v36 = vcombine.high %v18_v32, %v22_v33  ;;  %v890_v38 = vcombine.low %v19_v34, %v23_v37  ;;  %v891_v39 = vcombine.high %v19_v34, %v23_v37  ;;  %v1118_v46 = vld [vmem:[%s1429_s1 + $0x130] sm:$0xff]   ;;  %v1120_v48 = vld [vmem:[%s1429_s1 + $0x168] sm:$0xff]   ;;  %v1124_v52 = vld [vmem:[%s1429_s1 + $0x160] sm:$0xff]  }
  0x10   :  { %975 = vmatpush3.bf16.msra.mxu0 %v1094_v14  ;;  %v1119_v47 = vld [vmem:[%s1429_s1 + $0x1b0] sm:$0xff]   ;;  %v1121_v49 = vld [vmem:[%s1429_s1 + $0x1e8] sm:$0xff]   ;;  %v1125_v53 = vld [vmem:[%s1429_s1 + $0x1e0] sm:$0xff]  }
  0x11   :  { %1003 = vmatpush3.bf16.msra.mxu1 %v1095_v15  ;;  %976 = vmatprep.subr.bf16.mxu0 %v1096_v16  ;;  %v1122_v50 = vld [vmem:[%s1429_s1 + $0x128] sm:$0xff]   ;;  %v1126_v54 = vld [vmem:[%s1429_s1 + $0x120] sm:$0xff]   ;;  %v1128_v56 = vld [vmem:[%s1429_s1 + $0x158] sm:$0xff]  }
  0x12   :  { %1004 = vmatprep.subr.bf16.mxu1 %v1097_v17  ;;  %658 = vmatprep.mubr.bf16.mxu0 %v889_v36  ;;  %v1123_v51 = vld [vmem:[%s1429_s1 + $0x1a8] sm:$0xff]   ;;  %v1127_v55 = vld [vmem:[%s1429_s1 + $0x1a0] sm:$0xff]   ;;  %v1129_v57 = vld [vmem:[%s1429_s1 + $0x1d8] sm:$0xff]  }
  0x13   :  { %707 = vmatprep.mubr.bf16.mxu1 %v891_v39  ;;  %v26_v58 = vld [vmem:[%s1430_s0 + $0x40] sm:$0xff]  ;;  %v27_v61 = vld [vmem:[%s1430_s0 + $0x48] sm:$0xff]  ;;  %v1130_v1 = vld [vmem:[%s1429_s1 + $0x118] sm:$0xff]  }
  0x14   :  { %977 = vmatpush3.bf16.msra.mxu0 %v1098_v18  ;;  %v30_v59 = vld [vmem:[%s1430_s0 + $0x60] sm:$0xff]  ;;  %v31_v62 = vld [vmem:[%s1430_s0 + $0x68] sm:$0xff]  ;;  %v1131_v3 = vld [vmem:[%s1429_s1 + $0x198] sm:$0xff]  }
  0x15   :  { %1005 = vmatpush3.bf16.msra.mxu1 %v1099_v19  ;;  %978 = vmatprep.subr.bf16.mxu0 %v1100_v20  ;;  %v897_v60 = vcombine.high %v26_v58, %v30_v59  ;;  %v896_v63 = vcombine.low %v26_v58, %v30_v59  ;;  %v899_v0 = vcombine.high %v27_v61, %v31_v62  ;;  %v1132_v4 = vld [vmem:[%s1429_s1 + $0x150] sm:$0xff]   ;;  %v1136_v8 = vld [vmem:[%s1429_s1 + $0x148] sm:$0xff]   ;;  %v1140_v12 = vld [vmem:[%s1429_s1 + $0x140] sm:$0xff]  }
  0x16   :  { %1006 = vmatprep.subr.bf16.mxu1 %v1101_v21  ;;  %v898_v2 = vcombine.low %v27_v61, %v31_v62  ;;  %v1133_v5 = vld [vmem:[%s1429_s1 + $0x1d0] sm:$0xff]   ;;  %v1137_v9 = vld [vmem:[%s1429_s1 + $0x1c8] sm:$0xff]   ;;  %v1141_v13 = vld [vmem:[%s1429_s1 + $0x1c0] sm:$0xff]  }
  0x17   :  { %v1134_v6 = vld [vmem:[%s1429_s1 + $0x110] sm:$0xff]   ;;  %v1138_v10 = vld [vmem:[%s1429_s1 + $0x108] sm:$0xff]   ;;  %v1142_v14 = vld [vmem:[%s1429_s1 + $0x100] sm:$0xff]  }
  0x18   :  { %979 = vmatpush3.bf16.msra.mxu0 %v1102_v22  ;;  %v1135_v7 = vld [vmem:[%s1429_s1 + $0x190] sm:$0xff]   ;;  %v1139_v11 = vld [vmem:[%s1429_s1 + $0x188] sm:$0xff]   ;;  %v1143_v15 = vld [vmem:[%s1429_s1 + $0x180] sm:$0xff]  }
  0x19   :  { %1007 = vmatpush3.bf16.msra.mxu1 %v1103_v23  ;;  %980 = vmatprep.subr.bf16.mxu0 %v1104_v24  ;;  %v20_v16 = vld [vmem:[%s1430_s0 + $0x10] sm:$0xff]  ;;  %v21_v18 = vld [vmem:[%s1430_s0 + $0x18] sm:$0xff] }
  0x1a   :  { %1008 = vmatprep.subr.bf16.mxu1 %v1105_v25  ;;  %v24_v17 = vld [vmem:[%s1430_s0 + $0x30] sm:$0xff]  ;;  %v25_v19 = vld [vmem:[%s1430_s0 + $0x38] sm:$0xff] }
  0x1b   :  { %v892_v20 = vcombine.low %v20_v16, %v24_v17  ;;  %v893_v21 = vcombine.high %v20_v16, %v24_v17  ;;  %v894_v22 = vcombine.low %v21_v18, %v25_v19  ;;  %v895_v23 = vcombine.high %v21_v18, %v25_v19  ;;  %v28_v24 = vld [vmem:[%s1430_s0 + $0x50] sm:$0xff] }
  0x1c   :  { %981 = vmatpush3.bf16.msra.mxu0 %v1106_v26  ;;  %v32_v25 = vld [vmem:[%s1430_s0 + $0x70] sm:$0xff]  ;;  %v29_v26 = vld [vmem:[%s1430_s0 + $0x58] sm:$0xff] }
  0x1d   :  { %1009 = vmatpush3.bf16.msra.mxu1 %v1107_v27  ;;  %982 = vmatprep.subr.bf16.mxu0 %v1108_v28  ;;  %v901_v27 = vcombine.high %v28_v24, %v32_v25  ;;  %v33_v28 = vld [vmem:[%s1430_s0 + $0x78] sm:$0xff] }
  0x1e   :  { %1010 = vmatprep.subr.bf16.mxu1 %v1109_v29  ;;  %v903_v29 = vcombine.high %v29_v26, %v33_v28 }
  0x20   :  { %983 = vmatpush3.bf16.msra.mxu0 %v1110_v30  ;;  %v900_v30 = vcombine.low %v28_v24, %v32_v25 }
  0x21   :  { %1011 = vmatpush3.bf16.msra.mxu1 %v1111_v31  ;;  %1024 = vmatprep.subr.bf16.mxu0 %v1112_v40  ;;  %v902_v31 = vcombine.low %v29_v26, %v33_v28 }
  0x22   :  { %1052 = vmatprep.subr.bf16.mxu1 %v1113_v41 }
  0x23   :  { %659 = vmatmul.mubr.bf16.vlgmr.msra.gmra.mxu0 %v888_v35 }
  0x24   :  { %708 = vmatmul.mubr.bf16.vlgmr.msra.gmra.mxu1 %v890_v38  ;;  %1025 = vmatpush3.bf16.msra.mxu0 %v1114_v42 }
  0x25   :  { %1053 = vmatpush3.bf16.msra.mxu1 %v1115_v43  ;;  %1026 = vmatprep.subr.bf16.mxu0 %v1116_v44 }
  0x26   :  { %1054 = vmatprep.subr.bf16.mxu1 %v1117_v45  ;;  %666 = vmatprep.mubr.bf16.mxu0 %v897_v60 }
  0x27   :  { %715 = vmatprep.mubr.bf16.mxu1 %v899_v0 }
  0x28   :  { %1027 = vmatpush3.bf16.msra.mxu0 %v1118_v46 }
  0x29   :  { %1055 = vmatpush3.bf16.msra.mxu1 %v1119_v47  ;;  %1028 = vmatprep.subr.bf16.mxu0 %v1120_v48 }
  0x2a   :  { %1056 = vmatprep.subr.bf16.mxu1 %v1121_v49 }
  0x2b   :  { %667 = vmatmul.mubr.bf16.gmra.mxu0 %v896_v63 }
  0x2c   :  { %1029 = vmatpush3.bf16.msra.mxu0 %v1122_v50  ;;  %716 = vmatmul.mubr.bf16.gmra.mxu1 %v898_v2 }
  0x2d   :  { %1057 = vmatpush3.bf16.msra.mxu1 %v1123_v51  ;;  %1030 = vmatprep.subr.bf16.mxu0 %v1124_v52 }
  0x2e   :  { %1058 = vmatprep.subr.bf16.mxu1 %v1125_v53  ;;  %756 = vmatprep.mubr.bf16.mxu0 %v893_v21 }
  0x2f   :  { %805 = vmatprep.mubr.bf16.mxu1 %v895_v23 }
  0x30   :  { %1031 = vmatpush3.bf16.msra.mxu0 %v1126_v54 }
  0x31   :  { %1059 = vmatpush3.bf16.msra.mxu1 %v1127_v55  ;;  %1032 = vmatprep.subr.bf16.mxu0 %v1128_v56 }
  0x32   :  { %1060 = vmatprep.subr.bf16.mxu1 %v1129_v57 }
  0x34   :  { %1033 = vmatpush3.bf16.msra.mxu0 %v1130_v1 }
  0x35   :  { %1061 = vmatpush3.bf16.msra.mxu1 %v1131_v3  ;;  %1034 = vmatprep.subr.bf16.mxu0 %v1132_v4 }
  0x36   :  { %1062 = vmatprep.subr.bf16.mxu1 %v1133_v5 }
  0x38   :  { %1035 = vmatpush3.bf16.msra.mxu0 %v1134_v6 }
  0x39   :  { %1063 = vmatpush3.bf16.msra.mxu1 %v1135_v7  ;;  %1036 = vmatprep.subr.bf16.mxu0 %v1136_v8 }
  0x3a   :  { %1064 = vmatprep.subr.bf16.mxu1 %v1137_v9 }
  0x3c   :  { %1037 = vmatpush3.bf16.msra.mxu0 %v1138_v10 }
  0x3d   :  { %1065 = vmatpush3.bf16.msra.mxu1 %v1139_v11  ;;  %1038 = vmatprep.subr.bf16.mxu0 %v1140_v12 }
  0x3e   :  { %1066 = vmatprep.subr.bf16.mxu1 %v1141_v13 }
  0x40   :  { %1039 = vmatpush3.bf16.msra.mxu0 %v1142_v14 }
  0x41   :  { %1067 = vmatpush3.bf16.msra.mxu1 %v1143_v15 }
  0x43   :  { %757 = vmatmul.mubr.bf16.vlgmr.msra.gmra.mxu0 %v892_v20 }
  0x44   :  { %806 = vmatmul.mubr.bf16.vlgmr.msra.gmra.mxu1 %v894_v22  ;;  %764 = vmatprep.mubr.bf16.mxu0 %v901_v27 }
  0x45   :  { %813 = vmatprep.mubr.bf16.mxu1 %v903_v29 }
  0x4b   :  { %765 = vmatmul.mubr.bf16.gmra.mxu0 %v900_v30 }
  0x4c   :  { %814 = vmatmul.mubr.bf16.gmra.mxu1 %v902_v31 }
  0xe3   :  { %v984_v32 = vpop.f32.mrf.mxu0 }
  0xe4   :  { %v1012_v33 = vpop.f32.mrf.mxu1 }
  0xe5   :  { %v985_v34 = vpop.f32.mrf.mxu0 }
  0xe6   :  { %v1013_v35 = vpop.f32.mrf.mxu1  ;;  %v986_v50 = vadd.f32 %v985_v34, %v984_v32 }
  0xe7   :  { %v987_v36 = vpop.f32.mrf.mxu0  ;;  %v1014_v51 = vadd.f32 %v1013_v35, %v1012_v33 }
  0xe8   :  { %v1015_v37 = vpop.f32.mrf.mxu1 }
  0xe9   :  { %v988_v38 = vpop.f32.mrf.mxu0  ;;  %v710_v59 = vadd.f32 %v1014_v51, %v986_v50 }
  0xea   :  { %v1016_v39 = vpop.f32.mrf.mxu1  ;;  %v989_v54 = vadd.f32 %v988_v38, %v987_v36 }
  0xeb   :  { %v990_v40 = vpop.f32.mrf.mxu0  ;;  %v1017_v55 = vadd.f32 %v1016_v39, %v1015_v37 }
  0xec   :  { %v1018_v41 = vpop.f32.mrf.mxu1 }
  0xed   :  { %v991_v42 = vpop.f32.mrf.mxu0  ;;  %v713_v0 = vadd.f32 %v1017_v55, %v989_v54 }
  0xee   :  { %v1019_v43 = vpop.f32.mrf.mxu1  ;;  %v992_v60 = vadd.f32 %v991_v42, %v990_v40 }
  0xef   :  { %v993_v44 = vpop.f32.mrf.mxu0  ;;  %v1020_v61 = vadd.f32 %v1019_v43, %v1018_v41 }
  0xf0   :  { %v1021_v45 = vpop.f32.mrf.mxu1 }
  0xf1   :  { %v994_v46 = vpop.f32.mrf.mxu0  ;;  %v718_v7 = vadd.f32 %v1020_v61, %v992_v60 }
  0xf2   :  { %v1022_v47 = vpop.f32.mrf.mxu1  ;;  %v995_v11 = vadd.f32 %v994_v46, %v993_v44 }
  0xf3   :  { %v1023_v12 = vadd.f32 %v1022_v47, %v1021_v45 }
  0xf5   :  { %v721_v22 = vadd.f32 %v1023_v12, %v995_v11 }
 0x103   :  { %v1040_v48 = vpop.f32.mrf.mxu0 }
 0x104   :  { %v1068_v49 = vpop.f32.mrf.mxu1 }
 0x105   :  { %v1041_v52 = vpop.f32.mrf.mxu0 }
 0x106   :  { %v1069_v53 = vpop.f32.mrf.mxu1  ;;  %v1042_v56 = vadd.f32 %v1041_v52, %v1040_v48 }
 0x107   :  { %v1043_v57 = vpop.f32.mrf.mxu0  ;;  %v1070_v8 = vadd.f32 %v1069_v53, %v1068_v49 }
 0x108   :  { %v1071_v58 = vpop.f32.mrf.mxu1  ;;  %v759_v2 = vadd.f32 %v1042_v56, %v710_v59  ;;  %v857_v56 = vlaneseq }
 0x109   :  { %v1044_v62 = vpop.f32.mrf.mxu0 }
 0x10a   :  { %v1072_v63 = vpop.f32.mrf.mxu1  ;;  %v1045_v1 = vadd.f32 %v1044_v62, %v1043_v57  ;;  %v808_v15 = vadd.f32 %v1070_v8, %v759_v2  ;;  %v858_v57 = vshrl.u32 %v857_v56, 7  ;;  %v853_v62 = vld [vmem:[%s1432_s3] sm:$0x1] }
 0x10b   :  { %v1046_v3 = vpop.f32.mrf.mxu0  ;;  %v1073_v6 = vadd.f32 %v1072_v63, %v1071_v58  ;;  %v849_v58 = vld [vmem:[%s1431_s2] sm:$0x1] }
 0x10c   :  { %v1074_v4 = vpop.f32.mrf.mxu1  ;;  %v762_v5 = vadd.f32 %v1045_v1, %v713_v0  ;;  %v832_v26 = vmul.f32 %v808_v15, %v808_v15  ;;  %v859_v59 = vsub.s32 0, %v858_v57 }
 0x10d   :  { %v1047_v9 = vpop.f32.mrf.mxu0 }
 0x10e   :  { %v1075_v10 = vpop.f32.mrf.mxu1  ;;  %v811_v13 = vadd.f32 %v1073_v6, %v762_v5  ;;  %v1048_v14 = vadd.f32 %v1047_v9, %v1046_v3 }
 0x10f   :  { %v1049_v16 = vpop.f32.mrf.mxu0  ;;  %v1076_v19 = vadd.f32 %v1075_v10, %v1074_v4 }
 0x110   :  { %v1077_v17 = vpop.f32.mrf.mxu1  ;;  %v767_v18 = vadd.f32 %v1048_v14, %v718_v7  ;;  %v833_v23 = vmul.f32 %v811_v13, %v811_v13  ;;  %v822_v27 = vadd.f32 %v811_v13, %v808_v15 }
 0x111   :  { %v1050_v20 = vpop.f32.mrf.mxu0 }
 0x112   :  { %v1078_v21 = vpop.f32.mrf.mxu1  ;;  %v816_v24 = vadd.f32 %v1076_v19, %v767_v18  ;;  %v1051_v25 = vadd.f32 %v1050_v20, %v1049_v16  ;;  %v836_v31 = vadd.f32 %v833_v23, %v832_v26 }
 0x113   :  { %v1079_v30 = vadd.f32 %v1078_v21, %v1077_v17 }
 0x114   :  { %v834_v28 = vmul.f32 %v816_v24, %v816_v24  ;;  %v770_v29 = vadd.f32 %v1051_v25, %v721_v22  ;;  %v823_v32 = vadd.f32 %v822_v27, %v816_v24 }
 0x116   :  { %v819_v33 = vadd.f32 %v1079_v30, %v770_v29  ;;  %v837_v34 = vadd.f32 %v836_v31, %v834_v28 }
 0x118   :  { %v824_v35 = vadd.f32 %v823_v32, %v819_v33  ;;  %v835_v36 = vmul.f32 %v819_v33, %v819_v33 }
 0x11a   :  { %v825_v37 = vrot.slane %v824_v35, 4  ;;  %v838_v38 = vadd.f32 %v837_v34, %v835_v36 }
 0x11c   :  { %v826_v39 = vadd.f32 %v825_v37, %v824_v35  ;;  %v839_v40 = vrot.slane %v838_v38, 4 }
 0x11e   :  { %v827_v41 = vrot.slane %v826_v39, 2  ;;  %v840_v42 = vadd.f32 %v839_v40, %v838_v38 }
 0x120   :  { %v828_v43 = vadd.f32 %v827_v41, %v826_v39  ;;  %v841_v44 = vrot.slane %v840_v42, 2 }
 0x122   :  { %v829_v45 = vrot.slane %v828_v43, 1  ;;  %v842_v46 = vadd.f32 %v841_v44, %v840_v42 }
 0x124   :  { %v830_v47 = vadd.f32 %v829_v45, %v828_v43  ;;  %v843_v48 = vrot.slane %v842_v46, 1 }
 0x126   :  { %v831_v49 = vmul.f32 0.03125, %v830_v47  ;;  %v844_v50 = vadd.f32 %v843_v48, %v842_v46 }
 0x128   :  { %v845_v51 = vmul.f32 0.03125, %v844_v50  ;;  %v846_v52 = vmul.f32 %v831_v49, %v831_v49 }
 0x12a   :  { %v847_v53 = vsub.f32 %v845_v51, %v846_v52 }
 0x12c   :  { %v848_v54 = vmax.f32 %v847_v53, 0.0 }
 0x12e   :  { %v850_v55 = vadd.f32 1e-05, %v848_v54 }
 0x130   :  { %1144 = vrsqrt.f32 %v850_v55 }
 0x13d   :  { %v1145_v60 = vpop.eup %1144 }
 0x13e   :  { %v852_v61 = vmul.f32 %v1145_v60, %v849_v58 }
 0x140   :  { %v854_v63 = vmul.f32 %v852_v61, %v831_v49  ;;  %v860_v0 = vrot.slane %v852_v61, %v859_v59 }
 0x142   :  { %v855_v1 = vsub.f32 %v853_v62, %v854_v63  ;;  %v862_v2 = vmul.f32 %v860_v0, %v808_v15  ;;  %v863_v3 = vmul.f32 %v860_v0, %v811_v13  ;;  %v864_v4 = vmul.f32 %v860_v0, %v816_v24 }
 0x143   :  { %v865_v5 = vmul.f32 %v860_v0, %v819_v33 }
 0x144   :  { %v870_v6 = vrot.slane %v855_v1, %v859_v59 }
 0x146   :  { %v872_v7 = vadd.f32 %v870_v6, %v862_v2  ;;  %v873_v8 = vadd.f32 %v870_v6, %v863_v3  ;;  %v874_v9 = vadd.f32 %v870_v6, %v864_v4  ;;  %v875_v10 = vadd.f32 %v870_v6, %v865_v5 }
 0x148   :  { %v876_v11 = vmax.f32 %v872_v7, 0.0  ;;  %v877_v12 = vmax.f32 %v873_v8, 0.0  ;;  %v878_v14 = vmax.f32 %v874_v9, 0.0  ;;  %v879_v16 = vmax.f32 %v875_v10, 0.0 }
 0x14a   :  { %880 = vst [vmem:[%s1433_s4] sm:$0xff] %v876_v11  ;;  %881 = vst [vmem:[%s1433_s4 + $0x8] sm:$0xff] %v877_v12 }
 0x14b   :  { %882 = vst [vmem:[%s1433_s4 + $0x10] sm:$0xff] %v878_v14  ;;  %883 = vst [vmem:[%s1433_s4 + $0x18] sm:$0xff] %v879_v16 }

// kernel: generator_residual_forward.18
= control target key start
LH: loop header
LB: loop body
LE: loop exit
PB: predicated region body
PF: predicated region fallthrough
CT: control target
= control target key end

     0   :  { %s1000_s1 = inlined_call_operand.vmem [shape: bf16[640,128], index: 1, kind: input, shape index: {}]   ;;  %s1001_s0 = inlined_call_operand.vmem [shape: bf16[32,640], index: 0, kind: input, shape index: {}]   ;;  %s1002_s2 = inlined_call_operand.vmem [shape: f32[1,128], index: 2, kind: input, shape index: {}]   ;;  %s1003_s3 = inlined_call_operand.vmem [shape: f32[1,128], index: 3, kind: input, shape index: {}]   ;;  %s1004_s4 = inlined_call_operand.vmem [shape: f32[32,128], index: 4, kind: output, shape index: {}]  }
   0x1   :  { %v751_v0 = vld [vmem:[%s1000_s1 + $0x78] sm:$0xff]   ;;  %v755_v4 = vld [vmem:[%s1000_s1 + $0x70] sm:$0xff]   ;;  %v759_v8 = vld [vmem:[%s1000_s1 + $0x68] sm:$0xff]  }
   0x2   :  { %v752_v1 = vld [vmem:[%s1000_s1 + $0xf8] sm:$0xff]   ;;  %665 = vmatprep.subr.bf16.mxu0 %v751_v0  ;;  %v756_v5 = vld [vmem:[%s1000_s1 + $0xf0] sm:$0xff]   ;;  %v760_v9 = vld [vmem:[%s1000_s1 + $0xe8] sm:$0xff]  }
   0x3   :  { %v753_v2 = vld [vmem:[%s1000_s1 + $0x38] sm:$0xff]   ;;  %693 = vmatprep.subr.bf16.mxu1 %v752_v1  ;;  %v757_v6 = vld [vmem:[%s1000_s1 + $0x30] sm:$0xff]   ;;  %v761_v10 = vld [vmem:[%s1000_s1 + $0x28] sm:$0xff]  }
   0x4   :  { %v754_v3 = vld [vmem:[%s1000_s1 + $0xb8] sm:$0xff]   ;;  %666 = vmatpush3.bf16.msra.mxu0 %v753_v2  ;;  %v758_v7 = vld [vmem:[%s1000_s1 + $0xb0] sm:$0xff]   ;;  %v762_v11 = vld [vmem:[%s1000_s1 + $0xa8] sm:$0xff]  }
   0x5   :  { %694 = vmatpush3.bf16.msra.mxu1 %v754_v3  ;;  %667 = vmatprep.subr.bf16.mxu0 %v755_v4  ;;  %v763_v12 = vld [vmem:[%s1000_s1 + $0x60] sm:$0xff]   ;;  %v767_v16 = vld [vmem:[%s1000_s1 + $0x58] sm:$0xff]   ;;  %v771_v20 = vld [vmem:[%s1000_s1 + $0x50] sm:$0xff]  }
   0x6   :  { %695 = vmatprep.subr.bf16.mxu1 %v756_v5  ;;  %v764_v13 = vld [vmem:[%s1000_s1 + $0xe0] sm:$0xff]   ;;  %v768_v17 = vld [vmem:[%s1000_s1 + $0xd8] sm:$0xff]   ;;  %v772_v21 = vld [vmem:[%s1000_s1 + $0xd0] sm:$0xff]  }
   0x7   :  { %v765_v14 = vld [vmem:[%s1000_s1 + $0x20] sm:$0xff]   ;;  %v769_v18 = vld [vmem:[%s1000_s1 + $0x18] sm:$0xff]   ;;  %v773_v22 = vld [vmem:[%s1000_s1 + $0x10] sm:$0xff]  }
   0x8   :  { %668 = vmatpush3.bf16.msra.mxu0 %v757_v6  ;;  %v766_v15 = vld [vmem:[%s1000_s1 + $0xa0] sm:$0xff]   ;;  %v770_v19 = vld [vmem:[%s1000_s1 + $0x98] sm:$0xff]   ;;  %v774_v23 = vld [vmem:[%s1000_s1 + $0x90] sm:$0xff]  }
   0x9   :  { %696 = vmatpush3.bf16.msra.mxu1 %v758_v7  ;;  %669 = vmatprep.subr.bf16.mxu0 %v759_v8  ;;  %v775_v24 = vld [vmem:[%s1000_s1 + $0x48] sm:$0xff]   ;;  %v779_v28 = vld [vmem:[%s1000_s1 + $0x40] sm:$0xff]   ;;  %v789_v36 = vld [vmem:[%s1000_s1 + $0x138] sm:$0xff]  }
   0xa   :  { %697 = vmatprep.subr.bf16.mxu1 %v760_v9  ;;  %v776_v25 = vld [vmem:[%s1000_s1 + $0xc8] sm:$0xff]   ;;  %v780_v29 = vld [vmem:[%s1000_s1 + $0xc0] sm:$0xff]   ;;  %v790_v37 = vld [vmem:[%s1000_s1 + $0x130] sm:$0xff]  }
   0xb   :  { %v777_v26 = vld [vmem:[%s1000_s1 + $0x8] sm:$0xff]   ;;  %v781_v30 = vld [vmem:[%s1000_s1] sm:$0xff]   ;;  %v793_v45 = vld [vmem:[%s1000_s1 + $0x118] sm:$0xff]  }
   0xc   :  { %670 = vmatpush3.bf16.msra.mxu0 %v761_v10  ;;  %v778_v27 = vld [vmem:[%s1000_s1 + $0x88] sm:$0xff]   ;;  %v782_v31 = vld [vmem:[%s1000_s1 + $0x80] sm:$0xff]   ;;  %v800_v46 = vld [vmem:[%s1000_s1 + $0x110] sm:$0xff]  }
   0xd   :  { %698 = vmatpush3.bf16.msra.mxu1 %v762_v11  ;;  %671 = vmatprep.subr.bf16.mxu0 %v763_v12  ;;  %v783_v32 = vld [vmem:[%s1001_s0] ss:$20 sps:$4 sm:$0xff]   ;;  %v785_v33 = vld [vmem:[%s1001_s0 + $0x4] ss:$20 sps:$4 sm:$0xff]   ;;  %v786_v34 = vld [vmem:[%s1001_s0 + $0x8] ss:$20 sps:$4 sm:$0xff]  }
   0xe   :  { %699 = vmatprep.subr.bf16.mxu1 %v764_v13  ;;  %v788_v35 = vld [vmem:[%s1001_s0 + $0xc] ss:$20 sps:$4 sm:$0xff]   ;;  %434 = vmatprep.mubr.bf16.mxu0 %v785_v33  ;;  %v796_v40 = vld [vmem:[%s1001_s0 + $0x34] ss:$20 sps:$4 sm:$0xff]   ;;  %v799_v42 = vld [vmem:[%s1001_s0 + $0x30] ss:$20 sps:$4 sm:$0xff]  }
   0xf   :  { %483 = vmatprep.mubr.bf16.mxu1 %v788_v35  ;;  %v791_v38 = vld [vmem:[%s1000_s1 + $0x128] sm:$0xff]   ;;  %v792_v43 = vld [vmem:[%s1000_s1 + $0x120] sm:$0xff]  }
  0x10   :  { %672 = vmatpush3.bf16.msra.mxu0 %v765_v14  ;;  %v794_v39 = vld [vmem:[%s1001_s0 + $0x2c] ss:$20 sps:$4 sm:$0xff]   ;;  %v798_v41 = vld [vmem:[%s1001_s0 + $0x28] ss:$20 sps:$4 sm:$0xff]   ;;  %v803_v44 = vld [vmem:[%s1001_s0 + $0x10] ss:$20 sps:$4 sm:$0xff]  }
  0x11   :  { %700 = vmatpush3.bf16.msra.mxu1 %v766_v15  ;;  %673 = vmatprep.subr.bf16.mxu0 %v767_v16  ;;  %v801_v47 = vld [vmem:[%s1000_s1 + $0x108] sm:$0xff]   ;;  %v802_v48 = vld [vmem:[%s1000_s1 + $0x100] sm:$0xff]  }
  0x12   :  { %701 = vmatprep.subr.bf16.mxu1 %v768_v17  ;;  %v804_v49 = vld [vmem:[%s1001_s0 + $0x38] ss:$20 sps:$4 sm:$0xff]  }
  0x14   :  { %674 = vmatpush3.bf16.msra.mxu0 %v769_v18 }
  0x15   :  { %702 = vmatpush3.bf16.msra.mxu1 %v770_v19  ;;  %675 = vmatprep.subr.bf16.mxu0 %v771_v20 }
  0x16   :  { %703 = vmatprep.subr.bf16.mxu1 %v772_v21 }
  0x18   :  { %676 = vmatpush3.bf16.msra.mxu0 %v773_v22 }
  0x19   :  { %704 = vmatpush3.bf16.msra.mxu1 %v774_v23  ;;  %677 = vmatprep.subr.bf16.mxu0 %v775_v24 }
  0x1a   :  { %705 = vmatprep.subr.bf16.mxu1 %v776_v25 }
  0x1c   :  { %678 = vmatpush3.bf16.msra.mxu0 %v777_v26 }
  0x1d   :  { %706 = vmatpush3.bf16.msra.mxu1 %v778_v27  ;;  %679 = vmatprep.subr.bf16.mxu0 %v779_v28 }
  0x1e   :  { %707 = vmatprep.subr.bf16.mxu1 %v780_v29 }
  0x20   :  { %680 = vmatpush3.bf16.msra.mxu0 %v781_v30 }
  0x21   :  { %708 = vmatpush3.bf16.msra.mxu1 %v782_v31  ;;  %731 = vmatprep.subr.bf16.mxu0 %v789_v36 }
  0x23   :  { %435 = vmatmul.mubr.bf16.vlgmr.msra.gmra.mxu0 %v783_v32 }
  0x24   :  { %484 = vmatmul.mubr.bf16.vlgmr.msra.gmra.mxu1 %v786_v34  ;;  %732 = vmatpush3.bf16.msra.mxu0 %v789_v36 }
  0x25   :  { %733 = vmatprep.subr.bf16.mxu0 %v790_v37  ;;  %442 = vmatprep.mubr.bf16.mxu0 %v794_v39 }
  0x26   :  { %491 = vmatprep.mubr.bf16.mxu1 %v796_v40 }
  0x28   :  { %734 = vmatpush3.bf16.msra.mxu0 %v790_v37 }
  0x29   :  { %735 = vmatprep.subr.bf16.mxu0 %v791_v38 }
  0x2b   :  { %443 = vmatmul.mubr.bf16.gmra.mxu0 %v798_v41 }
  0x2c   :  { %492 = vmatmul.mubr.bf16.gmra.mxu1 %v799_v42  ;;  %736 = vmatpush3.bf16.msra.mxu0 %v791_v38 }
  0x2d   :  { %737 = vmatprep.subr.bf16.mxu0 %v792_v43  ;;  %747 = vmatprep.mubr.bf16.mxu0 %v803_v44 }
  0x30   :  { %738 = vmatpush3.bf16.msra.mxu0 %v792_v43 }
  0x31   :  { %739 = vmatprep.subr.bf16.mxu0 %v793_v45 }
  0x34   :  { %740 = vmatpush3.bf16.msra.mxu0 %v793_v45 }
  0x35   :  { %741 = vmatprep.subr.bf16.mxu0 %v800_v46 }
  0x38   :  { %742 = vmatpush3.bf16.msra.mxu0 %v800_v46 }
  0x39   :  { %743 = vmatprep.subr.bf16.mxu0 %v801_v47 }
  0x3c   :  { %744 = vmatpush3.bf16.msra.mxu0 %v801_v47 }
  0x3d   :  { %745 = vmatprep.subr.bf16.mxu0 %v802_v48 }
  0x40   :  { %746 = vmatpush3.bf16.msra.mxu0 %v802_v48 }
  0x43   :  { %748 = vmatmul.mubr.bf16.vlgmr.msra.gmra.mxu0 %v804_v49 }
  0xe3   :  { %v681_v50 = vpop.f32.mrf.mxu0 }
  0xe4   :  { %v709_v51 = vpop.f32.mrf.mxu1 }
  0xe5   :  { %v682_v52 = vpop.f32.mrf.mxu0 }
  0xe6   :  { %v710_v53 = vpop.f32.mrf.mxu1  ;;  %v683_v1 = vadd.f32 %v682_v52, %v681_v50  ;;  %v584_v50 = vlaneseq  ;;  %v576_v52 = vld [vmem:[%s1002_s2] sm:$0x1] }
  0xe7   :  { %v684_v54 = vpop.f32.mrf.mxu0  ;;  %v711_v2 = vadd.f32 %v710_v53, %v709_v51 }
  0xe8   :  { %v712_v55 = vpop.f32.mrf.mxu1  ;;  %v585_v51 = vshrl.u32 %v584_v50, 7 }
  0xe9   :  { %v685_v56 = vpop.f32.mrf.mxu0  ;;  %v486_v12 = vadd.f32 %v711_v2, %v683_v1 }
  0xea   :  { %v713_v57 = vpop.f32.mrf.mxu1  ;;  %v686_v5 = vadd.f32 %v685_v56, %v684_v54  ;;  %v586_v53 = vsub.s32 0, %v585_v51  ;;  %v580_v56 = vld [vmem:[%s1003_s3] sm:$0x1] }
  0xeb   :  { %v687_v58 = vpop.f32.mrf.mxu0  ;;  %v714_v6 = vadd.f32 %v713_v57, %v712_v55 }
  0xec   :  { %v715_v59 = vpop.f32.mrf.mxu1 }
  0xed   :  { %v688_v60 = vpop.f32.mrf.mxu0  ;;  %v489_v16 = vadd.f32 %v714_v6, %v686_v5 }
  0xee   :  { %v716_v61 = vpop.f32.mrf.mxu1  ;;  %v689_v7 = vadd.f32 %v688_v60, %v687_v58 }
  0xef   :  { %v690_v62 = vpop.f32.mrf.mxu0  ;;  %v717_v8 = vadd.f32 %v716_v61, %v715_v59 }
  0xf0   :  { %v718_v63 = vpop.f32.mrf.mxu1 }
  0xf1   :  { %v691_v0 = vpop.f32.mrf.mxu0  ;;  %v494_v14 = vadd.f32 %v717_v8, %v689_v7 }
  0xf2   :  { %v719_v3 = vpop.f32.mrf.mxu1  ;;  %v692_v10 = vadd.f32 %v691_v0, %v690_v62 }
  0xf3   :  { %v720_v11 = vadd.f32 %v719_v3, %v718_v63 }
  0xf5   :  { %v497_v19 = vadd.f32 %v720_v11, %v692_v10 }
 0x103   :  { %v749_v4 = vpop.f32.mrf.mxu0 }
 0x104   :  { %v543_v18 = vadd.f32 %v749_v4, %v494_v14 }
 0x105   :  { %v534_v9 = vpop.f32.mrf.mxu0 }
 0x106   :  { %v535_v15 = vadd.f32 %v534_v9, %v486_v12  ;;  %v561_v25 = vmul.f32 %v543_v18, %v543_v18 }
 0x107   :  { %v750_v13 = vpop.f32.mrf.mxu0 }
 0x108   :  { %v559_v21 = vmul.f32 %v535_v15, %v535_v15  ;;  %v546_v22 = vadd.f32 %v750_v13, %v497_v19 }
 0x109   :  { %v537_v17 = vpop.f32.mrf.mxu0 }
 0x10a   :  { %v538_v20 = vadd.f32 %v537_v17, %v489_v16  ;;  %v562_v28 = vmul.f32 %v546_v22, %v546_v22 }
 0x10c   :  { %v549_v23 = vadd.f32 %v538_v20, %v535_v15  ;;  %v560_v24 = vmul.f32 %v538_v20, %v538_v20 }
 0x10e   :  { %v550_v26 = vadd.f32 %v549_v23, %v543_v18  ;;  %v563_v27 = vadd.f32 %v560_v24, %v559_v21 }
 0x110   :  { %v551_v29 = vadd.f32 %v550_v26, %v546_v22  ;;  %v564_v30 = vadd.f32 %v563_v27, %v561_v25 }
 0x112   :  { %v552_v31 = vrot.slane %v551_v29, 4  ;;  %v565_v32 = vadd.f32 %v564_v30, %v562_v28 }
 0x114   :  { %v553_v33 = vadd.f32 %v552_v31, %v551_v29  ;;  %v566_v34 = vrot.slane %v565_v32, 4 }
 0x116   :  { %v554_v35 = vrot.slane %v553_v33, 2  ;;  %v567_v36 = vadd.f32 %v566_v34, %v565_v32 }
 0x118   :  { %v555_v37 = vadd.f32 %v554_v35, %v553_v33  ;;  %v568_v38 = vrot.slane %v567_v36, 2 }
 0x11a   :  { %v556_v39 = vrot.slane %v555_v37, 1  ;;  %v569_v40 = vadd.f32 %v568_v38, %v567_v36 }
 0x11c   :  { %v557_v41 = vadd.f32 %v556_v39, %v555_v37  ;;  %v570_v42 = vrot.slane %v569_v40, 1 }
 0x11e   :  { %v558_v43 = vmul.f32 0.03125, %v557_v41  ;;  %v571_v44 = vadd.f32 %v570_v42, %v569_v40 }
 0x120   :  { %v572_v45 = vmul.f32 0.03125, %v571_v44  ;;  %v573_v46 = vmul.f32 %v558_v43, %v558_v43 }
 0x122   :  { %v574_v47 = vsub.f32 %v572_v45, %v573_v46 }
 0x124   :  { %v575_v48 = vmax.f32 %v574_v47, 0.0 }
 0x126   :  { %v577_v49 = vadd.f32 1e-05, %v575_v48 }
 0x128   :  { %805 = vrsqrt.f32 %v577_v49 }
 0x135   :  { %v806_v54 = vpop.eup %805 }
 0x136   :  { %v579_v55 = vmul.f32 %v806_v54, %v576_v52 }
 0x138   :  { %v581_v57 = vmul.f32 %v579_v55, %v558_v43  ;;  %v587_v58 = vrot.slane %v579_v55, %v586_v53 }
 0x13a   :  { %v582_v59 = vsub.f32 %v580_v56, %v581_v57  ;;  %v589_v60 = vmul.f32 %v587_v58, %v535_v15  ;;  %v590_v61 = vmul.f32 %v587_v58, %v538_v20  ;;  %v591_v62 = vmul.f32 %v587_v58, %v543_v18 }
 0x13b   :  { %v592_v63 = vmul.f32 %v587_v58, %v546_v22 }
 0x13c   :  { %v597_v0 = vrot.slane %v582_v59, %v586_v53 }
 0x13e   :  { %v599_v1 = vadd.f32 %v597_v0, %v589_v60  ;;  %v600_v2 = vadd.f32 %v597_v0, %v590_v61  ;;  %v601_v3 = vadd.f32 %v597_v0, %v591_v62  ;;  %v602_v4 = vadd.f32 %v597_v0, %v592_v63 }
 0x140   :  { %v603_v5 = vmax.f32 %v599_v1, 0.0  ;;  %v604_v6 = vmax.f32 %v600_v2, 0.0  ;;  %v605_v7 = vmax.f32 %v601_v3, 0.0  ;;  %v606_v8 = vmax.f32 %v602_v4, 0.0 }
 0x142   :  { %607 = vst [vmem:[%s1004_s4] sm:$0xff] %v603_v5  ;;  %608 = vst [vmem:[%s1004_s4 + $0x8] sm:$0xff] %v604_v6 }
 0x143   :  { %609 = vst [vmem:[%s1004_s4 + $0x10] sm:$0xff] %v605_v7  ;;  %610 = vst [vmem:[%s1004_s4 + $0x18] sm:$0xff] %v606_v8 }

// kernel: generator_residual_forward.13
= control target key start
LH: loop header
LB: loop body
LE: loop exit
PB: predicated region body
PF: predicated region fallthrough
CT: control target
= control target key end

     0   :  { %s791_s1 = inlined_call_operand.vmem [shape: bf16[512,128], index: 1, kind: input, shape index: {}]   ;;  %s792_s0 = inlined_call_operand.vmem [shape: bf16[32,512], index: 0, kind: input, shape index: {}]   ;;  %s793_s2 = inlined_call_operand.vmem [shape: f32[1,128], index: 2, kind: input, shape index: {}]   ;;  %s794_s3 = inlined_call_operand.vmem [shape: f32[1,128], index: 3, kind: input, shape index: {}]   ;;  %s795_s4 = inlined_call_operand.vmem [shape: f32[32,128], index: 4, kind: output, shape index: {}]  }
   0x1   :  { %v582_v0 = vld [vmem:[%s791_s1 + $0x78] sm:$0xff]   ;;  %v586_v4 = vld [vmem:[%s791_s1 + $0x70] sm:$0xff]   ;;  %v590_v8 = vld [vmem:[%s791_s1 + $0x68] sm:$0xff]  }
   0x2   :  { %v583_v1 = vld [vmem:[%s791_s1 + $0xf8] sm:$0xff]   ;;  %526 = vmatprep.subr.bf16.mxu0 %v582_v0  ;;  %v587_v5 = vld [vmem:[%s791_s1 + $0xf0] sm:$0xff]   ;;  %v591_v9 = vld [vmem:[%s791_s1 + $0xe8] sm:$0xff]  }
   0x3   :  { %v584_v2 = vld [vmem:[%s791_s1 + $0x38] sm:$0xff]   ;;  %554 = vmatprep.subr.bf16.mxu1 %v583_v1  ;;  %v588_v6 = vld [vmem:[%s791_s1 + $0x30] sm:$0xff]   ;;  %v592_v10 = vld [vmem:[%s791_s1 + $0x28] sm:$0xff]  }
   0x4   :  { %v585_v3 = vld [vmem:[%s791_s1 + $0xb8] sm:$0xff]   ;;  %527 = vmatpush3.bf16.msra.mxu0 %v584_v2  ;;  %v589_v7 = vld [vmem:[%s791_s1 + $0xb0] sm:$0xff]   ;;  %v593_v11 = vld [vmem:[%s791_s1 + $0xa8] sm:$0xff]  }
   0x5   :  { %555 = vmatpush3.bf16.msra.mxu1 %v585_v3  ;;  %528 = vmatprep.subr.bf16.mxu0 %v586_v4  ;;  %v594_v12 = vld [vmem:[%s791_s1 + $0x60] sm:$0xff]   ;;  %v598_v16 = vld [vmem:[%s791_s1 + $0x58] sm:$0xff]   ;;  %v602_v20 = vld [vmem:[%s791_s1 + $0x50] sm:$0xff]  }
   0x6   :  { %556 = vmatprep.subr.bf16.mxu1 %v587_v5  ;;  %v595_v13 = vld [vmem:[%s791_s1 + $0xe0] sm:$0xff]   ;;  %v599_v17 = vld [vmem:[%s791_s1 + $0xd8] sm:$0xff]   ;;  %v603_v21 = vld [vmem:[%s791_s1 + $0xd0] sm:$0xff]  }
   0x7   :  { %v596_v14 = vld [vmem:[%s791_s1 + $0x20] sm:$0xff]   ;;  %v600_v18 = vld [vmem:[%s791_s1 + $0x18] sm:$0xff]   ;;  %v604_v22 = vld [vmem:[%s791_s1 + $0x10] sm:$0xff]  }
   0x8   :  { %529 = vmatpush3.bf16.msra.mxu0 %v588_v6  ;;  %v597_v15 = vld [vmem:[%s791_s1 + $0xa0] sm:$0xff]   ;;  %v601_v19 = vld [vmem:[%s791_s1 + $0x98] sm:$0xff]   ;;  %v605_v23 = vld [vmem:[%s791_s1 + $0x90] sm:$0xff]  }
   0x9   :  { %557 = vmatpush3.bf16.msra.mxu1 %v589_v7  ;;  %530 = vmatprep.subr.bf16.mxu0 %v590_v8  ;;  %v606_v24 = vld [vmem:[%s791_s1 + $0x48] sm:$0xff]   ;;  %v610_v28 = vld [vmem:[%s791_s1 + $0x40] sm:$0xff]  }
   0xa   :  { %558 = vmatprep.subr.bf16.mxu1 %v591_v9  ;;  %v607_v25 = vld [vmem:[%s791_s1 + $0xc8] sm:$0xff]   ;;  %v611_v29 = vld [vmem:[%s791_s1 + $0xc0] sm:$0xff]  }
   0xb   :  { %v608_v26 = vld [vmem:[%s791_s1 + $0x8] sm:$0xff]   ;;  %v612_v30 = vld [vmem:[%s791_s1] sm:$0xff]  }
   0xc   :  { %531 = vmatpush3.bf16.msra.mxu0 %v592_v10  ;;  %v609_v27 = vld [vmem:[%s791_s1 + $0x88] sm:$0xff]   ;;  %v613_v31 = vld [vmem:[%s791_s1 + $0x80] sm:$0xff]  }
   0xd   :  { %559 = vmatpush3.bf16.msra.mxu1 %v593_v11  ;;  %532 = vmatprep.subr.bf16.mxu0 %v594_v12  ;;  %v614_v32 = vld [vmem:[%s792_s0] ss:$16 sps:$4 sm:$0xff]   ;;  %v616_v33 = vld [vmem:[%s792_s0 + $0x4] ss:$16 sps:$4 sm:$0xff]   ;;  %v617_v34 = vld [vmem:[%s792_s0 + $0x8] ss:$16 sps:$4 sm:$0xff]  }
   0xe   :  { %560 = vmatprep.subr.bf16.mxu1 %v595_v13  ;;  %v619_v35 = vld [vmem:[%s792_s0 + $0xc] ss:$16 sps:$4 sm:$0xff]   ;;  %354 = vmatprep.mubr.bf16.mxu0 %v616_v33  ;;  %v620_v36 = vld [vmem:[%s792_s0 + $0x24] ss:$16 sps:$4 sm:$0xff]   ;;  %v624_v38 = vld [vmem:[%s792_s0 + $0x20] ss:$16 sps:$4 sm:$0xff]  }
   0xf   :  { %403 = vmatprep.mubr.bf16.mxu1 %v619_v35  ;;  %v622_v37 = vld [vmem:[%s792_s0 + $0x2c] ss:$16 sps:$4 sm:$0xff]   ;;  %v625_v39 = vld [vmem:[%s792_s0 + $0x28] ss:$16 sps:$4 sm:$0xff]  }
  0x10   :  { %533 = vmatpush3.bf16.msra.mxu0 %v596_v14 }
  0x11   :  { %561 = vmatpush3.bf16.msra.mxu1 %v597_v15  ;;  %534 = vmatprep.subr.bf16.mxu0 %v598_v16 }
  0x12   :  { %562 = vmatprep.subr.bf16.mxu1 %v599_v17 }
  0x14   :  { %535 = vmatpush3.bf16.msra.mxu0 %v600_v18 }
  0x15   :  { %563 = vmatpush3.bf16.msra.mxu1 %v601_v19  ;;  %536 = vmatprep.subr.bf16.mxu0 %v602_v20 }
  0x16   :  { %564 = vmatprep.subr.bf16.mxu1 %v603_v21 }
  0x18   :  { %537 = vmatpush3.bf16.msra.mxu0 %v604_v22 }
  0x19   :  { %565 = vmatpush3.bf16.msra.mxu1 %v605_v23  ;;  %538 = vmatprep.subr.bf16.mxu0 %v606_v24 }
  0x1a   :  { %566 = vmatprep.subr.bf16.mxu1 %v607_v25 }
  0x1c   :  { %539 = vmatpush3.bf16.msra.mxu0 %v608_v26 }
  0x1d   :  { %567 = vmatpush3.bf16.msra.mxu1 %v609_v27  ;;  %540 = vmatprep.subr.bf16.mxu0 %v610_v28 }
  0x1e   :  { %568 = vmatprep.subr.bf16.mxu1 %v611_v29 }
  0x20   :  { %541 = vmatpush3.bf16.msra.mxu0 %v612_v30 }
  0x21   :  { %569 = vmatpush3.bf16.msra.mxu1 %v613_v31 }
  0x23   :  { %355 = vmatmul.mubr.bf16.vlgmr.msra.gmra.mxu0 %v614_v32  ;;  %v455_v32 = vlaneseq }
  0x24   :  { %404 = vmatmul.mubr.bf16.vlgmr.msra.gmra.mxu1 %v617_v34  ;;  %362 = vmatprep.mubr.bf16.mxu0 %v620_v36  ;;  %v447_v34 = vld [vmem:[%s793_s2] sm:$0x1] }
  0x25   :  { %411 = vmatprep.mubr.bf16.mxu1 %v622_v37  ;;  %v456_v33 = vshrl.u32 %v455_v32, 7 }
  0x27   :  { %v457_v35 = vsub.s32 0, %v456_v33 }
  0x2b   :  { %363 = vmatmul.mubr.bf16.gmra.mxu0 %v624_v38  ;;  %v451_v38 = vld [vmem:[%s794_s3] sm:$0x1] }
  0x2c   :  { %412 = vmatmul.mubr.bf16.gmra.mxu1 %v625_v39 }
  0xe3   :  { %v542_v40 = vpop.f32.mrf.mxu0 }
  0xe4   :  { %v570_v41 = vpop.f32.mrf.mxu1 }
  0xe5   :  { %v543_v42 = vpop.f32.mrf.mxu0 }
  0xe6   :  { %v571_v43 = vpop.f32.mrf.mxu1  ;;  %v544_v49 = vadd.f32 %v543_v42, %v542_v40 }
  0xe7   :  { %v545_v44 = vpop.f32.mrf.mxu0  ;;  %v572_v50 = vadd.f32 %v571_v43, %v570_v41 }
  0xe8   :  { %v573_v45 = vpop.f32.mrf.mxu1 }
  0xe9   :  { %v546_v46 = vpop.f32.mrf.mxu0  ;;  %v406_v58 = vadd.f32 %v572_v50, %v544_v49 }
  0xea   :  { %v547_v47 = vadd.f32 %v546_v46, %v545_v44  ;;  %v574_v48 = vpop.f32.mrf.mxu1 }
  0xeb   :  { %v575_v51 = vadd.f32 %v574_v48, %v573_v45  ;;  %v548_v52 = vpop.f32.mrf.mxu0  ;;  %v430_v3 = vmul.f32 %v406_v58, %v406_v58 }
  0xec   :  { %v576_v53 = vpop.f32.mrf.mxu1 }
  0xed   :  { %v409_v54 = vadd.f32 %v575_v51, %v547_v47  ;;  %v549_v55 = vpop.f32.mrf.mxu0 }
  0xee   :  { %v550_v56 = vadd.f32 %v549_v55, %v548_v52  ;;  %v577_v57 = vpop.f32.mrf.mxu1 }
  0xef   :  { %v578_v59 = vadd.f32 %v577_v57, %v576_v53  ;;  %v551_v60 = vpop.f32.mrf.mxu0  ;;  %v431_v62 = vmul.f32 %v409_v54, %v409_v54  ;;  %v420_v4 = vadd.f32 %v409_v54, %v406_v58 }
  0xf0   :  { %v579_v61 = vpop.f32.mrf.mxu1 }
  0xf1   :  { %v414_v63 = vadd.f32 %v578_v59, %v550_v56  ;;  %v552_v0 = vpop.f32.mrf.mxu0  ;;  %v434_v7 = vadd.f32 %v431_v62, %v430_v3 }
  0xf2   :  { %v553_v1 = vadd.f32 %v552_v0, %v551_v60  ;;  %v580_v2 = vpop.f32.mrf.mxu1 }
  0xf3   :  { %v432_v5 = vmul.f32 %v414_v63, %v414_v63  ;;  %v581_v6 = vadd.f32 %v580_v2, %v579_v61  ;;  %v421_v8 = vadd.f32 %v420_v4, %v414_v63 }
  0xf5   :  { %v417_v9 = vadd.f32 %v581_v6, %v553_v1  ;;  %v435_v10 = vadd.f32 %v434_v7, %v432_v5 }
  0xf7   :  { %v422_v11 = vadd.f32 %v421_v8, %v417_v9  ;;  %v433_v12 = vmul.f32 %v417_v9, %v417_v9 }
  0xf9   :  { %v423_v13 = vrot.slane %v422_v11, 4  ;;  %v436_v14 = vadd.f32 %v435_v10, %v433_v12 }
  0xfb   :  { %v424_v15 = vadd.f32 %v423_v13, %v422_v11  ;;  %v437_v16 = vrot.slane %v436_v14, 4 }
  0xfd   :  { %v425_v17 = vrot.slane %v424_v15, 2  ;;  %v438_v18 = vadd.f32 %v437_v16, %v436_v14 }
  0xff   :  { %v426_v19 = vadd.f32 %v425_v17, %v424_v15  ;;  %v439_v20 = vrot.slane %v438_v18, 2 }
 0x101   :  { %v427_v21 = vrot.slane %v426_v19, 1  ;;  %v440_v22 = vadd.f32 %v439_v20, %v438_v18 }
 0x103   :  { %v428_v23 = vadd.f32 %v427_v21, %v426_v19  ;;  %v441_v24 = vrot.slane %v440_v22, 1 }
 0x105   :  { %v429_v25 = vmul.f32 0.03125, %v428_v23  ;;  %v442_v26 = vadd.f32 %v441_v24, %v440_v22 }
 0x107   :  { %v443_v27 = vmul.f32 0.03125, %v442_v26  ;;  %v444_v28 = vmul.f32 %v429_v25, %v429_v25 }
 0x109   :  { %v445_v29 = vsub.f32 %v443_v27, %v444_v28 }
 0x10b   :  { %v446_v30 = vmax.f32 %v445_v29, 0.0 }
 0x10d   :  { %v448_v31 = vadd.f32 1e-05, %v446_v30 }
 0x10f   :  { %626 = vrsqrt.f32 %v448_v31 }
 0x11c   :  { %v627_v36 = vpop.eup %626 }
 0x11d   :  { %v450_v37 = vmul.f32 %v627_v36, %v447_v34 }
 0x11f   :  { %v452_v39 = vmul.f32 %v450_v37, %v429_v25  ;;  %v458_v40 = vrot.slane %v450_v37, %v457_v35 }
 0x121   :  { %v453_v41 = vsub.f32 %v451_v38, %v452_v39  ;;  %v460_v42 = vmul.f32 %v458_v40, %v406_v58  ;;  %v461_v43 = vmul.f32 %v458_v40, %v409_v54  ;;  %v462_v44 = vmul.f32 %v458_v40, %v414_v63 }
 0x122   :  { %v463_v45 = vmul.f32 %v458_v40, %v417_v9 }
 0x123   :  { %v468_v46 = vrot.slane %v453_v41, %v457_v35 }
 0x125   :  { %v470_v47 = vadd.f32 %v468_v46, %v460_v42  ;;  %v471_v48 = vadd.f32 %v468_v46, %v461_v43  ;;  %v472_v49 = vadd.f32 %v468_v46, %v462_v44  ;;  %v473_v50 = vadd.f32 %v468_v46, %v463_v45 }
 0x127   :  { %v474_v51 = vmax.f32 %v470_v47, 0.0  ;;  %v475_v52 = vmax.f32 %v471_v48, 0.0  ;;  %v476_v53 = vmax.f32 %v472_v49, 0.0  ;;  %v477_v55 = vmax.f32 %v473_v50, 0.0 }
 0x129   :  { %478 = vst [vmem:[%s795_s4] sm:$0xff] %v474_v51  ;;  %479 = vst [vmem:[%s795_s4 + $0x8] sm:$0xff] %v475_v52 }
 0x12a   :  { %480 = vst [vmem:[%s795_s4 + $0x10] sm:$0xff] %v476_v53  ;;  %481 = vst [vmem:[%s795_s4 + $0x18] sm:$0xff] %v477_v55 }

// kernel: generator_residual_forward.15
= control target key start
LH: loop header
LB: loop body
LE: loop exit
PB: predicated region body
PF: predicated region fallthrough
CT: control target
= control target key end

     0   :  { %s1662_s1 = inlined_call_operand.vmem [shape: bf16[1152,128], index: 1, kind: input, shape index: {}]   ;;  %s1663_s0 = inlined_call_operand.vmem [shape: bf16[32,1152], index: 0, kind: input, shape index: {}]   ;;  %s1664_s2 = inlined_call_operand.vmem [shape: f32[1,128], index: 2, kind: input, shape index: {}]   ;;  %s1665_s3 = inlined_call_operand.vmem [shape: f32[1,128], index: 3, kind: input, shape index: {}]   ;;  %s1666_s4 = inlined_call_operand.vmem [shape: f32[32,128], index: 4, kind: output, shape index: {}]  }
   0x1   :  { %v1249_v0 = vld [vmem:[%s1662_s1 + $0x78] sm:$0xff]   ;;  %v1253_v4 = vld [vmem:[%s1662_s1 + $0x70] sm:$0xff]   ;;  %v1257_v8 = vld [vmem:[%s1662_s1 + $0x68] sm:$0xff]  }
   0x2   :  { %v1250_v1 = vld [vmem:[%s1662_s1 + $0xf8] sm:$0xff]   ;;  %1107 = vmatprep.subr.bf16.mxu0 %v1249_v0  ;;  %v1254_v5 = vld [vmem:[%s1662_s1 + $0xf0] sm:$0xff]   ;;  %v1258_v9 = vld [vmem:[%s1662_s1 + $0xe8] sm:$0xff]  }
   0x3   :  { %v1251_v2 = vld [vmem:[%s1662_s1 + $0x38] sm:$0xff]   ;;  %1135 = vmatprep.subr.bf16.mxu1 %v1250_v1  ;;  %v1255_v6 = vld [vmem:[%s1662_s1 + $0x30] sm:$0xff]   ;;  %v1259_v10 = vld [vmem:[%s1662_s1 + $0x28] sm:$0xff]  }
   0x4   :  { %v1252_v3 = vld [vmem:[%s1662_s1 + $0xb8] sm:$0xff]   ;;  %1108 = vmatpush3.bf16.msra.mxu0 %v1251_v2  ;;  %v1256_v7 = vld [vmem:[%s1662_s1 + $0xb0] sm:$0xff]   ;;  %v1260_v11 = vld [vmem:[%s1662_s1 + $0xa8] sm:$0xff]  }
   0x5   :  { %1136 = vmatpush3.bf16.msra.mxu1 %v1252_v3  ;;  %1109 = vmatprep.subr.bf16.mxu0 %v1253_v4  ;;  %v1261_v12 = vld [vmem:[%s1662_s1 + $0x60] sm:$0xff]   ;;  %v1265_v16 = vld [vmem:[%s1662_s1 + $0x58] sm:$0xff]   ;;  %v1269_v20 = vld [vmem:[%s1662_s1 + $0x50] sm:$0xff]  }
   0x6   :  { %1137 = vmatprep.subr.bf16.mxu1 %v1254_v5  ;;  %v1262_v13 = vld [vmem:[%s1662_s1 + $0xe0] sm:$0xff]   ;;  %v1266_v17 = vld [vmem:[%s1662_s1 + $0xd8] sm:$0xff]   ;;  %v1270_v21 = vld [vmem:[%s1662_s1 + $0xd0] sm:$0xff]  }
   0x7   :  { %v1263_v14 = vld [vmem:[%s1662_s1 + $0x20] sm:$0xff]   ;;  %v1267_v18 = vld [vmem:[%s1662_s1 + $0x18] sm:$0xff]   ;;  %v1271_v22 = vld [vmem:[%s1662_s1 + $0x10] sm:$0xff]  }
   0x8   :  { %1110 = vmatpush3.bf16.msra.mxu0 %v1255_v6  ;;  %v1264_v15 = vld [vmem:[%s1662_s1 + $0xa0] sm:$0xff]   ;;  %v1268_v19 = vld [vmem:[%s1662_s1 + $0x98] sm:$0xff]   ;;  %v1272_v23 = vld [vmem:[%s1662_s1 + $0x90] sm:$0xff]  }
   0x9   :  { %1138 = vmatpush3.bf16.msra.mxu1 %v1256_v7  ;;  %1111 = vmatprep.subr.bf16.mxu0 %v1257_v8  ;;  %v1273_v24 = vld [vmem:[%s1662_s1 + $0x48] sm:$0xff]   ;;  %v1277_v28 = vld [vmem:[%s1662_s1 + $0x40] sm:$0xff]   ;;  %v1287_v36 = vld [vmem:[%s1662_s1 + $0x178] sm:$0xff]  }
   0xa   :  { %1139 = vmatprep.subr.bf16.mxu1 %v1258_v9  ;;  %v1274_v25 = vld [vmem:[%s1662_s1 + $0xc8] sm:$0xff]   ;;  %v1278_v29 = vld [vmem:[%s1662_s1 + $0xc0] sm:$0xff]   ;;  %v1288_v37 = vld [vmem:[%s1662_s1 + $0x138] sm:$0xff]  }
   0xb   :  { %v1275_v26 = vld [vmem:[%s1662_s1 + $0x8] sm:$0xff]   ;;  %v1279_v30 = vld [vmem:[%s1662_s1] sm:$0xff]   ;;  %v1289_v38 = vld [vmem:[%s1662_s1 + $0x1f8] sm:$0xff]  }
   0xc   :  { %1112 = vmatpush3.bf16.msra.mxu0 %v1259_v10  ;;  %v1276_v27 = vld [vmem:[%s1662_s1 + $0x88] sm:$0xff]   ;;  %v1280_v31 = vld [vmem:[%s1662_s1 + $0x80] sm:$0xff]   ;;  %v1290_v39 = vld [vmem:[%s1662_s1 + $0x1b8] sm:$0xff]  }
   0xd   :  { %1140 = vmatpush3.bf16.msra.mxu1 %v1260_v11  ;;  %1113 = vmatprep.subr.bf16.mxu0 %v1261_v12  ;;  %v1281_v32 = vld [vmem:[%s1663_s0] ss:$36 sps:$4 sm:$0xff]   ;;  %v1284_v34 = vld [vmem:[%s1663_s0 + $0x8] ss:$36 sps:$4 sm:$0xff]   ;;  %v1291_v40 = vld [vmem:[%s1662_s1 + $0x170] sm:$0xff]  }
   0xe   :  { %1141 = vmatprep.subr.bf16.mxu1 %v1262_v13  ;;  %v1283_v33 = vld [vmem:[%s1663_s0 + $0x4] ss:$36 sps:$4 sm:$0xff]   ;;  %v1286_v35 = vld [vmem:[%s1663_s0 + $0xc] ss:$36 sps:$4 sm:$0xff]   ;;  %v1303_v52 = vld [vmem:[%s1662_s1 + $0x158] sm:$0xff]  }
   0xf   :  { %738 = vmatprep.mubr.bf16.mxu0 %v1283_v33  ;;  %787 = vmatprep.mubr.bf16.mxu1 %v1286_v35  ;;  %v1292_v41 = vld [vmem:[%s1662_s1 + $0x130] sm:$0xff]   ;;  %v1295_v44 = vld [vmem:[%s1662_s1 + $0x168] sm:$0xff]   ;;  %v1299_v48 = vld [vmem:[%s1662_s1 + $0x160] sm:$0xff]  }
  0x10   :  { %1114 = vmatpush3.bf16.msra.mxu0 %v1263_v14  ;;  %v1293_v42 = vld [vmem:[%s1662_s1 + $0x1f0] sm:$0xff]   ;;  %v1296_v45 = vld [vmem:[%s1662_s1 + $0x128] sm:$0xff]   ;;  %v1300_v49 = vld [vmem:[%s1662_s1 + $0x120] sm:$0xff]  }
  0x11   :  { %1142 = vmatpush3.bf16.msra.mxu1 %v1264_v15  ;;  %1115 = vmatprep.subr.bf16.mxu0 %v1265_v16  ;;  %v1294_v43 = vld [vmem:[%s1662_s1 + $0x1b0] sm:$0xff]   ;;  %v1297_v46 = vld [vmem:[%s1662_s1 + $0x1e8] sm:$0xff]   ;;  %v1301_v50 = vld [vmem:[%s1662_s1 + $0x1e0] sm:$0xff]  }
  0x12   :  { %1143 = vmatprep.subr.bf16.mxu1 %v1266_v17  ;;  %v1298_v47 = vld [vmem:[%s1662_s1 + $0x1a8] sm:$0xff]   ;;  %v1302_v51 = vld [vmem:[%s1662_s1 + $0x1a0] sm:$0xff]   ;;  %v1304_v53 = vld [vmem:[%s1662_s1 + $0x118] sm:$0xff]  }
  0x13   :  { %v1305_v54 = vld [vmem:[%s1663_s0 + $0x4c] ss:$36 sps:$4 sm:$0xff]   ;;  %v1307_v55 = vld [vmem:[%s1663_s0 + $0x54] ss:$36 sps:$4 sm:$0xff]   ;;  %v1321_v4 = vld [vmem:[%s1662_s1 + $0x140] sm:$0xff]  }
  0x14   :  { %1116 = vmatpush3.bf16.msra.mxu0 %v1267_v18  ;;  %v1309_v56 = vld [vmem:[%s1662_s1 + $0x1d8] sm:$0xff]   ;;  %v1310_v57 = vld [vmem:[%s1663_s0 + $0x48] ss:$36 sps:$4 sm:$0xff]   ;;  %v1311_v58 = vld [vmem:[%s1663_s0 + $0x50] ss:$36 sps:$4 sm:$0xff]  }
  0x15   :  { %1144 = vmatpush3.bf16.msra.mxu1 %v1268_v19  ;;  %1117 = vmatprep.subr.bf16.mxu0 %v1269_v20  ;;  %v1312_v59 = vld [vmem:[%s1662_s1 + $0x198] sm:$0xff]   ;;  %v1313_v60 = vld [vmem:[%s1662_s1 + $0x150] sm:$0xff]   ;;  %v1317_v0 = vld [vmem:[%s1662_s1 + $0x148] sm:$0xff]  }
  0x16   :  { %1145 = vmatprep.subr.bf16.mxu1 %v1270_v21  ;;  %v1314_v61 = vld [vmem:[%s1662_s1 + $0x110] sm:$0xff]   ;;  %v1318_v1 = vld [vmem:[%s1662_s1 + $0x108] sm:$0xff]   ;;  %v1322_v5 = vld [vmem:[%s1662_s1 + $0x100] sm:$0xff]  }
  0x17   :  { %v1315_v62 = vld [vmem:[%s1662_s1 + $0x1d0] sm:$0xff]   ;;  %v1319_v2 = vld [vmem:[%s1662_s1 + $0x1c8] sm:$0xff]   ;;  %v1323_v6 = vld [vmem:[%s1662_s1 + $0x1c0] sm:$0xff]  }
  0x18   :  { %1118 = vmatpush3.bf16.msra.mxu0 %v1271_v22  ;;  %v1316_v63 = vld [vmem:[%s1662_s1 + $0x190] sm:$0xff]   ;;  %v1320_v3 = vld [vmem:[%s1662_s1 + $0x188] sm:$0xff]   ;;  %v1327_v9 = vld [vmem:[%s1662_s1 + $0x180] sm:$0xff]  }
  0x19   :  { %1146 = vmatpush3.bf16.msra.mxu1 %v1272_v23  ;;  %1119 = vmatprep.subr.bf16.mxu0 %v1273_v24  ;;  %v1324_v7 = vld [vmem:[%s1663_s0 + $0x10] ss:$36 sps:$4 sm:$0xff]   ;;  %v1328_v10 = vld [vmem:[%s1662_s1 + $0x238] sm:$0xff]   ;;  %v1336_v16 = vld [vmem:[%s1662_s1 + $0x228] sm:$0xff]  }
  0x1a   :  { %1147 = vmatprep.subr.bf16.mxu1 %v1274_v25  ;;  %v1326_v8 = vld [vmem:[%s1663_s0 + $0x14] ss:$36 sps:$4 sm:$0xff]   ;;  %v1331_v12 = vld [vmem:[%s1663_s0 + $0x1c] ss:$36 sps:$4 sm:$0xff]   ;;  %v1337_v17 = vld [vmem:[%s1663_s0 + $0x64] ss:$36 sps:$4 sm:$0xff]  }
  0x1b   :  { %v1329_v11 = vld [vmem:[%s1663_s0 + $0x18] ss:$36 sps:$4 sm:$0xff]   ;;  %v1332_v13 = vld [vmem:[%s1662_s1 + $0x230] sm:$0xff]   ;;  %v1339_v18 = vld [vmem:[%s1663_s0 + $0x60] ss:$36 sps:$4 sm:$0xff]  }
  0x1c   :  { %1120 = vmatpush3.bf16.msra.mxu0 %v1275_v26  ;;  %v1333_v14 = vld [vmem:[%s1663_s0 + $0x5c] ss:$36 sps:$4 sm:$0xff]   ;;  %v1342_v22 = vld [vmem:[%s1662_s1 + $0x210] sm:$0xff]   ;;  %v1343_v23 = vld [vmem:[%s1662_s1 + $0x208] sm:$0xff]  }
  0x1d   :  { %1148 = vmatpush3.bf16.msra.mxu1 %v1276_v27  ;;  %1121 = vmatprep.subr.bf16.mxu0 %v1277_v28  ;;  %v1335_v15 = vld [vmem:[%s1663_s0 + $0x58] ss:$36 sps:$4 sm:$0xff]   ;;  %v1340_v19 = vld [vmem:[%s1662_s1 + $0x220] sm:$0xff]   ;;  %v1346_v25 = vld [vmem:[%s1663_s0 + $0x68] ss:$36 sps:$4 sm:$0xff]  }
  0x1e   :  { %1149 = vmatprep.subr.bf16.mxu1 %v1278_v29  ;;  %v1341_v20 = vld [vmem:[%s1662_s1 + $0x218] sm:$0xff]   ;;  %v1345_v21 = vld [vmem:[%s1663_s0 + $0x20] ss:$36 sps:$4 sm:$0xff]  }
  0x1f   :  { %v1344_v24 = vld [vmem:[%s1662_s1 + $0x200] sm:$0xff]  }
  0x20   :  { %1122 = vmatpush3.bf16.msra.mxu0 %v1279_v30 }
  0x21   :  { %1150 = vmatpush3.bf16.msra.mxu1 %v1280_v31  ;;  %1163 = vmatprep.subr.bf16.mxu0 %v1287_v36 }
  0x22   :  { %1191 = vmatprep.subr.bf16.mxu1 %v1289_v38 }
  0x23   :  { %739 = vmatmul.mubr.bf16.vlgmr.msra.gmra.mxu0 %v1281_v32 }
  0x24   :  { %788 = vmatmul.mubr.bf16.vlgmr.msra.gmra.mxu1 %v1284_v34  ;;  %1164 = vmatpush3.bf16.msra.mxu0 %v1288_v37 }
  0x25   :  { %1192 = vmatpush3.bf16.msra.mxu1 %v1290_v39  ;;  %1165 = vmatprep.subr.bf16.mxu0 %v1291_v40 }
  0x26   :  { %1193 = vmatprep.subr.bf16.mxu1 %v1293_v42  ;;  %746 = vmatprep.mubr.bf16.mxu0 %v1305_v54 }
  0x27   :  { %795 = vmatprep.mubr.bf16.mxu1 %v1307_v55 }
  0x28   :  { %1166 = vmatpush3.bf16.msra.mxu0 %v1292_v41 }
  0x29   :  { %1194 = vmatpush3.bf16.msra.mxu1 %v1294_v43  ;;  %1167 = vmatprep.subr.bf16.mxu0 %v1295_v44 }
  0x2a   :  { %1195 = vmatprep.subr.bf16.mxu1 %v1297_v46 }
  0x2b   :  { %747 = vmatmul.mubr.bf16.gmra.mxu0 %v1310_v57 }
  0x2c   :  { %1168 = vmatpush3.bf16.msra.mxu0 %v1296_v45  ;;  %796 = vmatmul.mubr.bf16.gmra.mxu1 %v1311_v58 }
  0x2d   :  { %1196 = vmatpush3.bf16.msra.mxu1 %v1298_v47  ;;  %1169 = vmatprep.subr.bf16.mxu0 %v1299_v48 }
  0x2e   :  { %1197 = vmatprep.subr.bf16.mxu1 %v1301_v50  ;;  %836 = vmatprep.mubr.bf16.mxu0 %v1326_v8 }
  0x2f   :  { %885 = vmatprep.mubr.bf16.mxu1 %v1331_v12 }
  0x30   :  { %1170 = vmatpush3.bf16.msra.mxu0 %v1300_v49 }
  0x31   :  { %1198 = vmatpush3.bf16.msra.mxu1 %v1302_v51  ;;  %1171 = vmatprep.subr.bf16.mxu0 %v1303_v52 }
  0x32   :  { %1199 = vmatprep.subr.bf16.mxu1 %v1309_v56 }
  0x34   :  { %1172 = vmatpush3.bf16.msra.mxu0 %v1304_v53 }
  0x35   :  { %1200 = vmatpush3.bf16.msra.mxu1 %v1312_v59  ;;  %1173 = vmatprep.subr.bf16.mxu0 %v1313_v60 }
  0x36   :  { %1201 = vmatprep.subr.bf16.mxu1 %v1315_v62 }
  0x38   :  { %1174 = vmatpush3.bf16.msra.mxu0 %v1314_v61 }
  0x39   :  { %1202 = vmatpush3.bf16.msra.mxu1 %v1316_v63  ;;  %1175 = vmatprep.subr.bf16.mxu0 %v1317_v0 }
  0x3a   :  { %1203 = vmatprep.subr.bf16.mxu1 %v1319_v2 }
  0x3c   :  { %1176 = vmatpush3.bf16.msra.mxu0 %v1318_v1 }
  0x3d   :  { %1204 = vmatpush3.bf16.msra.mxu1 %v1320_v3  ;;  %1177 = vmatprep.subr.bf16.mxu0 %v1321_v4 }
  0x3e   :  { %1205 = vmatprep.subr.bf16.mxu1 %v1323_v6 }
  0x40   :  { %1178 = vmatpush3.bf16.msra.mxu0 %v1322_v5 }
  0x41   :  { %1206 = vmatpush3.bf16.msra.mxu1 %v1327_v9  ;;  %1229 = vmatprep.subr.bf16.mxu0 %v1328_v10 }
  0x43   :  { %837 = vmatmul.mubr.bf16.vlgmr.msra.gmra.mxu0 %v1324_v7 }
  0x44   :  { %1230 = vmatpush3.bf16.msra.mxu0 %v1328_v10  ;;  %886 = vmatmul.mubr.bf16.vlgmr.msra.gmra.mxu1 %v1329_v11 }
  0x45   :  { %1231 = vmatprep.subr.bf16.mxu0 %v1332_v13  ;;  %844 = vmatprep.mubr.bf16.mxu0 %v1333_v14 }
  0x46   :  { %893 = vmatprep.mubr.bf16.mxu1 %v1337_v17 }
  0x48   :  { %1232 = vmatpush3.bf16.msra.mxu0 %v1332_v13 }
  0x49   :  { %1233 = vmatprep.subr.bf16.mxu0 %v1336_v16 }
  0x4b   :  { %845 = vmatmul.mubr.bf16.gmra.mxu0 %v1335_v15 }
  0x4c   :  { %1234 = vmatpush3.bf16.msra.mxu0 %v1336_v16  ;;  %894 = vmatmul.mubr.bf16.gmra.mxu1 %v1339_v18 }
  0x4d   :  { %1235 = vmatprep.subr.bf16.mxu0 %v1340_v19  ;;  %1245 = vmatprep.mubr.bf16.mxu0 %v1345_v21 }
  0x50   :  { %1236 = vmatpush3.bf16.msra.mxu0 %v1340_v19 }
  0x51   :  { %1237 = vmatprep.subr.bf16.mxu0 %v1341_v20 }
  0x54   :  { %1238 = vmatpush3.bf16.msra.mxu0 %v1341_v20 }
  0x55   :  { %1239 = vmatprep.subr.bf16.mxu0 %v1342_v22 }
  0x58   :  { %1240 = vmatpush3.bf16.msra.mxu0 %v1342_v22 }
  0x59   :  { %1241 = vmatprep.subr.bf16.mxu0 %v1343_v23 }
  0x5c   :  { %1242 = vmatpush3.bf16.msra.mxu0 %v1343_v23 }
  0x5d   :  { %1243 = vmatprep.subr.bf16.mxu0 %v1344_v24 }
  0x60   :  { %1244 = vmatpush3.bf16.msra.mxu0 %v1344_v24 }
  0x63   :  { %1246 = vmatmul.mubr.bf16.vlgmr.msra.gmra.mxu0 %v1346_v25 }
  0xe3   :  { %v1123_v26 = vpop.f32.mrf.mxu0 }
  0xe4   :  { %v1151_v27 = vpop.f32.mrf.mxu1 }
  0xe5   :  { %v1124_v28 = vpop.f32.mrf.mxu0 }
  0xe6   :  { %v1152_v29 = vpop.f32.mrf.mxu1  ;;  %v1125_v55 = vadd.f32 %v1124_v28, %v1123_v26 }
  0xe7   :  { %v1126_v30 = vpop.f32.mrf.mxu0  ;;  %v1153_v56 = vadd.f32 %v1152_v29, %v1151_v27 }
  0xe8   :  { %v1154_v31 = vpop.f32.mrf.mxu1 }
  0xe9   :  { %v1127_v32 = vpop.f32.mrf.mxu0  ;;  %v790_v2 = vadd.f32 %v1153_v56, %v1125_v55 }
  0xea   :  { %v1155_v34 = vpop.f32.mrf.mxu1  ;;  %v1128_v57 = vadd.f32 %v1127_v32, %v1126_v30 }
  0xeb   :  { %v1129_v33 = vpop.f32.mrf.mxu0  ;;  %v1156_v58 = vadd.f32 %v1155_v34, %v1154_v31 }
  0xec   :  { %v1157_v35 = vpop.f32.mrf.mxu1 }
  0xed   :  { %v1130_v36 = vpop.f32.mrf.mxu0  ;;  %v793_v5 = vadd.f32 %v1156_v58, %v1128_v57  ;;  %v986_v58 = vlaneseq }
  0xee   :  { %v1158_v37 = vpop.f32.mrf.mxu1  ;;  %v1131_v59 = vadd.f32 %v1130_v36, %v1129_v33 }
  0xef   :  { %v1132_v38 = vpop.f32.mrf.mxu0  ;;  %v1159_v60 = vadd.f32 %v1158_v37, %v1157_v35 }
  0xf0   :  { %v1160_v39 = vpop.f32.mrf.mxu1 }
  0xf1   :  { %v1133_v40 = vpop.f32.mrf.mxu0  ;;  %v798_v6 = vadd.f32 %v1159_v60, %v1131_v59  ;;  %v987_v59 = vshrl.u32 %v986_v58, 7  ;;  %v978_v60 = vld [vmem:[%s1664_s2] sm:$0x1] }
  0xf2   :  { %v1161_v42 = vpop.f32.mrf.mxu1  ;;  %v1134_v62 = vadd.f32 %v1133_v40, %v1132_v38 }
  0xf3   :  { %v1162_v63 = vadd.f32 %v1161_v42, %v1160_v39 }
  0xf5   :  { %v801_v10 = vadd.f32 %v1162_v63, %v1134_v62 }
 0x103   :  { %v1179_v41 = vpop.f32.mrf.mxu0 }
 0x104   :  { %v1207_v44 = vpop.f32.mrf.mxu1 }
 0x105   :  { %v1180_v43 = vpop.f32.mrf.mxu0 }
 0x106   :  { %v1208_v46 = vpop.f32.mrf.mxu1  ;;  %v1181_v61 = vadd.f32 %v1180_v43, %v1179_v41 }
 0x107   :  { %v1182_v45 = vpop.f32.mrf.mxu0  ;;  %v1209_v8 = vadd.f32 %v1208_v46, %v1207_v44 }
 0x108   :  { %v1210_v48 = vpop.f32.mrf.mxu1  ;;  %v839_v7 = vadd.f32 %v1181_v61, %v790_v2  ;;  %v988_v61 = vsub.s32 0, %v987_v59 }
 0x109   :  { %v1183_v47 = vpop.f32.mrf.mxu0 }
 0x10a   :  { %v1211_v50 = vpop.f32.mrf.mxu1  ;;  %v1184_v3 = vadd.f32 %v1183_v47, %v1182_v45  ;;  %v888_v20 = vadd.f32 %v1209_v8, %v839_v7 }
 0x10b   :  { %v1185_v49 = vpop.f32.mrf.mxu0  ;;  %v1212_v14 = vadd.f32 %v1211_v50, %v1210_v48 }
 0x10c   :  { %v1213_v52 = vpop.f32.mrf.mxu1  ;;  %v842_v13 = vadd.f32 %v1184_v3, %v793_v5 }
 0x10d   :  { %v1186_v51 = vpop.f32.mrf.mxu0 }
 0x10e   :  { %v1214_v54 = vpop.f32.mrf.mxu1  ;;  %v1187_v4 = vadd.f32 %v1186_v51, %v1185_v49  ;;  %v891_v24 = vadd.f32 %v1212_v14, %v842_v13 }
 0x10f   :  { %v1188_v53 = vpop.f32.mrf.mxu0  ;;  %v1215_v16 = vadd.f32 %v1214_v54, %v1213_v52 }
 0x110   :  { %v1216_v1 = vpop.f32.mrf.mxu1  ;;  %v847_v15 = vadd.f32 %v1187_v4, %v798_v6 }
 0x111   :  { %v1189_v0 = vpop.f32.mrf.mxu0 }
 0x112   :  { %v1190_v9 = vadd.f32 %v1189_v0, %v1188_v53  ;;  %v1217_v11 = vpop.f32.mrf.mxu1  ;;  %v896_v22 = vadd.f32 %v1215_v16, %v847_v15  ;;  %v982_v0 = vld [vmem:[%s1665_s3] sm:$0x1] }
 0x113   :  { %v1218_v19 = vadd.f32 %v1217_v11, %v1216_v1 }
 0x114   :  { %v850_v18 = vadd.f32 %v1190_v9, %v801_v10 }
 0x116   :  { %v899_v27 = vadd.f32 %v1218_v19, %v850_v18 }
 0x123   :  { %v1247_v12 = vpop.f32.mrf.mxu0 }
 0x124   :  { %v945_v26 = vadd.f32 %v1247_v12, %v896_v22 }
 0x125   :  { %v936_v17 = vpop.f32.mrf.mxu0 }
 0x126   :  { %v937_v23 = vadd.f32 %v936_v17, %v888_v20  ;;  %v963_v33 = vmul.f32 %v945_v26, %v945_v26 }
 0x127   :  { %v1248_v21 = vpop.f32.mrf.mxu0 }
 0x128   :  { %v961_v29 = vmul.f32 %v937_v23, %v937_v23  ;;  %v948_v30 = vadd.f32 %v1248_v21, %v899_v27 }
 0x129   :  { %v939_v25 = vpop.f32.mrf.mxu0 }
 0x12a   :  { %v940_v28 = vadd.f32 %v939_v25, %v891_v24  ;;  %v964_v36 = vmul.f32 %v948_v30, %v948_v30 }
 0x12c   :  { %v951_v31 = vadd.f32 %v940_v28, %v937_v23  ;;  %v962_v32 = vmul.f32 %v940_v28, %v940_v28 }
 0x12e   :  { %v952_v34 = vadd.f32 %v951_v31, %v945_v26  ;;  %v965_v35 = vadd.f32 %v962_v32, %v961_v29 }
 0x130   :  { %v953_v37 = vadd.f32 %v952_v34, %v948_v30  ;;  %v966_v38 = vadd.f32 %v965_v35, %v963_v33 }
 0x132   :  { %v954_v39 = vrot.slane %v953_v37, 4  ;;  %v967_v40 = vadd.f32 %v966_v38, %v964_v36 }
 0x134   :  { %v955_v41 = vadd.f32 %v954_v39, %v953_v37  ;;  %v968_v42 = vrot.slane %v967_v40, 4 }
 0x136   :  { %v956_v43 = vrot.slane %v955_v41, 2  ;;  %v969_v44 = vadd.f32 %v968_v42, %v967_v40 }
 0x138   :  { %v957_v45 = vadd.f32 %v956_v43, %v955_v41  ;;  %v970_v46 = vrot.slane %v969_v44, 2 }
 0x13a   :  { %v958_v47 = vrot.slane %v957_v45, 1  ;;  %v971_v48 = vadd.f32 %v970_v46, %v969_v44 }
 0x13c   :  { %v959_v49 = vadd.f32 %v958_v47, %v957_v45  ;;  %v972_v50 = vrot.slane %v971_v48, 1 }
 0x13e   :  { %v960_v51 = vmul.f32 0.03125, %v959_v49  ;;  %v973_v52 = vadd.f32 %v972_v50, %v971_v48 }
 0x140   :  { %v974_v53 = vmul.f32 0.03125, %v973_v52  ;;  %v975_v54 = vmul.f32 %v960_v51, %v960_v51 }
 0x142   :  { %v976_v55 = vsub.f32 %v974_v53, %v975_v54 }
 0x144   :  { %v977_v56 = vmax.f32 %v976_v55, 0.0 }
 0x146   :  { %v979_v57 = vadd.f32 1e-05, %v977_v56 }
 0x148   :  { %1347 = vrsqrt.f32 %v979_v57 }
 0x155   :  { %v1348_v62 = vpop.eup %1347 }
 0x156   :  { %v981_v63 = vmul.f32 %v1348_v62, %v978_v60 }
 0x158   :  { %v983_v1 = vmul.f32 %v981_v63, %v960_v51  ;;  %v989_v2 = vrot.slane %v981_v63, %v988_v61 }
 0x15a   :  { %v984_v3 = vsub.f32 %v982_v0, %v983_v1  ;;  %v991_v4 = vmul.f32 %v989_v2, %v937_v23  ;;  %v992_v5 = vmul.f32 %v989_v2, %v940_v28  ;;  %v993_v6 = vmul.f32 %v989_v2, %v945_v26 }
 0x15b   :  { %v994_v7 = vmul.f32 %v989_v2, %v948_v30 }
 0x15c   :  { %v999_v8 = vrot.slane %v984_v3, %v988_v61 }
 0x15e   :  { %v1001_v9 = vadd.f32 %v999_v8, %v991_v4  ;;  %v1002_v10 = vadd.f32 %v999_v8, %v992_v5  ;;  %v1003_v11 = vadd.f32 %v999_v8, %v993_v6  ;;  %v1004_v12 = vadd.f32 %v999_v8, %v994_v7 }
 0x160   :  { %v1005_v13 = vmax.f32 %v1001_v9, 0.0  ;;  %v1006_v14 = vmax.f32 %v1002_v10, 0.0  ;;  %v1007_v15 = vmax.f32 %v1003_v11, 0.0  ;;  %v1008_v16 = vmax.f32 %v1004_v12, 0.0 }
 0x162   :  { %1009 = vst [vmem:[%s1666_s4] sm:$0xff] %v1005_v13  ;;  %1010 = vst [vmem:[%s1666_s4 + $0x8] sm:$0xff] %v1006_v14 }
 0x163   :  { %1011 = vst [vmem:[%s1666_s4 + $0x10] sm:$0xff] %v1007_v15  ;;  %1012 = vst [vmem:[%s1666_s4 + $0x18] sm:$0xff] %v1008_v16 }

// kernel: generator_residual_forward.20
= control target key start
LH: loop header
LB: loop body
LE: loop exit
PB: predicated region body
PF: predicated region fallthrough
CT: control target
= control target key end

     0   :  { %s4718_s1 = inlined_call_operand.vmem [shape: bf16[2048,128], index: 1, kind: input, shape index: {}]   ;;  %s4719_s0 = inlined_call_operand.vmem [shape: bf16[128,2048], index: 0, kind: input, shape index: {}]   ;;  %s4720_s2 = inlined_call_operand.vmem [shape: f32[1,128], index: 2, kind: input, shape index: {}]   ;;  %s4721_s3 = inlined_call_operand.vmem [shape: f32[1,128], index: 3, kind: input, shape index: {}]   ;;  %s4722_s4 = inlined_call_operand.vmem [shape: f32[128,128], index: 4, kind: output, shape index: {}]  }
   0x1   :  { %v3504_v0 = vld [vmem:[%s4718_s1 + $0x78] sm:$0xff]   ;;  %v3508_v4 = vld [vmem:[%s4718_s1 + $0x70] sm:$0xff]   ;;  %v3512_v8 = vld [vmem:[%s4718_s1 + $0x68] sm:$0xff]  }
   0x2   :  { %v3505_v1 = vld [vmem:[%s4718_s1 + $0xf8] sm:$0xff]   ;;  %2992 = vmatprep.subr.bf16.mxu0 %v3504_v0  ;;  %v3509_v5 = vld [vmem:[%s4718_s1 + $0xf0] sm:$0xff]   ;;  %v3513_v9 = vld [vmem:[%s4718_s1 + $0xe8] sm:$0xff]  }
   0x3   :  { %v3506_v2 = vld [vmem:[%s4718_s1 + $0x38] sm:$0xff]   ;;  %3056 = vmatprep.subr.bf16.mxu1 %v3505_v1  ;;  %v3510_v6 = vld [vmem:[%s4718_s1 + $0x30] sm:$0xff]   ;;  %v3514_v10 = vld [vmem:[%s4718_s1 + $0x28] sm:$0xff]  }
   0x4   :  { %v3507_v3 = vld [vmem:[%s4718_s1 + $0xb8] sm:$0xff]   ;;  %2993 = vmatpush3.bf16.msra.mxu0 %v3506_v2  ;;  %v3511_v7 = vld [vmem:[%s4718_s1 + $0xb0] sm:$0xff]   ;;  %v3515_v11 = vld [vmem:[%s4718_s1 + $0xa8] sm:$0xff]  }
   0x5   :  { %3057 = vmatpush3.bf16.msra.mxu1 %v3507_v3  ;;  %2994 = vmatprep.subr.bf16.mxu0 %v3508_v4  ;;  %v3516_v12 = vld [vmem:[%s4718_s1 + $0x60] sm:$0xff]   ;;  %v3520_v16 = vld [vmem:[%s4718_s1 + $0x58] sm:$0xff]   ;;  %v3524_v20 = vld [vmem:[%s4718_s1 + $0x50] sm:$0xff]  }
   0x6   :  { %3058 = vmatprep.subr.bf16.mxu1 %v3509_v5  ;;  %v3517_v13 = vld [vmem:[%s4718_s1 + $0xe0] sm:$0xff]   ;;  %v3521_v17 = vld [vmem:[%s4718_s1 + $0xd8] sm:$0xff]   ;;  %v3525_v21 = vld [vmem:[%s4718_s1 + $0xd0] sm:$0xff]  }
   0x7   :  { %v3518_v14 = vld [vmem:[%s4718_s1 + $0x20] sm:$0xff]   ;;  %v3522_v18 = vld [vmem:[%s4718_s1 + $0x18] sm:$0xff]   ;;  %v3526_v22 = vld [vmem:[%s4718_s1 + $0x10] sm:$0xff]  }
   0x8   :  { %2995 = vmatpush3.bf16.msra.mxu0 %v3510_v6  ;;  %v3519_v15 = vld [vmem:[%s4718_s1 + $0xa0] sm:$0xff]   ;;  %v3523_v19 = vld [vmem:[%s4718_s1 + $0x98] sm:$0xff]   ;;  %v3527_v23 = vld [vmem:[%s4718_s1 + $0x90] sm:$0xff]  }
   0x9   :  { %3059 = vmatpush3.bf16.msra.mxu1 %v3511_v7  ;;  %2996 = vmatprep.subr.bf16.mxu0 %v3512_v8  ;;  %v3528_v24 = vld [vmem:[%s4718_s1 + $0x48] sm:$0xff]   ;;  %v3532_v28 = vld [vmem:[%s4718_s1 + $0x40] sm:$0xff]   ;;  %v3536_v40 = vld [vmem:[%s4718_s1 + $0x178] sm:$0xff]  }
   0xa   :  { %3060 = vmatprep.subr.bf16.mxu1 %v3513_v9  ;;  %v3529_v25 = vld [vmem:[%s4718_s1 + $0xc8] sm:$0xff]   ;;  %v3533_v29 = vld [vmem:[%s4718_s1 + $0xc0] sm:$0xff]   ;;  %v3537_v41 = vld [vmem:[%s4718_s1 + $0x138] sm:$0xff]  }
   0xb   :  { %v3530_v26 = vld [vmem:[%s4718_s1 + $0x8] sm:$0xff]   ;;  %v3534_v30 = vld [vmem:[%s4718_s1] sm:$0xff]   ;;  %v3538_v42 = vld [vmem:[%s4718_s1 + $0x1f8] sm:$0xff]  }
   0xc   :  { %2997 = vmatpush3.bf16.msra.mxu0 %v3514_v10  ;;  %v3531_v27 = vld [vmem:[%s4718_s1 + $0x88] sm:$0xff]   ;;  %v3535_v31 = vld [vmem:[%s4718_s1 + $0x80] sm:$0xff]   ;;  %v3539_v43 = vld [vmem:[%s4718_s1 + $0x1b8] sm:$0xff]  }
   0xd   :  { %3061 = vmatpush3.bf16.msra.mxu1 %v3515_v11  ;;  %2998 = vmatprep.subr.bf16.mxu0 %v3516_v12  ;;  %v18_v32 = vld [vmem:[%s4719_s0] sm:$0xff]  ;;  %v19_v34 = vld [vmem:[%s4719_s0 + $0x8] sm:$0xff]  ;;  %v3540_v50 = vld [vmem:[%s4718_s1 + $0x170] sm:$0xff]  }
   0xe   :  { %3062 = vmatprep.subr.bf16.mxu1 %v3517_v13  ;;  %v26_v33 = vld [vmem:[%s4719_s0 + $0x40] sm:$0xff]  ;;  %v27_v37 = vld [vmem:[%s4719_s0 + $0x48] sm:$0xff]  ;;  %v3541_v52 = vld [vmem:[%s4718_s1 + $0x130] sm:$0xff]  }
   0xf   :  { %v2736_v35 = vcombine.low %v18_v32, %v26_v33  ;;  %v2737_v36 = vcombine.high %v18_v32, %v26_v33  ;;  %v2738_v38 = vcombine.low %v19_v34, %v27_v37  ;;  %v2739_v39 = vcombine.high %v19_v34, %v27_v37  ;;  %v34_v44 = vld [vmem:[%s4719_s0 + $0x80] sm:$0xff]  ;;  %v35_v47 = vld [vmem:[%s4719_s0 + $0x88] sm:$0xff]  ;;  %v3542_v54 = vld [vmem:[%s4718_s1 + $0x1f0] sm:$0xff]  }
  0x10   :  { %2999 = vmatpush3.bf16.msra.mxu0 %v3518_v14  ;;  %v42_v45 = vld [vmem:[%s4719_s0 + $0xc0] sm:$0xff]  ;;  %v43_v48 = vld [vmem:[%s4719_s0 + $0xc8] sm:$0xff]  ;;  %v3543_v55 = vld [vmem:[%s4718_s1 + $0x1b0] sm:$0xff]  }
  0x11   :  { %3063 = vmatpush3.bf16.msra.mxu1 %v3519_v15  ;;  %3000 = vmatprep.subr.bf16.mxu0 %v3520_v16  ;;  %v2753_v46 = vcombine.high %v34_v44, %v42_v45  ;;  %v2755_v49 = vcombine.high %v35_v47, %v43_v48  ;;  %v2752_v51 = vcombine.low %v34_v44, %v42_v45  ;;  %v50_v56 = vld [vmem:[%s4719_s0 + $0x100] sm:$0xff]  ;;  %v51_v58 = vld [vmem:[%s4719_s0 + $0x108] sm:$0xff]  ;;  %v3558_v32 = vld [vmem:[%s4718_s1 + $0x1d0] sm:$0xff]  }
  0x12   :  { %3064 = vmatprep.subr.bf16.mxu1 %v3521_v17  ;;  %1842 = vmatprep.mubr.bf16.mxu0 %v2737_v36  ;;  %v2754_v53 = vcombine.low %v35_v47, %v43_v48  ;;  %v58_v57 = vld [vmem:[%s4719_s0 + $0x140] sm:$0xff]  ;;  %v59_v59 = vld [vmem:[%s4719_s0 + $0x148] sm:$0xff]  ;;  %v3559_v33 = vld [vmem:[%s4718_s1 + $0x190] sm:$0xff]  }
  0x13   :  { %1939 = vmatprep.mubr.bf16.mxu1 %v2739_v39  ;;  %v2769_v60 = vcombine.high %v50_v56, %v58_v57  ;;  %v2771_v61 = vcombine.high %v51_v58, %v59_v59  ;;  %v3544_v62 = vld [vmem:[%s4718_s1 + $0x168] sm:$0xff]   ;;  %v2768_v2 = vcombine.low %v50_v56, %v58_v57  ;;  %v66_v3 = vld [vmem:[%s4719_s0 + $0x180] sm:$0xff]  ;;  %v2770_v6 = vcombine.low %v51_v58, %v59_v59  ;;  %v3568_v56 = vld [vmem:[%s4718_s1 + $0x278] sm:$0xff]  }
  0x14   :  { %3001 = vmatpush3.bf16.msra.mxu0 %v3522_v18  ;;  %v3545_v63 = vld [vmem:[%s4718_s1 + $0x128] sm:$0xff]   ;;  %v74_v4 = vld [vmem:[%s4719_s0 + $0x1c0] sm:$0xff]  ;;  %v3552_v18 = vld [vmem:[%s4718_s1 + $0x158] sm:$0xff]  }
  0x15   :  { %3065 = vmatpush3.bf16.msra.mxu1 %v3523_v19  ;;  %3002 = vmatprep.subr.bf16.mxu0 %v3524_v20  ;;  %v3546_v0 = vld [vmem:[%s4718_s1 + $0x1e8] sm:$0xff]   ;;  %v2785_v7 = vcombine.high %v66_v3, %v74_v4  ;;  %v3548_v10 = vld [vmem:[%s4718_s1 + $0x160] sm:$0xff]   ;;  %v2784_v19 = vcombine.low %v66_v3, %v74_v4  ;;  %v3553_v20 = vld [vmem:[%s4718_s1 + $0x118] sm:$0xff]  }
  0x16   :  { %3066 = vmatprep.subr.bf16.mxu1 %v3525_v21  ;;  %v3547_v1 = vld [vmem:[%s4718_s1 + $0x1a8] sm:$0xff]   ;;  %v3549_v11 = vld [vmem:[%s4718_s1 + $0x120] sm:$0xff]   ;;  %v3570_v58 = vld [vmem:[%s4718_s1 + $0x2f8] sm:$0xff]  }
  0x17   :  { %v67_v5 = vld [vmem:[%s4719_s0 + $0x188] sm:$0xff]  ;;  %v3550_v12 = vld [vmem:[%s4718_s1 + $0x1e0] sm:$0xff]   ;;  %v29_v3 = vld [vmem:[%s4719_s0 + $0x58] sm:$0xff] }
  0x18   :  { %3003 = vmatpush3.bf16.msra.mxu0 %v3526_v22  ;;  %v75_v8 = vld [vmem:[%s4719_s0 + $0x1c8] sm:$0xff]  ;;  %v3551_v13 = vld [vmem:[%s4718_s1 + $0x1a0] sm:$0xff]  }
  0x19   :  { %3067 = vmatpush3.bf16.msra.mxu1 %v3527_v23  ;;  %3004 = vmatprep.subr.bf16.mxu0 %v3528_v24  ;;  %v2787_v9 = vcombine.high %v67_v5, %v75_v8  ;;  %v82_v14 = vld [vmem:[%s4719_s0 + $0x200] sm:$0xff]  ;;  %v83_v16 = vld [vmem:[%s4719_s0 + $0x208] sm:$0xff]  ;;  %v2786_v21 = vcombine.low %v67_v5, %v75_v8  ;;  %v3554_v23 = vld [vmem:[%s4718_s1 + $0x1d8] sm:$0xff]  }
  0x1a   :  { %3068 = vmatprep.subr.bf16.mxu1 %v3529_v25  ;;  %v90_v15 = vld [vmem:[%s4719_s0 + $0x240] sm:$0xff]  ;;  %v91_v17 = vld [vmem:[%s4719_s0 + $0x248] sm:$0xff]  ;;  %v3555_v25 = vld [vmem:[%s4718_s1 + $0x198] sm:$0xff]  }
  0x1b   :  { %v2801_v22 = vcombine.high %v82_v14, %v90_v15  ;;  %v2803_v24 = vcombine.high %v83_v16, %v91_v17  ;;  %v2800_v34 = vcombine.low %v82_v14, %v90_v15  ;;  %v3561_v39 = vld [vmem:[%s4718_s1 + $0x108] sm:$0xff]   ;;  %v3565_v48 = vld [vmem:[%s4718_s1 + $0x100] sm:$0xff]   ;;  %v36_v8 = vld [vmem:[%s4719_s0 + $0x90] sm:$0xff] }
  0x1c   :  { %3005 = vmatpush3.bf16.msra.mxu0 %v3530_v26  ;;  %v98_v26 = vld [vmem:[%s4719_s0 + $0x280] sm:$0xff]  ;;  %v115_v44 = vld [vmem:[%s4719_s0 + $0x308] sm:$0xff]  ;;  %v3571_v15 = vld [vmem:[%s4718_s1 + $0x2b8] sm:$0xff]  }
  0x1d   :  { %3069 = vmatpush3.bf16.msra.mxu1 %v3531_v27  ;;  %3006 = vmatprep.subr.bf16.mxu0 %v3532_v28  ;;  %v106_v27 = vld [vmem:[%s4719_s0 + $0x2c0] sm:$0xff]  ;;  %v3556_v28 = vld [vmem:[%s4718_s1 + $0x150] sm:$0xff]   ;;  %v123_v45 = vld [vmem:[%s4719_s0 + $0x348] sm:$0xff] }
  0x1e   :  { %3070 = vmatprep.subr.bf16.mxu1 %v3533_v29  ;;  %v99_v29 = vld [vmem:[%s4719_s0 + $0x288] sm:$0xff]  ;;  %v2817_v36 = vcombine.high %v98_v26, %v106_v27  ;;  %v2816_v47 = vcombine.low %v98_v26, %v106_v27 }
  0x1f   :  { %v131_v57 = vld [vmem:[%s4719_s0 + $0x388] sm:$0xff] }
  0x20   :  { %3007 = vmatpush3.bf16.msra.mxu0 %v3534_v30  ;;  %v107_v30 = vld [vmem:[%s4719_s0 + $0x2c8] sm:$0xff] }
  0x21   :  { %3071 = vmatpush3.bf16.msra.mxu1 %v3535_v31  ;;  %3120 = vmatprep.subr.bf16.mxu0 %v3536_v40  ;;  %v3557_v31 = vld [vmem:[%s4718_s1 + $0x110] sm:$0xff]   ;;  %v2819_v37 = vcombine.high %v99_v29, %v107_v30  ;;  %v3562_v40 = vld [vmem:[%s4718_s1 + $0x1c8] sm:$0xff]  }
  0x22   :  { %3184 = vmatprep.subr.bf16.mxu1 %v3538_v42  ;;  %v122_v42 = vld [vmem:[%s4719_s0 + $0x340] sm:$0xff]  ;;  %v139_v59 = vld [vmem:[%s4719_s0 + $0x3c8] sm:$0xff] }
  0x23   :  { %1843 = vmatmul.mubr.bf16.vlgmr.msra.gmra.mxu0 %v2736_v35  ;;  %v2802_v35 = vcombine.low %v83_v16, %v91_v17  ;;  %v2850_v5 = vcombine.low %v131_v57, %v139_v59  ;;  %v3572_v17 = vld [vmem:[%s4718_s1 + $0x270] sm:$0xff]   ;;  %v3576_v26 = vld [vmem:[%s4718_s1 + $0x268] sm:$0xff]  }
  0x24   :  { %1940 = vmatmul.mubr.bf16.vlgmr.msra.gmra.mxu1 %v2738_v38  ;;  %3121 = vmatpush3.bf16.msra.mxu0 %v3537_v41  ;;  %v3560_v38 = vld [vmem:[%s4718_s1 + $0x148] sm:$0xff]   ;;  %v114_v41 = vld [vmem:[%s4719_s0 + $0x300] sm:$0xff] }
  0x25   :  { %3185 = vmatpush3.bf16.msra.mxu1 %v3539_v43  ;;  %1850 = vmatprep.mubr.bf16.mxu0 %v2753_v46  ;;  %v3563_v43 = vld [vmem:[%s4718_s1 + $0x188] sm:$0xff]   ;;  %v3564_v46 = vld [vmem:[%s4718_s1 + $0x140] sm:$0xff]  }
  0x26   :  { %1947 = vmatprep.mubr.bf16.mxu1 %v2755_v49  ;;  %3122 = vmatprep.subr.bf16.mxu0 %v3540_v50  ;;  %v2818_v49 = vcombine.low %v99_v29, %v107_v30  ;;  %v2833_v50 = vcombine.high %v114_v41, %v122_v42  ;;  %v3578_v27 = vld [vmem:[%s4718_s1 + $0x2e8] sm:$0xff]  }
  0x27   :  { %3186 = vmatprep.subr.bf16.mxu1 %v3542_v54  ;;  %v130_v54 = vld [vmem:[%s4719_s0 + $0x380] sm:$0xff] }
  0x28   :  { %3123 = vmatpush3.bf16.msra.mxu0 %v3541_v52  ;;  %v2835_v52 = vcombine.high %v115_v44, %v123_v45 }
  0x29   :  { %3187 = vmatpush3.bf16.msra.mxu1 %v3543_v55  ;;  %3124 = vmatprep.subr.bf16.mxu0 %v3544_v62  ;;  %v138_v55 = vld [vmem:[%s4719_s0 + $0x3c0] sm:$0xff] }
  0x2a   :  { %3188 = vmatprep.subr.bf16.mxu1 %v3546_v0  ;;  %v2849_v62 = vcombine.high %v130_v54, %v138_v55  ;;  %v20_v0 = vld [vmem:[%s4719_s0 + $0x10] sm:$0xff]  ;;  %v2848_v4 = vcombine.low %v130_v54, %v138_v55  ;;  %v85_v54 = vld [vmem:[%s4719_s0 + $0x218] sm:$0xff] }
  0x2b   :  { %1851 = vmatmul.mubr.bf16.gmra.mxu0 %v2752_v51  ;;  %v3566_v51 = vld [vmem:[%s4718_s1 + $0x1c0] sm:$0xff]   ;;  %v93_v55 = vld [vmem:[%s4719_s0 + $0x258] sm:$0xff] }
  0x2c   :  { %1948 = vmatmul.mubr.bf16.gmra.mxu1 %v2754_v53  ;;  %1858 = vmatprep.mubr.bf16.mxu0 %v2769_v60  ;;  %v3567_v53 = vld [vmem:[%s4718_s1 + $0x180] sm:$0xff]   ;;  %v2832_v60 = vcombine.low %v114_v41, %v122_v42  ;;  %v3584_v42 = vld [vmem:[%s4718_s1 + $0x258] sm:$0xff]  }
  0x2d   :  { %1955 = vmatprep.mubr.bf16.mxu1 %v2771_v61  ;;  %3125 = vmatpush3.bf16.msra.mxu0 %v3545_v63  ;;  %v2834_v61 = vcombine.low %v115_v44, %v123_v45  ;;  %v2851_v63 = vcombine.high %v131_v57, %v139_v59  ;;  %v3583_v41 = vld [vmem:[%s4718_s1 + $0x2a0] sm:$0xff]   ;;  %v3586_v44 = vld [vmem:[%s4718_s1 + $0x2d8] sm:$0xff]   ;;  %v3591_v57 = vld [vmem:[%s4718_s1 + $0x290] sm:$0xff]  }
  0x2e   :  { %3189 = vmatpush3.bf16.msra.mxu1 %v3547_v1  ;;  %3126 = vmatprep.subr.bf16.mxu0 %v3548_v10  ;;  %v28_v1 = vld [vmem:[%s4719_s0 + $0x50] sm:$0xff] }
  0x2f   :  { %3190 = vmatprep.subr.bf16.mxu1 %v3550_v12  ;;  %v2740_v10 = vcombine.low %v20_v0, %v28_v1  ;;  %v37_v12 = vld [vmem:[%s4719_s0 + $0x98] sm:$0xff] }
  0x31   :  { %3127 = vmatpush3.bf16.msra.mxu0 %v3549_v11  ;;  %v3569_v11 = vld [vmem:[%s4718_s1 + $0x238] sm:$0xff]  }
  0x32   :  { %3191 = vmatpush3.bf16.msra.mxu1 %v3551_v13  ;;  %3128 = vmatprep.subr.bf16.mxu0 %v3552_v18  ;;  %v45_v13 = vld [vmem:[%s4719_s0 + $0xd8] sm:$0xff] }
  0x33   :  { %1859 = vmatmul.mubr.bf16.gmra.mxu0 %v2768_v2  ;;  %3192 = vmatprep.subr.bf16.mxu1 %v3554_v23  ;;  %v21_v2 = vld [vmem:[%s4719_s0 + $0x18] sm:$0xff]  ;;  %v2759_v18 = vcombine.high %v37_v12, %v45_v13  ;;  %v60_v23 = vld [vmem:[%s4719_s0 + $0x150] sm:$0xff]  ;;  %v2758_v29 = vcombine.low %v37_v12, %v45_v13  ;;  %v2806_v13 = vcombine.low %v85_v54, %v93_v55 }
  0x34   :  { %1956 = vmatmul.mubr.bf16.gmra.mxu1 %v2770_v6  ;;  %1866 = vmatprep.mubr.bf16.mxu0 %v2785_v7  ;;  %v2741_v6 = vcombine.high %v20_v0, %v28_v1  ;;  %v2743_v7 = vcombine.high %v21_v2, %v29_v3  ;;  %v2742_v14 = vcombine.low %v21_v2, %v29_v3  ;;  %v3593_v0 = vld [vmem:[%s4718_s1 + $0x208] sm:$0xff]   ;;  %v3596_v2 = vld [vmem:[%s4718_s1 + $0x240] sm:$0xff]   ;;  %v100_v3 = vld [vmem:[%s4719_s0 + $0x290] sm:$0xff] }
  0x35   :  { %1963 = vmatprep.mubr.bf16.mxu1 %v2787_v9  ;;  %3129 = vmatpush3.bf16.msra.mxu0 %v3553_v20  ;;  %v44_v9 = vld [vmem:[%s4719_s0 + $0xd0] sm:$0xff]  ;;  %v3595_v1 = vld [vmem:[%s4718_s1 + $0x288] sm:$0xff]   ;;  %v3602_v12 = vld [vmem:[%s4718_s1 + $0x3f8] sm:$0xff]  }
  0x36   :  { %3193 = vmatpush3.bf16.msra.mxu1 %v3555_v25  ;;  %3130 = vmatprep.subr.bf16.mxu0 %v3556_v28  ;;  %v2757_v16 = vcombine.high %v36_v8, %v44_v9  ;;  %v3574_v20 = vld [vmem:[%s4718_s1 + $0x2f0] sm:$0xff]   ;;  %v61_v25 = vld [vmem:[%s4719_s0 + $0x158] sm:$0xff]  ;;  %v2756_v28 = vcombine.low %v36_v8, %v44_v9  ;;  %v3597_v8 = vld [vmem:[%s4718_s1 + $0x200] sm:$0xff]  }
  0x37   :  { %3194 = vmatprep.subr.bf16.mxu1 %v3558_v32  ;;  %v3577_v32 = vld [vmem:[%s4718_s1 + $0x228] sm:$0xff]   ;;  %v3599_v9 = vld [vmem:[%s4718_s1 + $0x280] sm:$0xff]  }
  0x39   :  { %3131 = vmatpush3.bf16.msra.mxu0 %v3557_v31 }
  0x3a   :  { %3195 = vmatpush3.bf16.msra.mxu1 %v3559_v33  ;;  %3132 = vmatprep.subr.bf16.mxu0 %v3560_v38  ;;  %v3579_v33 = vld [vmem:[%s4718_s1 + $0x2a8] sm:$0xff]   ;;  %v69_v38 = vld [vmem:[%s4719_s0 + $0x198] sm:$0xff] }
  0x3b   :  { %1867 = vmatmul.mubr.bf16.gmra.mxu0 %v2784_v19  ;;  %3196 = vmatprep.subr.bf16.mxu1 %v3562_v40  ;;  %v3573_v19 = vld [vmem:[%s4718_s1 + $0x230] sm:$0xff]   ;;  %v3581_v40 = vld [vmem:[%s4718_s1 + $0x220] sm:$0xff]  }
  0x3c   :  { %1964 = vmatmul.mubr.bf16.gmra.mxu1 %v2786_v21  ;;  %1874 = vmatprep.mubr.bf16.mxu0 %v2801_v22  ;;  %v3575_v21 = vld [vmem:[%s4718_s1 + $0x2b0] sm:$0xff]  }
  0x3d   :  { %1971 = vmatprep.mubr.bf16.mxu1 %v2803_v24  ;;  %3133 = vmatpush3.bf16.msra.mxu0 %v3561_v39  ;;  %v52_v22 = vld [vmem:[%s4719_s0 + $0x110] sm:$0xff]  ;;  %v53_v24 = vld [vmem:[%s4719_s0 + $0x118] sm:$0xff] }
  0x3e   :  { %3197 = vmatpush3.bf16.msra.mxu1 %v3563_v43  ;;  %3134 = vmatprep.subr.bf16.mxu0 %v3564_v46  ;;  %v2773_v30 = vcombine.high %v52_v22, %v60_v23  ;;  %v2775_v31 = vcombine.high %v53_v24, %v61_v25  ;;  %v77_v39 = vld [vmem:[%s4719_s0 + $0x1d8] sm:$0xff]  ;;  %v2772_v43 = vcombine.low %v52_v22, %v60_v23 }
  0x3f   :  { %3198 = vmatprep.subr.bf16.mxu1 %v3566_v51  ;;  %v2774_v45 = vcombine.low %v53_v24, %v61_v25  ;;  %v84_v51 = vld [vmem:[%s4719_s0 + $0x210] sm:$0xff] }
  0x40   :  { %v132_v24 = vld [vmem:[%s4719_s0 + $0x390] sm:$0xff] }
  0x41   :  { %3135 = vmatpush3.bf16.msra.mxu0 %v3565_v48  ;;  %v2791_v48 = vcombine.high %v69_v38, %v77_v39  ;;  %v140_v25 = vld [vmem:[%s4719_s0 + $0x3d0] sm:$0xff] }
  0x42   :  { %3199 = vmatpush3.bf16.msra.mxu1 %v3567_v53  ;;  %3248 = vmatprep.subr.bf16.mxu0 %v3568_v56  ;;  %v92_v53 = vld [vmem:[%s4719_s0 + $0x250] sm:$0xff] }
  0x43   :  { %1875 = vmatmul.mubr.bf16.gmra.mxu0 %v2800_v34  ;;  %3312 = vmatprep.subr.bf16.mxu1 %v3570_v58  ;;  %v3580_v34 = vld [vmem:[%s4718_s1 + $0x260] sm:$0xff]   ;;  %v3589_v56 = vld [vmem:[%s4718_s1 + $0x210] sm:$0xff]   ;;  %v3592_v58 = vld [vmem:[%s4718_s1 + $0x248] sm:$0xff]  }
  0x44   :  { %1972 = vmatmul.mubr.bf16.gmra.mxu1 %v2802_v35  ;;  %1882 = vmatprep.mubr.bf16.mxu0 %v2817_v36  ;;  %v68_v35 = vld [vmem:[%s4719_s0 + $0x190] sm:$0xff] }
  0x45   :  { %1979 = vmatprep.mubr.bf16.mxu1 %v2819_v37  ;;  %v76_v36 = vld [vmem:[%s4719_s0 + $0x1d0] sm:$0xff]  ;;  %v3582_v37 = vld [vmem:[%s4718_s1 + $0x2e0] sm:$0xff]  }
  0x46   :  { %v2789_v46 = vcombine.high %v68_v35, %v76_v36  ;;  %v2788_v59 = vcombine.low %v68_v35, %v76_v36  ;;  %v31_v35 = vld [vmem:[%s4719_s0 + $0x68] sm:$0xff]  ;;  %v2852_v36 = vcombine.low %v132_v24, %v140_v25 }
  0x4b   :  { %1883 = vmatmul.mubr.bf16.gmra.mxu0 %v2816_v47  ;;  %v3585_v47 = vld [vmem:[%s4718_s1 + $0x218] sm:$0xff]  }
  0x4c   :  { %1980 = vmatmul.mubr.bf16.gmra.mxu1 %v2818_v49  ;;  %1890 = vmatprep.mubr.bf16.mxu0 %v2833_v50  ;;  %v3587_v49 = vld [vmem:[%s4718_s1 + $0x298] sm:$0xff]   ;;  %v3588_v50 = vld [vmem:[%s4718_s1 + $0x250] sm:$0xff]  }
  0x4d   :  { %1987 = vmatprep.mubr.bf16.mxu1 %v2835_v52  ;;  %v3590_v52 = vld [vmem:[%s4718_s1 + $0x2d0] sm:$0xff]  }
  0x53   :  { %1891 = vmatmul.mubr.bf16.gmra.mxu0 %v2832_v60  ;;  %v3594_v60 = vld [vmem:[%s4718_s1 + $0x2c8] sm:$0xff]  }
  0x54   :  { %1988 = vmatmul.mubr.bf16.gmra.mxu1 %v2834_v61  ;;  %1898 = vmatprep.mubr.bf16.mxu0 %v2849_v62  ;;  %v2790_v61 = vcombine.low %v69_v38, %v77_v39  ;;  %v2805_v62 = vcombine.high %v84_v51, %v92_v53 }
  0x55   :  { %1995 = vmatprep.mubr.bf16.mxu1 %v2851_v63  ;;  %v2807_v63 = vcombine.high %v85_v54, %v93_v55  ;;  %v54_v54 = vld [vmem:[%s4719_s0 + $0x120] sm:$0xff] }
  0x56   :  { %v62_v55 = vld [vmem:[%s4719_s0 + $0x160] sm:$0xff] }
  0x5b   :  { %1899 = vmatmul.mubr.bf16.gmra.mxu0 %v2848_v4  ;;  %v108_v4 = vld [vmem:[%s4719_s0 + $0x2d0] sm:$0xff] }
  0x5c   :  { %1996 = vmatmul.mubr.bf16.gmra.mxu1 %v2850_v5  ;;  %2036 = vmatprep.mubr.bf16.mxu0 %v2741_v6  ;;  %v3598_v5 = vld [vmem:[%s4718_s1 + $0x2c0] sm:$0xff]   ;;  %v101_v6 = vld [vmem:[%s4719_s0 + $0x298] sm:$0xff] }
  0x5d   :  { %2133 = vmatprep.mubr.bf16.mxu1 %v2743_v7  ;;  %v109_v7 = vld [vmem:[%s4719_s0 + $0x2d8] sm:$0xff] }
  0x63   :  { %2037 = vmatmul.mubr.bf16.vlgmr.msra.gmra.mxu0 %v2740_v10  ;;  %v3600_v10 = vld [vmem:[%s4718_s1 + $0x378] sm:$0xff]  }
  0x64   :  { %2134 = vmatmul.mubr.bf16.vlgmr.msra.gmra.mxu1 %v2742_v14  ;;  %3249 = vmatpush3.bf16.msra.mxu0 %v3569_v11  ;;  %v2804_v11 = vcombine.low %v84_v51, %v92_v53  ;;  %v2821_v14 = vcombine.high %v100_v3, %v108_v4  ;;  %v3606_v51 = vld [vmem:[%s4718_s1 + $0x3f0] sm:$0xff]  }
  0x65   :  { %3313 = vmatpush3.bf16.msra.mxu1 %v3571_v15  ;;  %2044 = vmatprep.mubr.bf16.mxu0 %v2757_v16  ;;  %v2823_v15 = vcombine.high %v101_v6, %v109_v7  ;;  %v116_v16 = vld [vmem:[%s4719_s0 + $0x310] sm:$0xff] }
  0x66   :  { %2141 = vmatprep.mubr.bf16.mxu1 %v2759_v18  ;;  %3250 = vmatprep.subr.bf16.mxu0 %v3572_v17  ;;  %v124_v17 = vld [vmem:[%s4719_s0 + $0x350] sm:$0xff]  ;;  %v117_v18 = vld [vmem:[%s4719_s0 + $0x318] sm:$0xff] }
  0x67   :  { %3314 = vmatprep.subr.bf16.mxu1 %v3574_v20  ;;  %v2820_v20 = vcombine.low %v100_v3, %v108_v4  ;;  %v2837_v22 = vcombine.high %v116_v16, %v124_v17  ;;  %v3607_v53 = vld [vmem:[%s4718_s1 + $0x3b0] sm:$0xff]   ;;  %v3614_v3 = vld [vmem:[%s4718_s1 + $0x3e0] sm:$0xff]  }
  0x68   :  { %3251 = vmatpush3.bf16.msra.mxu0 %v3573_v19  ;;  %v125_v19 = vld [vmem:[%s4719_s0 + $0x358] sm:$0xff]  ;;  %v70_v4 = vld [vmem:[%s4719_s0 + $0x1a0] sm:$0xff] }
  0x69   :  { %3315 = vmatpush3.bf16.msra.mxu1 %v3575_v21  ;;  %3252 = vmatprep.subr.bf16.mxu0 %v3576_v26  ;;  %v2822_v21 = vcombine.low %v101_v6, %v109_v7  ;;  %v2839_v23 = vcombine.high %v117_v18, %v125_v19  ;;  %v133_v26 = vld [vmem:[%s4719_s0 + $0x398] sm:$0xff]  ;;  %v71_v6 = vld [vmem:[%s4719_s0 + $0x1a8] sm:$0xff]  ;;  %v3613_v7 = vld [vmem:[%s4718_s1 + $0x320] sm:$0xff]  }
  0x6a   :  { %3316 = vmatprep.subr.bf16.mxu1 %v3578_v27  ;;  %v141_v27 = vld [vmem:[%s4719_s0 + $0x3d8] sm:$0xff] }
  0x6b   :  { %2045 = vmatmul.mubr.bf16.gmra.mxu0 %v2756_v28  ;;  %v2836_v28 = vcombine.low %v116_v16, %v124_v17  ;;  %v3617_v16 = vld [vmem:[%s4718_s1 + $0x318] sm:$0xff]  }
  0x6c   :  { %2142 = vmatmul.mubr.bf16.gmra.mxu1 %v2758_v29  ;;  %2052 = vmatprep.mubr.bf16.mxu0 %v2773_v30  ;;  %v2838_v29 = vcombine.low %v117_v18, %v125_v19  ;;  %v2853_v30 = vcombine.high %v132_v24, %v140_v25  ;;  %v3619_v17 = vld [vmem:[%s4718_s1 + $0x398] sm:$0xff]   ;;  %v3620_v18 = vld [vmem:[%s4718_s1 + $0x350] sm:$0xff]   ;;  %v95_v24 = vld [vmem:[%s4719_s0 + $0x268] sm:$0xff] }
  0x6d   :  { %2149 = vmatprep.mubr.bf16.mxu1 %v2775_v31  ;;  %3253 = vmatpush3.bf16.msra.mxu0 %v3577_v32  ;;  %v2855_v31 = vcombine.high %v133_v26, %v141_v27  ;;  %v22_v32 = vld [vmem:[%s4719_s0 + $0x20] sm:$0xff]  ;;  %v3622_v19 = vld [vmem:[%s4718_s1 + $0x3d0] sm:$0xff]  }
  0x6e   :  { %3317 = vmatpush3.bf16.msra.mxu1 %v3579_v33  ;;  %3254 = vmatprep.subr.bf16.mxu0 %v3580_v34  ;;  %v30_v33 = vld [vmem:[%s4719_s0 + $0x60] sm:$0xff]  ;;  %v23_v34 = vld [vmem:[%s4719_s0 + $0x28] sm:$0xff]  ;;  %v3623_v25 = vld [vmem:[%s4718_s1 + $0x390] sm:$0xff]  }
  0x6f   :  { %3318 = vmatprep.subr.bf16.mxu1 %v3582_v37  ;;  %v2854_v37 = vcombine.low %v133_v26, %v141_v27  ;;  %v2745_v38 = vcombine.high %v22_v32, %v30_v33  ;;  %v2747_v39 = vcombine.high %v23_v34, %v31_v35  ;;  %v3624_v26 = vld [vmem:[%s4718_s1 + $0x348] sm:$0xff]  }
  0x71   :  { %3255 = vmatpush3.bf16.msra.mxu0 %v3581_v40  ;;  %v38_v40 = vld [vmem:[%s4719_s0 + $0xa0] sm:$0xff] }
  0x72   :  { %3319 = vmatpush3.bf16.msra.mxu1 %v3583_v41  ;;  %3256 = vmatprep.subr.bf16.mxu0 %v3584_v42  ;;  %v46_v41 = vld [vmem:[%s4719_s0 + $0xe0] sm:$0xff]  ;;  %v2744_v42 = vcombine.low %v22_v32, %v30_v33  ;;  %v3625_v32 = vld [vmem:[%s4718_s1 + $0x308] sm:$0xff]  }
  0x73   :  { %2053 = vmatmul.mubr.bf16.gmra.mxu0 %v2772_v43  ;;  %3320 = vmatprep.subr.bf16.mxu1 %v3586_v44  ;;  %v39_v43 = vld [vmem:[%s4719_s0 + $0xa8] sm:$0xff] }
  0x74   :  { %2150 = vmatmul.mubr.bf16.gmra.mxu1 %v2774_v45  ;;  %2060 = vmatprep.mubr.bf16.mxu0 %v2789_v46  ;;  %v47_v44 = vld [vmem:[%s4719_s0 + $0xe8] sm:$0xff]  ;;  %v2746_v45 = vcombine.low %v23_v34, %v31_v35  ;;  %v3601_v46 = vld [vmem:[%s4718_s1 + $0x338] sm:$0xff]   ;;  %v3628_v34 = vld [vmem:[%s4718_s1 + $0x340] sm:$0xff]  }
  0x75   :  { %2157 = vmatprep.mubr.bf16.mxu1 %v2791_v48  ;;  %3257 = vmatpush3.bf16.msra.mxu0 %v3585_v47  ;;  %v3603_v47 = vld [vmem:[%s4718_s1 + $0x3b8] sm:$0xff]   ;;  %v2761_v48 = vcombine.high %v38_v40, %v46_v41  ;;  %v3627_v33 = vld [vmem:[%s4718_s1 + $0x388] sm:$0xff]   ;;  %v3630_v35 = vld [vmem:[%s4718_s1 + $0x3c0] sm:$0xff]  }
  0x76   :  { %3321 = vmatpush3.bf16.msra.mxu1 %v3587_v49  ;;  %3258 = vmatprep.subr.bf16.mxu0 %v3588_v50  ;;  %v2763_v49 = vcombine.high %v39_v43, %v47_v44  ;;  %v3604_v50 = vld [vmem:[%s4718_s1 + $0x370] sm:$0xff]  }
  0x77   :  { %3322 = vmatprep.subr.bf16.mxu1 %v3590_v52  ;;  %v3605_v52 = vld [vmem:[%s4718_s1 + $0x330] sm:$0xff]  }
  0x79   :  { %3259 = vmatpush3.bf16.msra.mxu0 %v3589_v56  ;;  %v3608_v56 = vld [vmem:[%s4718_s1 + $0x368] sm:$0xff]  }
  0x7a   :  { %3323 = vmatpush3.bf16.msra.mxu1 %v3591_v57  ;;  %3260 = vmatprep.subr.bf16.mxu0 %v3592_v58  ;;  %v55_v57 = vld [vmem:[%s4719_s0 + $0x128] sm:$0xff] }
  0x7b   :  { %2061 = vmatmul.mubr.bf16.gmra.mxu0 %v2788_v59  ;;  %3324 = vmatprep.subr.bf16.mxu1 %v3594_v60  ;;  %v63_v58 = vld [vmem:[%s4719_s0 + $0x168] sm:$0xff]  ;;  %v2760_v60 = vcombine.low %v38_v40, %v46_v41  ;;  %v3631_v41 = vld [vmem:[%s4718_s1 + $0x380] sm:$0xff]  }
  0x7c   :  { %2158 = vmatmul.mubr.bf16.gmra.mxu1 %v2790_v61  ;;  %2068 = vmatprep.mubr.bf16.mxu0 %v2805_v62  ;;  %v3610_v59 = vld [vmem:[%s4718_s1 + $0x3e8] sm:$0xff]   ;;  %v2762_v61 = vcombine.low %v39_v43, %v47_v44  ;;  %v2777_v62 = vcombine.high %v54_v54, %v62_v55 }
  0x7d   :  { %2165 = vmatprep.mubr.bf16.mxu1 %v2807_v63  ;;  %3261 = vmatpush3.bf16.msra.mxu0 %v3593_v0  ;;  %v2779_v63 = vcombine.high %v55_v57, %v63_v58  ;;  %v3609_v0 = vld [vmem:[%s4718_s1 + $0x328] sm:$0xff]  }
  0x7e   :  { %3325 = vmatpush3.bf16.msra.mxu1 %v3595_v1  ;;  %3262 = vmatprep.subr.bf16.mxu0 %v3596_v2  ;;  %v3611_v1 = vld [vmem:[%s4718_s1 + $0x3a8] sm:$0xff]   ;;  %v3612_v2 = vld [vmem:[%s4718_s1 + $0x360] sm:$0xff]  }
  0x7f   :  { %3326 = vmatprep.subr.bf16.mxu1 %v3598_v5  ;;  %v78_v5 = vld [vmem:[%s4719_s0 + $0x1e0] sm:$0xff]  ;;  %v111_v40 = vld [vmem:[%s4719_s0 + $0x2e8] sm:$0xff] }
  0x80   :  { %v2792_v27 = vcombine.low %v70_v4, %v78_v5 }
  0x81   :  { %3263 = vmatpush3.bf16.msra.mxu0 %v3597_v8  ;;  %v79_v8 = vld [vmem:[%s4719_s0 + $0x1e8] sm:$0xff] }
  0x82   :  { %3327 = vmatpush3.bf16.msra.mxu1 %v3599_v9  ;;  %3376 = vmatprep.subr.bf16.mxu0 %v3600_v10  ;;  %v3615_v9 = vld [vmem:[%s4718_s1 + $0x3a0] sm:$0xff]   ;;  %v3616_v10 = vld [vmem:[%s4718_s1 + $0x358] sm:$0xff]  }
  0x83   :  { %2069 = vmatmul.mubr.bf16.gmra.mxu0 %v2804_v11  ;;  %3440 = vmatprep.subr.bf16.mxu1 %v3602_v12  ;;  %v2776_v11 = vcombine.low %v54_v54, %v62_v55  ;;  %v3618_v12 = vld [vmem:[%s4718_s1 + $0x3d8] sm:$0xff]   ;;  %v134_v54 = vld [vmem:[%s4719_s0 + $0x3a0] sm:$0xff] }
  0x84   :  { %2166 = vmatmul.mubr.bf16.gmra.mxu1 %v2806_v13  ;;  %2076 = vmatprep.mubr.bf16.mxu0 %v2821_v14  ;;  %v2778_v13 = vcombine.low %v55_v57, %v63_v58  ;;  %v2793_v14 = vcombine.high %v70_v4, %v78_v5  ;;  %v142_v55 = vld [vmem:[%s4719_s0 + $0x3e0] sm:$0xff]  ;;  %v143_v57 = vld [vmem:[%s4719_s0 + $0x3e8] sm:$0xff] }
  0x85   :  { %2173 = vmatprep.mubr.bf16.mxu1 %v2823_v15  ;;  %v2795_v15 = vcombine.high %v71_v6, %v79_v8 }
  0x8b   :  { %2077 = vmatmul.mubr.bf16.gmra.mxu0 %v2820_v20  ;;  %v86_v20 = vld [vmem:[%s4719_s0 + $0x220] sm:$0xff] }
  0x8c   :  { %2174 = vmatmul.mubr.bf16.gmra.mxu1 %v2822_v21  ;;  %2084 = vmatprep.mubr.bf16.mxu0 %v2837_v22  ;;  %v94_v21 = vld [vmem:[%s4719_s0 + $0x260] sm:$0xff]  ;;  %v87_v22 = vld [vmem:[%s4719_s0 + $0x228] sm:$0xff] }
  0x8d   :  { %2181 = vmatprep.mubr.bf16.mxu1 %v2839_v23  ;;  %v3621_v23 = vld [vmem:[%s4718_s1 + $0x310] sm:$0xff]   ;;  %v2810_v43 = vcombine.low %v87_v22, %v95_v24 }
  0x93   :  { %2085 = vmatmul.mubr.bf16.gmra.mxu0 %v2836_v28  ;;  %v3626_v28 = vld [vmem:[%s4718_s1 + $0x3c8] sm:$0xff]  }
  0x94   :  { %2182 = vmatmul.mubr.bf16.gmra.mxu1 %v2838_v29  ;;  %2092 = vmatprep.mubr.bf16.mxu0 %v2853_v30  ;;  %v2794_v29 = vcombine.low %v71_v6, %v79_v8  ;;  %v2809_v30 = vcombine.high %v86_v20, %v94_v21  ;;  %v40_v6 = vld [vmem:[%s4719_s0 + $0xb0] sm:$0xff]  ;;  %v41_v8 = vld [vmem:[%s4719_s0 + $0xb8] sm:$0xff] }
  0x95   :  { %2189 = vmatprep.mubr.bf16.mxu1 %v2855_v31  ;;  %v2811_v31 = vcombine.high %v87_v22, %v95_v24  ;;  %v65_v22 = vld [vmem:[%s4719_s0 + $0x178] sm:$0xff] }
  0x9b   :  { %2093 = vmatmul.mubr.bf16.gmra.mxu0 %v2852_v36  ;;  %v102_v36 = vld [vmem:[%s4719_s0 + $0x2a0] sm:$0xff] }
  0x9c   :  { %2190 = vmatmul.mubr.bf16.gmra.mxu1 %v2854_v37  ;;  %2230 = vmatprep.mubr.bf16.mxu0 %v2745_v38  ;;  %v110_v37 = vld [vmem:[%s4719_s0 + $0x2e0] sm:$0xff] }
  0x9d   :  { %2327 = vmatprep.mubr.bf16.mxu1 %v2747_v39  ;;  %v3629_v38 = vld [vmem:[%s4718_s1 + $0x300] sm:$0xff]   ;;  %v103_v39 = vld [vmem:[%s4719_s0 + $0x2a8] sm:$0xff]  ;;  %v2825_v44 = vcombine.high %v102_v36, %v110_v37 }
  0xa3   :  { %2231 = vmatmul.mubr.bf16.vlgmr.msra.gmra.mxu0 %v2744_v42  ;;  %v2808_v42 = vcombine.low %v86_v20, %v94_v21  ;;  %v57_v21 = vld [vmem:[%s4719_s0 + $0x138] sm:$0xff] }
  0xa4   :  { %2328 = vmatmul.mubr.bf16.vlgmr.msra.gmra.mxu1 %v2746_v45  ;;  %3377 = vmatpush3.bf16.msra.mxu0 %v3601_v46  ;;  %v2827_v45 = vcombine.high %v103_v39, %v111_v40  ;;  %v118_v46 = vld [vmem:[%s4719_s0 + $0x320] sm:$0xff] }
  0xa5   :  { %3441 = vmatpush3.bf16.msra.mxu1 %v3603_v47  ;;  %2238 = vmatprep.mubr.bf16.mxu0 %v2761_v48  ;;  %v126_v47 = vld [vmem:[%s4719_s0 + $0x360] sm:$0xff]  ;;  %v119_v48 = vld [vmem:[%s4719_s0 + $0x328] sm:$0xff] }
  0xa6   :  { %2335 = vmatprep.mubr.bf16.mxu1 %v2763_v49  ;;  %3378 = vmatprep.subr.bf16.mxu0 %v3604_v50  ;;  %v127_v49 = vld [vmem:[%s4719_s0 + $0x368] sm:$0xff]  ;;  %v2824_v50 = vcombine.low %v102_v36, %v110_v37  ;;  %v2840_v58 = vcombine.low %v118_v46, %v126_v47 }
  0xa7   :  { %3442 = vmatprep.subr.bf16.mxu1 %v3606_v51  ;;  %v2826_v51 = vcombine.low %v103_v39, %v111_v40  ;;  %v72_v39 = vld [vmem:[%s4719_s0 + $0x1b0] sm:$0xff] }
  0xa8   :  { %3379 = vmatpush3.bf16.msra.mxu0 %v3605_v52  ;;  %v2841_v52 = vcombine.high %v118_v46, %v126_v47  ;;  %v80_v40 = vld [vmem:[%s4719_s0 + $0x1f0] sm:$0xff] }
  0xa9   :  { %3443 = vmatpush3.bf16.msra.mxu1 %v3607_v53  ;;  %3380 = vmatprep.subr.bf16.mxu0 %v3608_v56  ;;  %v2843_v53 = vcombine.high %v119_v48, %v127_v49  ;;  %v135_v56 = vld [vmem:[%s4719_s0 + $0x3a8] sm:$0xff] }
  0xaa   :  { %3444 = vmatprep.subr.bf16.mxu1 %v3610_v59  ;;  %v2842_v59 = vcombine.low %v119_v48, %v127_v49  ;;  %v2782_v49 = vcombine.low %v57_v21, %v65_v22 }
  0xab   :  { %2239 = vmatmul.mubr.bf16.gmra.mxu0 %v2760_v60  ;;  %v2857_v60 = vcombine.high %v134_v54, %v142_v55 }
  0xac   :  { %2336 = vmatmul.mubr.bf16.gmra.mxu1 %v2762_v61  ;;  %2246 = vmatprep.mubr.bf16.mxu0 %v2777_v62  ;;  %v2859_v61 = vcombine.high %v135_v56, %v143_v57  ;;  %v24_v62 = vld [vmem:[%s4719_s0 + $0x30] sm:$0xff] }
  0xad   :  { %2343 = vmatprep.mubr.bf16.mxu1 %v2779_v63  ;;  %3381 = vmatpush3.bf16.msra.mxu0 %v3609_v0  ;;  %v32_v63 = vld [vmem:[%s4719_s0 + $0x70] sm:$0xff]  ;;  %v25_v0 = vld [vmem:[%s4719_s0 + $0x38] sm:$0xff] }
  0xae   :  { %3445 = vmatpush3.bf16.msra.mxu1 %v3611_v1  ;;  %3382 = vmatprep.subr.bf16.mxu0 %v3612_v2  ;;  %v33_v1 = vld [vmem:[%s4719_s0 + $0x78] sm:$0xff]  ;;  %v2856_v2 = vcombine.low %v134_v54, %v142_v55  ;;  %v2749_v4 = vcombine.high %v24_v62, %v32_v63 }
  0xaf   :  { %3446 = vmatprep.subr.bf16.mxu1 %v3614_v3  ;;  %v2858_v3 = vcombine.low %v135_v56, %v143_v57  ;;  %v2751_v5 = vcombine.high %v25_v0, %v33_v1 }
  0xb1   :  { %3383 = vmatpush3.bf16.msra.mxu0 %v3613_v7  ;;  %v48_v7 = vld [vmem:[%s4719_s0 + $0xf0] sm:$0xff] }
  0xb2   :  { %3447 = vmatpush3.bf16.msra.mxu1 %v3615_v9  ;;  %3384 = vmatprep.subr.bf16.mxu0 %v3616_v10  ;;  %v49_v9 = vld [vmem:[%s4719_s0 + $0xf8] sm:$0xff]  ;;  %v2748_v10 = vcombine.low %v24_v62, %v32_v63  ;;  %v96_v62 = vld [vmem:[%s4719_s0 + $0x270] sm:$0xff] }
  0xb3   :  { %2247 = vmatmul.mubr.bf16.gmra.mxu0 %v2776_v11  ;;  %3448 = vmatprep.subr.bf16.mxu1 %v3618_v12  ;;  %v2750_v11 = vcombine.low %v25_v0, %v33_v1  ;;  %v2765_v12 = vcombine.high %v40_v6, %v48_v7  ;;  %v89_v1 = vld [vmem:[%s4719_s0 + $0x238] sm:$0xff] }
  0xb4   :  { %2344 = vmatmul.mubr.bf16.gmra.mxu1 %v2778_v13  ;;  %2254 = vmatprep.mubr.bf16.mxu0 %v2793_v14  ;;  %v2767_v13 = vcombine.high %v41_v8, %v49_v9 }
  0xb5   :  { %2351 = vmatprep.mubr.bf16.mxu1 %v2795_v15  ;;  %3385 = vmatpush3.bf16.msra.mxu0 %v3617_v16 }
  0xb6   :  { %3449 = vmatpush3.bf16.msra.mxu1 %v3619_v17  ;;  %3386 = vmatprep.subr.bf16.mxu0 %v3620_v18  ;;  %v56_v17 = vld [vmem:[%s4719_s0 + $0x130] sm:$0xff] }
  0xb7   :  { %3450 = vmatprep.subr.bf16.mxu1 %v3622_v19  ;;  %v64_v18 = vld [vmem:[%s4719_s0 + $0x170] sm:$0xff] }
  0xb8   :  { %v2780_v47 = vcombine.low %v56_v17, %v64_v18 }
  0xb9   :  { %3387 = vmatpush3.bf16.msra.mxu0 %v3621_v23 }
  0xba   :  { %3451 = vmatpush3.bf16.msra.mxu1 %v3623_v25  ;;  %3388 = vmatprep.subr.bf16.mxu0 %v3624_v26  ;;  %v2764_v25 = vcombine.low %v40_v6, %v48_v7 }
  0xbb   :  { %2255 = vmatmul.mubr.bf16.gmra.mxu0 %v2792_v27  ;;  %3452 = vmatprep.subr.bf16.mxu1 %v3626_v28  ;;  %v2766_v27 = vcombine.low %v41_v8, %v49_v9  ;;  %v2781_v28 = vcombine.high %v56_v17, %v64_v18 }
  0xbc   :  { %2352 = vmatmul.mubr.bf16.gmra.mxu1 %v2794_v29  ;;  %2262 = vmatprep.mubr.bf16.mxu0 %v2809_v30 }
  0xbd   :  { %2359 = vmatprep.mubr.bf16.mxu1 %v2811_v31  ;;  %3389 = vmatpush3.bf16.msra.mxu0 %v3625_v32  ;;  %v2783_v31 = vcombine.high %v57_v21, %v65_v22 }
  0xbe   :  { %3453 = vmatpush3.bf16.msra.mxu1 %v3627_v33  ;;  %3390 = vmatprep.subr.bf16.mxu0 %v3628_v34 }
  0xbf   :  { %3454 = vmatprep.subr.bf16.mxu1 %v3630_v35 }
  0xc1   :  { %3391 = vmatpush3.bf16.msra.mxu0 %v3629_v38 }
  0xc2   :  { %3455 = vmatpush3.bf16.msra.mxu1 %v3631_v41 }
  0xc3   :  { %2263 = vmatmul.mubr.bf16.gmra.mxu0 %v2808_v42 }
  0xc4   :  { %2360 = vmatmul.mubr.bf16.gmra.mxu1 %v2810_v43  ;;  %2270 = vmatprep.mubr.bf16.mxu0 %v2825_v44  ;;  %v73_v43 = vld [vmem:[%s4719_s0 + $0x1b8] sm:$0xff] }
  0xc5   :  { %2367 = vmatprep.mubr.bf16.mxu1 %v2827_v45  ;;  %v81_v44 = vld [vmem:[%s4719_s0 + $0x1f8] sm:$0xff] }
  0xc6   :  { %v2798_v7 = vcombine.low %v73_v43, %v81_v44 }
  0xcb   :  { %2271 = vmatmul.mubr.bf16.gmra.mxu0 %v2824_v50  ;;  %v2797_v50 = vcombine.high %v72_v39, %v80_v40 }
  0xcc   :  { %2368 = vmatmul.mubr.bf16.gmra.mxu1 %v2826_v51  ;;  %2278 = vmatprep.mubr.bf16.mxu0 %v2841_v52 }
  0xcd   :  { %2375 = vmatprep.mubr.bf16.mxu1 %v2843_v53  ;;  %v2799_v53 = vcombine.high %v73_v43, %v81_v44  ;;  %v120_v43 = vld [vmem:[%s4719_s0 + $0x330] sm:$0xff] }
  0xce   :  { %v128_v44 = vld [vmem:[%s4719_s0 + $0x370] sm:$0xff] }
  0xd3   :  { %2279 = vmatmul.mubr.bf16.gmra.mxu0 %v2840_v58 }
  0xd4   :  { %2376 = vmatmul.mubr.bf16.gmra.mxu1 %v2842_v59  ;;  %2286 = vmatprep.mubr.bf16.mxu0 %v2857_v60 }
  0xd5   :  { %2383 = vmatprep.mubr.bf16.mxu1 %v2859_v61  ;;  %v88_v61 = vld [vmem:[%s4719_s0 + $0x230] sm:$0xff] }
  0xd6   :  { %v2813_v8 = vcombine.high %v88_v61, %v96_v62 }
  0xdb   :  { %2287 = vmatmul.mubr.bf16.gmra.mxu0 %v2856_v2  ;;  %v97_v2 = vld [vmem:[%s4719_s0 + $0x278] sm:$0xff] }
  0xdc   :  { %2384 = vmatmul.mubr.bf16.gmra.mxu1 %v2858_v3  ;;  %2424 = vmatprep.mubr.bf16.mxu0 %v2749_v4 }
  0xdd   :  { %2521 = vmatprep.mubr.bf16.mxu1 %v2751_v5  ;;  %v2796_v5 = vcombine.low %v72_v39, %v80_v40 }
  0xe3   :  { %v3008_v14 = vpop.f32.mrf.mxu0  ;;  %2425 = vmatmul.mubr.bf16.vlgmr.msra.gmra.mxu0 %v2748_v10 }
  0xe4   :  { %v3072_v15 = vpop.f32.mrf.mxu1  ;;  %2522 = vmatmul.mubr.bf16.vlgmr.msra.gmra.mxu1 %v2750_v11  ;;  %2432 = vmatprep.mubr.bf16.mxu0 %v2765_v12  ;;  %v2815_v11 = vcombine.high %v89_v1, %v97_v2 }
  0xe5   :  { %v3009_v16 = vpop.f32.mrf.mxu0  ;;  %2529 = vmatprep.mubr.bf16.mxu1 %v2767_v13 }
  0xe6   :  { %v3010_v19 = vadd.f32 %v3009_v16, %v3008_v14  ;;  %v3073_v20 = vpop.f32.mrf.mxu1 }
  0xe7   :  { %v3074_v23 = vadd.f32 %v3073_v20, %v3072_v15  ;;  %v3011_v24 = vpop.f32.mrf.mxu0  ;;  %v112_v20 = vld [vmem:[%s4719_s0 + $0x2f0] sm:$0xff] }
  0xe8   :  { %v3075_v26 = vpop.f32.mrf.mxu1 }
  0xe9   :  { %v4367_v29 = vadd.f32 %v3074_v23, %v3010_v19  ;;  %v3012_v30 = vpop.f32.mrf.mxu0  ;;  %v104_v19 = vld [vmem:[%s4719_s0 + $0x2b0] sm:$0xff]  ;;  %v105_v23 = vld [vmem:[%s4719_s0 + $0x2b8] sm:$0xff] }
  0xea   :  { %v3013_v32 = vadd.f32 %v3012_v30, %v3011_v24  ;;  %v3076_v33 = vpop.f32.mrf.mxu1  ;;  %v113_v24 = vld [vmem:[%s4719_s0 + $0x2f8] sm:$0xff]  ;;  %v2814_v30 = vcombine.low %v89_v1, %v97_v2 }
  0xeb   :  { %v3077_v34 = vadd.f32 %v3076_v33, %v3075_v26  ;;  %v3014_v35 = vpop.f32.mrf.mxu0  ;;  %2433 = vmatmul.mubr.bf16.gmra.mxu0 %v2764_v25 }
  0xec   :  { %v3078_v36 = vpop.f32.mrf.mxu1  ;;  %2530 = vmatmul.mubr.bf16.gmra.mxu1 %v2766_v27  ;;  %2440 = vmatprep.mubr.bf16.mxu0 %v2781_v28  ;;  %v2812_v27 = vcombine.low %v88_v61, %v96_v62 }
  0xed   :  { %v4369_v37 = vadd.f32 %v3077_v34, %v3013_v32  ;;  %v3015_v38 = vpop.f32.mrf.mxu0  ;;  %2537 = vmatprep.mubr.bf16.mxu1 %v2783_v31  ;;  %v2829_v31 = vcombine.high %v104_v19, %v112_v20  ;;  %v2831_v34 = vcombine.high %v105_v23, %v113_v24 }
  0xee   :  { %v3016_v41 = vadd.f32 %v3015_v38, %v3014_v35  ;;  %v3079_v42 = vpop.f32.mrf.mxu1 }
  0xef   :  { %v3080_v45 = vadd.f32 %v3079_v42, %v3078_v36  ;;  %v3017_v46 = vpop.f32.mrf.mxu0 }
  0xf0   :  { %v3081_v48 = vpop.f32.mrf.mxu1 }
  0xf1   :  { %v4383_v51 = vadd.f32 %v3080_v45, %v3016_v41  ;;  %v3018_v52 = vpop.f32.mrf.mxu0 }
  0xf2   :  { %v3019_v54 = vadd.f32 %v3018_v52, %v3017_v46  ;;  %v3082_v55 = vpop.f32.mrf.mxu1  ;;  %v2828_v52 = vcombine.low %v104_v19, %v112_v20 }
  0xf3   :  { %v3083_v56 = vadd.f32 %v3082_v55, %v3081_v48  ;;  %v3020_v57 = vpop.f32.mrf.mxu0  ;;  %2441 = vmatmul.mubr.bf16.gmra.mxu0 %v2780_v47  ;;  %v121_v47 = vld [vmem:[%s4719_s0 + $0x338] sm:$0xff]  ;;  %v2845_v55 = vcombine.high %v120_v43, %v128_v44 }
  0xf4   :  { %v3084_v58 = vpop.f32.mrf.mxu1  ;;  %2538 = vmatmul.mubr.bf16.gmra.mxu1 %v2782_v49  ;;  %2448 = vmatprep.mubr.bf16.mxu0 %v2797_v50  ;;  %v129_v48 = vld [vmem:[%s4719_s0 + $0x378] sm:$0xff] }
  0xf5   :  { %v4385_v59 = vadd.f32 %v3083_v56, %v3019_v54  ;;  %v3021_v60 = vpop.f32.mrf.mxu0  ;;  %2545 = vmatprep.mubr.bf16.mxu1 %v2799_v53  ;;  %v2830_v54 = vcombine.low %v105_v23, %v113_v24 }
  0xf6   :  { %v3022_v63 = vadd.f32 %v3021_v60, %v3020_v57  ;;  %v3085_v0 = vpop.f32.mrf.mxu1 }
  0xf7   :  { %v3086_v3 = vadd.f32 %v3085_v0, %v3084_v58  ;;  %v3023_v4 = vpop.f32.mrf.mxu0  ;;  %v2847_v58 = vcombine.high %v121_v47, %v129_v48 }
  0xf8   :  { %v3087_v6 = vpop.f32.mrf.mxu1 }
  0xf9   :  { %v4399_v9 = vadd.f32 %v3086_v3, %v3022_v63  ;;  %v3024_v10 = vpop.f32.mrf.mxu0  ;;  %v136_v3 = vld [vmem:[%s4719_s0 + $0x3b0] sm:$0xff] }
  0xfa   :  { %v3025_v12 = vadd.f32 %v3024_v10, %v3023_v4  ;;  %v3088_v13 = vpop.f32.mrf.mxu1  ;;  %v144_v4 = vld [vmem:[%s4719_s0 + $0x3f0] sm:$0xff] }
  0xfb   :  { %v3089_v14 = vadd.f32 %v3088_v13, %v3087_v6  ;;  %v3026_v15 = vpop.f32.mrf.mxu0  ;;  %2449 = vmatmul.mubr.bf16.gmra.mxu0 %v2796_v5 }
  0xfc   :  { %v3090_v16 = vpop.f32.mrf.mxu1  ;;  %2546 = vmatmul.mubr.bf16.gmra.mxu1 %v2798_v7  ;;  %2456 = vmatprep.mubr.bf16.mxu0 %v2813_v8  ;;  %v137_v7 = vld [vmem:[%s4719_s0 + $0x3b8] sm:$0xff] }
  0xfd   :  { %v4401_v17 = vadd.f32 %v3089_v14, %v3025_v12  ;;  %v3027_v18 = vpop.f32.mrf.mxu0  ;;  %2553 = vmatprep.mubr.bf16.mxu1 %v2815_v11  ;;  %v145_v8 = vld [vmem:[%s4719_s0 + $0x3f8] sm:$0xff]  ;;  %v2844_v12 = vcombine.low %v120_v43, %v128_v44  ;;  %v2846_v14 = vcombine.low %v121_v47, %v129_v48 }
  0xfe   :  { %v3028_v21 = vadd.f32 %v3027_v18, %v3026_v15  ;;  %v3091_v22 = vpop.f32.mrf.mxu1  ;;  %v2861_v15 = vcombine.high %v136_v3, %v144_v4  ;;  %v2863_v19 = vcombine.high %v137_v7, %v145_v8 }
  0xff   :  { %v3092_v25 = vadd.f32 %v3091_v22, %v3090_v16  ;;  %v3029_v26 = vpop.f32.mrf.mxu0 }
 0x100   :  { %v3093_v28 = vpop.f32.mrf.mxu1 }
 0x101   :  { %v4415_v32 = vadd.f32 %v3092_v25, %v3028_v21  ;;  %v3030_v33 = vpop.f32.mrf.mxu0 }
 0x102   :  { %v3031_v35 = vadd.f32 %v3030_v33, %v3029_v26  ;;  %v3094_v36 = vpop.f32.mrf.mxu1  ;;  %v2860_v33 = vcombine.low %v136_v3, %v144_v4 }
 0x103   :  { %v3095_v38 = vadd.f32 %v3094_v36, %v3093_v28  ;;  %v3032_v39 = vpop.f32.mrf.mxu0  ;;  %2457 = vmatmul.mubr.bf16.gmra.mxu0 %v2812_v27 }
 0x104   :  { %v3096_v40 = vpop.f32.mrf.mxu1  ;;  %2554 = vmatmul.mubr.bf16.gmra.mxu1 %v2814_v30  ;;  %2464 = vmatprep.mubr.bf16.mxu0 %v2829_v31 }
 0x105   :  { %v4417_v41 = vadd.f32 %v3095_v38, %v3031_v35  ;;  %v3033_v42 = vpop.f32.mrf.mxu0  ;;  %2561 = vmatprep.mubr.bf16.mxu1 %v2831_v34  ;;  %v2862_v35 = vcombine.low %v137_v7, %v145_v8 }
 0x106   :  { %v3034_v45 = vadd.f32 %v3033_v42, %v3032_v39  ;;  %v3097_v46 = vpop.f32.mrf.mxu1 }
 0x107   :  { %v3098_v49 = vadd.f32 %v3097_v46, %v3096_v40  ;;  %v3035_v50 = vpop.f32.mrf.mxu0 }
 0x108   :  { %v3099_v53 = vpop.f32.mrf.mxu1 }
 0x109   :  { %v4431_v56 = vadd.f32 %v3098_v49, %v3034_v45  ;;  %v3036_v57 = vpop.f32.mrf.mxu0 }
 0x10a   :  { %v3037_v60 = vadd.f32 %v3036_v57, %v3035_v50  ;;  %v3100_v61 = vpop.f32.mrf.mxu1 }
 0x10b   :  { %v3101_v62 = vadd.f32 %v3100_v61, %v3099_v53  ;;  %v3038_v63 = vpop.f32.mrf.mxu0  ;;  %2465 = vmatmul.mubr.bf16.gmra.mxu0 %v2828_v52 }
 0x10c   :  { %v3102_v0 = vpop.f32.mrf.mxu1  ;;  %2562 = vmatmul.mubr.bf16.gmra.mxu1 %v2830_v54  ;;  %2472 = vmatprep.mubr.bf16.mxu0 %v2845_v55 }
 0x10d   :  { %v4433_v1 = vadd.f32 %v3101_v62, %v3037_v60  ;;  %v3039_v2 = vpop.f32.mrf.mxu0  ;;  %2569 = vmatprep.mubr.bf16.mxu1 %v2847_v58 }
 0x10e   :  { %v3040_v5 = vadd.f32 %v3039_v2, %v3038_v63  ;;  %v3103_v6 = vpop.f32.mrf.mxu1 }
 0x10f   :  { %v3104_v10 = vadd.f32 %v3103_v6, %v3102_v0  ;;  %v3041_v11 = vpop.f32.mrf.mxu0 }
 0x110   :  { %v3105_v13 = vpop.f32.mrf.mxu1 }
 0x111   :  { %v4447_v16 = vadd.f32 %v3104_v10, %v3040_v5  ;;  %v3042_v18 = vpop.f32.mrf.mxu0 }
 0x112   :  { %v3043_v20 = vadd.f32 %v3042_v18, %v3041_v11  ;;  %v3106_v21 = vpop.f32.mrf.mxu1 }
 0x113   :  { %v3107_v22 = vadd.f32 %v3106_v21, %v3105_v13  ;;  %v3044_v23 = vpop.f32.mrf.mxu0  ;;  %2473 = vmatmul.mubr.bf16.gmra.mxu0 %v2844_v12 }
 0x114   :  { %v3108_v24 = vpop.f32.mrf.mxu1  ;;  %2570 = vmatmul.mubr.bf16.gmra.mxu1 %v2846_v14  ;;  %2480 = vmatprep.mubr.bf16.mxu0 %v2861_v15 }
 0x115   :  { %v4449_v25 = vadd.f32 %v3107_v22, %v3043_v20  ;;  %v3045_v26 = vpop.f32.mrf.mxu0  ;;  %2577 = vmatprep.mubr.bf16.mxu1 %v2863_v19 }
 0x116   :  { %v3046_v27 = vadd.f32 %v3045_v26, %v3044_v23  ;;  %v3109_v28 = vpop.f32.mrf.mxu1 }
 0x117   :  { %v3110_v30 = vadd.f32 %v3109_v28, %v3108_v24  ;;  %v3047_v31 = vpop.f32.mrf.mxu0 }
 0x118   :  { %v3111_v34 = vpop.f32.mrf.mxu1 }
 0x119   :  { %v4451_v36 = vadd.f32 %v3110_v30, %v3046_v27  ;;  %v3048_v38 = vpop.f32.mrf.mxu0 }
 0x11a   :  { %v3049_v39 = vadd.f32 %v3048_v38, %v3047_v31  ;;  %v3112_v40 = vpop.f32.mrf.mxu1 }
 0x11b   :  { %v3113_v42 = vadd.f32 %v3112_v40, %v3111_v34  ;;  %v3050_v43 = vpop.f32.mrf.mxu0  ;;  %2481 = vmatmul.mubr.bf16.gmra.mxu0 %v2860_v33 }
 0x11c   :  { %v3114_v44 = vpop.f32.mrf.mxu1  ;;  %2578 = vmatmul.mubr.bf16.gmra.mxu1 %v2862_v35 }
 0x11d   :  { %v4453_v45 = vadd.f32 %v3113_v42, %v3049_v39  ;;  %v3051_v46 = vpop.f32.mrf.mxu0 }
 0x11e   :  { %v3052_v47 = vadd.f32 %v3051_v46, %v3050_v43  ;;  %v3115_v48 = vpop.f32.mrf.mxu1 }
 0x11f   :  { %v3116_v49 = vadd.f32 %v3115_v48, %v3114_v44  ;;  %v3053_v50 = vpop.f32.mrf.mxu0 }
 0x120   :  { %v3117_v52 = vpop.f32.mrf.mxu1 }
 0x121   :  { %v4455_v53 = vadd.f32 %v3116_v49, %v3052_v47  ;;  %v3054_v54 = vpop.f32.mrf.mxu0 }
 0x122   :  { %v3055_v55 = vadd.f32 %v3054_v54, %v3053_v50  ;;  %v3118_v57 = vpop.f32.mrf.mxu1 }
 0x123   :  { %v3119_v58 = vadd.f32 %v3118_v57, %v3117_v52  ;;  %v3136_v60 = vpop.f32.mrf.mxu0 }
 0x124   :  { %v3200_v61 = vpop.f32.mrf.mxu1 }
 0x125   :  { %v4457_v62 = vadd.f32 %v3119_v58, %v3055_v55  ;;  %v3137_v63 = vpop.f32.mrf.mxu0 }
 0x126   :  { %v3138_v0 = vadd.f32 %v3137_v63, %v3136_v60  ;;  %v3201_v2 = vpop.f32.mrf.mxu1 }
 0x127   :  { %v3202_v3 = vadd.f32 %v3201_v2, %v3200_v61  ;;  %v3139_v4 = vpop.f32.mrf.mxu0 }
 0x128   :  { %v2039_v5 = vadd.f32 %v3138_v0, %v4367_v29  ;;  %v3203_v6 = vpop.f32.mrf.mxu1 }
 0x129   :  { %v3140_v7 = vpop.f32.mrf.mxu0 }
 0x12a   :  { %v4460_v8 = vadd.f32 %v3202_v3, %v2039_v5  ;;  %v3141_v10 = vadd.f32 %v3140_v7, %v3139_v4  ;;  %v3204_v11 = vpop.f32.mrf.mxu1 }
 0x12b   :  { %v3205_v12 = vadd.f32 %v3204_v11, %v3203_v6  ;;  %v3142_v13 = vpop.f32.mrf.mxu0 }
 0x12c   :  { %v2042_v14 = vadd.f32 %v3141_v10, %v4369_v37  ;;  %v3206_v15 = vpop.f32.mrf.mxu1 }
 0x12d   :  { %v3143_v18 = vpop.f32.mrf.mxu0 }
 0x12e   :  { %v4463_v19 = vadd.f32 %v3205_v12, %v2042_v14  ;;  %v3144_v20 = vadd.f32 %v3143_v18, %v3142_v13  ;;  %v3207_v21 = vpop.f32.mrf.mxu1 }
 0x12f   :  { %v3208_v22 = vadd.f32 %v3207_v21, %v3206_v15  ;;  %v3145_v23 = vpop.f32.mrf.mxu0 }
 0x130   :  { %v2047_v29 = vadd.f32 %v3144_v20, %v4383_v51  ;;  %v3209_v24 = vpop.f32.mrf.mxu1 }
 0x131   :  { %v3146_v26 = vpop.f32.mrf.mxu0 }
 0x132   :  { %v4466_v27 = vadd.f32 %v3208_v22, %v2047_v29  ;;  %v3147_v28 = vadd.f32 %v3146_v26, %v3145_v23  ;;  %v3210_v30 = vpop.f32.mrf.mxu1 }
 0x133   :  { %v3211_v31 = vadd.f32 %v3210_v30, %v3209_v24  ;;  %v3148_v33 = vpop.f32.mrf.mxu0 }
 0x134   :  { %v2050_v37 = vadd.f32 %v3147_v28, %v4385_v59  ;;  %v3212_v34 = vpop.f32.mrf.mxu1 }
 0x135   :  { %v3149_v35 = vpop.f32.mrf.mxu0 }
 0x136   :  { %v4469_v38 = vadd.f32 %v3211_v31, %v2050_v37  ;;  %v3150_v39 = vadd.f32 %v3149_v35, %v3148_v33  ;;  %v3213_v40 = vpop.f32.mrf.mxu1 }
 0x137   :  { %v3214_v42 = vadd.f32 %v3213_v40, %v3212_v34  ;;  %v3151_v43 = vpop.f32.mrf.mxu0 }
 0x138   :  { %v2055_v51 = vadd.f32 %v3150_v39, %v4399_v9  ;;  %v3215_v44 = vpop.f32.mrf.mxu1 }
 0x139   :  { %v3152_v46 = vpop.f32.mrf.mxu0 }
 0x13a   :  { %v4472_v47 = vadd.f32 %v3214_v42, %v2055_v51  ;;  %v3153_v48 = vadd.f32 %v3152_v46, %v3151_v43  ;;  %v3216_v49 = vpop.f32.mrf.mxu1 }
 0x13b   :  { %v3217_v50 = vadd.f32 %v3216_v49, %v3215_v44  ;;  %v3154_v52 = vpop.f32.mrf.mxu0 }
 0x13c   :  { %v2058_v59 = vadd.f32 %v3153_v48, %v4401_v17  ;;  %v3218_v54 = vpop.f32.mrf.mxu1 }
 0x13d   :  { %v3155_v55 = vpop.f32.mrf.mxu0 }
 0x13e   :  { %v4475_v57 = vadd.f32 %v3217_v50, %v2058_v59  ;;  %v3156_v58 = vadd.f32 %v3155_v55, %v3154_v52  ;;  %v3219_v60 = vpop.f32.mrf.mxu1 }
 0x13f   :  { %v3220_v61 = vadd.f32 %v3219_v60, %v3218_v54  ;;  %v3157_v63 = vpop.f32.mrf.mxu0 }
 0x140   :  { %v2063_v9 = vadd.f32 %v3156_v58, %v4415_v32  ;;  %v3221_v0 = vpop.f32.mrf.mxu1 }
 0x141   :  { %v3158_v2 = vpop.f32.mrf.mxu0 }
 0x142   :  { %v4478_v3 = vadd.f32 %v3220_v61, %v2063_v9  ;;  %v3159_v4 = vadd.f32 %v3158_v2, %v3157_v63  ;;  %v3222_v5 = vpop.f32.mrf.mxu1 }
 0x143   :  { %v3223_v6 = vadd.f32 %v3222_v5, %v3221_v0  ;;  %v3160_v7 = vpop.f32.mrf.mxu0 }
 0x144   :  { %v2066_v17 = vadd.f32 %v3159_v4, %v4417_v41  ;;  %v3224_v10 = vpop.f32.mrf.mxu1 }
 0x145   :  { %v3161_v11 = vpop.f32.mrf.mxu0 }
 0x146   :  { %v4481_v12 = vadd.f32 %v3223_v6, %v2066_v17  ;;  %v3162_v13 = vadd.f32 %v3161_v11, %v3160_v7  ;;  %v3225_v14 = vpop.f32.mrf.mxu1 }
 0x147   :  { %v3226_v15 = vadd.f32 %v3225_v14, %v3224_v10  ;;  %v3163_v18 = vpop.f32.mrf.mxu0 }
 0x148   :  { %v2071_v32 = vadd.f32 %v3162_v13, %v4431_v56  ;;  %v3227_v20 = vpop.f32.mrf.mxu1 }
 0x149   :  { %v3164_v21 = vpop.f32.mrf.mxu0 }
 0x14a   :  { %v4484_v22 = vadd.f32 %v3226_v15, %v2071_v32  ;;  %v3165_v23 = vadd.f32 %v3164_v21, %v3163_v18  ;;  %v3228_v29 = vpop.f32.mrf.mxu1 }
 0x14b   :  { %v3229_v24 = vadd.f32 %v3228_v29, %v3227_v20  ;;  %v3166_v26 = vpop.f32.mrf.mxu0 }
 0x14c   :  { %v2074_v41 = vadd.f32 %v3165_v23, %v4433_v1  ;;  %v3230_v28 = vpop.f32.mrf.mxu1 }
 0x14d   :  { %v3167_v30 = vpop.f32.mrf.mxu0 }
 0x14e   :  { %v4487_v31 = vadd.f32 %v3229_v24, %v2074_v41  ;;  %v3168_v33 = vadd.f32 %v3167_v30, %v3166_v26  ;;  %v3231_v37 = vpop.f32.mrf.mxu1 }
 0x14f   :  { %v3232_v34 = vadd.f32 %v3231_v37, %v3230_v28  ;;  %v3169_v35 = vpop.f32.mrf.mxu0 }
 0x150   :  { %v2079_v56 = vadd.f32 %v3168_v33, %v4447_v16  ;;  %v3233_v39 = vpop.f32.mrf.mxu1 }
 0x151   :  { %v3170_v40 = vpop.f32.mrf.mxu0 }
 0x152   :  { %v4490_v42 = vadd.f32 %v3232_v34, %v2079_v56  ;;  %v3171_v43 = vadd.f32 %v3170_v40, %v3169_v35  ;;  %v3234_v51 = vpop.f32.mrf.mxu1 }
 0x153   :  { %v3235_v44 = vadd.f32 %v3234_v51, %v3233_v39  ;;  %v3172_v46 = vpop.f32.mrf.mxu0 }
 0x154   :  { %v2082_v1 = vadd.f32 %v3171_v43, %v4449_v25  ;;  %v3236_v48 = vpop.f32.mrf.mxu1 }
 0x155   :  { %v3173_v49 = vpop.f32.mrf.mxu0 }
 0x156   :  { %v4493_v50 = vadd.f32 %v3235_v44, %v2082_v1  ;;  %v3174_v52 = vadd.f32 %v3173_v49, %v3172_v46  ;;  %v3237_v59 = vpop.f32.mrf.mxu1 }
 0x157   :  { %v3238_v54 = vadd.f32 %v3237_v59, %v3236_v48  ;;  %v3175_v55 = vpop.f32.mrf.mxu0 }
 0x158   :  { %v2087_v16 = vadd.f32 %v3174_v52, %v4451_v36  ;;  %v3239_v58 = vpop.f32.mrf.mxu1 }
 0x159   :  { %v3176_v60 = vpop.f32.mrf.mxu0 }
 0x15a   :  { %v4496_v61 = vadd.f32 %v3238_v54, %v2087_v16  ;;  %v3177_v63 = vadd.f32 %v3176_v60, %v3175_v55  ;;  %v3240_v9 = vpop.f32.mrf.mxu1 }
 0x15b   :  { %v3241_v0 = vadd.f32 %v3240_v9, %v3239_v58  ;;  %v3178_v2 = vpop.f32.mrf.mxu0 }
 0x15c   :  { %v2090_v25 = vadd.f32 %v3177_v63, %v4453_v45  ;;  %v3242_v4 = vpop.f32.mrf.mxu1 }
 0x15d   :  { %v3179_v5 = vpop.f32.mrf.mxu0 }
 0x15e   :  { %v4499_v6 = vadd.f32 %v3241_v0, %v2090_v25  ;;  %v3180_v7 = vadd.f32 %v3179_v5, %v3178_v2  ;;  %v3243_v17 = vpop.f32.mrf.mxu1 }
 0x15f   :  { %v3244_v10 = vadd.f32 %v3243_v17, %v3242_v4  ;;  %v3181_v11 = vpop.f32.mrf.mxu0 }
 0x160   :  { %v2095_v36 = vadd.f32 %v3180_v7, %v4455_v53  ;;  %v3245_v13 = vpop.f32.mrf.mxu1 }
 0x161   :  { %v3182_v14 = vpop.f32.mrf.mxu0 }
 0x162   :  { %v4502_v15 = vadd.f32 %v3244_v10, %v2095_v36  ;;  %v3183_v18 = vadd.f32 %v3182_v14, %v3181_v11  ;;  %v3246_v32 = vpop.f32.mrf.mxu1 }
 0x163   :  { %v3247_v20 = vadd.f32 %v3246_v32, %v3245_v13  ;;  %v3264_v21 = vpop.f32.mrf.mxu0 }
 0x164   :  { %v2098_v45 = vadd.f32 %v3183_v18, %v4457_v62  ;;  %v3328_v23 = vpop.f32.mrf.mxu1 }
 0x165   :  { %v3265_v29 = vpop.f32.mrf.mxu0 }
 0x166   :  { %v4505_v24 = vadd.f32 %v3247_v20, %v2098_v45  ;;  %v3266_v26 = vadd.f32 %v3265_v29, %v3264_v21  ;;  %v3329_v41 = vpop.f32.mrf.mxu1 }
 0x167   :  { %v3330_v28 = vadd.f32 %v3329_v41, %v3328_v23  ;;  %v3267_v30 = vpop.f32.mrf.mxu0 }
 0x168   :  { %v2233_v53 = vadd.f32 %v3266_v26, %v4460_v8  ;;  %v3331_v33 = vpop.f32.mrf.mxu1 }
 0x169   :  { %v3268_v37 = vpop.f32.mrf.mxu0 }
 0x16a   :  { %v4508_v34 = vadd.f32 %v3330_v28, %v2233_v53  ;;  %v3269_v35 = vadd.f32 %v3268_v37, %v3267_v30  ;;  %v3332_v56 = vpop.f32.mrf.mxu1 }
 0x16b   :  { %v3333_v39 = vadd.f32 %v3332_v56, %v3331_v33  ;;  %v3270_v40 = vpop.f32.mrf.mxu0 }
 0x16c   :  { %v2236_v62 = vadd.f32 %v3269_v35, %v4463_v19  ;;  %v3334_v43 = vpop.f32.mrf.mxu1 }
 0x16d   :  { %v3271_v51 = vpop.f32.mrf.mxu0 }
 0x16e   :  { %v4511_v44 = vadd.f32 %v3333_v39, %v2236_v62  ;;  %v3272_v46 = vadd.f32 %v3271_v51, %v3270_v40  ;;  %v3335_v1 = vpop.f32.mrf.mxu1 }
 0x16f   :  { %v3336_v48 = vadd.f32 %v3335_v1, %v3334_v43  ;;  %v3273_v49 = vpop.f32.mrf.mxu0 }
 0x170   :  { %v2241_v8 = vadd.f32 %v3272_v46, %v4466_v27  ;;  %v3337_v52 = vpop.f32.mrf.mxu1 }
 0x171   :  { %v3274_v59 = vpop.f32.mrf.mxu0 }
 0x172   :  { %v4514_v54 = vadd.f32 %v3336_v48, %v2241_v8  ;;  %v3275_v55 = vadd.f32 %v3274_v59, %v3273_v49  ;;  %v3338_v16 = vpop.f32.mrf.mxu1 }
 0x173   :  { %v3339_v58 = vadd.f32 %v3338_v16, %v3337_v52  ;;  %v3276_v60 = vpop.f32.mrf.mxu0 }
 0x174   :  { %v2244_v19 = vadd.f32 %v3275_v55, %v4469_v38  ;;  %v3340_v63 = vpop.f32.mrf.mxu1 }
 0x175   :  { %v3277_v9 = vpop.f32.mrf.mxu0 }
 0x176   :  { %v4517_v0 = vadd.f32 %v3339_v58, %v2244_v19  ;;  %v3278_v2 = vadd.f32 %v3277_v9, %v3276_v60  ;;  %v3341_v25 = vpop.f32.mrf.mxu1 }
 0x177   :  { %v3342_v4 = vadd.f32 %v3341_v25, %v3340_v63  ;;  %v3279_v5 = vpop.f32.mrf.mxu0 }
 0x178   :  { %v2249_v27 = vadd.f32 %v3278_v2, %v4472_v47  ;;  %v3343_v7 = vpop.f32.mrf.mxu1 }
 0x179   :  { %v3280_v17 = vpop.f32.mrf.mxu0 }
 0x17a   :  { %v4520_v10 = vadd.f32 %v3342_v4, %v2249_v27  ;;  %v3281_v11 = vadd.f32 %v3280_v17, %v3279_v5  ;;  %v3344_v36 = vpop.f32.mrf.mxu1 }
 0x17b   :  { %v3345_v13 = vadd.f32 %v3344_v36, %v3343_v7  ;;  %v3282_v14 = vpop.f32.mrf.mxu0 }
 0x17c   :  { %v2252_v38 = vadd.f32 %v3281_v11, %v4475_v57  ;;  %v3346_v18 = vpop.f32.mrf.mxu1 }
 0x17d   :  { %v3283_v32 = vpop.f32.mrf.mxu0 }
 0x17e   :  { %v4523_v20 = vadd.f32 %v3345_v13, %v2252_v38  ;;  %v3284_v21 = vadd.f32 %v3283_v32, %v3282_v14  ;;  %v3347_v45 = vpop.f32.mrf.mxu1 }
 0x17f   :  { %v3348_v23 = vadd.f32 %v3347_v45, %v3346_v18  ;;  %v3285_v29 = vpop.f32.mrf.mxu0 }
 0x180   :  { %v2257_v47 = vadd.f32 %v3284_v21, %v4478_v3  ;;  %v3349_v26 = vpop.f32.mrf.mxu1 }
 0x181   :  { %v3286_v41 = vpop.f32.mrf.mxu0 }
 0x182   :  { %v4526_v28 = vadd.f32 %v3348_v23, %v2257_v47  ;;  %v3287_v30 = vadd.f32 %v3286_v41, %v3285_v29  ;;  %v3350_v53 = vpop.f32.mrf.mxu1 }
 0x183   :  { %v3351_v33 = vadd.f32 %v3350_v53, %v3349_v26  ;;  %v3288_v37 = vpop.f32.mrf.mxu0 }
 0x184   :  { %v2260_v57 = vadd.f32 %v3287_v30, %v4481_v12  ;;  %v3352_v35 = vpop.f32.mrf.mxu1 }
 0x185   :  { %v3289_v56 = vpop.f32.mrf.mxu0 }
 0x186   :  { %v4529_v39 = vadd.f32 %v3351_v33, %v2260_v57  ;;  %v3290_v40 = vadd.f32 %v3289_v56, %v3288_v37  ;;  %v3353_v62 = vpop.f32.mrf.mxu1 }
 0x187   :  { %v3354_v43 = vadd.f32 %v3353_v62, %v3352_v35  ;;  %v3291_v51 = vpop.f32.mrf.mxu0 }
 0x188   :  { %v2265_v3 = vadd.f32 %v3290_v40, %v4484_v22  ;;  %v3355_v46 = vpop.f32.mrf.mxu1 }
 0x189   :  { %v3292_v1 = vpop.f32.mrf.mxu0 }
 0x18a   :  { %v4532_v48 = vadd.f32 %v3354_v43, %v2265_v3  ;;  %v3293_v49 = vadd.f32 %v3292_v1, %v3291_v51  ;;  %v3356_v8 = vpop.f32.mrf.mxu1 }
 0x18b   :  { %v3357_v52 = vadd.f32 %v3356_v8, %v3355_v46  ;;  %v3294_v59 = vpop.f32.mrf.mxu0 }
 0x18c   :  { %v2268_v12 = vadd.f32 %v3293_v49, %v4487_v31  ;;  %v3358_v55 = vpop.f32.mrf.mxu1 }
 0x18d   :  { %v3295_v16 = vpop.f32.mrf.mxu0 }
 0x18e   :  { %v4535_v58 = vadd.f32 %v3357_v52, %v2268_v12  ;;  %v3296_v60 = vadd.f32 %v3295_v16, %v3294_v59  ;;  %v3359_v19 = vpop.f32.mrf.mxu1 }
 0x18f   :  { %v3360_v63 = vadd.f32 %v3359_v19, %v3358_v55  ;;  %v3297_v9 = vpop.f32.mrf.mxu0 }
 0x190   :  { %v2273_v22 = vadd.f32 %v3296_v60, %v4490_v42  ;;  %v3361_v2 = vpop.f32.mrf.mxu1 }
 0x191   :  { %v3298_v25 = vpop.f32.mrf.mxu0 }
 0x192   :  { %v4538_v4 = vadd.f32 %v3360_v63, %v2273_v22  ;;  %v3299_v5 = vadd.f32 %v3298_v25, %v3297_v9  ;;  %v3362_v27 = vpop.f32.mrf.mxu1 }
 0x193   :  { %v3363_v7 = vadd.f32 %v3362_v27, %v3361_v2  ;;  %v3300_v17 = vpop.f32.mrf.mxu0 }
 0x194   :  { %v2276_v31 = vadd.f32 %v3299_v5, %v4493_v50  ;;  %v3364_v11 = vpop.f32.mrf.mxu1 }
 0x195   :  { %v3301_v36 = vpop.f32.mrf.mxu0 }
 0x196   :  { %v4541_v13 = vadd.f32 %v3363_v7, %v2276_v31  ;;  %v3302_v14 = vadd.f32 %v3301_v36, %v3300_v17  ;;  %v3365_v38 = vpop.f32.mrf.mxu1 }
 0x197   :  { %v3366_v18 = vadd.f32 %v3365_v38, %v3364_v11  ;;  %v3303_v32 = vpop.f32.mrf.mxu0 }
 0x198   :  { %v2281_v42 = vadd.f32 %v3302_v14, %v4496_v61  ;;  %v3367_v21 = vpop.f32.mrf.mxu1 }
 0x199   :  { %v3304_v45 = vpop.f32.mrf.mxu0 }
 0x19a   :  { %v4544_v23 = vadd.f32 %v3366_v18, %v2281_v42  ;;  %v3305_v29 = vadd.f32 %v3304_v45, %v3303_v32  ;;  %v3368_v47 = vpop.f32.mrf.mxu1 }
 0x19b   :  { %v3369_v26 = vadd.f32 %v3368_v47, %v3367_v21  ;;  %v3306_v41 = vpop.f32.mrf.mxu0 }
 0x19c   :  { %v2284_v50 = vadd.f32 %v3305_v29, %v4499_v6  ;;  %v3370_v30 = vpop.f32.mrf.mxu1 }
 0x19d   :  { %v3307_v53 = vpop.f32.mrf.mxu0 }
 0x19e   :  { %v4547_v33 = vadd.f32 %v3369_v26, %v2284_v50  ;;  %v3308_v37 = vadd.f32 %v3307_v53, %v3306_v41  ;;  %v3371_v57 = vpop.f32.mrf.mxu1 }
 0x19f   :  { %v4549_v35 = vpop.f32.mrf.mxu0  ;;  %v3372_v56 = vadd.f32 %v3371_v57, %v3370_v30 }
 0x1a0   :  { %v2289_v61 = vadd.f32 %v3308_v37, %v4502_v15  ;;  %v4552_v40 = vpop.f32.mrf.mxu1 }
 0x1a1   :  { %v4554_v62 = vpop.f32.mrf.mxu0 }
 0x1a2   :  { %v4556_v43 = vadd.f32 %v3372_v56, %v2289_v61  ;;  %v4558_v51 = vpop.f32.mrf.mxu1 }
 0x1a3   :  { %v3392_v6 = vpop.f32.mrf.mxu0 }
 0x1a4   :  { %v3456_v3 = vpop.f32.mrf.mxu1 }
 0x1a5   :  { %v3393_v46 = vpop.f32.mrf.mxu0 }
 0x1a6   :  { %v3457_v1 = vpop.f32.mrf.mxu1  ;;  %v3394_v19 = vadd.f32 %v3393_v46, %v3392_v6 }
 0x1a7   :  { %v3395_v49 = vpop.f32.mrf.mxu0  ;;  %v3458_v14 = vadd.f32 %v3457_v1, %v3456_v3 }
 0x1a8   :  { %v3459_v8 = vpop.f32.mrf.mxu1  ;;  %v2427_v7 = vadd.f32 %v3394_v19, %v4508_v34 }
 0x1a9   :  { %v3396_v52 = vpop.f32.mrf.mxu0 }
 0x1aa   :  { %v3460_v59 = vpop.f32.mrf.mxu1  ;;  %v3397_v15 = vadd.f32 %v3396_v52, %v3395_v49 }
 0x1ab   :  { %v3398_v12 = vpop.f32.mrf.mxu0  ;;  %v3461_v17 = vadd.f32 %v3460_v59, %v3459_v8 }
 0x1ac   :  { %v3462_v55 = vpop.f32.mrf.mxu1  ;;  %v2430_v2 = vadd.f32 %v3397_v15, %v4511_v44  ;;  %v4566_v44 = vadd.f32 %v3458_v14, %v2427_v7 }
 0x1ad   :  { %v3399_v16 = vpop.f32.mrf.mxu0 }
 0x1ae   :  { %v3463_v60 = vpop.f32.mrf.mxu1  ;;  %v3400_v63 = vadd.f32 %v3399_v16, %v3398_v12  ;;  %v4563_v38 = vadd.f32 %v3461_v17, %v2430_v2  ;;  %v2608_v57 = vmul.f32 %v4566_v44, %v4566_v44 }
 0x1af   :  { %v3401_v9 = vpop.f32.mrf.mxu0  ;;  %v3464_v18 = vadd.f32 %v3463_v60, %v3462_v55 }
 0x1b0   :  { %v3465_v22 = vpop.f32.mrf.mxu1  ;;  %v2435_v31 = vadd.f32 %v3400_v63, %v4514_v54  ;;  %v2609_v41 = vmul.f32 %v4563_v38, %v4563_v38 }
 0x1b1   :  { %v3402_v25 = vpop.f32.mrf.mxu0 }
 0x1b2   :  { %v3403_v5 = vadd.f32 %v3402_v25, %v3401_v9  ;;  %v3466_v27 = vpop.f32.mrf.mxu1  ;;  %v4568_v29 = vadd.f32 %v3464_v18, %v2435_v31  ;;  %v2624_v49 = vadd.f32 %v2609_v41, %v2608_v57 }
 0x1b3   :  { %v3404_v11 = vpop.f32.mrf.mxu0  ;;  %v3467_v47 = vadd.f32 %v3466_v27, %v3465_v22 }
 0x1b4   :  { %v3468_v36 = vpop.f32.mrf.mxu1  ;;  %v2438_v32 = vadd.f32 %v3403_v5, %v4517_v0  ;;  %v2610_v61 = vmul.f32 %v4568_v29, %v4568_v29 }
 0x1b5   :  { %v3405_v42 = vpop.f32.mrf.mxu0 }
 0x1b6   :  { %v3406_v21 = vadd.f32 %v3405_v42, %v3404_v11  ;;  %v3469_v45 = vpop.f32.mrf.mxu1  ;;  %v4573_v50 = vadd.f32 %v3467_v47, %v2438_v32  ;;  %v2625_v16 = vadd.f32 %v2624_v49, %v2610_v61 }
 0x1b7   :  { %v3407_v34 = vpop.f32.mrf.mxu0  ;;  %v3470_v30 = vadd.f32 %v3469_v45, %v3468_v36 }
 0x1b8   :  { %v2443_v26 = vadd.f32 %v3406_v21, %v4520_v10  ;;  %v3471_v54 = vpop.f32.mrf.mxu1  ;;  %v2586_v10 = vadd.f32 %v4563_v38, %v4566_v44  ;;  %v2611_v8 = vmul.f32 %v4573_v50, %v4573_v50 }
 0x1b9   :  { %v3408_v53 = vpop.f32.mrf.mxu0 }
 0x1ba   :  { %v3409_v0 = vadd.f32 %v3408_v53, %v3407_v34  ;;  %v3472_v37 = vpop.f32.mrf.mxu1  ;;  %v4579_v56 = vadd.f32 %v3470_v30, %v2443_v26  ;;  %v2587_v59 = vadd.f32 %v2586_v10, %v4568_v29  ;;  %v2626_v2 = vadd.f32 %v2625_v16, %v2611_v8 }
 0x1bb   :  { %v3410_v6 = vpop.f32.mrf.mxu0  ;;  %v3473_v46 = vadd.f32 %v3472_v37, %v3471_v54 }
 0x1bc   :  { %v2446_v3 = vadd.f32 %v3409_v0, %v4523_v20  ;;  %v3474_v1 = vpop.f32.mrf.mxu1  ;;  %v2612_v60 = vmul.f32 %v4579_v56, %v4579_v56  ;;  %v2588_v20 = vadd.f32 %v2587_v59, %v4573_v50 }
 0x1bd   :  { %v3411_v52 = vpop.f32.mrf.mxu0 }
 0x1be   :  { %v4587_v12 = vadd.f32 %v3473_v46, %v2446_v3  ;;  %v3412_v55 = vadd.f32 %v3411_v52, %v3410_v6  ;;  %v3475_v15 = vpop.f32.mrf.mxu1  ;;  %v2589_v27 = vadd.f32 %v2588_v20, %v4579_v56  ;;  %v2627_v11 = vadd.f32 %v2626_v2, %v2612_v60 }
 0x1bf   :  { %v3413_v19 = vpop.f32.mrf.mxu0  ;;  %v3476_v9 = vadd.f32 %v3475_v15, %v3474_v1 }
 0x1c0   :  { %v2451_v63 = vadd.f32 %v3412_v55, %v4526_v28  ;;  %v3477_v22 = vpop.f32.mrf.mxu1  ;;  %v2613_v25 = vmul.f32 %v4587_v12, %v4587_v12  ;;  %v2590_v14 = vadd.f32 %v2589_v27, %v4587_v12 }
 0x1c1   :  { %v3414_v5 = vpop.f32.mrf.mxu0 }
 0x1c2   :  { %v4596_v7 = vadd.f32 %v3476_v9, %v2451_v63  ;;  %v3415_v17 = vadd.f32 %v3414_v5, %v3413_v19  ;;  %v3478_v31 = vpop.f32.mrf.mxu1  ;;  %v2628_v21 = vadd.f32 %v2627_v11, %v2613_v25 }
 0x1c3   :  { %v3416_v36 = vpop.f32.mrf.mxu0  ;;  %v3479_v32 = vadd.f32 %v3478_v31, %v3477_v22 }
 0x1c4   :  { %v2614_v28 = vmul.f32 %v4596_v7, %v4596_v7  ;;  %v2454_v18 = vadd.f32 %v3415_v17, %v4529_v39  ;;  %v3480_v42 = vpop.f32.mrf.mxu1  ;;  %v2591_v47 = vadd.f32 %v2590_v14, %v4596_v7 }
 0x1c5   :  { %v3417_v45 = vpop.f32.mrf.mxu0 }
 0x1c6   :  { %v4603_v34 = vadd.f32 %v3479_v32, %v2454_v18  ;;  %v3418_v26 = vadd.f32 %v3417_v45, %v3416_v36  ;;  %v3481_v54 = vpop.f32.mrf.mxu1  ;;  %v2629_v41 = vadd.f32 %v2628_v21, %v2614_v28 }
 0x1c7   :  { %v3419_v30 = vpop.f32.mrf.mxu0  ;;  %v3482_v39 = vadd.f32 %v3481_v54, %v3480_v42 }
 0x1c8   :  { %v2592_v53 = vadd.f32 %v2591_v47, %v4603_v34  ;;  %v2615_v0 = vmul.f32 %v4603_v34, %v4603_v34  ;;  %v2459_v37 = vadd.f32 %v3418_v26, %v4532_v48  ;;  %v3483_v57 = vpop.f32.mrf.mxu1 }
 0x1c9   :  { %v3420_v61 = vpop.f32.mrf.mxu0 }
 0x1ca   :  { %v2630_v6 = vadd.f32 %v2629_v41, %v2615_v0  ;;  %v4609_v10 = vadd.f32 %v3482_v39, %v2459_v37  ;;  %v3421_v3 = vadd.f32 %v3420_v61, %v3419_v30  ;;  %v3484_v46 = vpop.f32.mrf.mxu1 }
 0x1cb   :  { %v3422_v1 = vpop.f32.mrf.mxu0  ;;  %v3485_v59 = vadd.f32 %v3484_v46, %v3483_v57 }
 0x1cc   :  { %v2593_v49 = vadd.f32 %v2592_v53, %v4609_v10  ;;  %v2616_v8 = vmul.f32 %v4609_v10, %v4609_v10  ;;  %v2462_v52 = vadd.f32 %v3421_v3, %v4535_v58  ;;  %v3486_v55 = vpop.f32.mrf.mxu1 }
 0x1cd   :  { %v3423_v15 = vpop.f32.mrf.mxu0 }
 0x1ce   :  { %v2631_v48 = vadd.f32 %v2630_v6, %v2616_v8  ;;  %v4615_v16 = vadd.f32 %v3485_v59, %v2462_v52  ;;  %v3424_v60 = vadd.f32 %v3423_v15, %v3422_v1  ;;  %v3487_v19 = vpop.f32.mrf.mxu1 }
 0x1cf   :  { %v3425_v20 = vpop.f32.mrf.mxu0  ;;  %v3488_v2 = vadd.f32 %v3487_v19, %v3486_v55 }
 0x1d0   :  { %v2594_v63 = vadd.f32 %v2593_v49, %v4615_v16  ;;  %v2617_v9 = vmul.f32 %v4615_v16, %v4615_v16  ;;  %v2467_v22 = vadd.f32 %v3424_v60, %v4538_v4  ;;  %v3489_v25 = vpop.f32.mrf.mxu1 }
 0x1d1   :  { %v3426_v5 = vpop.f32.mrf.mxu0 }
 0x1d2   :  { %v2632_v58 = vadd.f32 %v2631_v48, %v2617_v9  ;;  %v4621_v27 = vadd.f32 %v3488_v2, %v2467_v22  ;;  %v3427_v17 = vadd.f32 %v3426_v5, %v3425_v20  ;;  %v3490_v31 = vpop.f32.mrf.mxu1  ;;  %v3375_v48 = vadd.f32 %v4558_v51, %v4552_v40 }
 0x1d3   :  { %v3428_v11 = vpop.f32.mrf.mxu0  ;;  %v3491_v18 = vadd.f32 %v3490_v31, %v3489_v25 }
 0x1d4   :  { %v2595_v36 = vadd.f32 %v2594_v63, %v4621_v27  ;;  %v2618_v14 = vmul.f32 %v4621_v27, %v4621_v27  ;;  %v2470_v28 = vadd.f32 %v3427_v17, %v4541_v13  ;;  %v3492_v32 = vpop.f32.mrf.mxu1  ;;  %v3311_v13 = vadd.f32 %v4554_v62, %v4549_v35 }
 0x1d5   :  { %v3429_v42 = vpop.f32.mrf.mxu0 }
 0x1d6   :  { %v2633_v4 = vadd.f32 %v2632_v58, %v2618_v14  ;;  %v4627_v21 = vadd.f32 %v3491_v18, %v2470_v28  ;;  %v3430_v45 = vadd.f32 %v3429_v42, %v3428_v11  ;;  %v3493_v47 = vpop.f32.mrf.mxu1  ;;  %v2292_v59 = vadd.f32 %v3311_v13, %v4505_v24 }
 0x1d7   :  { %v3431_v26 = vpop.f32.mrf.mxu0  ;;  %v3494_v53 = vadd.f32 %v3493_v47, %v3492_v32 }
 0x1d8   :  { %v2596_v54 = vadd.f32 %v2595_v36, %v4627_v21  ;;  %v2619_v41 = vmul.f32 %v4627_v21, %v4627_v21  ;;  %v2475_v30 = vadd.f32 %v3430_v45, %v4544_v23  ;;  %v3495_v0 = vpop.f32.mrf.mxu1  ;;  %v2389_v24 = vadd.f32 %v3375_v48, %v2292_v59  ;;  %v2653_v59 = vld [vmem:[%s4721_s3] sm:$0x1] }
 0x1d9   :  { %v3432_v37 = vpop.f32.mrf.mxu0 }
 0x1da   :  { %v2634_v39 = vadd.f32 %v2633_v4, %v2619_v41  ;;  %v4635_v57 = vadd.f32 %v3494_v53, %v2475_v30  ;;  %v3433_v61 = vadd.f32 %v3432_v37, %v3431_v26  ;;  %v3496_v6 = vpop.f32.mrf.mxu1 }
 0x1db   :  { %v3434_v3 = vpop.f32.mrf.mxu0  ;;  %v3497_v23 = vadd.f32 %v3496_v6, %v3495_v0 }
 0x1dc   :  { %v2597_v46 = vadd.f32 %v2596_v54, %v4635_v57  ;;  %v2620_v1 = vmul.f32 %v4635_v57, %v4635_v57  ;;  %v2478_v49 = vadd.f32 %v3433_v61, %v4547_v33  ;;  %v3498_v8 = vpop.f32.mrf.mxu1 }
 0x1dd   :  { %v3435_v52 = vpop.f32.mrf.mxu0 }
 0x1de   :  { %v2635_v55 = vadd.f32 %v2634_v39, %v2620_v1  ;;  %v4642_v35 = vadd.f32 %v3497_v23, %v2478_v49  ;;  %v3436_v62 = vadd.f32 %v3435_v52, %v3434_v3  ;;  %v3499_v15 = vpop.f32.mrf.mxu1  ;;  %v2649_v49 = vld [vmem:[%s4720_s2] sm:$0x1] }
 0x1df   :  { %v3437_v60 = vpop.f32.mrf.mxu0  ;;  %v3500_v63 = vadd.f32 %v3499_v15, %v3498_v8 }
 0x1e0   :  { %v2598_v19 = vadd.f32 %v2597_v46, %v4642_v35  ;;  %v2621_v20 = vmul.f32 %v4642_v35, %v4642_v35  ;;  %v2483_v33 = vadd.f32 %v3436_v62, %v4556_v43  ;;  %v3501_v9 = vpop.f32.mrf.mxu1  ;;  %v2657_v46 = vlaneseq }
 0x1e1   :  { %v3438_v22 = vpop.f32.mrf.mxu0 }
 0x1e2   :  { %v2636_v2 = vadd.f32 %v2635_v55, %v2621_v20  ;;  %v2580_v25 = vadd.f32 %v3500_v63, %v2483_v33  ;;  %v3439_v5 = vadd.f32 %v3438_v22, %v3437_v60  ;;  %v3502_v58 = vpop.f32.mrf.mxu1  ;;  %v2658_v1 = vshrl.u32 %v2657_v46, 7 }
 0x1e3   :  { %v3503_v40 = vadd.f32 %v3502_v58, %v3501_v9 }
 0x1e4   :  { %v2599_v17 = vadd.f32 %v2598_v19, %v2580_v25  ;;  %v2622_v31 = vmul.f32 %v2580_v25, %v2580_v25  ;;  %v2486_v11 = vadd.f32 %v3439_v5, %v2389_v24  ;;  %v2659_v23 = vsub.s32 0, %v2658_v1 }
 0x1e6   :  { %v2637_v51 = vadd.f32 %v2636_v2, %v2622_v31  ;;  %v2583_v36 = vadd.f32 %v3503_v40, %v2486_v11 }
 0x1e8   :  { %v2600_v14 = vadd.f32 %v2599_v17, %v2583_v36  ;;  %v2623_v28 = vmul.f32 %v2583_v36, %v2583_v36 }
 0x1ea   :  { %v2601_v18 = vrot.slane %v2600_v14, 4  ;;  %v2638_v32 = vadd.f32 %v2637_v51, %v2623_v28 }
 0x1ec   :  { %v2602_v42 = vadd.f32 %v2601_v18, %v2600_v14  ;;  %v2639_v43 = vrot.slane %v2638_v32, 4 }
 0x1ee   :  { %v2603_v4 = vrot.slane %v2602_v42, 2  ;;  %v2640_v45 = vadd.f32 %v2639_v43, %v2638_v32 }
 0x1f0   :  { %v2604_v47 = vadd.f32 %v2603_v4, %v2602_v42  ;;  %v2641_v26 = vrot.slane %v2640_v45, 2 }
 0x1f2   :  { %v2605_v54 = vrot.slane %v2604_v47, 1  ;;  %v2642_v41 = vadd.f32 %v2641_v26, %v2640_v45 }
 0x1f4   :  { %v2606_v30 = vadd.f32 %v2605_v54, %v2604_v47  ;;  %v2643_v53 = vrot.slane %v2642_v41, 1 }
 0x1f6   :  { %v2607_v0 = vmul.f32 0.0078125, %v2606_v30  ;;  %v2644_v37 = vadd.f32 %v2643_v53, %v2642_v41 }
 0x1f8   :  { %v2645_v13 = vmul.f32 0.0078125, %v2644_v37  ;;  %v2646_v39 = vmul.f32 %v2607_v0, %v2607_v0 }
 0x1fa   :  { %v2647_v61 = vsub.f32 %v2645_v13, %v2646_v39 }
 0x1fc   :  { %v2648_v6 = vmax.f32 %v2647_v61, 0.0 }
 0x1fe   :  { %v2650_v3 = vadd.f32 1e-05, %v2648_v6 }
 0x200   :  { %3632 = vrsqrt.f32 %v2650_v3 }
 0x20d   :  { %v3633_v8 = vpop.eup %3632 }
 0x20e   :  { %v2652_v52 = vmul.f32 %v3633_v8, %v2649_v49 }
 0x210   :  { %v2654_v55 = vmul.f32 %v2652_v52, %v2607_v0  ;;  %v2660_v62 = vrot.slane %v2652_v52, %v2659_v23 }
 0x212   :  { %v2655_v15 = vsub.f32 %v2653_v59, %v2654_v55  ;;  %v2662_v48 = vmul.f32 %v2660_v62, %v4566_v44  ;;  %v2663_v60 = vmul.f32 %v2660_v62, %v4563_v38  ;;  %v2668_v19 = vmul.f32 %v2660_v62, %v4596_v7 }
 0x213   :  { %v2669_v20 = vmul.f32 %v2660_v62, %v4603_v34  ;;  %v2670_v33 = vmul.f32 %v2660_v62, %v4609_v10  ;;  %v2671_v63 = vmul.f32 %v2660_v62, %v4615_v16  ;;  %v2672_v9 = vmul.f32 %v2660_v62, %v4621_v27 }
 0x214   :  { %v2673_v22 = vmul.f32 %v2660_v62, %v4627_v21  ;;  %v2674_v24 = vmul.f32 %v2660_v62, %v4635_v57  ;;  %v2675_v2 = vmul.f32 %v2660_v62, %v4642_v35  ;;  %v2676_v5 = vmul.f32 %v2660_v62, %v2580_v25 }
 0x215   :  { %v2664_v44 = vmul.f32 %v2660_v62, %v4568_v29  ;;  %v2665_v38 = vmul.f32 %v2660_v62, %v4573_v50  ;;  %v2677_v7 = vmul.f32 %v2660_v62, %v2583_v36  ;;  %v2682_v58 = vrot.slane %v2655_v15, %v2659_v23 }
 0x216   :  { %v2666_v34 = vmul.f32 %v2660_v62, %v4579_v56  ;;  %v2667_v10 = vmul.f32 %v2660_v62, %v4587_v12 }
 0x217   :  { %v2684_v16 = vadd.f32 %v2682_v58, %v2662_v48  ;;  %v2685_v17 = vadd.f32 %v2682_v58, %v2663_v60  ;;  %v2686_v27 = vadd.f32 %v2682_v58, %v2664_v44  ;;  %v2687_v31 = vadd.f32 %v2682_v58, %v2665_v38 }
 0x218   :  { %v2688_v21 = vadd.f32 %v2682_v58, %v2666_v34  ;;  %v2689_v11 = vadd.f32 %v2682_v58, %v2667_v10  ;;  %v2690_v57 = vadd.f32 %v2682_v58, %v2668_v19  ;;  %v2691_v40 = vadd.f32 %v2682_v58, %v2669_v20 }
 0x219   :  { %v2692_v35 = vadd.f32 %v2682_v58, %v2670_v33  ;;  %v2693_v25 = vadd.f32 %v2682_v58, %v2671_v63  ;;  %v2694_v51 = vadd.f32 %v2682_v58, %v2672_v9  ;;  %v2695_v29 = vadd.f32 %v2682_v58, %v2673_v22 }
 0x21a   :  { %v2696_v14 = vadd.f32 %v2682_v58, %v2674_v24  ;;  %v2697_v50 = vadd.f32 %v2682_v58, %v2675_v2  ;;  %v2698_v36 = vadd.f32 %v2682_v58, %v2676_v5  ;;  %v2699_v28 = vadd.f32 %v2682_v58, %v2677_v7 }
 0x21b   :  { %v2700_v18 = vmax.f32 %v2684_v16, 0.0  ;;  %v2701_v56 = vmax.f32 %v2685_v17, 0.0  ;;  %v2702_v32 = vmax.f32 %v2686_v27, 0.0  ;;  %v2703_v12 = vmax.f32 %v2687_v31, 0.0 }
 0x21c   :  { %v2704_v42 = vmax.f32 %v2688_v21, 0.0  ;;  %v2705_v43 = vmax.f32 %v2689_v11, 0.0  ;;  %v2706_v4 = vmax.f32 %v2690_v57, 0.0  ;;  %v2707_v45 = vmax.f32 %v2691_v40, 0.0 }
 0x21d   :  { %v2708_v47 = vmax.f32 %v2692_v35, 0.0  ;;  %v2709_v26 = vmax.f32 %v2693_v25, 0.0  ;;  %v2710_v54 = vmax.f32 %v2694_v51, 0.0  ;;  %v2711_v41 = vmax.f32 %v2695_v29, 0.0  ;;  %2716 = vst [vmem:[%s4722_s4] sm:$0xff] %v2700_v18  ;;  %2717 = vst [vmem:[%s4722_s4 + $0x8] sm:$0xff] %v2701_v56 }
 0x21e   :  { %2718 = vst [vmem:[%s4722_s4 + $0x10] sm:$0xff] %v2702_v32  ;;  %2719 = vst [vmem:[%s4722_s4 + $0x18] sm:$0xff] %v2703_v12  ;;  %v2712_v30 = vmax.f32 %v2696_v14, 0.0  ;;  %v2713_v53 = vmax.f32 %v2697_v50, 0.0  ;;  %v2714_v0 = vmax.f32 %v2698_v36, 0.0  ;;  %v2715_v37 = vmax.f32 %v2699_v28, 0.0 }
 0x21f   :  { %2720 = vst [vmem:[%s4722_s4 + $0x20] sm:$0xff] %v2704_v42  ;;  %2721 = vst [vmem:[%s4722_s4 + $0x28] sm:$0xff] %v2705_v43 }
 0x220   :  { %2722 = vst [vmem:[%s4722_s4 + $0x30] sm:$0xff] %v2706_v4  ;;  %2723 = vst [vmem:[%s4722_s4 + $0x38] sm:$0xff] %v2707_v45 }
 0x221   :  { %2724 = vst [vmem:[%s4722_s4 + $0x40] sm:$0xff] %v2708_v47  ;;  %2725 = vst [vmem:[%s4722_s4 + $0x48] sm:$0xff] %v2709_v26 }
 0x222   :  { %2726 = vst [vmem:[%s4722_s4 + $0x50] sm:$0xff] %v2710_v54  ;;  %2727 = vst [vmem:[%s4722_s4 + $0x58] sm:$0xff] %v2711_v41 }
 0x223   :  { %2728 = vst [vmem:[%s4722_s4 + $0x60] sm:$0xff] %v2712_v30  ;;  %2729 = vst [vmem:[%s4722_s4 + $0x68] sm:$0xff] %v2713_v53 }
 0x224   :  { %2730 = vst [vmem:[%s4722_s4 + $0x70] sm:$0xff] %v2714_v0  ;;  %2731 = vst [vmem:[%s4722_s4 + $0x78] sm:$0xff] %v2715_v37 }

// kernel: generator_residual_forward.21
= control target key start
LH: loop header
LB: loop body
LE: loop exit
PB: predicated region body
PF: predicated region fallthrough
CT: control target
= control target key end

     0   :  { %v3873_v0 = vmov 0   ;;  %s5392_s1 = inlined_call_operand.vmem [shape: bf16[1024,128], index: 1, kind: input, shape index: {}]   ;;  %s5393_s0 = inlined_call_operand.vmem [shape: bf16[512,1024], index: 0, kind: input, shape index: {}]   ;;  %s5394_s2 = inlined_call_operand.vmem [shape: f32[1,128], index: 2, kind: input, shape index: {}]   ;;  %s5395_s3 = inlined_call_operand.vmem [shape: f32[512,128], index: 3, kind: output, shape index: {}]  }
   0x1   :  { %2070 = vmatprep.subr.bf16.mxu0 %v3873_v0  ;;  %2359 = vmatprep.subr.bf16.mxu1 %v3873_v0  ;;  %v3680_v1 = vld [vmem:[%s5392_s1 + $0x38] sm:$0xff]   ;;  %v3682_v3 = vld [vmem:[%s5392_s1 + $0x30] sm:$0xff]   ;;  %v3684_v5 = vld [vmem:[%s5392_s1 + $0x28] sm:$0xff]  }
   0x2   :  { %v3681_v2 = vld [vmem:[%s5392_s1 + $0xb8] sm:$0xff]   ;;  %2071 = vmatpush1.bf16.msra.mxu0 %v3680_v1  ;;  %v3683_v4 = vld [vmem:[%s5392_s1 + $0xb0] sm:$0xff]   ;;  %v3685_v6 = vld [vmem:[%s5392_s1 + $0xa8] sm:$0xff]  }
   0x3   :  { %2360 = vmatpush1.bf16.msra.mxu1 %v3681_v2  ;;  %2072 = vmatprep.subr.bf16.mxu0 %v3873_v0  ;;  %v3686_v7 = vld [vmem:[%s5392_s1 + $0x20] sm:$0xff]   ;;  %v3688_v9 = vld [vmem:[%s5392_s1 + $0x18] sm:$0xff]   ;;  %v3690_v11 = vld [vmem:[%s5392_s1 + $0x10] sm:$0xff]  }
   0x4   :  { %2361 = vmatprep.subr.bf16.mxu1 %v3873_v0  ;;  %v3687_v8 = vld [vmem:[%s5392_s1 + $0xa0] sm:$0xff]   ;;  %v3689_v10 = vld [vmem:[%s5392_s1 + $0x98] sm:$0xff]   ;;  %v3691_v12 = vld [vmem:[%s5392_s1 + $0x90] sm:$0xff]  }
   0x5   :  { %v3692_v13 = vld [vmem:[%s5392_s1 + $0x8] sm:$0xff]   ;;  %v3694_v15 = vld [vmem:[%s5392_s1] sm:$0xff]   ;;  %v3696_v17 = vld [vmem:[%s5392_s1 + $0x78] sm:$0xff]  }
   0x6   :  { %2073 = vmatpush1.bf16.msra.mxu0 %v3682_v3  ;;  %v3693_v14 = vld [vmem:[%s5392_s1 + $0x88] sm:$0xff]   ;;  %v3695_v16 = vld [vmem:[%s5392_s1 + $0x80] sm:$0xff]   ;;  %v3697_v18 = vld [vmem:[%s5392_s1 + $0xf8] sm:$0xff]  }
   0x7   :  { %2362 = vmatpush1.bf16.msra.mxu1 %v3683_v4  ;;  %2074 = vmatprep.subr.bf16.mxu0 %v3873_v0  ;;  %v3969_v19 = vld [vmem:[%s5393_s0] sm:$0xff]  ;;  %v3979_v21 = vld [vmem:[%s5393_s0 + $0x8] sm:$0xff]  ;;  %v3698_v24 = vld [vmem:[%s5392_s1 + $0x70] sm:$0xff]  }
   0x8   :  { %2363 = vmatprep.subr.bf16.mxu1 %v3873_v0  ;;  %v3974_v20 = vld [vmem:[%s5393_s0 + $0x20] sm:$0xff]  ;;  %v3986_v23 = vld [vmem:[%s5393_s0 + $0x28] sm:$0xff]  ;;  %v3699_v26 = vld [vmem:[%s5392_s1 + $0xf0] sm:$0xff]  }
   0x9   :  { %v3360_v22 = vcombine.high %v3969_v19, %v3974_v20  ;;  %v3362_v25 = vcombine.high %v3979_v21, %v3986_v23  ;;  %v3700_v27 = vld [vmem:[%s5392_s1 + $0x68] sm:$0xff]   ;;  %v3702_v29 = vld [vmem:[%s5392_s1 + $0x60] sm:$0xff]   ;;  %v3704_v31 = vld [vmem:[%s5392_s1 + $0x58] sm:$0xff]   ;;  %v3359_v42 = vcombine.low %v3969_v19, %v3974_v20  ;;  %v3361_v44 = vcombine.low %v3979_v21, %v3986_v23 }
   0xa   :  { %2075 = vmatpush1.bf16.msra.mxu0 %v3684_v5  ;;  %v3701_v28 = vld [vmem:[%s5392_s1 + $0xe8] sm:$0xff]   ;;  %v3703_v30 = vld [vmem:[%s5392_s1 + $0xe0] sm:$0xff]   ;;  %v3705_v32 = vld [vmem:[%s5392_s1 + $0xd8] sm:$0xff]  }
   0xb   :  { %2364 = vmatpush1.bf16.msra.mxu1 %v3685_v6  ;;  %2076 = vmatprep.subr.bf16.mxu0 %v3873_v0  ;;  %v3706_v33 = vld [vmem:[%s5392_s1 + $0x50] sm:$0xff]   ;;  %v3708_v35 = vld [vmem:[%s5392_s1 + $0x48] sm:$0xff]   ;;  %v3710_v37 = vld [vmem:[%s5392_s1 + $0x40] sm:$0xff]  }
   0xc   :  { %2365 = vmatprep.subr.bf16.mxu1 %v3873_v0  ;;  %2102 = vmatprep.mubr.bf16.mxu0 %v3360_v22  ;;  %v3707_v34 = vld [vmem:[%s5392_s1 + $0xd0] sm:$0xff]   ;;  %v3709_v36 = vld [vmem:[%s5392_s1 + $0xc8] sm:$0xff]   ;;  %v3711_v38 = vld [vmem:[%s5392_s1 + $0xc0] sm:$0xff]  }
   0xd   :  { %2391 = vmatprep.mubr.bf16.mxu1 %v3362_v25  ;;  %v23_v39 = vld [vmem:[%s5393_s0 + $0x40] sm:$0xff]  ;;  %v24_v41 = vld [vmem:[%s5393_s0 + $0x48] sm:$0xff]  ;;  %v3712_v45 = vld [vmem:[%s5392_s1 + $0x138] sm:$0xff]  }
   0xe   :  { %2077 = vmatpush1.bf16.msra.mxu0 %v3686_v7  ;;  %v27_v40 = vld [vmem:[%s5393_s0 + $0x60] sm:$0xff]  ;;  %v28_v43 = vld [vmem:[%s5393_s0 + $0x68] sm:$0xff]  ;;  %v3713_v46 = vld [vmem:[%s5392_s1 + $0x1b8] sm:$0xff]  }
   0xf   :  { %2366 = vmatpush1.bf16.msra.mxu1 %v3687_v8  ;;  %2078 = vmatprep.subr.bf16.mxu0 %v3873_v0  ;;  %v3368_v47 = vcombine.high %v23_v39, %v27_v40  ;;  %v3370_v48 = vcombine.high %v24_v41, %v28_v43  ;;  %v31_v49 = vld [vmem:[%s5393_s0 + $0x80] sm:$0xff]  ;;  %v3714_v51 = vld [vmem:[%s5392_s1 + $0x130] sm:$0xff]   ;;  %v32_v53 = vld [vmem:[%s5393_s0 + $0x88] sm:$0xff]  ;;  %v3367_v55 = vcombine.low %v23_v39, %v27_v40 }
  0x10   :  { %2367 = vmatprep.subr.bf16.mxu1 %v3873_v0  ;;  %v35_v50 = vld [vmem:[%s5393_s0 + $0xa0] sm:$0xff]  ;;  %v3715_v52 = vld [vmem:[%s5392_s1 + $0x1b0] sm:$0xff]   ;;  %v36_v54 = vld [vmem:[%s5393_s0 + $0xa8] sm:$0xff]  ;;  %v3369_v56 = vcombine.low %v24_v41, %v28_v43 }
  0x11   :  { %v3376_v57 = vcombine.high %v31_v49, %v35_v50  ;;  %v3378_v58 = vcombine.high %v32_v53, %v36_v54  ;;  %v3716_v59 = vld [vmem:[%s5392_s1 + $0x128] sm:$0xff]   ;;  %v39_v61 = vld [vmem:[%s5393_s0 + $0xc0] sm:$0xff]  ;;  %v3375_v4 = vcombine.low %v31_v49, %v35_v50  ;;  %v3720_v5 = vld [vmem:[%s5392_s1 + $0x118] sm:$0xff]   ;;  %v3377_v6 = vcombine.low %v32_v53, %v36_v54 }
  0x12   :  { %2079 = vmatpush1.bf16.msra.mxu0 %v3688_v9  ;;  %v3717_v60 = vld [vmem:[%s5392_s1 + $0x1a8] sm:$0xff]   ;;  %v43_v62 = vld [vmem:[%s5393_s0 + $0xe0] sm:$0xff]  ;;  %v3721_v8 = vld [vmem:[%s5392_s1 + $0x198] sm:$0xff]  }
  0x13   :  { %2368 = vmatpush1.bf16.msra.mxu1 %v3689_v10  ;;  %2080 = vmatprep.subr.bf16.mxu0 %v3873_v0  ;;  %v40_v63 = vld [vmem:[%s5393_s0 + $0xc8] sm:$0xff]  ;;  %v3718_v2 = vld [vmem:[%s5392_s1 + $0x120] sm:$0xff]   ;;  %v3384_v7 = vcombine.high %v39_v61, %v43_v62  ;;  %v3731_v39 = vld [vmem:[%s5392_s1 + $0x1f0] sm:$0xff]  }
  0x14   :  { %2369 = vmatprep.subr.bf16.mxu1 %v3873_v0  ;;  %v44_v1 = vld [vmem:[%s5393_s0 + $0xe8] sm:$0xff]  ;;  %v3719_v3 = vld [vmem:[%s5392_s1 + $0x1a0] sm:$0xff]  }
  0x15   :  { %v3386_v9 = vcombine.high %v40_v63, %v44_v1  ;;  %v47_v10 = vld [vmem:[%s5393_s0 + $0x100] sm:$0xff]  ;;  %v3724_v20 = vld [vmem:[%s5392_s1 + $0x108] sm:$0xff]  }
  0x16   :  { %2081 = vmatpush1.bf16.msra.mxu0 %v3690_v11  ;;  %v51_v11 = vld [vmem:[%s5393_s0 + $0x120] sm:$0xff]  ;;  %v3725_v21 = vld [vmem:[%s5392_s1 + $0x188] sm:$0xff]  }
  0x17   :  { %2370 = vmatpush1.bf16.msra.mxu1 %v3691_v12  ;;  %2082 = vmatprep.subr.bf16.mxu0 %v3873_v0  ;;  %v48_v12 = vld [vmem:[%s5393_s0 + $0x108] sm:$0xff]  ;;  %v55_v22 = vld [vmem:[%s5393_s0 + $0x140] sm:$0xff] }
  0x18   :  { %2371 = vmatprep.subr.bf16.mxu1 %v3873_v0  ;;  %v59_v23 = vld [vmem:[%s5393_s0 + $0x160] sm:$0xff]  ;;  %v56_v25 = vld [vmem:[%s5393_s0 + $0x148] sm:$0xff] }
  0x19   :  { %v3399_v40 = vcombine.low %v55_v22, %v59_v23  ;;  %v76_v49 = vld [vmem:[%s5393_s0 + $0x1e8] sm:$0xff]  ;;  %v3734_v54 = vld [vmem:[%s5392_s1 + $0x160] sm:$0xff]  }
  0x1a   :  { %2083 = vmatpush1.bf16.msra.mxu0 %v3692_v13  ;;  %v52_v13 = vld [vmem:[%s5393_s0 + $0x128] sm:$0xff] }
  0x1b   :  { %2372 = vmatpush1.bf16.msra.mxu1 %v3693_v14  ;;  %2084 = vmatprep.subr.bf16.mxu0 %v3873_v0  ;;  %v3722_v14 = vld [vmem:[%s5392_s1 + $0x110] sm:$0xff]   ;;  %v3394_v19 = vcombine.high %v48_v12, %v52_v13 }
  0x1c   :  { %2373 = vmatprep.subr.bf16.mxu1 %v3873_v0 }
  0x1e   :  { %2085 = vmatpush1.bf16.msra.mxu0 %v3694_v15  ;;  %v3723_v15 = vld [vmem:[%s5392_s1 + $0x190] sm:$0xff]  }
  0x1f   :  { %2374 = vmatpush1.bf16.msra.mxu1 %v3695_v16  ;;  %2086 = vmatprep.subr.bf16.mxu0 %v3873_v0  ;;  %v3383_v16 = vcombine.low %v39_v61, %v43_v62 }
  0x20   :  { %2375 = vmatprep.subr.bf16.mxu1 %v3873_v0 }
  0x22   :  { %2087 = vmatpush2.bf16.msra.mxu0 %v3696_v17  ;;  %v3385_v17 = vcombine.low %v40_v63, %v44_v1  ;;  %v87_v1 = vld [vmem:[%s5393_s0 + $0x240] sm:$0xff] }
  0x23   :  { %2376 = vmatpush2.bf16.msra.mxu1 %v3697_v18  ;;  %2088 = vmatprep.subr.bf16.mxu0 %v3873_v0  ;;  %v3392_v18 = vcombine.high %v47_v10, %v51_v11 }
  0x24   :  { %2377 = vmatprep.subr.bf16.mxu1 %v3873_v0 }
  0x26   :  { %2089 = vmatpush2.bf16.msra.mxu0 %v3698_v24  ;;  %v3726_v24 = vld [vmem:[%s5392_s1 + $0x100] sm:$0xff]  }
  0x27   :  { %2378 = vmatpush2.bf16.msra.mxu1 %v3699_v26  ;;  %2090 = vmatprep.subr.bf16.mxu0 %v3873_v0  ;;  %v60_v26 = vld [vmem:[%s5393_s0 + $0x168] sm:$0xff] }
  0x28   :  { %2379 = vmatprep.subr.bf16.mxu1 %v3873_v0  ;;  %v3401_v41 = vcombine.low %v56_v25, %v60_v26 }
  0x2a   :  { %2091 = vmatpush2.bf16.msra.mxu0 %v3700_v27  ;;  %v3727_v27 = vld [vmem:[%s5392_s1 + $0x180] sm:$0xff]  }
  0x2b   :  { %2380 = vmatpush2.bf16.msra.mxu1 %v3701_v28  ;;  %2092 = vmatprep.subr.bf16.mxu0 %v3873_v0  ;;  %v3391_v28 = vcombine.low %v47_v10, %v51_v11  ;;  %v99_v10 = vld [vmem:[%s5393_s0 + $0x2a0] sm:$0xff]  ;;  %v96_v11 = vld [vmem:[%s5393_s0 + $0x288] sm:$0xff] }
  0x2c   :  { %2381 = vmatprep.subr.bf16.mxu1 %v3873_v0 }
  0x2e   :  { %2093 = vmatpush2.bf16.msra.mxu0 %v3702_v29  ;;  %v3393_v29 = vcombine.low %v48_v12, %v52_v13  ;;  %v100_v12 = vld [vmem:[%s5393_s0 + $0x2a8] sm:$0xff]  ;;  %v3736_v13 = vld [vmem:[%s5392_s1 + $0x158] sm:$0xff]  }
  0x2f   :  { %2382 = vmatpush2.bf16.msra.mxu1 %v3703_v30  ;;  %2094 = vmatprep.subr.bf16.mxu0 %v3873_v0  ;;  %v3400_v30 = vcombine.high %v55_v22, %v59_v23  ;;  %v108_v22 = vld [vmem:[%s5393_s0 + $0x2e8] sm:$0xff] }
  0x30   :  { %2383 = vmatprep.subr.bf16.mxu1 %v3873_v0 }
  0x32   :  { %2095 = vmatpush2.bf16.msra.mxu0 %v3704_v31  ;;  %v3402_v31 = vcombine.high %v56_v25, %v60_v26 }
  0x33   :  { %2384 = vmatpush2.bf16.msra.mxu1 %v3705_v32  ;;  %2096 = vmatprep.subr.bf16.mxu0 %v3873_v0  ;;  %v3728_v32 = vld [vmem:[%s5392_s1 + $0x178] sm:$0xff]  }
  0x34   :  { %2385 = vmatprep.subr.bf16.mxu1 %v3873_v0 }
  0x36   :  { %2097 = vmatpush2.bf16.msra.mxu0 %v3706_v33  ;;  %v3729_v33 = vld [vmem:[%s5392_s1 + $0x1f8] sm:$0xff]  }
  0x37   :  { %2386 = vmatpush2.bf16.msra.mxu1 %v3707_v34  ;;  %2098 = vmatprep.subr.bf16.mxu0 %v3873_v0  ;;  %v63_v34 = vld [vmem:[%s5393_s0 + $0x180] sm:$0xff] }
  0x38   :  { %2387 = vmatprep.subr.bf16.mxu1 %v3873_v0 }
  0x3a   :  { %2099 = vmatpush2.bf16.msra.mxu0 %v3708_v35  ;;  %v67_v35 = vld [vmem:[%s5393_s0 + $0x1a0] sm:$0xff] }
  0x3b   :  { %2388 = vmatpush2.bf16.msra.mxu1 %v3709_v36  ;;  %2100 = vmatprep.subr.bf16.mxu0 %v3873_v0  ;;  %v3730_v36 = vld [vmem:[%s5392_s1 + $0x170] sm:$0xff]   ;;  %v3407_v50 = vcombine.low %v63_v34, %v67_v35 }
  0x3c   :  { %2389 = vmatprep.subr.bf16.mxu1 %v3873_v0 }
  0x3e   :  { %2101 = vmatpush2.bf16.msra.mxu0 %v3710_v37  ;;  %v64_v37 = vld [vmem:[%s5393_s0 + $0x188] sm:$0xff] }
  0x3f   :  { %2390 = vmatpush2.bf16.msra.mxu1 %v3711_v38  ;;  %2648 = vmatprep.subr.bf16.mxu0 %v3873_v0  ;;  %v68_v38 = vld [vmem:[%s5393_s0 + $0x1a8] sm:$0xff] }
  0x40   :  { %2937 = vmatprep.subr.bf16.mxu1 %v3873_v0  ;;  %v3410_v43 = vcombine.high %v64_v37, %v68_v38 }
  0x41   :  { %2103 = vmatmul.mubr.bf16.vlgmr.msra.gmra.mxu0 %v3359_v42  ;;  %v3408_v42 = vcombine.high %v63_v34, %v67_v35 }
  0x42   :  { %2392 = vmatmul.mubr.bf16.vlgmr.msra.gmra.mxu1 %v3361_v44  ;;  %2649 = vmatpush1.bf16.msra.mxu0 %v3712_v45  ;;  %v3732_v44 = vld [vmem:[%s5392_s1 + $0x168] sm:$0xff]  }
  0x43   :  { %2938 = vmatpush1.bf16.msra.mxu1 %v3713_v46  ;;  %2110 = vmatprep.mubr.bf16.mxu0 %v3368_v47  ;;  %v3733_v45 = vld [vmem:[%s5392_s1 + $0x1e8] sm:$0xff]   ;;  %v71_v46 = vld [vmem:[%s5393_s0 + $0x1c0] sm:$0xff] }
  0x44   :  { %2399 = vmatprep.mubr.bf16.mxu1 %v3370_v48  ;;  %2650 = vmatprep.subr.bf16.mxu0 %v3873_v0  ;;  %v75_v47 = vld [vmem:[%s5393_s0 + $0x1e0] sm:$0xff]  ;;  %v72_v48 = vld [vmem:[%s5393_s0 + $0x1c8] sm:$0xff] }
  0x45   :  { %2939 = vmatprep.subr.bf16.mxu1 %v3873_v0  ;;  %v3418_v53 = vcombine.high %v72_v48, %v76_v49  ;;  %v3417_v61 = vcombine.low %v72_v48, %v76_v49  ;;  %v132_v48 = vld [vmem:[%s5393_s0 + $0x3a8] sm:$0xff] }
  0x46   :  { %2651 = vmatpush1.bf16.msra.mxu0 %v3714_v51  ;;  %v3409_v51 = vcombine.low %v64_v37, %v68_v38  ;;  %v119_v37 = vld [vmem:[%s5393_s0 + $0x340] sm:$0xff]  ;;  %v3740_v49 = vld [vmem:[%s5392_s1 + $0x148] sm:$0xff]  }
  0x47   :  { %2940 = vmatpush1.bf16.msra.mxu1 %v3715_v52  ;;  %2652 = vmatprep.subr.bf16.mxu0 %v3873_v0  ;;  %v3416_v52 = vcombine.high %v71_v46, %v75_v47  ;;  %v123_v38 = vld [vmem:[%s5393_s0 + $0x360] sm:$0xff] }
  0x48   :  { %2941 = vmatprep.subr.bf16.mxu1 %v3873_v0 }
  0x49   :  { %2111 = vmatmul.mubr.bf16.gmra.mxu0 %v3367_v55  ;;  %v3735_v55 = vld [vmem:[%s5392_s1 + $0x1e0] sm:$0xff]  }
  0x4a   :  { %2400 = vmatmul.mubr.bf16.gmra.mxu1 %v3369_v56  ;;  %2118 = vmatprep.mubr.bf16.mxu0 %v3376_v57  ;;  %v79_v56 = vld [vmem:[%s5393_s0 + $0x200] sm:$0xff] }
  0x4b   :  { %2407 = vmatprep.mubr.bf16.mxu1 %v3378_v58  ;;  %2653 = vmatpush1.bf16.msra.mxu0 %v3716_v59  ;;  %v83_v57 = vld [vmem:[%s5393_s0 + $0x220] sm:$0xff]  ;;  %v80_v58 = vld [vmem:[%s5393_s0 + $0x208] sm:$0xff] }
  0x4c   :  { %2942 = vmatpush1.bf16.msra.mxu1 %v3717_v60  ;;  %2654 = vmatprep.subr.bf16.mxu0 %v3873_v0  ;;  %v84_v59 = vld [vmem:[%s5393_s0 + $0x228] sm:$0xff]  ;;  %v3415_v60 = vcombine.low %v71_v46, %v75_v47  ;;  %v3424_v62 = vcombine.high %v79_v56, %v83_v57  ;;  %v131_v46 = vld [vmem:[%s5393_s0 + $0x3a0] sm:$0xff] }
  0x4d   :  { %2943 = vmatprep.subr.bf16.mxu1 %v3873_v0  ;;  %v3426_v63 = vcombine.high %v80_v58, %v84_v59  ;;  %v128_v47 = vld [vmem:[%s5393_s0 + $0x388] sm:$0xff] }
  0x4f   :  { %2655 = vmatpush1.bf16.msra.mxu0 %v3718_v2  ;;  %v91_v2 = vld [vmem:[%s5393_s0 + $0x260] sm:$0xff] }
  0x50   :  { %2944 = vmatpush1.bf16.msra.mxu1 %v3719_v3  ;;  %2656 = vmatprep.subr.bf16.mxu0 %v3873_v0  ;;  %v88_v3 = vld [vmem:[%s5393_s0 + $0x248] sm:$0xff] }
  0x51   :  { %2119 = vmatmul.mubr.bf16.gmra.mxu0 %v3375_v4  ;;  %2945 = vmatprep.subr.bf16.mxu1 %v3873_v0  ;;  %v92_v4 = vld [vmem:[%s5393_s0 + $0x268] sm:$0xff] }
  0x52   :  { %2408 = vmatmul.mubr.bf16.gmra.mxu1 %v3377_v6  ;;  %2126 = vmatprep.mubr.bf16.mxu0 %v3384_v7  ;;  %v3425_v6 = vcombine.low %v80_v58, %v84_v59  ;;  %v3432_v7 = vcombine.high %v87_v1, %v91_v2  ;;  %v3473_v59 = vcombine.low %v128_v47, %v132_v48 }
  0x53   :  { %2415 = vmatprep.mubr.bf16.mxu1 %v3386_v9  ;;  %2657 = vmatpush1.bf16.msra.mxu0 %v3720_v5  ;;  %v3423_v5 = vcombine.low %v79_v56, %v83_v57  ;;  %v95_v9 = vld [vmem:[%s5393_s0 + $0x280] sm:$0xff]  ;;  %v136_v57 = vld [vmem:[%s5393_s0 + $0x3c8] sm:$0xff] }
  0x54   :  { %2946 = vmatpush1.bf16.msra.mxu1 %v3721_v8  ;;  %2658 = vmatprep.subr.bf16.mxu0 %v3873_v0  ;;  %v3434_v8 = vcombine.high %v88_v3, %v92_v4  ;;  %v3439_v23 = vcombine.low %v95_v9, %v99_v10  ;;  %v139_v56 = vld [vmem:[%s5393_s0 + $0x3e0] sm:$0xff] }
  0x55   :  { %2947 = vmatprep.subr.bf16.mxu1 %v3873_v0 }
  0x57   :  { %2659 = vmatpush1.bf16.msra.mxu0 %v3722_v14  ;;  %v3737_v14 = vld [vmem:[%s5392_s1 + $0x1d8] sm:$0xff]  }
  0x58   :  { %2948 = vmatpush1.bf16.msra.mxu1 %v3723_v15  ;;  %2660 = vmatprep.subr.bf16.mxu0 %v3873_v0  ;;  %v3431_v15 = vcombine.low %v87_v1, %v91_v2  ;;  %v144_v1 = vld [vmem:[%s5393_s0 + $0x408] sm:$0xff] }
  0x59   :  { %2127 = vmatmul.mubr.bf16.gmra.mxu0 %v3383_v16  ;;  %2949 = vmatprep.subr.bf16.mxu1 %v3873_v0  ;;  %v3433_v16 = vcombine.low %v88_v3, %v92_v4  ;;  %v148_v2 = vld [vmem:[%s5393_s0 + $0x428] sm:$0xff]  ;;  %v3742_v3 = vld [vmem:[%s5392_s1 + $0x140] sm:$0xff]  }
  0x5a   :  { %2416 = vmatmul.mubr.bf16.gmra.mxu1 %v3385_v17  ;;  %2134 = vmatprep.mubr.bf16.mxu0 %v3392_v18  ;;  %v3440_v17 = vcombine.high %v95_v9, %v99_v10  ;;  %v3442_v18 = vcombine.high %v96_v11, %v100_v12  ;;  %v3743_v4 = vld [vmem:[%s5392_s1 + $0x1c0] sm:$0xff]  }
  0x5b   :  { %2423 = vmatprep.mubr.bf16.mxu1 %v3394_v19  ;;  %2661 = vmatpush1.bf16.msra.mxu0 %v3724_v20  ;;  %v103_v19 = vld [vmem:[%s5393_s0 + $0x2c0] sm:$0xff] }
  0x5c   :  { %2950 = vmatpush1.bf16.msra.mxu1 %v3725_v21  ;;  %2662 = vmatprep.subr.bf16.mxu0 %v3873_v0  ;;  %v107_v20 = vld [vmem:[%s5393_s0 + $0x2e0] sm:$0xff]  ;;  %v104_v21 = vld [vmem:[%s5393_s0 + $0x2c8] sm:$0xff] }
  0x5d   :  { %2951 = vmatprep.subr.bf16.mxu1 %v3873_v0  ;;  %v3448_v25 = vcombine.high %v103_v19, %v107_v20  ;;  %v3450_v26 = vcombine.high %v104_v21, %v108_v22  ;;  %v3449_v34 = vcombine.low %v104_v21, %v108_v22  ;;  %v151_v9 = vld [vmem:[%s5393_s0 + $0x440] sm:$0xff] }
  0x5e   :  { %v155_v10 = vld [vmem:[%s5393_s0 + $0x460] sm:$0xff] }
  0x5f   :  { %2663 = vmatpush1.bf16.msra.mxu0 %v3726_v24  ;;  %v3441_v24 = vcombine.low %v96_v11, %v100_v12  ;;  %v152_v11 = vld [vmem:[%s5393_s0 + $0x448] sm:$0xff]  ;;  %v3495_v21 = vcombine.low %v151_v9, %v155_v10 }
  0x60   :  { %2952 = vmatpush1.bf16.msra.mxu1 %v3727_v27  ;;  %2664 = vmatprep.subr.bf16.mxu0 %v3873_v0  ;;  %v111_v27 = vld [vmem:[%s5393_s0 + $0x300] sm:$0xff]  ;;  %v156_v12 = vld [vmem:[%s5393_s0 + $0x468] sm:$0xff] }
  0x61   :  { %2135 = vmatmul.mubr.bf16.gmra.mxu0 %v3391_v28  ;;  %2953 = vmatprep.subr.bf16.mxu1 %v3873_v0  ;;  %v115_v28 = vld [vmem:[%s5393_s0 + $0x320] sm:$0xff]  ;;  %v3497_v22 = vcombine.low %v152_v11, %v156_v12 }
  0x62   :  { %2424 = vmatmul.mubr.bf16.gmra.mxu1 %v3393_v29  ;;  %2142 = vmatprep.mubr.bf16.mxu0 %v3400_v30  ;;  %v112_v29 = vld [vmem:[%s5393_s0 + $0x308] sm:$0xff]  ;;  %v3456_v35 = vcombine.high %v111_v27, %v115_v28 }
  0x63   :  { %2431 = vmatprep.mubr.bf16.mxu1 %v3402_v31  ;;  %2665 = vmatpush2.bf16.msra.mxu0 %v3728_v32  ;;  %v116_v30 = vld [vmem:[%s5393_s0 + $0x328] sm:$0xff]  ;;  %v3738_v31 = vld [vmem:[%s5392_s1 + $0x150] sm:$0xff]  }
  0x64   :  { %2954 = vmatpush2.bf16.msra.mxu1 %v3729_v33  ;;  %2666 = vmatprep.subr.bf16.mxu0 %v3873_v0  ;;  %v3739_v32 = vld [vmem:[%s5392_s1 + $0x1d0] sm:$0xff]   ;;  %v3447_v33 = vcombine.low %v103_v19, %v107_v20  ;;  %v160_v19 = vld [vmem:[%s5393_s0 + $0x488] sm:$0xff] }
  0x65   :  { %2955 = vmatprep.subr.bf16.mxu1 %v3873_v0  ;;  %v164_v20 = vld [vmem:[%s5393_s0 + $0x4a8] sm:$0xff] }
  0x67   :  { %2667 = vmatpush2.bf16.msra.mxu0 %v3730_v36  ;;  %v3458_v36 = vcombine.high %v112_v29, %v116_v30 }
  0x68   :  { %2956 = vmatpush2.bf16.msra.mxu1 %v3731_v39  ;;  %2668 = vmatprep.subr.bf16.mxu0 %v3873_v0  ;;  %v120_v39 = vld [vmem:[%s5393_s0 + $0x348] sm:$0xff] }
  0x69   :  { %2143 = vmatmul.mubr.bf16.gmra.mxu0 %v3399_v40  ;;  %2957 = vmatprep.subr.bf16.mxu1 %v3873_v0  ;;  %v124_v40 = vld [vmem:[%s5393_s0 + $0x368] sm:$0xff] }
  0x6a   :  { %2432 = vmatmul.mubr.bf16.gmra.mxu1 %v3401_v41  ;;  %2150 = vmatprep.mubr.bf16.mxu0 %v3408_v42  ;;  %v3455_v41 = vcombine.low %v111_v27, %v115_v28  ;;  %v3457_v42 = vcombine.low %v112_v29, %v116_v30  ;;  %v168_v27 = vld [vmem:[%s5393_s0 + $0x4c8] sm:$0xff]  ;;  %v3505_v30 = vcombine.low %v160_v19, %v164_v20 }
  0x6b   :  { %2439 = vmatprep.mubr.bf16.mxu1 %v3410_v43  ;;  %2669 = vmatpush2.bf16.msra.mxu0 %v3732_v44  ;;  %v3464_v43 = vcombine.high %v119_v37, %v123_v38  ;;  %v3466_v44 = vcombine.high %v120_v39, %v124_v40  ;;  %v172_v28 = vld [vmem:[%s5393_s0 + $0x4e8] sm:$0xff] }
  0x6c   :  { %2958 = vmatpush2.bf16.msra.mxu1 %v3733_v45  ;;  %2670 = vmatprep.subr.bf16.mxu0 %v3873_v0  ;;  %v127_v45 = vld [vmem:[%s5393_s0 + $0x380] sm:$0xff] }
  0x6d   :  { %2959 = vmatprep.subr.bf16.mxu1 %v3873_v0  ;;  %v3471_v58 = vcombine.low %v127_v45, %v131_v46 }
  0x6f   :  { %2671 = vmatpush2.bf16.msra.mxu0 %v3734_v54  ;;  %v3474_v54 = vcombine.high %v128_v47, %v132_v48 }
  0x70   :  { %2960 = vmatpush2.bf16.msra.mxu1 %v3735_v55  ;;  %2672 = vmatprep.subr.bf16.mxu0 %v3873_v0  ;;  %v135_v55 = vld [vmem:[%s5393_s0 + $0x3c0] sm:$0xff] }
  0x71   :  { %2151 = vmatmul.mubr.bf16.gmra.mxu0 %v3407_v50  ;;  %2961 = vmatprep.subr.bf16.mxu1 %v3873_v0  ;;  %v3741_v50 = vld [vmem:[%s5392_s1 + $0x1c8] sm:$0xff]  }
  0x72   :  { %2440 = vmatmul.mubr.bf16.gmra.mxu1 %v3409_v51  ;;  %2158 = vmatprep.mubr.bf16.mxu0 %v3416_v52  ;;  %v3463_v51 = vcombine.low %v119_v37, %v123_v38  ;;  %v3465_v52 = vcombine.low %v120_v39, %v124_v40  ;;  %v3513_v38 = vcombine.low %v168_v27, %v172_v28 }
  0x73   :  { %2447 = vmatprep.mubr.bf16.mxu1 %v3418_v53  ;;  %2673 = vmatpush2.bf16.msra.mxu0 %v3736_v13  ;;  %v3472_v53 = vcombine.high %v127_v45, %v131_v46 }
  0x74   :  { %2962 = vmatpush2.bf16.msra.mxu1 %v3737_v14  ;;  %2674 = vmatprep.subr.bf16.mxu0 %v3873_v0  ;;  %v3489_v14 = vcombine.low %v144_v1, %v148_v2 }
  0x75   :  { %2963 = vmatprep.subr.bf16.mxu1 %v3873_v0 }
  0x77   :  { %2675 = vmatpush2.bf16.msra.mxu0 %v3738_v31 }
  0x78   :  { %2964 = vmatpush2.bf16.msra.mxu1 %v3739_v32  ;;  %2676 = vmatprep.subr.bf16.mxu0 %v3873_v0  ;;  %v3514_v32 = vcombine.high %v168_v27, %v172_v28  ;;  %v228_v27 = vld [vmem:[%s5393_s0 + $0x6a8] sm:$0xff] }
  0x79   :  { %2159 = vmatmul.mubr.bf16.gmra.mxu0 %v3415_v60  ;;  %2965 = vmatprep.subr.bf16.mxu1 %v3873_v0  ;;  %v3480_v60 = vcombine.high %v135_v55, %v139_v56 }
  0x7a   :  { %2448 = vmatmul.mubr.bf16.gmra.mxu1 %v3417_v61  ;;  %2166 = vmatprep.mubr.bf16.mxu0 %v3424_v62  ;;  %v143_v62 = vld [vmem:[%s5393_s0 + $0x400] sm:$0xff] }
  0x7b   :  { %2455 = vmatprep.mubr.bf16.mxu1 %v3426_v63  ;;  %2677 = vmatpush2.bf16.msra.mxu0 %v3740_v49  ;;  %v147_v63 = vld [vmem:[%s5393_s0 + $0x420] sm:$0xff] }
  0x7c   :  { %2966 = vmatpush2.bf16.msra.mxu1 %v3741_v50  ;;  %2678 = vmatprep.subr.bf16.mxu0 %v3873_v0  ;;  %v3487_v13 = vcombine.low %v143_v62, %v147_v63  ;;  %v191_v49 = vld [vmem:[%s5393_s0 + $0x580] sm:$0xff] }
  0x7d   :  { %2967 = vmatprep.subr.bf16.mxu1 %v3873_v0  ;;  %v140_v0 = vld [vmem:[%s5393_s0 + $0x3e8] sm:$0xff]  ;;  %v195_v50 = vld [vmem:[%s5393_s0 + $0x5a0] sm:$0xff] }
  0x7e   :  { %v3482_v61 = vcombine.high %v136_v57, %v140_v0 }
  0x7f   :  { %2679 = vmatpush2.bf16.msra.mxu0 %v3742_v3  ;;  %v208_v3 = vld [vmem:[%s5393_s0 + $0x608] sm:$0xff] }
  0x80   :  { %2968 = vmatpush2.bf16.msra.mxu1 %v3743_v4  ;;  %v212_v4 = vld [vmem:[%s5393_s0 + $0x628] sm:$0xff] }
  0x81   :  { %2167 = vmatmul.mubr.bf16.gmra.mxu0 %v3423_v5  ;;  %v3479_v5 = vcombine.low %v135_v55, %v139_v56  ;;  %v3536_v55 = vcombine.high %v191_v49, %v195_v50 }
  0x82   :  { %2456 = vmatmul.mubr.bf16.gmra.mxu1 %v3425_v6  ;;  %2174 = vmatprep.mubr.bf16.mxu0 %v3432_v7  ;;  %v3481_v6 = vcombine.low %v136_v57, %v140_v0  ;;  %v3488_v7 = vcombine.high %v143_v62, %v147_v63  ;;  %v199_v57 = vld [vmem:[%s5393_s0 + $0x5c0] sm:$0xff] }
  0x83   :  { %2463 = vmatprep.mubr.bf16.mxu1 %v3434_v8  ;;  %v3490_v8 = vcombine.high %v144_v1, %v148_v2  ;;  %v203_v0 = vld [vmem:[%s5393_s0 + $0x5e0] sm:$0xff] }
  0x84   :  { %v3544_v62 = vcombine.high %v199_v57, %v203_v0  ;;  %v207_v1 = vld [vmem:[%s5393_s0 + $0x600] sm:$0xff] }
  0x85   :  { %v211_v2 = vld [vmem:[%s5393_s0 + $0x620] sm:$0xff] }
  0x89   :  { %2175 = vmatmul.mubr.bf16.gmra.mxu0 %v3431_v15  ;;  %v3496_v15 = vcombine.high %v151_v9, %v155_v10  ;;  %v215_v9 = vld [vmem:[%s5393_s0 + $0x640] sm:$0xff] }
  0x8a   :  { %2464 = vmatmul.mubr.bf16.gmra.mxu1 %v3433_v16  ;;  %2182 = vmatprep.mubr.bf16.mxu0 %v3440_v17  ;;  %v3498_v16 = vcombine.high %v152_v11, %v156_v12  ;;  %v159_v17 = vld [vmem:[%s5393_s0 + $0x480] sm:$0xff]  ;;  %v216_v11 = vld [vmem:[%s5393_s0 + $0x648] sm:$0xff] }
  0x8b   :  { %2471 = vmatprep.mubr.bf16.mxu1 %v3442_v18  ;;  %v163_v18 = vld [vmem:[%s5393_s0 + $0x4a0] sm:$0xff]  ;;  %v220_v12 = vld [vmem:[%s5393_s0 + $0x668] sm:$0xff] }
  0x8c   :  { %v3503_v29 = vcombine.low %v159_v17, %v163_v18  ;;  %v219_v10 = vld [vmem:[%s5393_s0 + $0x660] sm:$0xff] }
  0x91   :  { %2183 = vmatmul.mubr.bf16.gmra.mxu0 %v3439_v23  ;;  %v3504_v23 = vcombine.high %v159_v17, %v163_v18  ;;  %v3562_v17 = vcombine.high %v216_v11, %v220_v12 }
  0x92   :  { %2472 = vmatmul.mubr.bf16.gmra.mxu1 %v3441_v24  ;;  %2190 = vmatprep.mubr.bf16.mxu0 %v3448_v25  ;;  %v3506_v24 = vcombine.high %v160_v19, %v164_v20  ;;  %v167_v25 = vld [vmem:[%s5393_s0 + $0x4c0] sm:$0xff] }
  0x93   :  { %2479 = vmatprep.mubr.bf16.mxu1 %v3450_v26  ;;  %v171_v26 = vld [vmem:[%s5393_s0 + $0x4e0] sm:$0xff] }
  0x94   :  { %v3512_v31 = vcombine.high %v167_v25, %v171_v26  ;;  %v3511_v37 = vcombine.low %v167_v25, %v171_v26  ;;  %v224_v26 = vld [vmem:[%s5393_s0 + $0x688] sm:$0xff] }
  0x99   :  { %2191 = vmatmul.mubr.bf16.gmra.mxu0 %v3447_v33  ;;  %v175_v33 = vld [vmem:[%s5393_s0 + $0x500] sm:$0xff] }
  0x9a   :  { %2480 = vmatmul.mubr.bf16.gmra.mxu1 %v3449_v34  ;;  %2198 = vmatprep.mubr.bf16.mxu0 %v3456_v35  ;;  %v179_v34 = vld [vmem:[%s5393_s0 + $0x520] sm:$0xff]  ;;  %v176_v35 = vld [vmem:[%s5393_s0 + $0x508] sm:$0xff] }
  0x9b   :  { %2487 = vmatprep.mubr.bf16.mxu1 %v3458_v36  ;;  %v180_v36 = vld [vmem:[%s5393_s0 + $0x528] sm:$0xff]  ;;  %v3520_v39 = vcombine.high %v175_v33, %v179_v34  ;;  %v3519_v45 = vcombine.low %v175_v33, %v179_v34 }
  0x9c   :  { %v3522_v40 = vcombine.high %v176_v35, %v180_v36  ;;  %v3521_v46 = vcombine.low %v176_v35, %v180_v36  ;;  %v3570_v35 = vcombine.high %v224_v26, %v228_v27 }
  0xa1   :  { %2199 = vmatmul.mubr.bf16.gmra.mxu0 %v3455_v41  ;;  %v183_v41 = vld [vmem:[%s5393_s0 + $0x540] sm:$0xff] }
  0xa2   :  { %2488 = vmatmul.mubr.bf16.gmra.mxu1 %v3457_v42  ;;  %2206 = vmatprep.mubr.bf16.mxu0 %v3464_v43  ;;  %v187_v42 = vld [vmem:[%s5393_s0 + $0x560] sm:$0xff]  ;;  %v184_v43 = vld [vmem:[%s5393_s0 + $0x548] sm:$0xff] }
  0xa3   :  { %2495 = vmatprep.mubr.bf16.mxu1 %v3466_v44  ;;  %v188_v44 = vld [vmem:[%s5393_s0 + $0x568] sm:$0xff]  ;;  %v3528_v47 = vcombine.high %v183_v41, %v187_v42 }
  0xa4   :  { %v3530_v48 = vcombine.high %v184_v43, %v188_v44 }
  0xa9   :  { %2207 = vmatmul.mubr.bf16.gmra.mxu0 %v3463_v51  ;;  %v192_v51 = vld [vmem:[%s5393_s0 + $0x588] sm:$0xff] }
  0xaa   :  { %2496 = vmatmul.mubr.bf16.gmra.mxu1 %v3465_v52  ;;  %2214 = vmatprep.mubr.bf16.mxu0 %v3472_v53  ;;  %v196_v52 = vld [vmem:[%s5393_s0 + $0x5a8] sm:$0xff]  ;;  %v3527_v53 = vcombine.low %v183_v41, %v187_v42  ;;  %v231_v42 = vld [vmem:[%s5393_s0 + $0x6c0] sm:$0xff] }
  0xab   :  { %2503 = vmatprep.mubr.bf16.mxu1 %v3474_v54  ;;  %v3529_v54 = vcombine.low %v184_v43, %v188_v44  ;;  %v3538_v56 = vcombine.high %v192_v51, %v196_v52  ;;  %v235_v43 = vld [vmem:[%s5393_s0 + $0x6e0] sm:$0xff] }
  0xb1   :  { %2215 = vmatmul.mubr.bf16.gmra.mxu0 %v3471_v58  ;;  %v200_v58 = vld [vmem:[%s5393_s0 + $0x5c8] sm:$0xff] }
  0xb2   :  { %2504 = vmatmul.mubr.bf16.gmra.mxu1 %v3473_v59  ;;  %2222 = vmatprep.mubr.bf16.mxu0 %v3480_v60  ;;  %v204_v59 = vld [vmem:[%s5393_s0 + $0x5e8] sm:$0xff]  ;;  %v3535_v60 = vcombine.low %v191_v49, %v195_v50 }
  0xb3   :  { %2511 = vmatprep.mubr.bf16.mxu1 %v3482_v61  ;;  %v3537_v61 = vcombine.low %v192_v51, %v196_v52  ;;  %v3546_v63 = vcombine.high %v200_v58, %v204_v59  ;;  %v3569_v52 = vcombine.low %v224_v26, %v228_v27 }
  0xb9   :  { %2223 = vmatmul.mubr.bf16.gmra.mxu0 %v3479_v5  ;;  %v3543_v5 = vcombine.low %v199_v57, %v203_v0 }
  0xba   :  { %2512 = vmatmul.mubr.bf16.gmra.mxu1 %v3481_v6  ;;  %2230 = vmatprep.mubr.bf16.mxu0 %v3488_v7  ;;  %v3545_v6 = vcombine.low %v200_v58, %v204_v59  ;;  %v3552_v7 = vcombine.high %v207_v1, %v211_v2 }
  0xbb   :  { %2519 = vmatprep.mubr.bf16.mxu1 %v3490_v8  ;;  %v3554_v8 = vcombine.high %v208_v3, %v212_v4 }
  0xc1   :  { %2231 = vmatmul.mubr.bf16.gmra.mxu0 %v3487_v13  ;;  %v3551_v13 = vcombine.low %v207_v1, %v211_v2  ;;  %v240_v2 = vld [vmem:[%s5393_s0 + $0x708] sm:$0xff] }
  0xc2   :  { %2520 = vmatmul.mubr.bf16.gmra.mxu1 %v3489_v14  ;;  %2238 = vmatprep.mubr.bf16.mxu0 %v3496_v15  ;;  %v3553_v14 = vcombine.low %v208_v3, %v212_v4  ;;  %v3560_v15 = vcombine.high %v215_v9, %v219_v10  ;;  %v244_v3 = vld [vmem:[%s5393_s0 + $0x728] sm:$0xff] }
  0xc3   :  { %2527 = vmatprep.mubr.bf16.mxu1 %v3498_v16  ;;  %v4481_v16 = vld [vmem:[%s5394_s2] ss:$0 sm:$0xff] }
  0xc9   :  { %2239 = vmatmul.mubr.bf16.gmra.mxu0 %v3495_v21 }
  0xca   :  { %2528 = vmatmul.mubr.bf16.gmra.mxu1 %v3497_v22  ;;  %2246 = vmatprep.mubr.bf16.mxu0 %v3504_v23  ;;  %v223_v22 = vld [vmem:[%s5393_s0 + $0x680] sm:$0xff] }
  0xcb   :  { %2535 = vmatprep.mubr.bf16.mxu1 %v3506_v24  ;;  %v227_v23 = vld [vmem:[%s5393_s0 + $0x6a0] sm:$0xff] }
  0xcc   :  { %v3568_v33 = vcombine.high %v223_v22, %v227_v23  ;;  %v3567_v49 = vcombine.low %v223_v22, %v227_v23  ;;  %v248_v23 = vld [vmem:[%s5393_s0 + $0x748] sm:$0xff] }
  0xd1   :  { %2247 = vmatmul.mubr.bf16.gmra.mxu0 %v3503_v29  ;;  %v3559_v29 = vcombine.low %v215_v9, %v219_v10 }
  0xd2   :  { %2536 = vmatmul.mubr.bf16.gmra.mxu1 %v3505_v30  ;;  %2254 = vmatprep.mubr.bf16.mxu0 %v3512_v31 }
  0xd3   :  { %2543 = vmatprep.mubr.bf16.mxu1 %v3514_v32  ;;  %v3561_v32 = vcombine.low %v216_v11, %v220_v12  ;;  %v3586_v11 = vcombine.high %v240_v2, %v244_v3 }
  0xd9   :  { %2255 = vmatmul.mubr.bf16.gmra.mxu0 %v3511_v37 }
  0xda   :  { %2544 = vmatmul.mubr.bf16.gmra.mxu1 %v3513_v38  ;;  %2262 = vmatprep.mubr.bf16.mxu0 %v3520_v39 }
  0xdb   :  { %2551 = vmatprep.mubr.bf16.mxu1 %v3522_v40 }
  0xe1   :  { %2263 = vmatmul.mubr.bf16.gmra.mxu0 %v3519_v45 }
  0xe2   :  { %2552 = vmatmul.mubr.bf16.gmra.mxu1 %v3521_v46  ;;  %2270 = vmatprep.mubr.bf16.mxu0 %v3528_v47  ;;  %v232_v46 = vld [vmem:[%s5393_s0 + $0x6c8] sm:$0xff] }
  0xe3   :  { %2559 = vmatprep.mubr.bf16.mxu1 %v3530_v48  ;;  %v236_v47 = vld [vmem:[%s5393_s0 + $0x6e8] sm:$0xff] }
  0xe9   :  { %2271 = vmatmul.mubr.bf16.gmra.mxu0 %v3527_v53  ;;  %v3576_v53 = vcombine.high %v231_v42, %v235_v43 }
  0xea   :  { %2560 = vmatmul.mubr.bf16.gmra.mxu1 %v3529_v54  ;;  %2278 = vmatprep.mubr.bf16.mxu0 %v3536_v55  ;;  %v3578_v55 = vcombine.high %v232_v46, %v236_v47 }
  0xeb   :  { %2567 = vmatprep.mubr.bf16.mxu1 %v3538_v56 }
  0xf1   :  { %2279 = vmatmul.mubr.bf16.gmra.mxu0 %v3535_v60 }
  0xf2   :  { %2568 = vmatmul.mubr.bf16.gmra.mxu1 %v3537_v61  ;;  %2286 = vmatprep.mubr.bf16.mxu0 %v3544_v62  ;;  %v239_v61 = vld [vmem:[%s5393_s0 + $0x700] sm:$0xff] }
  0xf3   :  { %2575 = vmatprep.mubr.bf16.mxu1 %v3546_v63  ;;  %v243_v62 = vld [vmem:[%s5393_s0 + $0x720] sm:$0xff] }
  0xf4   :  { %v3584_v9 = vcombine.high %v239_v61, %v243_v62  ;;  %v3583_v27 = vcombine.low %v239_v61, %v243_v62  ;;  %v263_v62 = vld [vmem:[%s5393_s0 + $0x7c0] sm:$0xff] }
  0xf9   :  { %2287 = vmatmul.mubr.bf16.gmra.mxu0 %v3543_v5  ;;  %v3575_v5 = vcombine.low %v231_v42, %v235_v43  ;;  %v259_v42 = vld [vmem:[%s5393_s0 + $0x7a0] sm:$0xff] }
  0xfa   :  { %2576 = vmatmul.mubr.bf16.gmra.mxu1 %v3545_v6  ;;  %2294 = vmatprep.mubr.bf16.mxu0 %v3552_v7 }
  0xfb   :  { %2583 = vmatprep.mubr.bf16.mxu1 %v3554_v8  ;;  %v3577_v8 = vcombine.low %v232_v46, %v236_v47  ;;  %v256_v46 = vld [vmem:[%s5393_s0 + $0x788] sm:$0xff] }
  0xfc   :  { %v260_v47 = vld [vmem:[%s5393_s0 + $0x7a8] sm:$0xff] }
 0x101   :  { %v2104_v18 = vpop.f32.mrf.mxu0  ;;  %2295 = vmatmul.mubr.bf16.gmra.mxu0 %v3551_v13 }
 0x102   :  { %v2105_v19 = vadd.f32 %v4481_v16, %v2104_v18  ;;  %v2393_v20 = vpop.f32.mrf.mxu1  ;;  %2584 = vmatmul.mubr.bf16.gmra.mxu1 %v3553_v14  ;;  %2302 = vmatprep.mubr.bf16.mxu0 %v3560_v15 }
 0x103   :  { %v2106_v21 = vpop.f32.mrf.mxu0  ;;  %2591 = vmatprep.mubr.bf16.mxu1 %v3562_v17 }
 0x104   :  { %v4490_v24 = vadd.f32 %v2393_v20, %v2105_v19  ;;  %v2395_v25 = vpop.f32.mrf.mxu1  ;;  %v247_v19 = vld [vmem:[%s5393_s0 + $0x740] sm:$0xff] }
 0x105   :  { %v2107_v28 = vpop.f32.mrf.mxu0  ;;  %v251_v20 = vld [vmem:[%s5393_s0 + $0x760] sm:$0xff]  ;;  %v252_v25 = vld [vmem:[%s5393_s0 + $0x768] sm:$0xff] }
 0x106   :  { %v2108_v30 = vadd.f32 %v4481_v16, %v2107_v28  ;;  %v2396_v31 = vpop.f32.mrf.mxu1 }
 0x107   :  { %v2109_v34 = vpop.f32.mrf.mxu0 }
 0x108   :  { %v4499_v36 = vadd.f32 %v2396_v31, %v2108_v30  ;;  %v2398_v37 = vpop.f32.mrf.mxu1  ;;  %v3585_v30 = vcombine.low %v240_v2, %v244_v3  ;;  %v3592_v31 = vcombine.high %v247_v19, %v251_v20 }
 0x109   :  { %v2112_v38 = vpop.f32.mrf.mxu0  ;;  %2303 = vmatmul.mubr.bf16.gmra.mxu0 %v3559_v29 }
 0x10a   :  { %v2113_v39 = vadd.f32 %v4481_v16, %v2112_v38  ;;  %v2401_v40 = vpop.f32.mrf.mxu1  ;;  %2592 = vmatmul.mubr.bf16.gmra.mxu1 %v3561_v32  ;;  %2310 = vmatprep.mubr.bf16.mxu0 %v3568_v33  ;;  %v3594_v33 = vcombine.high %v248_v23, %v252_v25 }
 0x10b   :  { %v2114_v41 = vpop.f32.mrf.mxu0  ;;  %2599 = vmatprep.mubr.bf16.mxu1 %v3570_v35 }
 0x10c   :  { %v4508_v44 = vadd.f32 %v2401_v40, %v2113_v39  ;;  %v2403_v45 = vpop.f32.mrf.mxu1  ;;  %v255_v41 = vld [vmem:[%s5393_s0 + $0x780] sm:$0xff] }
 0x10d   :  { %v2115_v48 = vpop.f32.mrf.mxu0 }
 0x10e   :  { %v2116_v50 = vadd.f32 %v4481_v16, %v2115_v48  ;;  %v2404_v51 = vpop.f32.mrf.mxu1 }
 0x10f   :  { %v2117_v54 = vpop.f32.mrf.mxu0 }
 0x110   :  { %v4517_v56 = vadd.f32 %v2404_v51, %v2116_v50  ;;  %v2406_v57 = vpop.f32.mrf.mxu1 }
 0x111   :  { %v2120_v0 = vpop.f32.mrf.mxu0  ;;  %2311 = vmatmul.mubr.bf16.gmra.mxu0 %v3567_v49  ;;  %v3591_v49 = vcombine.low %v247_v19, %v251_v20 }
 0x112   :  { %v2121_v58 = vadd.f32 %v4481_v16, %v2120_v0  ;;  %v2409_v59 = vpop.f32.mrf.mxu1  ;;  %2600 = vmatmul.mubr.bf16.gmra.mxu1 %v3569_v52  ;;  %2318 = vmatprep.mubr.bf16.mxu0 %v3576_v53  ;;  %v3593_v52 = vcombine.low %v248_v23, %v252_v25  ;;  %v3600_v53 = vcombine.high %v255_v41, %v259_v42  ;;  %v17_v23 = vld [vmem:[%s5393_s0 + $0x10] sm:$0xff] }
 0x113   :  { %v2122_v60 = vpop.f32.mrf.mxu0  ;;  %2607 = vmatprep.mubr.bf16.mxu1 %v3578_v55  ;;  %v3602_v55 = vcombine.high %v256_v46, %v260_v47  ;;  %v21_v25 = vld [vmem:[%s5393_s0 + $0x30] sm:$0xff] }
 0x114   :  { %v4526_v63 = vadd.f32 %v2409_v59, %v2121_v58  ;;  %v2411_v1 = vpop.f32.mrf.mxu1 }
 0x115   :  { %v2123_v4 = vpop.f32.mrf.mxu0  ;;  %v267_v1 = vld [vmem:[%s5393_s0 + $0x7e0] sm:$0xff] }
 0x116   :  { %v2124_v6 = vadd.f32 %v4481_v16, %v2123_v4  ;;  %v2412_v7 = vpop.f32.mrf.mxu1  ;;  %v264_v4 = vld [vmem:[%s5393_s0 + $0x7c8] sm:$0xff] }
 0x117   :  { %v2125_v10 = vpop.f32.mrf.mxu0 }
 0x118   :  { %v4535_v12 = vadd.f32 %v2412_v7, %v2124_v6  ;;  %v2414_v13 = vpop.f32.mrf.mxu1  ;;  %v3599_v7 = vcombine.low %v255_v41, %v259_v42  ;;  %v3601_v10 = vcombine.low %v256_v46, %v260_v47 }
 0x119   :  { %v2128_v14 = vpop.f32.mrf.mxu0  ;;  %2319 = vmatmul.mubr.bf16.gmra.mxu0 %v3575_v5  ;;  %v268_v5 = vld [vmem:[%s5393_s0 + $0x7e8] sm:$0xff] }
 0x11a   :  { %v2129_v15 = vadd.f32 %v4481_v16, %v2128_v14  ;;  %v2417_v17 = vpop.f32.mrf.mxu1  ;;  %2608 = vmatmul.mubr.bf16.gmra.mxu1 %v3577_v8  ;;  %2326 = vmatprep.mubr.bf16.mxu0 %v3584_v9  ;;  %v3610_v14 = vcombine.high %v264_v4, %v268_v5 }
 0x11b   :  { %v2130_v18 = vpop.f32.mrf.mxu0  ;;  %2615 = vmatprep.mubr.bf16.mxu1 %v3586_v11  ;;  %v3608_v11 = vcombine.high %v263_v62, %v267_v1 }
 0x11c   :  { %v4544_v21 = vadd.f32 %v2417_v17, %v2129_v15  ;;  %v2419_v22 = vpop.f32.mrf.mxu1 }
 0x11d   :  { %v2131_v26 = vpop.f32.mrf.mxu0 }
 0x11e   :  { %v2132_v28 = vadd.f32 %v4481_v16, %v2131_v26  ;;  %v2420_v29 = vpop.f32.mrf.mxu1 }
 0x11f   :  { %v2133_v32 = vpop.f32.mrf.mxu0 }
 0x120   :  { %v4553_v34 = vadd.f32 %v2420_v29, %v2132_v28  ;;  %v2422_v35 = vpop.f32.mrf.mxu1  ;;  %v18_v28 = vld [vmem:[%s5393_s0 + $0x18] sm:$0xff] }
 0x121   :  { %v2136_v37 = vpop.f32.mrf.mxu0  ;;  %2327 = vmatmul.mubr.bf16.gmra.mxu0 %v3583_v27  ;;  %v22_v29 = vld [vmem:[%s5393_s0 + $0x38] sm:$0xff]  ;;  %v3609_v35 = vcombine.low %v264_v4, %v268_v5 }
 0x122   :  { %v2137_v38 = vadd.f32 %v4481_v16, %v2136_v37  ;;  %v2425_v39 = vpop.f32.mrf.mxu1  ;;  %2616 = vmatmul.mubr.bf16.gmra.mxu1 %v3585_v30  ;;  %2334 = vmatprep.mubr.bf16.mxu0 %v3592_v31  ;;  %v3607_v31 = vcombine.low %v263_v62, %v267_v1  ;;  %v3364_v37 = vcombine.high %v17_v23, %v21_v25 }
 0x123   :  { %v2138_v40 = vpop.f32.mrf.mxu0  ;;  %2623 = vmatprep.mubr.bf16.mxu1 %v3594_v33 }
 0x124   :  { %v4562_v43 = vadd.f32 %v2425_v39, %v2137_v38  ;;  %v2427_v45 = vpop.f32.mrf.mxu1  ;;  %v3366_v39 = vcombine.high %v18_v28, %v22_v29 }
 0x125   :  { %v2139_v48 = vpop.f32.mrf.mxu0 }
 0x126   :  { %v2140_v50 = vadd.f32 %v4481_v16, %v2139_v48  ;;  %v2428_v51 = vpop.f32.mrf.mxu1  ;;  %v25_v48 = vld [vmem:[%s5393_s0 + $0x50] sm:$0xff] }
 0x127   :  { %v2141_v54 = vpop.f32.mrf.mxu0 }
 0x128   :  { %v4571_v57 = vadd.f32 %v2428_v51, %v2140_v50  ;;  %v2430_v0 = vpop.f32.mrf.mxu1 }
 0x129   :  { %v2144_v58 = vpop.f32.mrf.mxu0  ;;  %2335 = vmatmul.mubr.bf16.gmra.mxu0 %v3591_v49  ;;  %v29_v49 = vld [vmem:[%s5393_s0 + $0x70] sm:$0xff] }
 0x12a   :  { %v2145_v59 = vadd.f32 %v4481_v16, %v2144_v58  ;;  %v2433_v60 = vpop.f32.mrf.mxu1  ;;  %2624 = vmatmul.mubr.bf16.gmra.mxu1 %v3593_v52  ;;  %2342 = vmatprep.mubr.bf16.mxu0 %v3600_v53  ;;  %v26_v52 = vld [vmem:[%s5393_s0 + $0x58] sm:$0xff] }
 0x12b   :  { %v2146_v61 = vpop.f32.mrf.mxu0  ;;  %2631 = vmatprep.mubr.bf16.mxu1 %v3602_v55  ;;  %v30_v53 = vld [vmem:[%s5393_s0 + $0x78] sm:$0xff]  ;;  %v3363_v55 = vcombine.low %v17_v23, %v21_v25 }
 0x12c   :  { %v4580_v2 = vadd.f32 %v2433_v60, %v2145_v59  ;;  %v2435_v3 = vpop.f32.mrf.mxu1  ;;  %v3365_v59 = vcombine.low %v18_v28, %v22_v29  ;;  %v3372_v60 = vcombine.high %v25_v48, %v29_v49  ;;  %v3374_v62 = vcombine.high %v26_v52, %v30_v53 }
 0x12d   :  { %v2147_v6 = vpop.f32.mrf.mxu0 }
 0x12e   :  { %v2148_v8 = vadd.f32 %v4481_v16, %v2147_v6  ;;  %v2436_v9 = vpop.f32.mrf.mxu1 }
 0x12f   :  { %v2149_v13 = vpop.f32.mrf.mxu0 }
 0x130   :  { %v4589_v15 = vadd.f32 %v2436_v9, %v2148_v8  ;;  %v2438_v17 = vpop.f32.mrf.mxu1  ;;  %v33_v8 = vld [vmem:[%s5393_s0 + $0x90] sm:$0xff]  ;;  %v34_v13 = vld [vmem:[%s5393_s0 + $0x98] sm:$0xff] }
 0x131   :  { %v2152_v18 = vpop.f32.mrf.mxu0  ;;  %2343 = vmatmul.mubr.bf16.gmra.mxu0 %v3599_v7  ;;  %v37_v9 = vld [vmem:[%s5393_s0 + $0xb0] sm:$0xff] }
 0x132   :  { %v2153_v19 = vadd.f32 %v4481_v16, %v2152_v18  ;;  %v2441_v20 = vpop.f32.mrf.mxu1  ;;  %2632 = vmatmul.mubr.bf16.gmra.mxu1 %v3601_v10  ;;  %2350 = vmatprep.mubr.bf16.mxu0 %v3608_v11  ;;  %v3371_v18 = vcombine.low %v25_v48, %v29_v49  ;;  %v3380_v23 = vcombine.high %v33_v8, %v37_v9 }
 0x133   :  { %v2154_v22 = vpop.f32.mrf.mxu0  ;;  %2639 = vmatprep.mubr.bf16.mxu1 %v3610_v14  ;;  %v38_v14 = vld [vmem:[%s5393_s0 + $0xb8] sm:$0xff] }
 0x134   :  { %v4598_v26 = vadd.f32 %v2441_v20, %v2153_v19  ;;  %v2443_v27 = vpop.f32.mrf.mxu1  ;;  %v3373_v22 = vcombine.low %v26_v52, %v30_v53  ;;  %v3381_v49 = vcombine.low %v34_v13, %v38_v14 }
 0x135   :  { %v2155_v30 = vpop.f32.mrf.mxu0  ;;  %v3382_v27 = vcombine.high %v34_v13, %v38_v14 }
 0x136   :  { %v2156_v32 = vadd.f32 %v4481_v16, %v2155_v30  ;;  %v2444_v33 = vpop.f32.mrf.mxu1 }
 0x137   :  { %v2157_v38 = vpop.f32.mrf.mxu0 }
 0x138   :  { %v4607_v40 = vadd.f32 %v2444_v33, %v2156_v32  ;;  %v2446_v41 = vpop.f32.mrf.mxu1 }
 0x139   :  { %v2160_v42 = vpop.f32.mrf.mxu0  ;;  %2351 = vmatmul.mubr.bf16.gmra.mxu0 %v3607_v31  ;;  %v42_v41 = vld [vmem:[%s5393_s0 + $0xd8] sm:$0xff] }
 0x13a   :  { %v2161_v45 = vadd.f32 %v4481_v16, %v2160_v42  ;;  %v2449_v46 = vpop.f32.mrf.mxu1  ;;  %2640 = vmatmul.mubr.bf16.gmra.mxu1 %v3609_v35  ;;  %2680 = vmatprep.mubr.bf16.mxu0 %v3364_v37  ;;  %v41_v35 = vld [vmem:[%s5393_s0 + $0xd0] sm:$0xff]  ;;  %v46_v42 = vld [vmem:[%s5393_s0 + $0xf8] sm:$0xff] }
 0x13b   :  { %v2162_v47 = vpop.f32.mrf.mxu0  ;;  %2969 = vmatprep.mubr.bf16.mxu1 %v3366_v39  ;;  %v45_v37 = vld [vmem:[%s5393_s0 + $0xf0] sm:$0xff]  ;;  %v3390_v53 = vcombine.high %v42_v41, %v46_v42  ;;  %v3389_v13 = vcombine.low %v42_v41, %v46_v42 }
 0x13c   :  { %v4616_v50 = vadd.f32 %v2449_v46, %v2161_v45  ;;  %v2451_v51 = vpop.f32.mrf.mxu1  ;;  %v3379_v46 = vcombine.low %v33_v8, %v37_v9  ;;  %v3387_v8 = vcombine.low %v41_v35, %v45_v37 }
 0x13d   :  { %v2163_v54 = vpop.f32.mrf.mxu0  ;;  %v3388_v51 = vcombine.high %v41_v35, %v45_v37  ;;  %v62_v35 = vld [vmem:[%s5393_s0 + $0x178] sm:$0xff] }
 0x13e   :  { %v2164_v0 = vadd.f32 %v4481_v16, %v2163_v54  ;;  %v2452_v58 = vpop.f32.mrf.mxu1 }
 0x13f   :  { %v2165_v61 = vpop.f32.mrf.mxu0 }
 0x140   :  { %v4625_v1 = vadd.f32 %v2452_v58, %v2164_v0  ;;  %v2454_v3 = vpop.f32.mrf.mxu1  ;;  %v49_v61 = vld [vmem:[%s5393_s0 + $0x110] sm:$0xff] }
 0x141   :  { %v2168_v4 = vpop.f32.mrf.mxu0  ;;  %2681 = vmatmul.mubr.bf16.vlgmr.msra.gmra.mxu0 %v3363_v55 }
 0x142   :  { %v2169_v5 = vadd.f32 %v4481_v16, %v2168_v4  ;;  %v2457_v6 = vpop.f32.mrf.mxu1  ;;  %2970 = vmatmul.mubr.bf16.vlgmr.msra.gmra.mxu1 %v3365_v59  ;;  %2688 = vmatprep.mubr.bf16.mxu0 %v3372_v60 }
 0x143   :  { %v2170_v7 = vpop.f32.mrf.mxu0  ;;  %2977 = vmatprep.mubr.bf16.mxu1 %v3374_v62  ;;  %v53_v62 = vld [vmem:[%s5393_s0 + $0x130] sm:$0xff] }
 0x144   :  { %v4634_v10 = vadd.f32 %v2457_v6, %v2169_v5  ;;  %v2459_v11 = vpop.f32.mrf.mxu1  ;;  %v50_v5 = vld [vmem:[%s5393_s0 + $0x118] sm:$0xff]  ;;  %v3396_v14 = vcombine.high %v49_v61, %v53_v62 }
 0x145   :  { %v2171_v17 = vpop.f32.mrf.mxu0  ;;  %v54_v6 = vld [vmem:[%s5393_s0 + $0x138] sm:$0xff] }
 0x146   :  { %v2172_v19 = vadd.f32 %v4481_v16, %v2171_v17  ;;  %v2460_v20 = vpop.f32.mrf.mxu1 }
 0x147   :  { %v2173_v25 = vpop.f32.mrf.mxu0 }
 0x148   :  { %v4643_v28 = vadd.f32 %v2460_v20, %v2172_v19  ;;  %v2462_v29 = vpop.f32.mrf.mxu1 }
 0x149   :  { %v2176_v30 = vpop.f32.mrf.mxu0  ;;  %2689 = vmatmul.mubr.bf16.gmra.mxu0 %v3371_v18  ;;  %v3398_v18 = vcombine.high %v50_v5, %v54_v6  ;;  %v57_v29 = vld [vmem:[%s5393_s0 + $0x150] sm:$0xff] }
 0x14a   :  { %v2177_v31 = vadd.f32 %v4481_v16, %v2176_v30  ;;  %v2465_v32 = vpop.f32.mrf.mxu1  ;;  %2978 = vmatmul.mubr.bf16.gmra.mxu1 %v3373_v22  ;;  %2696 = vmatprep.mubr.bf16.mxu0 %v3380_v23  ;;  %v61_v30 = vld [vmem:[%s5393_s0 + $0x170] sm:$0xff] }
 0x14b   :  { %v2178_v33 = vpop.f32.mrf.mxu0  ;;  %2985 = vmatprep.mubr.bf16.mxu1 %v3382_v27 }
 0x14c   :  { %v4652_v38 = vadd.f32 %v2465_v32, %v2177_v31  ;;  %v2467_v39 = vpop.f32.mrf.mxu1  ;;  %v58_v33 = vld [vmem:[%s5393_s0 + $0x158] sm:$0xff] }
 0x14d   :  { %v2179_v45 = vpop.f32.mrf.mxu0  ;;  %v3395_v39 = vcombine.low %v49_v61, %v53_v62  ;;  %v66_v62 = vld [vmem:[%s5393_s0 + $0x198] sm:$0xff] }
 0x14e   :  { %v2180_v47 = vadd.f32 %v4481_v16, %v2179_v45  ;;  %v2468_v48 = vpop.f32.mrf.mxu1  ;;  %v3397_v45 = vcombine.low %v50_v5, %v54_v6  ;;  %v3403_v6 = vcombine.low %v57_v29, %v61_v30 }
 0x14f   :  { %v2181_v52 = vpop.f32.mrf.mxu0 }
 0x150   :  { %v4661_v54 = vadd.f32 %v2468_v48, %v2180_v47  ;;  %v2470_v55 = vpop.f32.mrf.mxu1  ;;  %v3406_v48 = vcombine.high %v58_v33, %v62_v35 }
 0x151   :  { %v2184_v0 = vpop.f32.mrf.mxu0  ;;  %2697 = vmatmul.mubr.bf16.gmra.mxu0 %v3379_v46  ;;  %v3404_v46 = vcombine.high %v57_v29, %v61_v30  ;;  %v77_v29 = vld [vmem:[%s5393_s0 + $0x1f0] sm:$0xff] }
 0x152   :  { %v2185_v58 = vadd.f32 %v4481_v16, %v2184_v0  ;;  %v2473_v59 = vpop.f32.mrf.mxu1  ;;  %2986 = vmatmul.mubr.bf16.gmra.mxu1 %v3381_v49  ;;  %2704 = vmatprep.mubr.bf16.mxu0 %v3388_v51 }
 0x153   :  { %v2186_v60 = vpop.f32.mrf.mxu0  ;;  %2993 = vmatprep.mubr.bf16.mxu1 %v3390_v53 }
 0x154   :  { %v4670_v3 = vadd.f32 %v2473_v59, %v2185_v58  ;;  %v2475_v4 = vpop.f32.mrf.mxu1  ;;  %v65_v58 = vld [vmem:[%s5393_s0 + $0x190] sm:$0xff] }
 0x155   :  { %v2187_v7 = vpop.f32.mrf.mxu0  ;;  %v69_v59 = vld [vmem:[%s5393_s0 + $0x1b0] sm:$0xff]  ;;  %v70_v4 = vld [vmem:[%s5393_s0 + $0x1b8] sm:$0xff] }
 0x156   :  { %v2188_v9 = vadd.f32 %v4481_v16, %v2187_v7  ;;  %v2476_v11 = vpop.f32.mrf.mxu1 }
 0x157   :  { %v2189_v17 = vpop.f32.mrf.mxu0 }
 0x158   :  { %v4679_v19 = vadd.f32 %v2476_v11, %v2188_v9  ;;  %v2478_v20 = vpop.f32.mrf.mxu1  ;;  %v3405_v9 = vcombine.low %v58_v33, %v62_v35  ;;  %v3412_v11 = vcombine.high %v65_v58, %v69_v59  ;;  %v74_v33 = vld [vmem:[%s5393_s0 + $0x1d8] sm:$0xff] }
 0x159   :  { %v2192_v22 = vpop.f32.mrf.mxu0  ;;  %2705 = vmatmul.mubr.bf16.gmra.mxu0 %v3387_v8  ;;  %v78_v35 = vld [vmem:[%s5393_s0 + $0x1f8] sm:$0xff] }
 0x15a   :  { %v2193_v23 = vadd.f32 %v4481_v16, %v2192_v22  ;;  %v2481_v25 = vpop.f32.mrf.mxu1  ;;  %2994 = vmatmul.mubr.bf16.gmra.mxu1 %v3389_v13  ;;  %2712 = vmatprep.mubr.bf16.mxu0 %v3396_v14  ;;  %v3414_v14 = vcombine.high %v66_v62, %v70_v4 }
 0x15b   :  { %v2194_v27 = vpop.f32.mrf.mxu0  ;;  %3001 = vmatprep.mubr.bf16.mxu1 %v3398_v18 }
 0x15c   :  { %v4688_v31 = vadd.f32 %v2481_v25, %v2193_v23  ;;  %v2483_v32 = vpop.f32.mrf.mxu1  ;;  %v73_v27 = vld [vmem:[%s5393_s0 + $0x1d0] sm:$0xff] }
 0x15d   :  { %v2195_v37 = vpop.f32.mrf.mxu0 }
 0x15e   :  { %v2196_v41 = vadd.f32 %v4481_v16, %v2195_v37  ;;  %v2484_v42 = vpop.f32.mrf.mxu1 }
 0x15f   :  { %v2197_v47 = vpop.f32.mrf.mxu0 }
 0x160   :  { %v4697_v49 = vadd.f32 %v2484_v42, %v2196_v41  ;;  %v2486_v51 = vpop.f32.mrf.mxu1 }
 0x161   :  { %v2200_v52 = vpop.f32.mrf.mxu0  ;;  %2713 = vmatmul.mubr.bf16.gmra.mxu0 %v3395_v39  ;;  %v3411_v39 = vcombine.low %v65_v58, %v69_v59  ;;  %v81_v58 = vld [vmem:[%s5393_s0 + $0x210] sm:$0xff] }
 0x162   :  { %v2201_v53 = vadd.f32 %v4481_v16, %v2200_v52  ;;  %v2489_v55 = vpop.f32.mrf.mxu1  ;;  %3002 = vmatmul.mubr.bf16.gmra.mxu1 %v3397_v45  ;;  %2720 = vmatprep.mubr.bf16.mxu0 %v3404_v46  ;;  %v3413_v45 = vcombine.low %v66_v62, %v70_v4  ;;  %v3420_v46 = vcombine.high %v73_v27, %v77_v29  ;;  %v85_v59 = vld [vmem:[%s5393_s0 + $0x230] sm:$0xff] }
 0x163   :  { %v2202_v0 = vpop.f32.mrf.mxu0  ;;  %3009 = vmatprep.mubr.bf16.mxu1 %v3406_v48  ;;  %v3422_v48 = vcombine.high %v74_v33, %v78_v35 }
 0x164   :  { %v4706_v60 = vadd.f32 %v2489_v55, %v2201_v53  ;;  %v2491_v61 = vpop.f32.mrf.mxu1 }
 0x165   :  { %v2203_v5 = vpop.f32.mrf.mxu0 }
 0x166   :  { %v2204_v7 = vadd.f32 %v4481_v16, %v2203_v5  ;;  %v2492_v8 = vpop.f32.mrf.mxu1  ;;  %v82_v5 = vld [vmem:[%s5393_s0 + $0x218] sm:$0xff] }
 0x167   :  { %v2205_v13 = vpop.f32.mrf.mxu0 }
 0x168   :  { %v4715_v17 = vadd.f32 %v2492_v8, %v2204_v7  ;;  %v2494_v18 = vpop.f32.mrf.mxu1  ;;  %v3419_v8 = vcombine.low %v73_v27, %v77_v29  ;;  %v3421_v13 = vcombine.low %v74_v33, %v78_v35  ;;  %v89_v27 = vld [vmem:[%s5393_s0 + $0x250] sm:$0xff] }
 0x169   :  { %v2208_v20 = vpop.f32.mrf.mxu0  ;;  %2721 = vmatmul.mubr.bf16.gmra.mxu0 %v3403_v6  ;;  %v86_v6 = vld [vmem:[%s5393_s0 + $0x238] sm:$0xff]  ;;  %v93_v29 = vld [vmem:[%s5393_s0 + $0x270] sm:$0xff] }
 0x16a   :  { %v2209_v22 = vadd.f32 %v4481_v16, %v2208_v20  ;;  %v2497_v23 = vpop.f32.mrf.mxu1  ;;  %3010 = vmatmul.mubr.bf16.gmra.mxu1 %v3405_v9  ;;  %2728 = vmatprep.mubr.bf16.mxu0 %v3412_v11  ;;  %v3430_v20 = vcombine.high %v82_v5, %v86_v6 }
 0x16b   :  { %v2210_v25 = vpop.f32.mrf.mxu0  ;;  %3017 = vmatprep.mubr.bf16.mxu1 %v3414_v14  ;;  %v3428_v14 = vcombine.high %v81_v58, %v85_v59 }
 0x16c   :  { %v4724_v30 = vadd.f32 %v2497_v23, %v2209_v22  ;;  %v2499_v32 = vpop.f32.mrf.mxu1 }
 0x16d   :  { %v2211_v37 = vpop.f32.mrf.mxu0 }
 0x16e   :  { %v2212_v41 = vadd.f32 %v4481_v16, %v2211_v37  ;;  %v2500_v42 = vpop.f32.mrf.mxu1 }
 0x16f   :  { %v2213_v47 = vpop.f32.mrf.mxu0 }
 0x170   :  { %v4733_v51 = vadd.f32 %v2500_v42, %v2212_v41  ;;  %v2502_v52 = vpop.f32.mrf.mxu1  ;;  %v90_v41 = vld [vmem:[%s5393_s0 + $0x258] sm:$0xff] }
 0x171   :  { %v2216_v53 = vpop.f32.mrf.mxu0  ;;  %2729 = vmatmul.mubr.bf16.gmra.mxu0 %v3411_v39  ;;  %v94_v42 = vld [vmem:[%s5393_s0 + $0x278] sm:$0xff]  ;;  %v3429_v52 = vcombine.low %v82_v5, %v86_v6 }
 0x172   :  { %v2217_v55 = vadd.f32 %v4481_v16, %v2216_v53  ;;  %v2505_v0 = vpop.f32.mrf.mxu1  ;;  %3018 = vmatmul.mubr.bf16.gmra.mxu1 %v3413_v45  ;;  %2736 = vmatprep.mubr.bf16.mxu0 %v3420_v46  ;;  %v3427_v46 = vcombine.low %v81_v58, %v85_v59  ;;  %v3436_v53 = vcombine.high %v89_v27, %v93_v29  ;;  %v97_v58 = vld [vmem:[%s5393_s0 + $0x290] sm:$0xff] }
 0x173   :  { %v2218_v61 = vpop.f32.mrf.mxu0  ;;  %3025 = vmatprep.mubr.bf16.mxu1 %v3422_v48  ;;  %v101_v59 = vld [vmem:[%s5393_s0 + $0x2b0] sm:$0xff] }
 0x174   :  { %v4742_v62 = vadd.f32 %v2505_v0, %v2217_v55  ;;  %v2507_v4 = vpop.f32.mrf.mxu1  ;;  %v3438_v0 = vcombine.high %v90_v41, %v94_v42 }
 0x175   :  { %v2219_v7 = vpop.f32.mrf.mxu0 }
 0x176   :  { %v2220_v9 = vadd.f32 %v4481_v16, %v2219_v7  ;;  %v2508_v11 = vpop.f32.mrf.mxu1 }
 0x177   :  { %v2221_v18 = vpop.f32.mrf.mxu0 }
 0x178   :  { %v4751_v22 = vadd.f32 %v2508_v11, %v2220_v9  ;;  %v2510_v23 = vpop.f32.mrf.mxu1 }
 0x179   :  { %v2224_v25 = vpop.f32.mrf.mxu0  ;;  %2737 = vmatmul.mubr.bf16.gmra.mxu0 %v3419_v8 }
 0x17a   :  { %v2225_v32 = vadd.f32 %v4481_v16, %v2224_v25  ;;  %v2513_v37 = vpop.f32.mrf.mxu1  ;;  %3026 = vmatmul.mubr.bf16.gmra.mxu1 %v3421_v13  ;;  %2744 = vmatprep.mubr.bf16.mxu0 %v3428_v14  ;;  %v98_v13 = vld [vmem:[%s5393_s0 + $0x298] sm:$0xff] }
 0x17b   :  { %v2226_v39 = vpop.f32.mrf.mxu0  ;;  %3033 = vmatprep.mubr.bf16.mxu1 %v3430_v20  ;;  %v102_v14 = vld [vmem:[%s5393_s0 + $0x2b8] sm:$0xff]  ;;  %v3435_v20 = vcombine.low %v89_v27, %v93_v29  ;;  %v105_v27 = vld [vmem:[%s5393_s0 + $0x2d0] sm:$0xff] }
 0x17c   :  { %v4760_v33 = vadd.f32 %v2513_v37, %v2225_v32  ;;  %v2515_v35 = vpop.f32.mrf.mxu1  ;;  %v3437_v32 = vcombine.low %v90_v41, %v94_v42  ;;  %v3444_v37 = vcombine.high %v97_v58, %v101_v59  ;;  %v109_v29 = vld [vmem:[%s5393_s0 + $0x2f0] sm:$0xff] }
 0x17d   :  { %v2227_v45 = vpop.f32.mrf.mxu0  ;;  %v3446_v35 = vcombine.high %v98_v13, %v102_v14 }
 0x17e   :  { %v2228_v47 = vadd.f32 %v4481_v16, %v2227_v45  ;;  %v2516_v48 = vpop.f32.mrf.mxu1 }
 0x17f   :  { %v2229_v55 = vpop.f32.mrf.mxu0 }
 0x180   :  { %v4769_v61 = vadd.f32 %v2516_v48, %v2228_v47  ;;  %v2518_v4 = vpop.f32.mrf.mxu1  ;;  %v106_v55 = vld [vmem:[%s5393_s0 + $0x2d8] sm:$0xff] }
 0x181   :  { %v2232_v7 = vpop.f32.mrf.mxu0  ;;  %2745 = vmatmul.mubr.bf16.gmra.mxu0 %v3427_v46 }
 0x182   :  { %v2233_v8 = vadd.f32 %v4481_v16, %v2232_v7  ;;  %v2521_v9 = vpop.f32.mrf.mxu1  ;;  %3034 = vmatmul.mubr.bf16.gmra.mxu1 %v3429_v52  ;;  %2752 = vmatprep.mubr.bf16.mxu0 %v3436_v53  ;;  %v3443_v7 = vcombine.low %v97_v58, %v101_v59  ;;  %v113_v58 = vld [vmem:[%s5393_s0 + $0x310] sm:$0xff] }
 0x183   :  { %v2234_v11 = vpop.f32.mrf.mxu0  ;;  %3041 = vmatprep.mubr.bf16.mxu1 %v3438_v0  ;;  %v110_v0 = vld [vmem:[%s5393_s0 + $0x2f8] sm:$0xff]  ;;  %v117_v59 = vld [vmem:[%s5393_s0 + $0x330] sm:$0xff] }
 0x184   :  { %v4778_v5 = vadd.f32 %v2521_v9, %v2233_v8  ;;  %v2523_v6 = vpop.f32.mrf.mxu1  ;;  %v3445_v11 = vcombine.low %v98_v13, %v102_v14 }
 0x185   :  { %v2235_v18 = vpop.f32.mrf.mxu0  ;;  %v3452_v6 = vcombine.high %v105_v27, %v109_v29 }
 0x186   :  { %v2236_v23 = vadd.f32 %v4481_v16, %v2235_v18  ;;  %v2524_v25 = vpop.f32.mrf.mxu1 }
 0x187   :  { %v2237_v39 = vpop.f32.mrf.mxu0 }
 0x188   :  { %v4787_v45 = vadd.f32 %v2524_v25, %v2236_v23  ;;  %v2526_v46 = vpop.f32.mrf.mxu1 }
 0x189   :  { %v2240_v47 = vpop.f32.mrf.mxu0  ;;  %2753 = vmatmul.mubr.bf16.gmra.mxu0 %v3435_v20  ;;  %v3454_v20 = vcombine.high %v106_v55, %v110_v0  ;;  %v114_v46 = vld [vmem:[%s5393_s0 + $0x318] sm:$0xff] }
 0x18a   :  { %v2241_v48 = vadd.f32 %v4481_v16, %v2240_v47  ;;  %v2529_v52 = vpop.f32.mrf.mxu1  ;;  %3042 = vmatmul.mubr.bf16.gmra.mxu1 %v3437_v32  ;;  %2760 = vmatprep.mubr.bf16.mxu0 %v3444_v37  ;;  %v118_v47 = vld [vmem:[%s5393_s0 + $0x338] sm:$0xff] }
 0x18b   :  { %v2242_v53 = vpop.f32.mrf.mxu0  ;;  %3049 = vmatprep.mubr.bf16.mxu1 %v3446_v35 }
 0x18c   :  { %v4796_v41 = vadd.f32 %v2529_v52, %v2241_v48  ;;  %v2531_v42 = vpop.f32.mrf.mxu1  ;;  %v3451_v52 = vcombine.low %v105_v27, %v109_v29  ;;  %v121_v27 = vld [vmem:[%s5393_s0 + $0x350] sm:$0xff] }
 0x18d   :  { %v2243_v4 = vpop.f32.mrf.mxu0  ;;  %v125_v29 = vld [vmem:[%s5393_s0 + $0x370] sm:$0xff] }
 0x18e   :  { %v2244_v8 = vadd.f32 %v4481_v16, %v2243_v4  ;;  %v2532_v9 = vpop.f32.mrf.mxu1  ;;  %v3453_v4 = vcombine.low %v106_v55, %v110_v0 }
 0x18f   :  { %v2245_v18 = vpop.f32.mrf.mxu0 }
 0x190   :  { %v4805_v23 = vadd.f32 %v2532_v9, %v2244_v8  ;;  %v2534_v25 = vpop.f32.mrf.mxu1  ;;  %v3462_v9 = vcombine.high %v114_v46, %v118_v47 }
 0x191   :  { %v2248_v32 = vpop.f32.mrf.mxu0  ;;  %2761 = vmatmul.mubr.bf16.gmra.mxu0 %v3443_v7  ;;  %v3460_v7 = vcombine.high %v113_v58, %v117_v59 }
 0x192   :  { %v2249_v37 = vadd.f32 %v4481_v16, %v2248_v32  ;;  %v2537_v39 = vpop.f32.mrf.mxu1  ;;  %3050 = vmatmul.mubr.bf16.gmra.mxu1 %v3445_v11  ;;  %2768 = vmatprep.mubr.bf16.mxu0 %v3452_v6 }
 0x193   :  { %v2250_v35 = vpop.f32.mrf.mxu0  ;;  %3057 = vmatprep.mubr.bf16.mxu1 %v3454_v20 }
 0x194   :  { %v4814_v13 = vadd.f32 %v2537_v39, %v2249_v37  ;;  %v2539_v14 = vpop.f32.mrf.mxu1  ;;  %v122_v37 = vld [vmem:[%s5393_s0 + $0x358] sm:$0xff] }
 0x195   :  { %v2251_v48 = vpop.f32.mrf.mxu0  ;;  %v126_v39 = vld [vmem:[%s5393_s0 + $0x378] sm:$0xff]  ;;  %v3459_v14 = vcombine.low %v113_v58, %v117_v59  ;;  %v129_v58 = vld [vmem:[%s5393_s0 + $0x390] sm:$0xff] }
 0x196   :  { %v2252_v53 = vadd.f32 %v4481_v16, %v2251_v48  ;;  %v2540_v42 = vpop.f32.mrf.mxu1  ;;  %v133_v59 = vld [vmem:[%s5393_s0 + $0x3b0] sm:$0xff] }
 0x197   :  { %v2253_v8 = vpop.f32.mrf.mxu0 }
 0x198   :  { %v4823_v11 = vadd.f32 %v2540_v42, %v2252_v53  ;;  %v2542_v6 = vpop.f32.mrf.mxu1  ;;  %v3461_v53 = vcombine.low %v114_v46, %v118_v47  ;;  %v3468_v42 = vcombine.high %v121_v27, %v125_v29 }
 0x199   :  { %v2256_v18 = vpop.f32.mrf.mxu0  ;;  %2769 = vmatmul.mubr.bf16.gmra.mxu0 %v3451_v52 }
 0x19a   :  { %v2257_v20 = vadd.f32 %v4481_v16, %v2256_v18  ;;  %v2545_v25 = vpop.f32.mrf.mxu1  ;;  %3058 = vmatmul.mubr.bf16.gmra.mxu1 %v3453_v4  ;;  %2776 = vmatprep.mubr.bf16.mxu0 %v3460_v7  ;;  %v3470_v7 = vcombine.high %v122_v37, %v126_v39 }
 0x19b   :  { %v2258_v32 = vpop.f32.mrf.mxu0  ;;  %3065 = vmatprep.mubr.bf16.mxu1 %v3462_v9 }
 0x19c   :  { %v4832_v55 = vadd.f32 %v2545_v25, %v2257_v20  ;;  %v2547_v0 = vpop.f32.mrf.mxu1  ;;  %v130_v32 = vld [vmem:[%s5393_s0 + $0x398] sm:$0xff] }
 0x19d   :  { %v2259_v35 = vpop.f32.mrf.mxu0  ;;  %v134_v0 = vld [vmem:[%s5393_s0 + $0x3b8] sm:$0xff] }
 0x19e   :  { %v2260_v48 = vadd.f32 %v4481_v16, %v2259_v35  ;;  %v2548_v52 = vpop.f32.mrf.mxu1 }
 0x19f   :  { %v2261_v4 = vpop.f32.mrf.mxu0 }
 0x1a0   :  { %v4841_v8 = vadd.f32 %v2548_v52, %v2260_v48  ;;  %v2550_v9 = vpop.f32.mrf.mxu1 }
 0x1a1   :  { %v2264_v6 = vpop.f32.mrf.mxu0  ;;  %2777 = vmatmul.mubr.bf16.gmra.mxu0 %v3459_v14  ;;  %v3467_v14 = vcombine.low %v121_v27, %v125_v29  ;;  %v137_v27 = vld [vmem:[%s5393_s0 + $0x3d0] sm:$0xff] }
 0x1a2   :  { %v2265_v18 = vadd.f32 %v4481_v16, %v2264_v6  ;;  %v2553_v20 = vpop.f32.mrf.mxu1  ;;  %3066 = vmatmul.mubr.bf16.gmra.mxu1 %v3461_v53  ;;  %2784 = vmatprep.mubr.bf16.mxu0 %v3468_v42  ;;  %v3469_v53 = vcombine.low %v122_v37, %v126_v39  ;;  %v3476_v42 = vcombine.high %v129_v58, %v133_v59  ;;  %v141_v29 = vld [vmem:[%s5393_s0 + $0x3f0] sm:$0xff] }
 0x1a3   :  { %v2266_v25 = vpop.f32.mrf.mxu0  ;;  %3073 = vmatprep.mubr.bf16.mxu1 %v3470_v7  ;;  %v3478_v7 = vcombine.high %v130_v32, %v134_v0 }
 0x1a4   :  { %v4850_v46 = vadd.f32 %v2553_v20, %v2265_v18  ;;  %v2555_v47 = vpop.f32.mrf.mxu1 }
 0x1a5   :  { %v2267_v35 = vpop.f32.mrf.mxu0 }
 0x1a6   :  { %v2268_v48 = vadd.f32 %v4481_v16, %v2267_v35  ;;  %v2556_v52 = vpop.f32.mrf.mxu1  ;;  %v142_v35 = vld [vmem:[%s5393_s0 + $0x3f8] sm:$0xff] }
 0x1a7   :  { %v2269_v4 = vpop.f32.mrf.mxu0 }
 0x1a8   :  { %v4859_v9 = vadd.f32 %v2556_v52, %v2268_v48  ;;  %v2558_v6 = vpop.f32.mrf.mxu1  ;;  %v3475_v48 = vcombine.low %v129_v58, %v133_v59  ;;  %v4879_v52 = vld [vmem:[%s5394_s2] ss:$0 sm:$0xff]  ;;  %v3477_v4 = vcombine.low %v130_v32, %v134_v0  ;;  %v149_v32 = vld [vmem:[%s5393_s0 + $0x430] sm:$0xff] }
 0x1a9   :  { %v2272_v18 = vpop.f32.mrf.mxu0  ;;  %2785 = vmatmul.mubr.bf16.gmra.mxu0 %v3467_v14 }
 0x1aa   :  { %5396 = vst [vmem:[#allocation2_spill] sm:$0xff] %v4859_v9  ;;  %v2273_v20 = vadd.f32 %v4481_v16, %v2272_v18  ;;  %v2561_v25 = vpop.f32.mrf.mxu1  ;;  %3074 = vmatmul.mubr.bf16.gmra.mxu1 %v3469_v53  ;;  %2792 = vmatprep.mubr.bf16.mxu0 %v3476_v42  ;;  %v138_v16 = vld [vmem:[%s5393_s0 + $0x3d8] sm:$0xff] }
 0x1ab   :  { %v2274_v47 = vpop.f32.mrf.mxu0  ;;  %3081 = vmatprep.mubr.bf16.mxu1 %v3478_v7  ;;  %v3484_v7 = vcombine.high %v137_v27, %v141_v29  ;;  %v3486_v18 = vcombine.high %v138_v16, %v142_v35 }
 0x1ac   :  { %v4868_v37 = vadd.f32 %v2561_v25, %v2273_v20  ;;  %v2563_v39 = vpop.f32.mrf.mxu1 }
 0x1ad   :  { %v2275_v14 = vpop.f32.mrf.mxu0 }
 0x1ae   :  { %5397 = vst [vmem:[#allocation3_spill] sm:$0xff] %v4868_v37  ;;  %v2276_v53 = vadd.f32 %v4879_v52, %v2275_v14  ;;  %v2564_v42 = vpop.f32.mrf.mxu1  ;;  %v145_v14 = vld [vmem:[%s5393_s0 + $0x410] sm:$0xff] }
 0x1af   :  { %v2277_v6 = vpop.f32.mrf.mxu0 }
 0x1b0   :  { %v4882_v20 = vadd.f32 %v2564_v42, %v2276_v53  ;;  %v2566_v25 = vpop.f32.mrf.mxu1  ;;  %v150_v42 = vld [vmem:[%s5393_s0 + $0x438] sm:$0xff] }
 0x1b1   :  { %v2280_v47 = vpop.f32.mrf.mxu0  ;;  %2793 = vmatmul.mubr.bf16.gmra.mxu0 %v3475_v48  ;;  %v146_v48 = vld [vmem:[%s5393_s0 + $0x418] sm:$0xff]  ;;  %v3485_v25 = vcombine.low %v138_v16, %v142_v35 }
 0x1b2   :  { %5398 = vst [vmem:[#allocation4_spill] sm:$0xff] %v4882_v20  ;;  %v2281_v39 = vadd.f32 %v4879_v52, %v2280_v47  ;;  %v2569_v58 = vpop.f32.mrf.mxu1  ;;  %3082 = vmatmul.mubr.bf16.gmra.mxu1 %v3477_v4  ;;  %2800 = vmatprep.mubr.bf16.mxu0 %v3484_v7  ;;  %v3483_v7 = vcombine.low %v137_v27, %v141_v29  ;;  %v153_v27 = vld [vmem:[%s5393_s0 + $0x450] sm:$0xff] }
 0x1b3   :  { %v2282_v59 = vpop.f32.mrf.mxu0  ;;  %3089 = vmatprep.mubr.bf16.mxu1 %v3486_v18  ;;  %v3492_v47 = vcombine.high %v145_v14, %v149_v32  ;;  %v3494_v20 = vcombine.high %v146_v48, %v150_v42  ;;  %v157_v29 = vld [vmem:[%s5393_s0 + $0x470] sm:$0xff] }
 0x1b4   :  { %v4891_v0 = vadd.f32 %v2569_v58, %v2281_v39  ;;  %v2571_v53 = vpop.f32.mrf.mxu1 }
 0x1b5   :  { %v2283_v4 = vpop.f32.mrf.mxu0 }
 0x1b6   :  { %5399 = vst [vmem:[#allocation5_spill] sm:$0xff] %v4891_v0  ;;  %v2284_v6 = vadd.f32 %v4879_v52, %v2283_v4  ;;  %v2572_v18 = vpop.f32.mrf.mxu1  ;;  %v154_v4 = vld [vmem:[%s5393_s0 + $0x458] sm:$0xff] }
 0x1b7   :  { %v2285_v59 = vpop.f32.mrf.mxu0 }
 0x1b8   :  { %v4900_v39 = vadd.f32 %v2572_v18, %v2284_v6  ;;  %v2574_v58 = vpop.f32.mrf.mxu1 }
 0x1b9   :  { %v2288_v53 = vpop.f32.mrf.mxu0  ;;  %2801 = vmatmul.mubr.bf16.gmra.mxu0 %v3483_v7  ;;  %v3491_v7 = vcombine.low %v145_v14, %v149_v32  ;;  %v161_v14 = vld [vmem:[%s5393_s0 + $0x490] sm:$0xff] }
 0x1ba   :  { %5400 = vst [vmem:[#allocation6_spill] sm:$0xff] %v4900_v39  ;;  %v2289_v0 = vadd.f32 %v4879_v52, %v2288_v53  ;;  %v2577_v37 = vpop.f32.mrf.mxu1  ;;  %3090 = vmatmul.mubr.bf16.gmra.mxu1 %v3485_v25  ;;  %2808 = vmatprep.mubr.bf16.mxu0 %v3492_v47  ;;  %v3493_v25 = vcombine.low %v146_v48, %v150_v42  ;;  %v165_v32 = vld [vmem:[%s5393_s0 + $0x4b0] sm:$0xff] }
 0x1bb   :  { %v2290_v9 = vpop.f32.mrf.mxu0  ;;  %3097 = vmatprep.mubr.bf16.mxu1 %v3494_v20  ;;  %v3500_v47 = vcombine.high %v153_v27, %v157_v29 }
 0x1bc   :  { %v4909_v16 = vadd.f32 %v2577_v37, %v2289_v0  ;;  %v2579_v35 = vpop.f32.mrf.mxu1  ;;  %v158_v9 = vld [vmem:[%s5393_s0 + $0x478] sm:$0xff] }
 0x1bd   :  { %v2291_v20 = vpop.f32.mrf.mxu0  ;;  %v3502_v58 = vcombine.high %v154_v4, %v158_v9 }
 0x1be   :  { %5401 = vst [vmem:[#allocation7_spill] sm:$0xff] %v4909_v16  ;;  %v2292_v6 = vadd.f32 %v4879_v52, %v2291_v20  ;;  %v2580_v18 = vpop.f32.mrf.mxu1  ;;  %v162_v20 = vld [vmem:[%s5393_s0 + $0x498] sm:$0xff] }
 0x1bf   :  { %v2293_v59 = vpop.f32.mrf.mxu0 }
 0x1c0   :  { %v4918_v37 = vadd.f32 %v2580_v18, %v2292_v6  ;;  %v2582_v0 = vpop.f32.mrf.mxu1  ;;  %v3499_v6 = vcombine.low %v153_v27, %v157_v29  ;;  %v3508_v59 = vcombine.high %v161_v14, %v165_v32  ;;  %v169_v27 = vld [vmem:[%s5393_s0 + $0x4d0] sm:$0xff] }
 0x1c1   :  { %v2296_v53 = vpop.f32.mrf.mxu0  ;;  %2809 = vmatmul.mubr.bf16.gmra.mxu0 %v3491_v7  ;;  %v173_v29 = vld [vmem:[%s5393_s0 + $0x4f0] sm:$0xff] }
 0x1c2   :  { %5402 = vst [vmem:[#allocation8_spill] sm:$0xff] %v4918_v37  ;;  %v2297_v35 = vadd.f32 %v4879_v52, %v2296_v53  ;;  %v2585_v16 = vpop.f32.mrf.mxu1  ;;  %3098 = vmatmul.mubr.bf16.gmra.mxu1 %v3493_v25  ;;  %2816 = vmatprep.mubr.bf16.mxu0 %v3500_v47  ;;  %v3501_v47 = vcombine.low %v154_v4, %v158_v9 }
 0x1c3   :  { %v2298_v39 = vpop.f32.mrf.mxu0  ;;  %3105 = vmatprep.mubr.bf16.mxu1 %v3502_v58 }
 0x1c4   :  { %v4927_v48 = vadd.f32 %v2585_v16, %v2297_v35  ;;  %v2587_v42 = vpop.f32.mrf.mxu1  ;;  %v166_v39 = vld [vmem:[%s5393_s0 + $0x4b8] sm:$0xff] }
 0x1c5   :  { %v2299_v7 = vpop.f32.mrf.mxu0  ;;  %v3510_v0 = vcombine.high %v162_v20, %v166_v39 }
 0x1c6   :  { %5403 = vst [vmem:[#allocation9_spill] sm:$0xff] %v4927_v48  ;;  %v2300_v18 = vadd.f32 %v4879_v52, %v2299_v7  ;;  %v2588_v25 = vpop.f32.mrf.mxu1  ;;  %v170_v7 = vld [vmem:[%s5393_s0 + $0x4d8] sm:$0xff] }
 0x1c7   :  { %v2301_v58 = vpop.f32.mrf.mxu0 }
 0x1c8   :  { %v4936_v16 = vadd.f32 %v2588_v25, %v2300_v18  ;;  %v2590_v53 = vpop.f32.mrf.mxu1  ;;  %v3507_v18 = vcombine.low %v161_v14, %v165_v32  ;;  %v3516_v58 = vcombine.high %v169_v27, %v173_v29  ;;  %v177_v14 = vld [vmem:[%s5393_s0 + $0x510] sm:$0xff] }
 0x1c9   :  { %v2304_v35 = vpop.f32.mrf.mxu0  ;;  %2817 = vmatmul.mubr.bf16.gmra.mxu0 %v3499_v6  ;;  %v181_v32 = vld [vmem:[%s5393_s0 + $0x530] sm:$0xff] }
 0x1ca   :  { %5404 = vst [vmem:[#allocation10_spill] sm:$0xff] %v4936_v16  ;;  %v2305_v42 = vadd.f32 %v4879_v52, %v2304_v35  ;;  %v2593_v48 = vpop.f32.mrf.mxu1  ;;  %3106 = vmatmul.mubr.bf16.gmra.mxu1 %v3501_v47  ;;  %2824 = vmatprep.mubr.bf16.mxu0 %v3508_v59  ;;  %v3509_v59 = vcombine.low %v162_v20, %v166_v39 }
 0x1cb   :  { %v2306_v37 = vpop.f32.mrf.mxu0  ;;  %3113 = vmatprep.mubr.bf16.mxu1 %v3510_v0 }
 0x1cc   :  { %v4945_v4 = vadd.f32 %v2593_v48, %v2305_v42  ;;  %v2595_v9 = vpop.f32.mrf.mxu1  ;;  %v174_v37 = vld [vmem:[%s5393_s0 + $0x4f8] sm:$0xff] }
 0x1cd   :  { %v2307_v6 = vpop.f32.mrf.mxu0  ;;  %v3518_v53 = vcombine.high %v170_v7, %v174_v37 }
 0x1ce   :  { %5405 = vst [vmem:[#allocation11_spill] sm:$0xff] %v4945_v4  ;;  %v2308_v25 = vadd.f32 %v4879_v52, %v2307_v6  ;;  %v2596_v47 = vpop.f32.mrf.mxu1  ;;  %v178_v6 = vld [vmem:[%s5393_s0 + $0x518] sm:$0xff] }
 0x1cf   :  { %v2309_v0 = vpop.f32.mrf.mxu0 }
 0x1d0   :  { %v4954_v48 = vadd.f32 %v2596_v47, %v2308_v25  ;;  %v2598_v35 = vpop.f32.mrf.mxu1  ;;  %v3515_v25 = vcombine.low %v169_v27, %v173_v29  ;;  %v3524_v0 = vcombine.high %v177_v14, %v181_v32  ;;  %v185_v27 = vld [vmem:[%s5393_s0 + $0x550] sm:$0xff] }
 0x1d1   :  { %v2312_v42 = vpop.f32.mrf.mxu0  ;;  %2825 = vmatmul.mubr.bf16.gmra.mxu0 %v3507_v18  ;;  %v189_v29 = vld [vmem:[%s5393_s0 + $0x570] sm:$0xff] }
 0x1d2   :  { %5406 = vst [vmem:[#allocation12_spill] sm:$0xff] %v4954_v48  ;;  %v2313_v9 = vadd.f32 %v4879_v52, %v2312_v42  ;;  %v2601_v4 = vpop.f32.mrf.mxu1  ;;  %3114 = vmatmul.mubr.bf16.gmra.mxu1 %v3509_v59  ;;  %2832 = vmatprep.mubr.bf16.mxu0 %v3516_v58  ;;  %v3517_v58 = vcombine.low %v170_v7, %v174_v37 }
 0x1d3   :  { %v2314_v16 = vpop.f32.mrf.mxu0  ;;  %3121 = vmatprep.mubr.bf16.mxu1 %v3518_v53 }
 0x1d4   :  { %v4963_v20 = vadd.f32 %v2601_v4, %v2313_v9  ;;  %v2603_v39 = vpop.f32.mrf.mxu1  ;;  %v182_v16 = vld [vmem:[%s5393_s0 + $0x538] sm:$0xff] }
 0x1d5   :  { %v2315_v18 = vpop.f32.mrf.mxu0  ;;  %v3526_v35 = vcombine.high %v178_v6, %v182_v16 }
 0x1d6   :  { %5407 = vst [vmem:[#allocation13_spill] sm:$0xff] %v4963_v20  ;;  %v2316_v47 = vadd.f32 %v4879_v52, %v2315_v18  ;;  %v2604_v59 = vpop.f32.mrf.mxu1  ;;  %v186_v18 = vld [vmem:[%s5393_s0 + $0x558] sm:$0xff] }
 0x1d7   :  { %v2317_v53 = vpop.f32.mrf.mxu0 }
 0x1d8   :  { %v4972_v4 = vadd.f32 %v2604_v59, %v2316_v47  ;;  %v2606_v42 = vpop.f32.mrf.mxu1  ;;  %v3523_v47 = vcombine.low %v177_v14, %v181_v32  ;;  %v3532_v53 = vcombine.high %v185_v27, %v189_v29  ;;  %v193_v14 = vld [vmem:[%s5393_s0 + $0x590] sm:$0xff] }
 0x1d9   :  { %v2320_v9 = vpop.f32.mrf.mxu0  ;;  %2833 = vmatmul.mubr.bf16.gmra.mxu0 %v3515_v25  ;;  %v197_v32 = vld [vmem:[%s5393_s0 + $0x5b0] sm:$0xff] }
 0x1da   :  { %5408 = vst [vmem:[#allocation14_spill] sm:$0xff] %v4972_v4  ;;  %v2321_v39 = vadd.f32 %v4879_v52, %v2320_v9  ;;  %v2609_v20 = vpop.f32.mrf.mxu1  ;;  %3122 = vmatmul.mubr.bf16.gmra.mxu1 %v3517_v58  ;;  %2840 = vmatprep.mubr.bf16.mxu0 %v3524_v0  ;;  %v3525_v0 = vcombine.low %v178_v6, %v182_v16 }
 0x1db   :  { %v2322_v48 = vpop.f32.mrf.mxu0  ;;  %3129 = vmatprep.mubr.bf16.mxu1 %v3526_v35 }
 0x1dc   :  { %v4981_v7 = vadd.f32 %v2609_v20, %v2321_v39  ;;  %v2611_v37 = vpop.f32.mrf.mxu1  ;;  %v190_v48 = vld [vmem:[%s5393_s0 + $0x578] sm:$0xff] }
 0x1dd   :  { %v2323_v25 = vpop.f32.mrf.mxu0  ;;  %v3534_v42 = vcombine.high %v186_v18, %v190_v48 }
 0x1de   :  { %5409 = vst [vmem:[#allocation15_spill] sm:$0xff] %v4981_v7  ;;  %v2324_v59 = vadd.f32 %v4879_v52, %v2323_v25  ;;  %v2612_v58 = vpop.f32.mrf.mxu1  ;;  %v194_v25 = vld [vmem:[%s5393_s0 + $0x598] sm:$0xff] }
 0x1df   :  { %v2325_v35 = vpop.f32.mrf.mxu0 }
 0x1e0   :  { %v4990_v20 = vadd.f32 %v2612_v58, %v2324_v59  ;;  %v2614_v9 = vpop.f32.mrf.mxu1  ;;  %v3531_v59 = vcombine.low %v185_v27, %v189_v29  ;;  %v3540_v35 = vcombine.high %v193_v14, %v197_v32  ;;  %v201_v27 = vld [vmem:[%s5393_s0 + $0x5d0] sm:$0xff] }
 0x1e1   :  { %v2328_v39 = vpop.f32.mrf.mxu0  ;;  %2841 = vmatmul.mubr.bf16.gmra.mxu0 %v3523_v47  ;;  %v205_v29 = vld [vmem:[%s5393_s0 + $0x5f0] sm:$0xff] }
 0x1e2   :  { %5410 = vst [vmem:[#allocation16_spill] sm:$0xff] %v4990_v20  ;;  %v2329_v37 = vadd.f32 %v4879_v52, %v2328_v39  ;;  %v2617_v7 = vpop.f32.mrf.mxu1  ;;  %3130 = vmatmul.mubr.bf16.gmra.mxu1 %v3525_v0  ;;  %2848 = vmatprep.mubr.bf16.mxu0 %v3532_v53  ;;  %v3533_v53 = vcombine.low %v186_v18, %v190_v48 }
 0x1e3   :  { %v2330_v4 = vpop.f32.mrf.mxu0  ;;  %3137 = vmatprep.mubr.bf16.mxu1 %v3534_v42 }
 0x1e4   :  { %v4999_v6 = vadd.f32 %v2617_v7, %v2329_v37  ;;  %v2619_v16 = vpop.f32.mrf.mxu1  ;;  %v198_v4 = vld [vmem:[%s5393_s0 + $0x5b8] sm:$0xff] }
 0x1e5   :  { %v2331_v47 = vpop.f32.mrf.mxu0  ;;  %v3542_v9 = vcombine.high %v194_v25, %v198_v4 }
 0x1e6   :  { %5411 = vst [vmem:[#allocation17_spill] sm:$0xff] %v4999_v6  ;;  %v2332_v58 = vadd.f32 %v4879_v52, %v2331_v47  ;;  %v2620_v0 = vpop.f32.mrf.mxu1  ;;  %v202_v47 = vld [vmem:[%s5393_s0 + $0x5d8] sm:$0xff] }
 0x1e7   :  { %v2333_v42 = vpop.f32.mrf.mxu0 }
 0x1e8   :  { %v5008_v7 = vadd.f32 %v2620_v0, %v2332_v58  ;;  %v2622_v39 = vpop.f32.mrf.mxu1  ;;  %v3539_v58 = vcombine.low %v193_v14, %v197_v32  ;;  %v3548_v42 = vcombine.high %v201_v27, %v205_v29  ;;  %v209_v14 = vld [vmem:[%s5393_s0 + $0x610] sm:$0xff] }
 0x1e9   :  { %v2336_v37 = vpop.f32.mrf.mxu0  ;;  %2849 = vmatmul.mubr.bf16.gmra.mxu0 %v3531_v59  ;;  %v213_v32 = vld [vmem:[%s5393_s0 + $0x630] sm:$0xff] }
 0x1ea   :  { %5412 = vst [vmem:[#allocation18_spill] sm:$0xff] %v5008_v7  ;;  %v2337_v16 = vadd.f32 %v4879_v52, %v2336_v37  ;;  %v2625_v6 = vpop.f32.mrf.mxu1  ;;  %3138 = vmatmul.mubr.bf16.gmra.mxu1 %v3533_v53  ;;  %2856 = vmatprep.mubr.bf16.mxu0 %v3540_v35  ;;  %v3541_v35 = vcombine.low %v194_v25, %v198_v4 }
 0x1eb   :  { %v2338_v20 = vpop.f32.mrf.mxu0  ;;  %3145 = vmatprep.mubr.bf16.mxu1 %v3542_v9 }
 0x1ec   :  { %v5017_v18 = vadd.f32 %v2625_v6, %v2337_v16  ;;  %v2627_v48 = vpop.f32.mrf.mxu1  ;;  %v206_v20 = vld [vmem:[%s5393_s0 + $0x5f8] sm:$0xff] }
 0x1ed   :  { %v2339_v59 = vpop.f32.mrf.mxu0  ;;  %v3550_v39 = vcombine.high %v202_v47, %v206_v20 }
 0x1ee   :  { %5413 = vst [vmem:[#allocation19_spill] sm:$0xff] %v5017_v18  ;;  %v2340_v0 = vadd.f32 %v4879_v52, %v2339_v59  ;;  %v2628_v53 = vpop.f32.mrf.mxu1  ;;  %v210_v59 = vld [vmem:[%s5393_s0 + $0x618] sm:$0xff] }
 0x1ef   :  { %v2341_v9 = vpop.f32.mrf.mxu0 }
 0x1f0   :  { %v5026_v6 = vadd.f32 %v2628_v53, %v2340_v0  ;;  %v2630_v37 = vpop.f32.mrf.mxu1  ;;  %v3547_v0 = vcombine.low %v201_v27, %v205_v29  ;;  %v3556_v9 = vcombine.high %v209_v14, %v213_v32  ;;  %v217_v27 = vld [vmem:[%s5393_s0 + $0x650] sm:$0xff] }
 0x1f1   :  { %v2344_v16 = vpop.f32.mrf.mxu0  ;;  %2857 = vmatmul.mubr.bf16.gmra.mxu0 %v3539_v58  ;;  %v221_v29 = vld [vmem:[%s5393_s0 + $0x670] sm:$0xff] }
 0x1f2   :  { %5414 = vst [vmem:[#allocation20_spill] sm:$0xff] %v5026_v6  ;;  %v2345_v48 = vadd.f32 %v4879_v52, %v2344_v16  ;;  %v2633_v18 = vpop.f32.mrf.mxu1  ;;  %3146 = vmatmul.mubr.bf16.gmra.mxu1 %v3541_v35  ;;  %2864 = vmatprep.mubr.bf16.mxu0 %v3548_v42  ;;  %v3549_v42 = vcombine.low %v202_v47, %v206_v20 }
 0x1f3   :  { %v2346_v7 = vpop.f32.mrf.mxu0  ;;  %3153 = vmatprep.mubr.bf16.mxu1 %v3550_v39 }
 0x1f4   :  { %v5035_v25 = vadd.f32 %v2633_v18, %v2345_v48  ;;  %v2635_v4 = vpop.f32.mrf.mxu1  ;;  %v214_v7 = vld [vmem:[%s5393_s0 + $0x638] sm:$0xff] }
 0x1f5   :  { %v2347_v58 = vpop.f32.mrf.mxu0  ;;  %v3558_v37 = vcombine.high %v210_v59, %v214_v7 }
 0x1f6   :  { %5415 = vst [vmem:[#allocation21_spill] sm:$0xff] %v5035_v25  ;;  %v2348_v53 = vadd.f32 %v4879_v52, %v2347_v58  ;;  %v2636_v35 = vpop.f32.mrf.mxu1  ;;  %v218_v58 = vld [vmem:[%s5393_s0 + $0x658] sm:$0xff] }
 0x1f7   :  { %v2349_v39 = vpop.f32.mrf.mxu0 }
 0x1f8   :  { %v5044_v18 = vadd.f32 %v2636_v35, %v2348_v53  ;;  %v2638_v16 = vpop.f32.mrf.mxu1  ;;  %v3555_v53 = vcombine.low %v209_v14, %v213_v32  ;;  %v3564_v39 = vcombine.high %v217_v27, %v221_v29  ;;  %v229_v14 = vld [vmem:[%s5393_s0 + $0x6b0] sm:$0xff] }
 0x1f9   :  { %v2352_v48 = vpop.f32.mrf.mxu0  ;;  %2865 = vmatmul.mubr.bf16.gmra.mxu0 %v3547_v0 }
 0x1fa   :  { %5416 = vst [vmem:[#allocation22_spill] sm:$0xff] %v5044_v18  ;;  %v2353_v4 = vadd.f32 %v4879_v52, %v2352_v48  ;;  %v2641_v25 = vpop.f32.mrf.mxu1  ;;  %3154 = vmatmul.mubr.bf16.gmra.mxu1 %v3549_v42  ;;  %2872 = vmatprep.mubr.bf16.mxu0 %v3556_v9  ;;  %v3557_v9 = vcombine.low %v210_v59, %v214_v7  ;;  %v226_v7 = vld [vmem:[%s5393_s0 + $0x698] sm:$0xff] }
 0x1fb   :  { %v2354_v6 = vpop.f32.mrf.mxu0  ;;  %3161 = vmatprep.mubr.bf16.mxu1 %v3558_v37 }
 0x1fc   :  { %v5053_v47 = vadd.f32 %v2641_v25, %v2353_v4  ;;  %v2643_v20 = vpop.f32.mrf.mxu1  ;;  %v222_v6 = vld [vmem:[%s5393_s0 + $0x678] sm:$0xff] }
 0x1fd   :  { %v2355_v0 = vpop.f32.mrf.mxu0  ;;  %v3566_v16 = vcombine.high %v218_v58, %v222_v6 }
 0x1fe   :  { %5417 = vst [vmem:[#allocation23_spill] sm:$0xff] %v5053_v47  ;;  %v2356_v35 = vadd.f32 %v4879_v52, %v2355_v0  ;;  %v2644_v42 = vpop.f32.mrf.mxu1  ;;  %v225_v52 = vld [vmem:[%s5393_s0 + $0x690] sm:$0xff]  ;;  %v3563_v0 = vcombine.low %v217_v27, %v221_v29 }
 0x1ff   :  { %v2357_v37 = vpop.f32.mrf.mxu0  ;;  %v237_v27 = vld [vmem:[%s5393_s0 + $0x6f0] sm:$0xff] }
 0x200   :  { %v5062_v25 = vadd.f32 %v2644_v42, %v2356_v35  ;;  %v2646_v48 = vpop.f32.mrf.mxu1  ;;  %v3565_v42 = vcombine.low %v218_v58, %v222_v6  ;;  %v234_v6 = vld [vmem:[%s5393_s0 + $0x6d8] sm:$0xff] }
 0x201   :  { %v2682_v4 = vpop.f32.mrf.mxu0  ;;  %2873 = vmatmul.mubr.bf16.gmra.mxu0 %v3555_v53 }
 0x202   :  { %v2683_v20 = vadd.f32 %v2682_v4, %v4490_v24  ;;  %v2971_v47 = vpop.f32.mrf.mxu1  ;;  %3162 = vmatmul.mubr.bf16.gmra.mxu1 %v3557_v9  ;;  %2880 = vmatprep.mubr.bf16.mxu0 %v3564_v39  ;;  %v230_v24 = vld [vmem:[%s5393_s0 + $0x6b8] sm:$0xff]  ;;  %v3572_v9 = vcombine.high %v225_v52, %v229_v14 }
 0x203   :  { %v2684_v18 = vpop.f32.mrf.mxu0  ;;  %3169 = vmatprep.mubr.bf16.mxu1 %v3566_v16  ;;  %v3574_v37 = vcombine.high %v226_v7, %v230_v24 }
 0x204   :  { %v2972_v32 = vadd.f32 %v2971_v47, %v2683_v20  ;;  %v2973_v59 = vpop.f32.mrf.mxu1 }
 0x205   :  { %v2685_v18 = vpop.f32.mrf.mxu0 }
 0x206   :  { %3744 = vtanh.f32 %v2972_v32  ;;  %v2686_v53 = vadd.f32 %v2685_v18, %v4499_v36  ;;  %v2974_v35 = vpop.f32.mrf.mxu1  ;;  %v233_v36 = vld [vmem:[%s5393_s0 + $0x6d0] sm:$0xff]  ;;  %v3571_v18 = vcombine.low %v225_v52, %v229_v14 }
 0x207   :  { %v2687_v39 = vpop.f32.mrf.mxu0  ;;  %v245_v14 = vld [vmem:[%s5393_s0 + $0x730] sm:$0xff] }
 0x208   :  { %v2975_v47 = vadd.f32 %v2974_v35, %v2686_v53  ;;  %v2976_v16 = vpop.f32.mrf.mxu1  ;;  %v3573_v35 = vcombine.low %v226_v7, %v230_v24  ;;  %v242_v24 = vld [vmem:[%s5393_s0 + $0x718] sm:$0xff] }
 0x209   :  { %v2690_v48 = vpop.f32.mrf.mxu0  ;;  %2881 = vmatmul.mubr.bf16.gmra.mxu0 %v3563_v0 }
 0x20a   :  { %3746 = vtanh.f32 %v2975_v47  ;;  %v2691_v4 = vadd.f32 %v2690_v48, %v4508_v44  ;;  %v2979_v20 = vpop.f32.mrf.mxu1  ;;  %3170 = vmatmul.mubr.bf16.gmra.mxu1 %v3565_v42  ;;  %2888 = vmatprep.mubr.bf16.mxu0 %v3572_v9  ;;  %v238_v44 = vld [vmem:[%s5393_s0 + $0x6f8] sm:$0xff]  ;;  %v3580_v42 = vcombine.high %v233_v36, %v237_v27 }
 0x20b   :  { %v2692_v59 = vpop.f32.mrf.mxu0  ;;  %3177 = vmatprep.mubr.bf16.mxu1 %v3574_v37  ;;  %v3582_v39 = vcombine.high %v234_v6, %v238_v44 }
 0x20c   :  { %v2980_v29 = vadd.f32 %v2979_v20, %v2691_v4  ;;  %v2981_v58 = vpop.f32.mrf.mxu1  ;;  %v246_v59 = vld [vmem:[%s5393_s0 + $0x738] sm:$0xff] }
 0x20d   :  { %v2693_v32 = vpop.f32.mrf.mxu0  ;;  %v3579_v58 = vcombine.low %v233_v36, %v237_v27 }
 0x20e   :  { %3748 = vtanh.f32 %v2980_v29  ;;  %v2694_v0 = vadd.f32 %v2693_v32, %v4517_v56  ;;  %v2982_v53 = vpop.f32.mrf.mxu1  ;;  %v241_v56 = vld [vmem:[%s5393_s0 + $0x710] sm:$0xff] }
 0x20f   :  { %v2695_v9 = vpop.f32.mrf.mxu0 }
 0x210   :  { %v2983_v37 = vadd.f32 %v2982_v53, %v2694_v0  ;;  %v2984_v47 = vpop.f32.mrf.mxu1  ;;  %v3581_v0 = vcombine.low %v234_v6, %v238_v44  ;;  %v3588_v53 = vcombine.high %v241_v56, %v245_v14  ;;  %v3590_v9 = vcombine.high %v242_v24, %v246_v59  ;;  %v249_v44 = vld [vmem:[%s5393_s0 + $0x750] sm:$0xff] }
 0x211   :  { %v2698_v16 = vpop.f32.mrf.mxu0  ;;  %2889 = vmatmul.mubr.bf16.gmra.mxu0 %v3571_v18 }
 0x212   :  { %3750 = vtanh.f32 %v2983_v37  ;;  %v2699_v48 = vadd.f32 %v2698_v16, %v4526_v63  ;;  %v2987_v4 = vpop.f32.mrf.mxu1  ;;  %3178 = vmatmul.mubr.bf16.gmra.mxu1 %v3573_v35  ;;  %2896 = vmatprep.mubr.bf16.mxu0 %v3580_v42  ;;  %v253_v16 = vld [vmem:[%s5393_s0 + $0x770] sm:$0xff] }
 0x213   :  { %v3745_v20 = vpop.eup %3744  ;;  %v2700_v52 = vpop.f32.mrf.mxu0  ;;  %3185 = vmatprep.mubr.bf16.mxu1 %v3582_v39 }
 0x214   :  { %3290 = vst [vmem:[%s5395_s3] sm:$0xff] %v3745_v20  ;;  %v2988_v7 = vadd.f32 %v2987_v4, %v2699_v48  ;;  %v2989_v63 = vpop.f32.mrf.mxu1  ;;  %v250_v4 = vld [vmem:[%s5393_s0 + $0x758] sm:$0xff] }
 0x215   :  { %v2701_v29 = vpop.f32.mrf.mxu0  ;;  %v254_v20 = vld [vmem:[%s5393_s0 + $0x778] sm:$0xff] }
 0x216   :  { %3752 = vtanh.f32 %v2988_v7  ;;  %v2702_v32 = vadd.f32 %v2701_v29, %v4535_v12  ;;  %v2990_v18 = vpop.f32.mrf.mxu1  ;;  %v3587_v7 = vcombine.low %v241_v56, %v245_v14 }
 0x217   :  { %v3747_v35 = vpop.eup %3746  ;;  %v2703_v42 = vpop.f32.mrf.mxu0 }
 0x218   :  { %3291 = vst [vmem:[%s5395_s3 + $0x8] sm:$0xff] %v3747_v35  ;;  %v2991_v39 = vadd.f32 %v2990_v18, %v2702_v32  ;;  %v2992_v37 = vpop.f32.mrf.mxu1  ;;  %v3596_v32 = vcombine.high %v249_v44, %v253_v16 }
 0x219   :  { %v2706_v47 = vpop.f32.mrf.mxu0  ;;  %2897 = vmatmul.mubr.bf16.gmra.mxu0 %v3579_v58  ;;  %v3589_v58 = vcombine.low %v242_v24, %v246_v59  ;;  %v257_v59 = vld [vmem:[%s5393_s0 + $0x790] sm:$0xff] }
 0x21a   :  { %3754 = vtanh.f32 %v2991_v39  ;;  %v2707_v36 = vadd.f32 %v2706_v47, %v4544_v21  ;;  %v2995_v27 = vpop.f32.mrf.mxu1  ;;  %3186 = vmatmul.mubr.bf16.gmra.mxu1 %v3581_v0  ;;  %2904 = vmatprep.mubr.bf16.mxu0 %v3588_v53  ;;  %v3598_v53 = vcombine.high %v250_v4, %v254_v20  ;;  %v261_v39 = vld [vmem:[%s5393_s0 + $0x7b0] sm:$0xff]  ;;  %v258_v47 = vld [vmem:[%s5393_s0 + $0x798] sm:$0xff] }
 0x21b   :  { %v3749_v12 = vpop.eup %3748  ;;  %v2708_v6 = vpop.f32.mrf.mxu0  ;;  %3193 = vmatprep.mubr.bf16.mxu1 %v3590_v9 }
 0x21c   :  { %3292 = vst [vmem:[%s5395_s3 + $0x10] sm:$0xff] %v3749_v12  ;;  %v2996_v48 = vadd.f32 %v2995_v27, %v2707_v36  ;;  %v2997_v21 = vpop.f32.mrf.mxu1  ;;  %v262_v36 = vld [vmem:[%s5393_s0 + $0x7b8] sm:$0xff]  ;;  %v3595_v12 = vcombine.low %v249_v44, %v253_v16 }
 0x21d   :  { %v2709_v52 = vpop.f32.mrf.mxu0  ;;  %v3597_v21 = vcombine.low %v250_v4, %v254_v20  ;;  %v265_v20 = vld [vmem:[%s5393_s0 + $0x7d0] sm:$0xff] }
 0x21e   :  { %3756 = vtanh.f32 %v2996_v48  ;;  %v2710_v63 = vadd.f32 %v2709_v52, %v4553_v34  ;;  %v2998_v29 = vpop.f32.mrf.mxu1  ;;  %v3604_v52 = vcombine.high %v257_v59, %v261_v39 }
 0x21f   :  { %v3751_v18 = vpop.eup %3750  ;;  %v2711_v0 = vpop.f32.mrf.mxu0 }
 0x220   :  { %3293 = vst [vmem:[%s5395_s3 + $0x18] sm:$0xff] %v3751_v18  ;;  %v2999_v35 = vadd.f32 %v2998_v29, %v2710_v63  ;;  %v3000_v42 = vpop.f32.mrf.mxu1  ;;  %v3606_v29 = vcombine.high %v258_v47, %v262_v36  ;;  %v269_v0 = vld [vmem:[%s5393_s0 + $0x7f0] sm:$0xff] }
 0x221   :  { %v2714_v9 = vpop.f32.mrf.mxu0  ;;  %2905 = vmatmul.mubr.bf16.gmra.mxu0 %v3587_v7  ;;  %v270_v42 = vld [vmem:[%s5393_s0 + $0x7f8] sm:$0xff] }
 0x222   :  { %3758 = vtanh.f32 %v2999_v35  ;;  %v2715_v56 = vadd.f32 %v2714_v9, %v4562_v43  ;;  %v3003_v14 = vpop.f32.mrf.mxu1  ;;  %3194 = vmatmul.mubr.bf16.gmra.mxu1 %v3589_v58  ;;  %2912 = vmatprep.mubr.bf16.mxu0 %v3596_v32  ;;  %v266_v35 = vld [vmem:[%s5393_s0 + $0x7d8] sm:$0xff] }
 0x223   :  { %v3753_v34 = vpop.eup %3752  ;;  %v2716_v24 = vpop.f32.mrf.mxu0  ;;  %3201 = vmatprep.mubr.bf16.mxu1 %v3598_v53 }
 0x224   :  { %3294 = vst [vmem:[%s5395_s3 + $0x20] sm:$0xff] %v3753_v34  ;;  %v3004_v37 = vadd.f32 %v3003_v14, %v2715_v56  ;;  %v3005_v43 = vpop.f32.mrf.mxu1  ;;  %v3603_v56 = vcombine.low %v257_v59, %v261_v39  ;;  %v3605_v24 = vcombine.low %v258_v47, %v262_v36 }
 0x225   :  { %v2717_v27 = vpop.f32.mrf.mxu0 }
 0x226   :  { %3760 = vtanh.f32 %v3004_v37  ;;  %v2718_v6 = vadd.f32 %v2717_v27, %v4571_v57  ;;  %v3006_v48 = vpop.f32.mrf.mxu1  ;;  %v3612_v37 = vcombine.high %v265_v20, %v269_v0 }
 0x227   :  { %v3755_v7 = vpop.eup %3754  ;;  %v2719_v63 = vpop.f32.mrf.mxu0 }
 0x228   :  { %3295 = vst [vmem:[%s5395_s3 + $0x28] sm:$0xff] %v3755_v7  ;;  %v3007_v58 = vadd.f32 %v3006_v48, %v2718_v6  ;;  %v3008_v32 = vpop.f32.mrf.mxu1  ;;  %v3611_v63 = vcombine.low %v265_v20, %v269_v0 }
 0x229   :  { %v2722_v18 = vpop.f32.mrf.mxu0  ;;  %2913 = vmatmul.mubr.bf16.gmra.mxu0 %v3595_v12  ;;  %v3614_v12 = vcombine.high %v266_v35, %v270_v42  ;;  %v3613_v32 = vcombine.low %v266_v35, %v270_v42 }
 0x22a   :  { %3762 = vtanh.f32 %v3007_v58  ;;  %v2723_v44 = vadd.f32 %v2722_v18, %v4580_v2  ;;  %v3011_v16 = vpop.f32.mrf.mxu1  ;;  %3202 = vmatmul.mubr.bf16.gmra.mxu1 %v3597_v21  ;;  %2920 = vmatprep.mubr.bf16.mxu0 %v3604_v52 }
 0x22b   :  { %v3757_v57 = vpop.eup %3756  ;;  %v2724_v4 = vpop.f32.mrf.mxu0  ;;  %3209 = vmatprep.mubr.bf16.mxu1 %v3606_v29 }
 0x22c   :  { %3296 = vst [vmem:[%s5395_s3 + $0x30] sm:$0xff] %v3757_v57  ;;  %v3012_v53 = vadd.f32 %v3011_v16, %v2723_v44  ;;  %v3013_v2 = vpop.f32.mrf.mxu1 }
 0x22d   :  { %v2725_v9 = vpop.f32.mrf.mxu0 }
 0x22e   :  { %3764 = vtanh.f32 %v3012_v53  ;;  %v2726_v14 = vadd.f32 %v2725_v9, %v4589_v15  ;;  %v3014_v34 = vpop.f32.mrf.mxu1 }
 0x22f   :  { %v3759_v43 = vpop.eup %3758  ;;  %v2727_v27 = vpop.f32.mrf.mxu0 }
 0x230   :  { %3297 = vst [vmem:[%s5395_s3 + $0x38] sm:$0xff] %v3759_v43  ;;  %v3015_v6 = vadd.f32 %v3014_v34, %v2726_v14  ;;  %v3016_v48 = vpop.f32.mrf.mxu1 }
 0x231   :  { %v2730_v21 = vpop.f32.mrf.mxu0  ;;  %2921 = vmatmul.mubr.bf16.gmra.mxu0 %v3603_v56 }
 0x232   :  { %3766 = vtanh.f32 %v3015_v6  ;;  %v2731_v59 = vadd.f32 %v2730_v21, %v4598_v26  ;;  %v3019_v39 = vpop.f32.mrf.mxu1  ;;  %3210 = vmatmul.mubr.bf16.gmra.mxu1 %v3605_v24  ;;  %2928 = vmatprep.mubr.bf16.mxu0 %v3612_v37 }
 0x233   :  { %v3761_v15 = vpop.eup %3760  ;;  %v2732_v47 = vpop.f32.mrf.mxu0  ;;  %3217 = vmatprep.mubr.bf16.mxu1 %v3614_v12 }
 0x234   :  { %3298 = vst [vmem:[%s5395_s3 + $0x40] sm:$0xff] %v3761_v15  ;;  %v3020_v36 = vadd.f32 %v3019_v39, %v2731_v59  ;;  %v3021_v52 = vpop.f32.mrf.mxu1 }
 0x235   :  { %v2733_v7 = vpop.f32.mrf.mxu0 }
 0x236   :  { %3768 = vtanh.f32 %v3020_v36  ;;  %v2734_v29 = vadd.f32 %v2733_v7, %v4607_v40  ;;  %v3022_v58 = vpop.f32.mrf.mxu1 }
 0x237   :  { %v3763_v26 = vpop.eup %3762  ;;  %v2735_v18 = vpop.f32.mrf.mxu0 }
 0x238   :  { %3299 = vst [vmem:[%s5395_s3 + $0x48] sm:$0xff] %v3763_v26  ;;  %v3023_v44 = vadd.f32 %v3022_v58, %v2734_v29  ;;  %v3024_v16 = vpop.f32.mrf.mxu1 }
 0x239   :  { %v2738_v57 = vpop.f32.mrf.mxu0  ;;  %2929 = vmatmul.mubr.bf16.gmra.mxu0 %v3611_v63 }
 0x23a   :  { %3770 = vtanh.f32 %v3023_v44  ;;  %v2739_v4 = vadd.f32 %v2738_v57, %v4616_v50  ;;  %v3027_v53 = vpop.f32.mrf.mxu1  ;;  %3218 = vmatmul.mubr.bf16.gmra.mxu1 %v3613_v32 }
 0x23b   :  { %v3765_v20 = vpop.eup %3764  ;;  %v2740_v0 = vpop.f32.mrf.mxu0 }
 0x23c   :  { %3300 = vst [vmem:[%s5395_s3 + $0x50] sm:$0xff] %v3765_v20  ;;  %v3028_v40 = vadd.f32 %v3027_v53, %v2739_v4  ;;  %v3029_v2 = vpop.f32.mrf.mxu1 }
 0x23d   :  { %v2741_v35 = vpop.f32.mrf.mxu0 }
 0x23e   :  { %3772 = vtanh.f32 %v3028_v40  ;;  %v2742_v42 = vadd.f32 %v2741_v35, %v4625_v1  ;;  %v3030_v9 = vpop.f32.mrf.mxu1 }
 0x23f   :  { %v3767_v56 = vpop.eup %3766  ;;  %v2743_v14 = vpop.f32.mrf.mxu0 }
 0x240   :  { %3301 = vst [vmem:[%s5395_s3 + $0x58] sm:$0xff] %v3767_v56  ;;  %v3031_v50 = vadd.f32 %v3030_v9, %v2742_v42  ;;  %v3032_v34 = vpop.f32.mrf.mxu1 }
 0x241   :  { %v2746_v24 = vpop.f32.mrf.mxu0 }
 0x242   :  { %3774 = vtanh.f32 %v3031_v50  ;;  %v2747_v37 = vadd.f32 %v2746_v24, %v4634_v10  ;;  %v3035_v43 = vpop.f32.mrf.mxu1 }
 0x243   :  { %v3769_v27 = vpop.eup %3768  ;;  %v2748_v12 = vpop.f32.mrf.mxu0 }
 0x244   :  { %3302 = vst [vmem:[%s5395_s3 + $0x60] sm:$0xff] %v3769_v27  ;;  %v3036_v1 = vadd.f32 %v3035_v43, %v2747_v37  ;;  %v3037_v6 = vpop.f32.mrf.mxu1 }
 0x245   :  { %v2749_v48 = vpop.f32.mrf.mxu0 }
 0x246   :  { %3776 = vtanh.f32 %v3036_v1  ;;  %v2750_v21 = vadd.f32 %v2749_v48, %v4643_v28  ;;  %v3038_v59 = vpop.f32.mrf.mxu1 }
 0x247   :  { %v3771_v39 = vpop.eup %3770  ;;  %v2751_v15 = vpop.f32.mrf.mxu0 }
 0x248   :  { %3303 = vst [vmem:[%s5395_s3 + $0x68] sm:$0xff] %v3771_v39  ;;  %v3039_v10 = vadd.f32 %v3038_v59, %v2750_v21  ;;  %v3040_v47 = vpop.f32.mrf.mxu1 }
 0x249   :  { %v2754_v36 = vpop.f32.mrf.mxu0 }
 0x24a   :  { %3778 = vtanh.f32 %v3039_v10  ;;  %v2755_v52 = vadd.f32 %v2754_v36, %v4652_v38  ;;  %v3043_v7 = vpop.f32.mrf.mxu1 }
 0x24b   :  { %v3773_v63 = vpop.eup %3772  ;;  %v2756_v29 = vpop.f32.mrf.mxu0 }
 0x24c   :  { %3304 = vst [vmem:[%s5395_s3 + $0x70] sm:$0xff] %v3773_v63  ;;  %v3044_v28 = vadd.f32 %v3043_v7, %v2755_v52  ;;  %v3045_v58 = vpop.f32.mrf.mxu1 }
 0x24d   :  { %v2757_v32 = vpop.f32.mrf.mxu0 }
 0x24e   :  { %3780 = vtanh.f32 %v3044_v28  ;;  %v2758_v26 = vadd.f32 %v2757_v32, %v4661_v54  ;;  %v3046_v18 = vpop.f32.mrf.mxu1 }
 0x24f   :  { %v3775_v44 = vpop.eup %3774  ;;  %v2759_v16 = vpop.f32.mrf.mxu0 }
 0x250   :  { %3305 = vst [vmem:[%s5395_s3 + $0x78] sm:$0xff] %v3775_v44  ;;  %v3047_v38 = vadd.f32 %v3046_v18, %v2758_v26  ;;  %v3048_v57 = vpop.f32.mrf.mxu1 }
 0x251   :  { %v2762_v4 = vpop.f32.mrf.mxu0 }
 0x252   :  { %3782 = vtanh.f32 %v3047_v38  ;;  %v2763_v53 = vadd.f32 %v2762_v4, %v4670_v3  ;;  %v3051_v20 = vpop.f32.mrf.mxu1 }
 0x253   :  { %v3777_v0 = vpop.eup %3776  ;;  %v2764_v40 = vpop.f32.mrf.mxu0 }
 0x254   :  { %3306 = vst [vmem:[%s5395_s3 + $0x80] sm:$0xff] %v3777_v0  ;;  %v3052_v54 = vadd.f32 %v3051_v20, %v2763_v53  ;;  %v3053_v2 = vpop.f32.mrf.mxu1 }
 0x255   :  { %v2765_v35 = vpop.f32.mrf.mxu0 }
 0x256   :  { %3784 = vtanh.f32 %v3052_v54  ;;  %v2766_v42 = vadd.f32 %v2765_v35, %v4679_v19  ;;  %v3054_v9 = vpop.f32.mrf.mxu1 }
 0x257   :  { %v3779_v56 = vpop.eup %3778  ;;  %v2767_v14 = vpop.f32.mrf.mxu0 }
 0x258   :  { %3307 = vst [vmem:[%s5395_s3 + $0x88] sm:$0xff] %v3779_v56  ;;  %v3055_v3 = vadd.f32 %v3054_v9, %v2766_v42  ;;  %v3056_v50 = vpop.f32.mrf.mxu1 }
 0x259   :  { %v2770_v34 = vpop.f32.mrf.mxu0 }
 0x25a   :  { %3786 = vtanh.f32 %v3055_v3  ;;  %v2771_v24 = vadd.f32 %v2770_v34, %v4688_v31  ;;  %v3059_v37 = vpop.f32.mrf.mxu1 }
 0x25b   :  { %v3781_v43 = vpop.eup %3780  ;;  %v2772_v27 = vpop.f32.mrf.mxu0 }
 0x25c   :  { %3308 = vst [vmem:[%s5395_s3 + $0x90] sm:$0xff] %v3781_v43  ;;  %v3060_v19 = vadd.f32 %v3059_v37, %v2771_v24  ;;  %v3061_v12 = vpop.f32.mrf.mxu1 }
 0x25d   :  { %v2773_v1 = vpop.f32.mrf.mxu0 }
 0x25e   :  { %3788 = vtanh.f32 %v3060_v19  ;;  %v2774_v6 = vadd.f32 %v2773_v1, %v4697_v49  ;;  %v3062_v48 = vpop.f32.mrf.mxu1 }
 0x25f   :  { %v3783_v21 = vpop.eup %3782  ;;  %v2775_v59 = vpop.f32.mrf.mxu0 }
 0x260   :  { %3309 = vst [vmem:[%s5395_s3 + $0x98] sm:$0xff] %v3783_v21  ;;  %v3063_v31 = vadd.f32 %v3062_v48, %v2774_v6  ;;  %v3064_v39 = vpop.f32.mrf.mxu1 }
 0x261   :  { %v2778_v15 = vpop.f32.mrf.mxu0 }
 0x262   :  { %3790 = vtanh.f32 %v3063_v31  ;;  %v2779_v10 = vadd.f32 %v2778_v15, %v4706_v60  ;;  %v3067_v47 = vpop.f32.mrf.mxu1 }
 0x263   :  { %v3785_v36 = vpop.eup %3784  ;;  %v2780_v52 = vpop.f32.mrf.mxu0 }
 0x264   :  { %3310 = vst [vmem:[%s5395_s3 + $0xa0] sm:$0xff] %v3785_v36  ;;  %v3068_v49 = vadd.f32 %v3067_v47, %v2779_v10  ;;  %v3069_v7 = vpop.f32.mrf.mxu1 }
 0x265   :  { %v2781_v63 = vpop.f32.mrf.mxu0 }
 0x266   :  { %3792 = vtanh.f32 %v3068_v49  ;;  %v2782_v29 = vadd.f32 %v2781_v63, %v4715_v17  ;;  %v3070_v28 = vpop.f32.mrf.mxu1 }
 0x267   :  { %v3787_v58 = vpop.eup %3786  ;;  %v2783_v32 = vpop.f32.mrf.mxu0 }
 0x268   :  { %3311 = vst [vmem:[%s5395_s3 + $0xa8] sm:$0xff] %v3787_v58  ;;  %v3071_v60 = vadd.f32 %v3070_v28, %v2782_v29  ;;  %v3072_v26 = vpop.f32.mrf.mxu1 }
 0x269   :  { %v2786_v18 = vpop.f32.mrf.mxu0 }
 0x26a   :  { %3794 = vtanh.f32 %v3071_v60  ;;  %v2787_v44 = vadd.f32 %v2786_v18, %v4724_v30  ;;  %v3075_v16 = vpop.f32.mrf.mxu1 }
 0x26b   :  { %v3789_v38 = vpop.eup %3788  ;;  %v2788_v57 = vpop.f32.mrf.mxu0 }
 0x26c   :  { %3312 = vst [vmem:[%s5395_s3 + $0xb0] sm:$0xff] %v3789_v38  ;;  %v3076_v17 = vadd.f32 %v3075_v16, %v2787_v44  ;;  %v3077_v4 = vpop.f32.mrf.mxu1 }
 0x26d   :  { %v2789_v53 = vpop.f32.mrf.mxu0 }
 0x26e   :  { %3796 = vtanh.f32 %v3076_v17  ;;  %v2790_v20 = vadd.f32 %v2789_v53, %v4733_v51  ;;  %v3078_v0 = vpop.f32.mrf.mxu1 }
 0x26f   :  { %v3791_v40 = vpop.eup %3790  ;;  %v2791_v54 = vpop.f32.mrf.mxu0 }
 0x270   :  { %3313 = vst [vmem:[%s5395_s3 + $0xb8] sm:$0xff] %v3791_v40  ;;  %v3079_v30 = vadd.f32 %v3078_v0, %v2790_v20  ;;  %v3080_v2 = vpop.f32.mrf.mxu1 }
 0x271   :  { %v2794_v35 = vpop.f32.mrf.mxu0 }
 0x272   :  { %3798 = vtanh.f32 %v3079_v30  ;;  %v2795_v42 = vadd.f32 %v2794_v35, %v4742_v62  ;;  %v3083_v9 = vpop.f32.mrf.mxu1 }
 0x273   :  { %v3793_v56 = vpop.eup %3792  ;;  %v2796_v14 = vpop.f32.mrf.mxu0 }
 0x274   :  { %3314 = vst [vmem:[%s5395_s3 + $0xc0] sm:$0xff] %v3793_v56  ;;  %v3084_v51 = vadd.f32 %v3083_v9, %v2795_v42  ;;  %v3085_v3 = vpop.f32.mrf.mxu1 }
 0x275   :  { %v2797_v50 = vpop.f32.mrf.mxu0 }
 0x276   :  { %3800 = vtanh.f32 %v3084_v51  ;;  %v2798_v34 = vadd.f32 %v2797_v50, %v4751_v22  ;;  %v3086_v24 = vpop.f32.mrf.mxu1 }
 0x277   :  { %v3795_v37 = vpop.eup %3794  ;;  %v2799_v43 = vpop.f32.mrf.mxu0 }
 0x278   :  { %3315 = vst [vmem:[%s5395_s3 + $0xc8] sm:$0xff] %v3795_v37  ;;  %v3087_v62 = vadd.f32 %v3086_v24, %v2798_v34  ;;  %v3088_v27 = vpop.f32.mrf.mxu1 }
 0x279   :  { %v2802_v19 = vpop.f32.mrf.mxu0 }
 0x27a   :  { %3802 = vtanh.f32 %v3087_v62  ;;  %v2803_v12 = vadd.f32 %v2802_v19, %v4760_v33  ;;  %v3091_v1 = vpop.f32.mrf.mxu1 }
 0x27b   :  { %v3797_v6 = vpop.eup %3796  ;;  %v2804_v48 = vpop.f32.mrf.mxu0 }
 0x27c   :  { %3316 = vst [vmem:[%s5395_s3 + $0xd0] sm:$0xff] %v3797_v6  ;;  %v3092_v22 = vadd.f32 %v3091_v1, %v2803_v12  ;;  %v3093_v21 = vpop.f32.mrf.mxu1 }
 0x27d   :  { %v2805_v59 = vpop.f32.mrf.mxu0 }
 0x27e   :  { %3804 = vtanh.f32 %v3092_v22  ;;  %v2806_v31 = vadd.f32 %v2805_v59, %v4769_v61  ;;  %v3094_v39 = vpop.f32.mrf.mxu1 }
 0x27f   :  { %v3799_v15 = vpop.eup %3798  ;;  %v2807_v10 = vpop.f32.mrf.mxu0 }
 0x280   :  { %3317 = vst [vmem:[%s5395_s3 + $0xd8] sm:$0xff] %v3799_v15  ;;  %v3095_v33 = vadd.f32 %v3094_v39, %v2806_v31  ;;  %v3096_v47 = vpop.f32.mrf.mxu1 }
 0x281   :  { %v2810_v36 = vpop.f32.mrf.mxu0 }
 0x282   :  { %3806 = vtanh.f32 %v3095_v33  ;;  %v2811_v52 = vadd.f32 %v2810_v36, %v4778_v5  ;;  %v3099_v49 = vpop.f32.mrf.mxu1 }
 0x283   :  { %v3801_v7 = vpop.eup %3800  ;;  %v2812_v63 = vpop.f32.mrf.mxu0 }
 0x284   :  { %3318 = vst [vmem:[%s5395_s3 + $0xe0] sm:$0xff] %v3801_v7  ;;  %v3100_v61 = vadd.f32 %v3099_v49, %v2811_v52  ;;  %v3101_v29 = vpop.f32.mrf.mxu1  ;;  %v5418_v49 = vld [vmem:[#allocation2_spill] sm:$0xff] }
 0x285   :  { %v2813_v28 = vpop.f32.mrf.mxu0 }
 0x286   :  { %3808 = vtanh.f32 %v3100_v61  ;;  %v2814_v58 = vadd.f32 %v2813_v28, %v4787_v45  ;;  %v3102_v32 = vpop.f32.mrf.mxu1 }
 0x287   :  { %v3803_v60 = vpop.eup %3802  ;;  %v2815_v26 = vpop.f32.mrf.mxu0 }
 0x288   :  { %3319 = vst [vmem:[%s5395_s3 + $0xe8] sm:$0xff] %v3803_v60  ;;  %v3103_v5 = vadd.f32 %v3102_v32, %v2814_v58  ;;  %v3104_v18 = vpop.f32.mrf.mxu1  ;;  %v5419_v32 = vld [vmem:[#allocation3_spill] sm:$0xff] }
 0x289   :  { %v2818_v44 = vpop.f32.mrf.mxu0 }
 0x28a   :  { %3810 = vtanh.f32 %v3103_v5  ;;  %v2819_v16 = vadd.f32 %v2818_v44, %v4796_v41  ;;  %v3107_v38 = vpop.f32.mrf.mxu1 }
 0x28b   :  { %v3805_v57 = vpop.eup %3804  ;;  %v2820_v17 = vpop.f32.mrf.mxu0 }
 0x28c   :  { %3320 = vst [vmem:[%s5395_s3 + $0xf0] sm:$0xff] %v3805_v57  ;;  %v3108_v45 = vadd.f32 %v3107_v38, %v2819_v16  ;;  %v3109_v4 = vpop.f32.mrf.mxu1  ;;  %v5420_v57 = vld [vmem:[#allocation4_spill] sm:$0xff] }
 0x28d   :  { %v2821_v53 = vpop.f32.mrf.mxu0 }
 0x28e   :  { %3812 = vtanh.f32 %v3108_v45  ;;  %v2822_v20 = vadd.f32 %v2821_v53, %v4805_v23  ;;  %v3110_v0 = vpop.f32.mrf.mxu1 }
 0x28f   :  { %v3807_v40 = vpop.eup %3806  ;;  %v2823_v54 = vpop.f32.mrf.mxu0 }
 0x290   :  { %3321 = vst [vmem:[%s5395_s3 + $0xf8] sm:$0xff] %v3807_v40  ;;  %v3111_v41 = vadd.f32 %v3110_v0, %v2822_v20  ;;  %v3112_v30 = vpop.f32.mrf.mxu1  ;;  %v5421_v54 = vld [vmem:[#allocation5_spill] sm:$0xff] }
 0x291   :  { %v2826_v2 = vpop.f32.mrf.mxu0 }
 0x292   :  { %3814 = vtanh.f32 %v3111_v41  ;;  %v2827_v35 = vadd.f32 %v2826_v2, %v4814_v13  ;;  %v3115_v42 = vpop.f32.mrf.mxu1 }
 0x293   :  { %v3809_v9 = vpop.eup %3808  ;;  %v2828_v56 = vpop.f32.mrf.mxu0 }
 0x294   :  { %3322 = vst [vmem:[%s5395_s3 + $0x100] sm:$0xff] %v3809_v9  ;;  %v3116_v23 = vadd.f32 %v3115_v42, %v2827_v35  ;;  %v3117_v14 = vpop.f32.mrf.mxu1 }
 0x295   :  { %v2829_v51 = vpop.f32.mrf.mxu0 }
 0x296   :  { %3816 = vtanh.f32 %v3116_v23  ;;  %v2830_v3 = vadd.f32 %v2829_v51, %v4823_v11  ;;  %v3118_v50 = vpop.f32.mrf.mxu1  ;;  %v5422_v23 = vld [vmem:[#allocation6_spill] sm:$0xff] }
 0x297   :  { %v3811_v34 = vpop.eup %3810  ;;  %v2831_v24 = vpop.f32.mrf.mxu0 }
 0x298   :  { %3323 = vst [vmem:[%s5395_s3 + $0x108] sm:$0xff] %v3811_v34  ;;  %v3119_v13 = vadd.f32 %v3118_v50, %v2830_v3  ;;  %v3120_v37 = vpop.f32.mrf.mxu1 }
 0x299   :  { %v2834_v43 = vpop.f32.mrf.mxu0  ;;  %v5423_v37 = vld [vmem:[#allocation7_spill] sm:$0xff] }
 0x29a   :  { %3818 = vtanh.f32 %v3119_v13  ;;  %v2835_v62 = vadd.f32 %v2834_v43, %v4832_v55  ;;  %v3123_v27 = vpop.f32.mrf.mxu1 }
 0x29b   :  { %v3813_v19 = vpop.eup %3812  ;;  %v2836_v12 = vpop.f32.mrf.mxu0 }
 0x29c   :  { %3324 = vst [vmem:[%s5395_s3 + $0x110] sm:$0xff] %v3813_v19  ;;  %v3124_v11 = vadd.f32 %v3123_v27, %v2835_v62  ;;  %v3125_v1 = vpop.f32.mrf.mxu1 }
 0x29d   :  { %v2837_v6 = vpop.f32.mrf.mxu0 }
 0x29e   :  { %3820 = vtanh.f32 %v3124_v11  ;;  %v2838_v48 = vadd.f32 %v2837_v6, %v4841_v8  ;;  %v3126_v22 = vpop.f32.mrf.mxu1  ;;  %v5424_v6 = vld [vmem:[#allocation8_spill] sm:$0xff] }
 0x29f   :  { %v3815_v21 = vpop.eup %3814  ;;  %v2839_v59 = vpop.f32.mrf.mxu0 }
 0x2a0   :  { %3325 = vst [vmem:[%s5395_s3 + $0x118] sm:$0xff] %v3815_v21  ;;  %v3127_v55 = vadd.f32 %v3126_v22, %v2838_v48  ;;  %v3128_v31 = vpop.f32.mrf.mxu1 }
 0x2a1   :  { %v2842_v39 = vpop.f32.mrf.mxu0 }
 0x2a2   :  { %3822 = vtanh.f32 %v3127_v55  ;;  %v2843_v15 = vadd.f32 %v2842_v39, %v4850_v46  ;;  %v3131_v10 = vpop.f32.mrf.mxu1 }
 0x2a3   :  { %v3817_v33 = vpop.eup %3816  ;;  %v2844_v47 = vpop.f32.mrf.mxu0 }
 0x2a4   :  { %3326 = vst [vmem:[%s5395_s3 + $0x120] sm:$0xff] %v3817_v33  ;;  %v3132_v8 = vadd.f32 %v3131_v10, %v2843_v15  ;;  %v3133_v36 = vpop.f32.mrf.mxu1  ;;  %v5425_v15 = vld [vmem:[#allocation9_spill] sm:$0xff] }
 0x2a5   :  { %v2845_v52 = vpop.f32.mrf.mxu0 }
 0x2a6   :  { %3824 = vtanh.f32 %v3132_v8  ;;  %v2846_v7 = vadd.f32 %v2845_v52, %v5418_v49  ;;  %v3134_v63 = vpop.f32.mrf.mxu1 }
 0x2a7   :  { %v3819_v61 = vpop.eup %3818  ;;  %v2847_v29 = vpop.f32.mrf.mxu0 }
 0x2a8   :  { %3327 = vst [vmem:[%s5395_s3 + $0x128] sm:$0xff] %v3819_v61  ;;  %v3135_v46 = vadd.f32 %v3134_v63, %v2846_v7  ;;  %v3136_v28 = vpop.f32.mrf.mxu1  ;;  %v5426_v7 = vld [vmem:[#allocation10_spill] sm:$0xff] }
 0x2a9   :  { %v2850_v58 = vpop.f32.mrf.mxu0 }
 0x2aa   :  { %3826 = vtanh.f32 %v3135_v46  ;;  %v2851_v60 = vadd.f32 %v2850_v58, %v5419_v32  ;;  %v3139_v26 = vpop.f32.mrf.mxu1 }
 0x2ab   :  { %v3821_v5 = vpop.eup %3820  ;;  %v2852_v18 = vpop.f32.mrf.mxu0 }
 0x2ac   :  { %3328 = vst [vmem:[%s5395_s3 + $0x130] sm:$0xff] %v3821_v5  ;;  %v3140_v44 = vadd.f32 %v3139_v26, %v2851_v60  ;;  %v3141_v16 = vpop.f32.mrf.mxu1  ;;  %v5427_v60 = vld [vmem:[#allocation11_spill] sm:$0xff] }
 0x2ad   :  { %v2853_v38 = vpop.f32.mrf.mxu0 }
 0x2ae   :  { %3828 = vtanh.f32 %v3140_v44  ;;  %v2854_v17 = vadd.f32 %v2853_v38, %v5420_v57  ;;  %v3142_v45 = vpop.f32.mrf.mxu1 }
 0x2af   :  { %v3823_v4 = vpop.eup %3822  ;;  %v2855_v53 = vpop.f32.mrf.mxu0 }
 0x2b0   :  { %3329 = vst [vmem:[%s5395_s3 + $0x138] sm:$0xff] %v3823_v4  ;;  %v3143_v20 = vadd.f32 %v3142_v45, %v2854_v17  ;;  %v3144_v0 = vpop.f32.mrf.mxu1  ;;  %v5428_v17 = vld [vmem:[#allocation12_spill] sm:$0xff] }
 0x2b1   :  { %v2858_v40 = vpop.f32.mrf.mxu0 }
 0x2b2   :  { %3830 = vtanh.f32 %v3143_v20  ;;  %v2859_v41 = vadd.f32 %v2858_v40, %v5421_v54  ;;  %v3147_v30 = vpop.f32.mrf.mxu1 }
 0x2b3   :  { %v3825_v2 = vpop.eup %3824  ;;  %v2860_v35 = vpop.f32.mrf.mxu0 }
 0x2b4   :  { %3330 = vst [vmem:[%s5395_s3 + $0x140] sm:$0xff] %v3825_v2  ;;  %v3148_v42 = vadd.f32 %v3147_v30, %v2859_v41  ;;  %v3149_v9 = vpop.f32.mrf.mxu1  ;;  %v5429_v41 = vld [vmem:[#allocation13_spill] sm:$0xff] }
 0x2b5   :  { %v2861_v56 = vpop.f32.mrf.mxu0 }
 0x2b6   :  { %3832 = vtanh.f32 %v3148_v42  ;;  %v2862_v14 = vadd.f32 %v2861_v56, %v5422_v23  ;;  %v3150_v51 = vpop.f32.mrf.mxu1 }
 0x2b7   :  { %v3827_v3 = vpop.eup %3826  ;;  %v2863_v50 = vpop.f32.mrf.mxu0 }
 0x2b8   :  { %3331 = vst [vmem:[%s5395_s3 + $0x148] sm:$0xff] %v3827_v3  ;;  %v3151_v34 = vadd.f32 %v3150_v51, %v2862_v14  ;;  %v3152_v24 = vpop.f32.mrf.mxu1  ;;  %v5430_v14 = vld [vmem:[#allocation14_spill] sm:$0xff] }
 0x2b9   :  { %v2866_v13 = vpop.f32.mrf.mxu0 }
 0x2ba   :  { %3834 = vtanh.f32 %v3151_v34  ;;  %v2867_v43 = vadd.f32 %v2866_v13, %v5423_v37  ;;  %v3155_v62 = vpop.f32.mrf.mxu1 }
 0x2bb   :  { %v3829_v27 = vpop.eup %3828  ;;  %v2868_v19 = vpop.f32.mrf.mxu0 }
 0x2bc   :  { %3332 = vst [vmem:[%s5395_s3 + $0x150] sm:$0xff] %v3829_v27  ;;  %v3156_v12 = vadd.f32 %v3155_v62, %v2867_v43  ;;  %v3157_v11 = vpop.f32.mrf.mxu1  ;;  %v5431_v43 = vld [vmem:[#allocation15_spill] sm:$0xff] }
 0x2bd   :  { %v2869_v1 = vpop.f32.mrf.mxu0 }
 0x2be   :  { %3836 = vtanh.f32 %v3156_v12  ;;  %v2870_v48 = vadd.f32 %v2869_v1, %v5424_v6  ;;  %v3158_v22 = vpop.f32.mrf.mxu1 }
 0x2bf   :  { %v3831_v21 = vpop.eup %3830  ;;  %v2871_v59 = vpop.f32.mrf.mxu0 }
 0x2c0   :  { %3333 = vst [vmem:[%s5395_s3 + $0x158] sm:$0xff] %v3831_v21  ;;  %v3159_v55 = vadd.f32 %v3158_v22, %v2870_v48  ;;  %v3160_v31 = vpop.f32.mrf.mxu1  ;;  %v5432_v48 = vld [vmem:[#allocation16_spill] sm:$0xff] }
 0x2c1   :  { %v2874_v39 = vpop.f32.mrf.mxu0 }
 0x2c2   :  { %3838 = vtanh.f32 %v3159_v55  ;;  %v2875_v10 = vadd.f32 %v2874_v39, %v5425_v15  ;;  %v3163_v33 = vpop.f32.mrf.mxu1 }
 0x2c3   :  { %v3833_v47 = vpop.eup %3832  ;;  %v2876_v8 = vpop.f32.mrf.mxu0 }
 0x2c4   :  { %3334 = vst [vmem:[%s5395_s3 + $0x160] sm:$0xff] %v3833_v47  ;;  %v3164_v36 = vadd.f32 %v3163_v33, %v2875_v10  ;;  %v3165_v52 = vpop.f32.mrf.mxu1  ;;  %v5433_v10 = vld [vmem:[#allocation17_spill] sm:$0xff] }
 0x2c5   :  { %v2877_v49 = vpop.f32.mrf.mxu0 }
 0x2c6   :  { %3840 = vtanh.f32 %v3164_v36  ;;  %v2878_v63 = vadd.f32 %v2877_v49, %v5426_v7  ;;  %v3166_v61 = vpop.f32.mrf.mxu1 }
 0x2c7   :  { %v3835_v29 = vpop.eup %3834  ;;  %v2879_v46 = vpop.f32.mrf.mxu0 }
 0x2c8   :  { %3335 = vst [vmem:[%s5395_s3 + $0x168] sm:$0xff] %v3835_v29  ;;  %v3167_v28 = vadd.f32 %v3166_v61, %v2878_v63  ;;  %v3168_v58 = vpop.f32.mrf.mxu1  ;;  %v5434_v63 = vld [vmem:[#allocation18_spill] sm:$0xff] }
 0x2c9   :  { %v2882_v32 = vpop.f32.mrf.mxu0 }
 0x2ca   :  { %3842 = vtanh.f32 %v3167_v28  ;;  %v2883_v26 = vadd.f32 %v2882_v32, %v5427_v60  ;;  %v3171_v5 = vpop.f32.mrf.mxu1 }
 0x2cb   :  { %v3837_v18 = vpop.eup %3836  ;;  %v2884_v44 = vpop.f32.mrf.mxu0 }
 0x2cc   :  { %3336 = vst [vmem:[%s5395_s3 + $0x170] sm:$0xff] %v3837_v18  ;;  %v3172_v16 = vadd.f32 %v3171_v5, %v2883_v26  ;;  %v3173_v38 = vpop.f32.mrf.mxu1  ;;  %v5435_v26 = vld [vmem:[#allocation19_spill] sm:$0xff] }
 0x2cd   :  { %v2885_v57 = vpop.f32.mrf.mxu0 }
 0x2ce   :  { %3844 = vtanh.f32 %v3172_v16  ;;  %v2886_v45 = vadd.f32 %v2885_v57, %v5428_v17  ;;  %v3174_v4 = vpop.f32.mrf.mxu1 }
 0x2cf   :  { %v3839_v53 = vpop.eup %3838  ;;  %v2887_v20 = vpop.f32.mrf.mxu0 }
 0x2d0   :  { %3337 = vst [vmem:[%s5395_s3 + $0x178] sm:$0xff] %v3839_v53  ;;  %v3175_v0 = vadd.f32 %v3174_v4, %v2886_v45  ;;  %v3176_v40 = vpop.f32.mrf.mxu1  ;;  %v5436_v45 = vld [vmem:[#allocation20_spill] sm:$0xff] }
 0x2d1   :  { %v2890_v54 = vpop.f32.mrf.mxu0 }
 0x2d2   :  { %3846 = vtanh.f32 %v3175_v0  ;;  %v2891_v30 = vadd.f32 %v2890_v54, %v5429_v41  ;;  %v3179_v2 = vpop.f32.mrf.mxu1 }
 0x2d3   :  { %v3841_v35 = vpop.eup %3840  ;;  %v2892_v42 = vpop.f32.mrf.mxu0 }
 0x2d4   :  { %3338 = vst [vmem:[%s5395_s3 + $0x180] sm:$0xff] %v3841_v35  ;;  %v3180_v9 = vadd.f32 %v3179_v2, %v2891_v30  ;;  %v3181_v56 = vpop.f32.mrf.mxu1  ;;  %v5437_v30 = vld [vmem:[#allocation21_spill] sm:$0xff] }
 0x2d5   :  { %v2893_v23 = vpop.f32.mrf.mxu0 }
 0x2d6   :  { %3848 = vtanh.f32 %v3180_v9  ;;  %v2894_v51 = vadd.f32 %v2893_v23, %v5430_v14  ;;  %v3182_v3 = vpop.f32.mrf.mxu1 }
 0x2d7   :  { %v3843_v50 = vpop.eup %3842  ;;  %v2895_v34 = vpop.f32.mrf.mxu0 }
 0x2d8   :  { %3339 = vst [vmem:[%s5395_s3 + $0x188] sm:$0xff] %v3843_v50  ;;  %v3183_v24 = vadd.f32 %v3182_v3, %v2894_v51  ;;  %v3184_v13 = vpop.f32.mrf.mxu1  ;;  %v5438_v51 = vld [vmem:[#allocation22_spill] sm:$0xff] }
 0x2d9   :  { %v2898_v37 = vpop.f32.mrf.mxu0 }
 0x2da   :  { %3850 = vtanh.f32 %v3183_v24  ;;  %v2899_v62 = vadd.f32 %v2898_v37, %v5431_v43  ;;  %v3187_v27 = vpop.f32.mrf.mxu1 }
 0x2db   :  { %v3845_v19 = vpop.eup %3844  ;;  %v2900_v12 = vpop.f32.mrf.mxu0 }
 0x2dc   :  { %3340 = vst [vmem:[%s5395_s3 + $0x190] sm:$0xff] %v3845_v19  ;;  %v3188_v11 = vadd.f32 %v3187_v27, %v2899_v62  ;;  %v3189_v1 = vpop.f32.mrf.mxu1  ;;  %v5439_v62 = vld [vmem:[#allocation23_spill] sm:$0xff] }
 0x2dd   :  { %v2901_v6 = vpop.f32.mrf.mxu0 }
 0x2de   :  { %3852 = vtanh.f32 %v3188_v11  ;;  %v2902_v22 = vadd.f32 %v2901_v6, %v5432_v48  ;;  %v3190_v21 = vpop.f32.mrf.mxu1 }
 0x2df   :  { %v3847_v59 = vpop.eup %3846  ;;  %v2903_v55 = vpop.f32.mrf.mxu0 }
 0x2e0   :  { %3341 = vst [vmem:[%s5395_s3 + $0x198] sm:$0xff] %v3847_v59  ;;  %v3191_v31 = vadd.f32 %v3190_v21, %v2902_v22  ;;  %v3192_v39 = vpop.f32.mrf.mxu1 }
 0x2e1   :  { %v2906_v15 = vpop.f32.mrf.mxu0 }
 0x2e2   :  { %3854 = vtanh.f32 %v3191_v31  ;;  %v2907_v33 = vadd.f32 %v2906_v15, %v5433_v10  ;;  %v3195_v47 = vpop.f32.mrf.mxu1 }
 0x2e3   :  { %v3849_v8 = vpop.eup %3848  ;;  %v2908_v36 = vpop.f32.mrf.mxu0 }
 0x2e4   :  { %3342 = vst [vmem:[%s5395_s3 + $0x1a0] sm:$0xff] %v3849_v8  ;;  %v3196_v52 = vadd.f32 %v3195_v47, %v2907_v33  ;;  %v3197_v49 = vpop.f32.mrf.mxu1 }
 0x2e5   :  { %v2909_v7 = vpop.f32.mrf.mxu0 }
 0x2e6   :  { %3856 = vtanh.f32 %v3196_v52  ;;  %v2910_v61 = vadd.f32 %v2909_v7, %v5434_v63  ;;  %v3198_v29 = vpop.f32.mrf.mxu1 }
 0x2e7   :  { %v3851_v46 = vpop.eup %3850  ;;  %v2911_v28 = vpop.f32.mrf.mxu0 }
 0x2e8   :  { %3343 = vst [vmem:[%s5395_s3 + $0x1a8] sm:$0xff] %v3851_v46  ;;  %v3199_v58 = vadd.f32 %v3198_v29, %v2910_v61  ;;  %v3200_v32 = vpop.f32.mrf.mxu1 }
 0x2e9   :  { %v2914_v60 = vpop.f32.mrf.mxu0 }
 0x2ea   :  { %3858 = vtanh.f32 %v3199_v58  ;;  %v2915_v5 = vadd.f32 %v2914_v60, %v5435_v26  ;;  %v3203_v18 = vpop.f32.mrf.mxu1 }
 0x2eb   :  { %v3853_v44 = vpop.eup %3852  ;;  %v2916_v16 = vpop.f32.mrf.mxu0 }
 0x2ec   :  { %3344 = vst [vmem:[%s5395_s3 + $0x1b0] sm:$0xff] %v3853_v44  ;;  %v3204_v38 = vadd.f32 %v3203_v18, %v2915_v5  ;;  %v3205_v57 = vpop.f32.mrf.mxu1 }
 0x2ed   :  { %v2917_v17 = vpop.f32.mrf.mxu0 }
 0x2ee   :  { %3860 = vtanh.f32 %v3204_v38  ;;  %v2918_v4 = vadd.f32 %v2917_v17, %v5436_v45  ;;  %v3206_v53 = vpop.f32.mrf.mxu1 }
 0x2ef   :  { %v3855_v20 = vpop.eup %3854  ;;  %v2919_v0 = vpop.f32.mrf.mxu0 }
 0x2f0   :  { %3345 = vst [vmem:[%s5395_s3 + $0x1b8] sm:$0xff] %v3855_v20  ;;  %v3207_v40 = vadd.f32 %v3206_v53, %v2918_v4  ;;  %v3208_v54 = vpop.f32.mrf.mxu1 }
 0x2f1   :  { %v2922_v41 = vpop.f32.mrf.mxu0 }
 0x2f2   :  { %3862 = vtanh.f32 %v3207_v40  ;;  %v2923_v2 = vadd.f32 %v2922_v41, %v5437_v30  ;;  %v3211_v35 = vpop.f32.mrf.mxu1 }
 0x2f3   :  { %v3857_v42 = vpop.eup %3856  ;;  %v2924_v9 = vpop.f32.mrf.mxu0 }
 0x2f4   :  { %3346 = vst [vmem:[%s5395_s3 + $0x1c0] sm:$0xff] %v3857_v42  ;;  %v3212_v56 = vadd.f32 %v3211_v35, %v2923_v2  ;;  %v3213_v23 = vpop.f32.mrf.mxu1 }
 0x2f5   :  { %v2925_v14 = vpop.f32.mrf.mxu0 }
 0x2f6   :  { %3864 = vtanh.f32 %v3212_v56  ;;  %v2926_v3 = vadd.f32 %v2925_v14, %v5438_v51  ;;  %v3214_v50 = vpop.f32.mrf.mxu1 }
 0x2f7   :  { %v3859_v34 = vpop.eup %3858  ;;  %v2927_v24 = vpop.f32.mrf.mxu0 }
 0x2f8   :  { %3347 = vst [vmem:[%s5395_s3 + $0x1c8] sm:$0xff] %v3859_v34  ;;  %v3215_v13 = vadd.f32 %v3214_v50, %v2926_v3  ;;  %v3216_v37 = vpop.f32.mrf.mxu1 }
 0x2f9   :  { %v2930_v43 = vpop.f32.mrf.mxu0 }
 0x2fa   :  { %3866 = vtanh.f32 %v3215_v13  ;;  %v2931_v27 = vadd.f32 %v2930_v43, %v5439_v62  ;;  %v3219_v19 = vpop.f32.mrf.mxu1 }
 0x2fb   :  { %v3861_v12 = vpop.eup %3860  ;;  %v2932_v11 = vpop.f32.mrf.mxu0 }
 0x2fc   :  { %3348 = vst [vmem:[%s5395_s3 + $0x1d0] sm:$0xff] %v3861_v12  ;;  %v3220_v1 = vadd.f32 %v3219_v19, %v2931_v27  ;;  %v3221_v6 = vpop.f32.mrf.mxu1 }
 0x2fd   :  { %v2933_v48 = vpop.f32.mrf.mxu0 }
 0x2fe   :  { %3868 = vtanh.f32 %v3220_v1  ;;  %v2934_v22 = vadd.f32 %v2933_v48, %v5062_v25  ;;  %v3222_v21 = vpop.f32.mrf.mxu1 }
 0x2ff   :  { %v3863_v59 = vpop.eup %3862  ;;  %v2935_v55 = vpop.f32.mrf.mxu0 }
 0x300   :  { %3349 = vst [vmem:[%s5395_s3 + $0x1d8] sm:$0xff] %v3863_v59  ;;  %v3223_v31 = vadd.f32 %v3222_v21, %v2934_v22  ;;  %v3224_v39 = vpop.f32.mrf.mxu1 }
 0x302   :  { %3870 = vtanh.f32 %v3223_v31 }
 0x303   :  { %v3865_v15 = vpop.eup %3864 }
 0x304   :  { %3350 = vst [vmem:[%s5395_s3 + $0x1e0] sm:$0xff] %v3865_v15 }
 0x307   :  { %v3867_v10 = vpop.eup %3866 }
 0x308   :  { %3351 = vst [vmem:[%s5395_s3 + $0x1e8] sm:$0xff] %v3867_v10 }
 0x30b   :  { %v3869_v25 = vpop.eup %3868 }
 0x30c   :  { %3352 = vst [vmem:[%s5395_s3 + $0x1f0] sm:$0xff] %v3869_v25 }
 0x30f   :  { %v3871_v33 = vpop.eup %3870 }
 0x310   :  { %3353 = vst [vmem:[%s5395_s3 + $0x1f8] sm:$0xff] %v3871_v33 }

</bundles_post_ra>
